<compile_context>
chip_gen: v6e
topology: v6e:2x2x1
jax: 0.10.0
libtpu: 0.0.40
codegen_flags: <defaults>
</compile_context>

<pallas_src>
import functools

import jax
import jax.numpy as jnp
from jax.experimental import pallas as pl
from jax.experimental.pallas import tpu as pltpu  # noqa: F401  (TPU backend assumed)


# ----------------------------------------------------------------------------
# Small helpers.
# ----------------------------------------------------------------------------
def _rup(v, m):
    return ((v + m - 1) // m) * m


def _full_spec(shape):
    # Single-block spec: whole (padded) array resident in VMEM for the call.
    return pl.BlockSpec(shape, lambda: (0,) * len(shape))


def _pad2(a, rows, cols):
    a = jnp.asarray(a, jnp.float32)
    return jnp.pad(a, ((0, rows - a.shape[0]), (0, cols - a.shape[1])))


def _mm(a, b):
    """MXU matmul: bf16 operands, f32 accumulation."""
    return jnp.dot(a.astype(jnp.bfloat16), b.astype(jnp.bfloat16),
                   preferred_element_type=jnp.float32)


# ----------------------------------------------------------------------------
# Fused branch kernel:
#   SuperGAT('MX', heads=1) -> ReLU -> SuperGAT -> ReLU -> GCN -> ReLU
#   -> global mean pool -> fc_g1 -> ReLU -> fc_g2
# All activations stay in VMEM/vregs; output is the (B, output_dim) embedding.
# ----------------------------------------------------------------------------
def _branch_kernel(x_ref, adj_ref, anorm_ref, pool_ref,
                   w1_ref, al1_ref, ar1_ref, b1_ref,
                   w2_ref, al2_ref, ar2_ref, b2_ref,
                   w3_ref, b3_ref,
                   wg1_ref, bg1_ref,
                   wg2_ref, bg2_ref,
                   o_ref, *, neg_slope):
    adj = adj_ref[...]
    mask = adj > 0.0

    def supergat(h_in, w, att_l, att_r, bias):
        h = _mm(h_in, w)                                               # (N, C)
        # logits[i, j] = h_i . h_j   (MX attention)
        logits = jax.lax.dot_general(
            h.astype(jnp.bfloat16), h.astype(jnp.bfloat16),
            (((1,), (1,)), ((), ())), preferred_element_type=jnp.float32)
        s_l = jnp.sum(h * att_l, axis=-1, keepdims=True)               # (N, 1): h_j . att_l
        s_r = jnp.sum(h * att_r, axis=-1, keepdims=True)               # (N, 1): h_i . att_r
        alpha = (s_r + s_l.T) * jax.nn.sigmoid(logits)                 # alpha[i, j]
        alpha = jnp.where(alpha >= 0.0, alpha, neg_slope * alpha)      # leaky_relu(0.2)
        alpha = jnp.where(mask, alpha, -1e30)
        alpha = alpha - jnp.max(alpha, axis=-1, keepdims=True)
        e = jnp.where(mask, jnp.exp(alpha), 0.0)
        denom = jnp.maximum(jnp.sum(e, axis=-1, keepdims=True), 1e-30)  # >=1 (self-loops)
        attn = e * pl.reciprocal(denom, approx=True)                    # EUP divide
        return jnp.maximum(_mm(attn, h) + bias, 0.0)

    h = supergat(x_ref[...], w1_ref[...], al1_ref[...], ar1_ref[...], b1_ref[...])
    h = supergat(h, w2_ref[...], al2_ref[...], ar2_ref[...], b2_ref[...])

    # GCNConv + ReLU + global mean pool, fused.
    h = _mm(h, w3_ref[...])
    h = jnp.maximum(_mm(anorm_ref[...], h) + b3_ref[...], 0.0)
    p = _mm(pool_ref[...], h)                                          # (B, 4*f_pad)

    # Branch MLP (dropout == identity at inference).
    g = jnp.maximum(_mm(p, wg1_ref[...]) + bg1_ref[...], 0.0)
    o_ref[...] = _mm(g, wg2_ref[...]) + bg2_ref[...]


def _branch_cost(n, b, bp):
    f0, f1 = bp["w1"].shape
    f2 = bp["w2"].shape[1]
    f3 = bp["w3"].shape[1]
    g1 = bp["wg1"].shape[1]
    g2 = bp["wg2"].shape[1]
    flops = (2 * n * f0 * f1 + 4 * n * n * f1
             + 2 * n * f1 * f2 + 4 * n * n * f2
             + 2 * n * f2 * f3 + 2 * n * n * f3
             + 2 * b * n * f3 + 2 * b * f3 * g1 + 2 * b * g1 * g2)
    transcendentals = 4 * n * n                    # sigmoid + exp per SuperGAT layer
    bytes_accessed = 4 * (n * f0 + 3 * n * n + b * n
                          + f0 * f1 + f1 * f2 + f2 * f3 + f3 * g1 + g1 * g2
                          + 3 * (f1 + f2) + f3 + g1 + g2 + b * g2)
    return pl.CostEstimate(flops=flops, transcendentals=transcendentals,
                           bytes_accessed=bytes_accessed)


def branch_embed(x, edge_index, batch, num_graphs, bp, *, neg_slope=0.2):
    n, _ = x.shape
    n_pad = max(_rup(n, 8), 8)
    f_pad = bp["w1"].shape[0]
    x_pad = _pad2(x, n_pad, f_pad)

    adj = build_adj(edge_index, n_pad)          # self-loops for all (incl. padded) nodes
    anorm = gcn_norm_adj(adj)
    pool = pool_matrix(batch, num_graphs, n_pad)  # padded nodes get zero pool weight

    out_dim = bp["wg2"].shape[1]
    args = (x_pad, adj, anorm, pool,
            bp["w1"], bp["al1"], bp["ar1"], bp["b1"],
            bp["w2"], bp["al2"], bp["ar2"], bp["b2"],
            bp["w3"], bp["b3"],
            bp["wg1"], bp["bg1"],
            bp["wg2"], bp["bg2"])
    return pl.pallas_call(
        functools.partial(_branch_kernel, neg_slope=neg_slope),
        out_shape=jax.ShapeDtypeStruct((num_graphs, out_dim), jnp.float32),
        in_specs=[_full_spec(a.shape) for a in args],
        out_specs=_full_spec((num_graphs, out_dim)),
        cost_estimate=_branch_cost(n_pad, num_graphs, bp),
    )(*args)


# ----------------------------------------------------------------------------
# Fused head kernel: concat (folded into split fc1 weight) -> fc1 -> ReLU
#                    -> fc2 -> ReLU -> out     (output padded to 128 lanes).
# ----------------------------------------------------------------------------
def _head_kernel(xl_ref, xp_ref, w1l_ref, w1p_ref, b1_ref,
                 w2_ref, b2_ref, w3_ref, b3_ref, o_ref):
    h = _mm(xl_ref[...], w1l_ref[...]) + _mm(xp_ref[...], w1p_ref[...]) + b1_ref[...]
    h = jnp.maximum(h, 0.0)
    h = jnp.maximum(_mm(h, w2_ref[...]) + b2_ref[...], 0.0)
    o_ref[...] = _mm(h, w3_ref[...]) + b3_ref[...]


def head_forward(xl, xp, hp, n_output):
    b = xl.shape[0]
    n_pad = hp["w3"].shape[1]
    args = (xl, xp, hp["w1l"], hp["w1p"], hp["b1"],
            hp["w2"], hp["b2"], hp["w3"], hp["b3"])
    out = pl.pallas_call(
        _head_kernel,
        out_shape=jax.ShapeDtypeStruct((b, n_pad), jnp.float32),
        in_specs=[_full_spec(a.shape) for a in args],
        out_specs=_full_spec((b, n_pad)),
    )(*args)
    return out[:, :n_output]


# ----------------------------------------------------------------------------
# Graph preprocessing (plain JAX glue).
# ----------------------------------------------------------------------------
def build_adj(edge_index, num_nodes_pad):
    """Dense A[dst, src] = 1 at padded size, self-loops removed then re-added
    (padded rows get a self-loop so edge-softmax rows are never empty)."""
    src, dst = edge_index[0], edge_index[1]
    a = jnp.zeros((num_nodes_pad, num_nodes_pad), jnp.float32).at[dst, src].set(1.0)
    a = a * (1.0 - jnp.eye(num_nodes_pad, dtype=jnp.float32))
    return a + jnp.eye(num_nodes_pad, dtype=jnp.float32)


def gcn_norm_adj(a_hat):
    deg = jnp.sum(a_hat, axis=1)
    dinv = jax.lax.rsqrt(jnp.maximum(deg, 1e-12))
    return a_hat * dinv[:, None] * dinv[None, :]


def pool_matrix(batch, num_graphs, num_nodes_pad):
    n = batch.shape[0]
    batch_pad = jnp.concatenate(
        [batch.astype(jnp.int32),
         jnp.full((num_nodes_pad - n,), num_graphs, jnp.int32)])  # sentinel -> zero weight
    onehot = (batch_pad[None, :] == jnp.arange(num_graphs)[:, None]).astype(jnp.float32)
    counts = jnp.sum(onehot, axis=1, keepdims=True)
    return onehot / jnp.maximum(counts, 1.0)            # (B, N_pad) mean-pool operator


# ----------------------------------------------------------------------------
# Parameters: init at module shapes, then zero-pad to 128-multiples once.
# ----------------------------------------------------------------------------
def _glorot(key, shape):
    fan_in, fan_out = shape[0], shape[-1]
    scale = jnp.sqrt(6.0 / (fan_in + fan_out))
    return jax.random.uniform(key, shape, jnp.float32, -scale, scale)


def init_params(key, n_output=1, num_features_pro=54, num_features_lig=78, output_dim=128):
    keys = iter(jax.random.split(key, 64))
    p = {}

    def supergat_p(f_in, f_out):
        return {"w": _glorot(next(keys), (f_in, f_out)),
                "att_l": _glorot(next(keys), (1, f_out)),
                "att_r": _glorot(next(keys), (1, f_out)),
                "b": jnp.zeros((f_out,), jnp.float32)}

    def dense_p(f_in, f_out):
        return {"w": _glorot(next(keys), (f_in, f_out)),
                "b": jnp.zeros((f_out,), jnp.float32)}

    fl, fp = num_features_lig, num_features_pro
    p["lig_c1"] = supergat_p(fl, fl)
    p["lig_c2"] = supergat_p(fl, fl * 2)
    p["lig_c3"] = dense_p(fl * 2, fl * 4)
    p["lig_fc_g1"] = dense_p(fl * 4, 1024)
    p["lig_fc_g2"] = dense_p(1024, output_dim)
    p["pro_c1"] = supergat_p(fp, fp)
    p["pro_c2"] = supergat_p(fp, fp * 2)
    p["pro_c3"] = dense_p(fp * 2, fp * 4)
    p["pro_fc_g1"] = dense_p(fp * 4, 1024)
    p["pro_fc_g2"] = dense_p(1024, output_dim)
    p["fc1"] = dense_p(2 * output_dim, 1024)
    p["fc2"] = dense_p(1024, 512)
    p["out"] = dense_p(512, n_output)
    return p


def pad_params(params, output_dim, n_output):
    def sg(p):
        f_in, f_out = p["w"].shape
        fi, fo = _rup(f_in, 128), _rup(f_out, 128)
        return dict(w=_pad2(p["w"], fi, fo),
                    al=_pad2(p["att_l"], 1, fo),
                    ar=_pad2(p["att_r"], 1, fo),
                    b=_pad2(p["b"].reshape(1, -1), 1, fo))

    def dn(p):
        f_in, f_out = p["w"].shape
        fi, fo = _rup(f_in, 128), _rup(f_out, 128)
        return dict(w=_pad2(p["w"], fi, fo), b=_pad2(p["b"].reshape(1, -1), 1, fo))

    def branch(prefix):
        c1, c2 = sg(params[prefix + "_c1"]), sg(params[prefix + "_c2"])
        c3 = dn(params[prefix + "_c3"])
        g1 = dn(params[prefix + "_fc_g1"])
        g2 = dn(params[prefix + "_fc_g2"])
        return dict(w1=c1["w"], al1=c1["al"], ar1=c1["ar"], b1=c1["b"],
                    w2=c2["w"], al2=c2["al"], ar2=c2["ar"], b2=c2["b"],
                    w3=c3["w"], b3=c3["b"],
                    wg1=g1["w"], bg1=g1["b"],
                    wg2=g2["w"], bg2=g2["b"])

    w1 = jnp.asarray(params["fc1"]["w"], jnp.float32)
    head = dict(
        w1l=w1[:output_dim], w1p=w1[output_dim:],
        b1=params["fc1"]["b"].reshape(1, -1).astype(jnp.float32),
        w2=params["fc2"]["w"].astype(jnp.float32),
        b2=params["fc2"]["b"].reshape(1, -1).astype(jnp.float32),
        w3=_pad2(params["out"]["w"], _rup(512, 128), _rup(n_output, 128)),
        b3=_pad2(params["out"]["b"].reshape(1, -1), 1, _rup(n_output, 128)),
    )
    return dict(lig=branch("lig"), pro=branch("pro"), head=head)


# ----------------------------------------------------------------------------
# Full forward pass (inference: dropout == identity).
# ----------------------------------------------------------------------------
def supergat_gcn_forward(padded, lig_x, lig_edge_index, lig_batch,
                         pro_x, pro_edge_index, pro_batch, num_graphs, n_output=1):
    # ligand branch (fused: SuperGAT x2 -> GCN -> mean-pool -> fc_g1 -> fc_g2)
    x = branch_embed(lig_x, lig_edge_index, lig_batch, num_graphs, padded["lig"])
    # protein branch
    xt = branch_embed(pro_x, pro_edge_index, pro_batch, num_graphs, padded["pro"])
    # joint head (fused: fc1 -> fc2 -> out), concat folded into split fc1 weights
    return head_forward(x, xt, padded["head"], n_output)       # (B, n_output)


# ----------------------------------------------------------------------------
# Synthetic example data.
# ----------------------------------------------------------------------------
def ring_edge_index(graph_sizes):
    src, dst = [], []
    start = 0
    for n in graph_sizes:
        for k in range(n):
            a = start + k
            b = start + (k + 1) % n
            src += [a, b]
            dst += [b, a]
        start += n
    return jnp.array([src, dst], dtype=jnp.int32)


def batch_vector(graph_sizes):
    return jnp.concatenate([jnp.full((n,), g, jnp.int32) for g, n in enumerate(graph_sizes)])


if __name__ == "__main__":
    key = jax.random.PRNGKey(0)
    k_par, k_lig, k_pro = jax.random.split(key, 3)

    NUM_FEATURES_LIG, NUM_FEATURES_PRO = 78, 54
    OUTPUT_DIM, N_OUTPUT = 128, 1
    lig_sizes = [10, 10]   # 2 ligand graphs, 20 nodes total
    pro_sizes = [12, 12]   # 2 protein graphs, 24 nodes total
    num_graphs = 2

    lig_x = jax.random.normal(k_lig, (sum(lig_sizes), NUM_FEATURES_LIG), jnp.float32)
    pro_x = jax.random.normal(k_pro, (sum(pro_sizes), NUM_FEATURES_PRO), jnp.float32)
    lig_edge_index = ring_edge_index(lig_sizes)
    pro_edge_index = ring_edge_index(pro_sizes)
    lig_batch = batch_vector(lig_sizes)
    pro_batch = batch_vector(pro_sizes)

    params = init_params(k_par, n_output=N_OUTPUT,
                         num_features_pro=NUM_FEATURES_PRO,
                         num_features_lig=NUM_FEATURES_LIG,
                         output_dim=OUTPUT_DIM)
    padded = pad_params(params, OUTPUT_DIM, N_OUTPUT)

    fwd = jax.jit(supergat_gcn_forward, static_argnames=("num_graphs", "n_output"))
    out = fwd(padded, lig_x, lig_edge_index, lig_batch,
              pro_x, pro_edge_index, pro_batch,
              num_graphs=num_graphs, n_output=N_OUTPUT)
    out = jax.block_until_ready(out)
    assert out.shape == (num_graphs, N_OUTPUT) and out.dtype == jnp.float32
    assert bool(jnp.all(jnp.isfinite(out)))
    print("KERNEL_OK")
</pallas_src>

<mosaic_0001>
module attributes {stable_mosaic.version = 11 : i64} {
  func.func @_head_kernel(%arg0: memref<2x128xf32, #tpu.memory_space<vmem>>, %arg1: memref<2x128xf32, #tpu.memory_space<vmem>>, %arg2: memref<128x1024xf32, #tpu.memory_space<vmem>>, %arg3: memref<128x1024xf32, #tpu.memory_space<vmem>>, %arg4: memref<1x1024xf32, #tpu.memory_space<vmem>>, %arg5: memref<1024x512xf32, #tpu.memory_space<vmem>>, %arg6: memref<1x512xf32, #tpu.memory_space<vmem>>, %arg7: memref<512x128xf32, #tpu.memory_space<vmem>>, %arg8: memref<1x128xf32, #tpu.memory_space<vmem>>, %arg9: memref<2x128xf32, #tpu.memory_space<vmem>>) attributes {dimension_semantics = [], scalar_prefetch = 0 : i64, scratch_operands = 0 : i64, tpu.core_type = #tpu.core_type<tc>} {
    %c0 = arith.constant 0 : index
    %c0_0 = arith.constant 0 : index
    %0 = vector.load %arg0[%c0, %c0_0] : memref<2x128xf32, #tpu.memory_space<vmem>>, vector<2x128xf32>
    %c0_1 = arith.constant 0 : index
    %c0_2 = arith.constant 0 : index
    %1 = vector.load %arg2[%c0_1, %c0_2] : memref<128x1024xf32, #tpu.memory_space<vmem>>, vector<128x1024xf32>
    %2 = arith.truncf %0 : vector<2x128xf32> to vector<2x128xbf16>
    %3 = arith.truncf %1 : vector<128x1024xf32> to vector<128x1024xbf16>
    %cst = arith.constant dense<0.000000e+00> : vector<2x1024xf32>
    %4 = tpu.matmul %2, %3, %cst {dimension_numbers = #tpu.dot_dimension_numbers<[1], [0], [0], [1], [0, 0, 1, 1], [], []>} : vector<2x128xbf16>, vector<128x1024xbf16>, vector<2x1024xf32> -> vector<2x1024xf32>
    %c0_3 = arith.constant 0 : index
    %c0_4 = arith.constant 0 : index
    %5 = vector.load %arg1[%c0_3, %c0_4] : memref<2x128xf32, #tpu.memory_space<vmem>>, vector<2x128xf32>
    %c0_5 = arith.constant 0 : index
    %c0_6 = arith.constant 0 : index
    %6 = vector.load %arg3[%c0_5, %c0_6] : memref<128x1024xf32, #tpu.memory_space<vmem>>, vector<128x1024xf32>
    %7 = arith.truncf %5 : vector<2x128xf32> to vector<2x128xbf16>
    %8 = arith.truncf %6 : vector<128x1024xf32> to vector<128x1024xbf16>
    %cst_7 = arith.constant dense<0.000000e+00> : vector<2x1024xf32>
    %9 = tpu.matmul %7, %8, %cst_7 {dimension_numbers = #tpu.dot_dimension_numbers<[1], [0], [0], [1], [0, 0, 1, 1], [], []>} : vector<2x128xbf16>, vector<128x1024xbf16>, vector<2x1024xf32> -> vector<2x1024xf32>
    %10 = arith.addf %4, %9 : vector<2x1024xf32>
    %c0_8 = arith.constant 0 : index
    %c0_9 = arith.constant 0 : index
    %11 = vector.load %arg4[%c0_8, %c0_9] : memref<1x1024xf32, #tpu.memory_space<vmem>>, vector<1x1024xf32>
    %12 = vector.broadcast %11 : vector<1x1024xf32> to vector<2x1024xf32>
    %13 = arith.addf %10, %12 : vector<2x1024xf32>
    %cst_10 = arith.constant 0.000000e+00 : f32
    %14 = vector.broadcast %cst_10 : f32 to vector<2x1024xf32>
    %15 = arith.maximumf %13, %14 : vector<2x1024xf32>
    %c0_11 = arith.constant 0 : index
    %c0_12 = arith.constant 0 : index
    %16 = vector.load %arg5[%c0_11, %c0_12] : memref<1024x512xf32, #tpu.memory_space<vmem>>, vector<1024x512xf32>
    %17 = arith.truncf %15 : vector<2x1024xf32> to vector<2x1024xbf16>
    %18 = arith.truncf %16 : vector<1024x512xf32> to vector<1024x512xbf16>
    %cst_13 = arith.constant dense<0.000000e+00> : vector<2x512xf32>
    %19 = tpu.matmul %17, %18, %cst_13 {dimension_numbers = #tpu.dot_dimension_numbers<[1], [0], [0], [1], [0, 0, 1, 1], [], []>} : vector<2x1024xbf16>, vector<1024x512xbf16>, vector<2x512xf32> -> vector<2x512xf32>
    %c0_14 = arith.constant 0 : index
    %c0_15 = arith.constant 0 : index
    %20 = vector.load %arg6[%c0_14, %c0_15] : memref<1x512xf32, #tpu.memory_space<vmem>>, vector<1x512xf32>
    %21 = vector.broadcast %20 : vector<1x512xf32> to vector<2x512xf32>
    %22 = arith.addf %19, %21 : vector<2x512xf32>
    %cst_16 = arith.constant 0.000000e+00 : f32
    %23 = vector.broadcast %cst_16 : f32 to vector<2x512xf32>
    %24 = arith.maximumf %22, %23 : vector<2x512xf32>
    %c0_17 = arith.constant 0 : index
    %c0_18 = arith.constant 0 : index
    %25 = vector.load %arg7[%c0_17, %c0_18] : memref<512x128xf32, #tpu.memory_space<vmem>>, vector<512x128xf32>
    %26 = arith.truncf %24 : vector<2x512xf32> to vector<2x512xbf16>
    %27 = arith.truncf %25 : vector<512x128xf32> to vector<512x128xbf16>
    %cst_19 = arith.constant dense<0.000000e+00> : vector<2x128xf32>
    %28 = tpu.matmul %26, %27, %cst_19 {dimension_numbers = #tpu.dot_dimension_numbers<[1], [0], [0], [1], [0, 0, 1, 1], [], []>} : vector<2x512xbf16>, vector<512x128xbf16>, vector<2x128xf32> -> vector<2x128xf32>
    %c0_20 = arith.constant 0 : index
    %c0_21 = arith.constant 0 : index
    %29 = vector.load %arg8[%c0_20, %c0_21] : memref<1x128xf32, #tpu.memory_space<vmem>>, vector<1x128xf32>
    %30 = vector.broadcast %29 : vector<1x128xf32> to vector<2x128xf32>
    %31 = arith.addf %28, %30 : vector<2x128xf32>
    %c0_22 = arith.constant 0 : index
    %c0_23 = arith.constant 0 : index
    %32 = vector.load %arg9[%c0_22, %c0_23] : memref<2x128xf32, #tpu.memory_space<vmem>>, vector<2x128xf32>
    tpu.vector_store %arg9[%c0_22, %c0_23], %31 {strides = array<i32>} : memref<2x128xf32, #tpu.memory_space<vmem>>, vector<2x128xf32>,
    return
  }
}

module attributes {stable_mosaic.version = 11 : i64} {
  func.func @_branch_kernel(%arg0: memref<24x128xf32, #tpu.memory_space<vmem>>, %arg1: memref<24x24xf32, #tpu.memory_space<vmem>>, %arg2: memref<24x24xf32, #tpu.memory_space<vmem>>, %arg3: memref<2x24xf32, #tpu.memory_space<vmem>>, %arg4: memref<128x128xf32, #tpu.memory_space<vmem>>, %arg5: memref<1x128xf32, #tpu.memory_space<vmem>>, %arg6: memref<1x128xf32, #tpu.memory_space<vmem>>, %arg7: memref<1x128xf32, #tpu.memory_space<vmem>>, %arg8: memref<128x256xf32, #tpu.memory_space<vmem>>, %arg9: memref<1x256xf32, #tpu.memory_space<vmem>>, %arg10: memref<1x256xf32, #tpu.memory_space<vmem>>, %arg11: memref<1x256xf32, #tpu.memory_space<vmem>>, %arg12: memref<256x384xf32, #tpu.memory_space<vmem>>, %arg13: memref<1x384xf32, #tpu.memory_space<vmem>>, %arg14: memref<384x1024xf32, #tpu.memory_space<vmem>>, %arg15: memref<1x1024xf32, #tpu.memory_space<vmem>>, %arg16: memref<1024x128xf32, #tpu.memory_space<vmem>>, %arg17: memref<1x128xf32, #tpu.memory_space<vmem>>, %arg18: memref<2x128xf32, #tpu.memory_space<vmem>>) attributes {dimension_semantics = [], scalar_prefetch = 0 : i64, scratch_operands = 0 : i64, tpu.core_type = #tpu.core_type<tc>} {
    %c0 = arith.constant 0 : index
    %c0_0 = arith.constant 0 : index
    %0 = vector.load %arg1[%c0, %c0_0] : memref<24x24xf32, #tpu.memory_space<vmem>>, vector<24x24xf32>
    %cst = arith.constant 0.000000e+00 : f32
    %1 = vector.broadcast %cst : f32 to vector<24x24xf32>
    %2 = arith.cmpf ogt, %0, %1 : vector<24x24xf32>
    %c0_1 = arith.constant 0 : index
    %c0_2 = arith.constant 0 : index
    %3 = vector.load %arg0[%c0_1, %c0_2] : memref<24x128xf32, #tpu.memory_space<vmem>>, vector<24x128xf32>
    %c0_3 = arith.constant 0 : index
    %c0_4 = arith.constant 0 : index
    %4 = vector.load %arg4[%c0_3, %c0_4] : memref<128x128xf32, #tpu.memory_space<vmem>>, vector<128x128xf32>
    %c0_5 = arith.constant 0 : index
    %c0_6 = arith.constant 0 : index
    %5 = vector.load %arg5[%c0_5, %c0_6] : memref<1x128xf32, #tpu.memory_space<vmem>>, vector<1x128xf32>
    %c0_7 = arith.constant 0 : index
    %c0_8 = arith.constant 0 : index
    %6 = vector.load %arg6[%c0_7, %c0_8] : memref<1x128xf32, #tpu.memory_space<vmem>>, vector<1x128xf32>
    %c0_9 = arith.constant 0 : index
    %c0_10 = arith.constant 0 : index
    %7 = vector.load %arg7[%c0_9, %c0_10] : memref<1x128xf32, #tpu.memory_space<vmem>>, vector<1x128xf32>
    %8 = arith.truncf %3 : vector<24x128xf32> to vector<24x128xbf16>
    %9 = arith.truncf %4 : vector<128x128xf32> to vector<128x128xbf16>
    %cst_11 = arith.constant dense<0.000000e+00> : vector<24x128xf32>
    %10 = tpu.matmul %8, %9, %cst_11 {dimension_numbers = #tpu.dot_dimension_numbers<[1], [0], [0], [1], [0, 0, 1, 1], [], []>} : vector<24x128xbf16>, vector<128x128xbf16>, vector<24x128xf32> -> vector<24x128xf32>
    %11 = arith.truncf %10 : vector<24x128xf32> to vector<24x128xbf16>
    %12 = arith.truncf %10 : vector<24x128xf32> to vector<24x128xbf16>
    %cst_12 = arith.constant dense<0.000000e+00> : vector<24x24xf32>
    %13 = tpu.matmul %11, %12, %cst_12 {dimension_numbers = #tpu.dot_dimension_numbers<[1], [1], [0], [0], [0, 0, 1, 0], [], []>} : vector<24x128xbf16>, vector<24x128xbf16>, vector<24x24xf32> -> vector<24x24xf32>
    %14 = vector.broadcast %5 : vector<1x128xf32> to vector<24x128xf32>
    %15 = arith.mulf %10, %14 : vector<24x128xf32>
    %cst_13 = arith.constant dense<0.000000e+00> : vector<24xf32>
    %16 = vector.multi_reduction <add>, %15, %cst_13 [1] : vector<24x128xf32> to vector<24xf32>
    %17 = vector.shape_cast %16 : vector<24xf32> to vector<24x1xf32>
    %18 = vector.broadcast %6 : vector<1x128xf32> to vector<24x128xf32>
    %19 = arith.mulf %10, %18 : vector<24x128xf32>
    %cst_14 = arith.constant dense<0.000000e+00> : vector<24xf32>
    %20 = vector.multi_reduction <add>, %19, %cst_14 [1] : vector<24x128xf32> to vector<24xf32>
    %21 = vector.shape_cast %20 : vector<24xf32> to vector<24x1xf32>
    %22 = tpu.transpose %17, [1, 0] : vector<24x1xf32> -> vector<1x24xf32>
    %23 = vector.broadcast %21 : vector<24x1xf32> to vector<24x24xf32>
    %24 = vector.broadcast %22 : vector<1x24xf32> to vector<24x24xf32>
    %25 = arith.addf %23, %24 : vector<24x24xf32>
    %26 = arith.negf %13 : vector<24x24xf32>
    %27 = math.exp %26 : vector<24x24xf32>
    %cst_15 = arith.constant 1.000000e+00 : f32
    %28 = vector.broadcast %cst_15 : f32 to vector<24x24xf32>
    %29 = arith.addf %28, %27 : vector<24x24xf32>
    %30 = arith.divf %28, %29 : vector<24x24xf32>
    %31 = arith.mulf %25, %30 : vector<24x24xf32>
    %cst_16 = arith.constant 0.000000e+00 : f32
    %32 = vector.broadcast %cst_16 : f32 to vector<24x24xf32>
    %33 = arith.cmpf oge, %31, %32 : vector<24x24xf32>
    %cst_17 = arith.constant 2.000000e-01 : f32
    %34 = vector.broadcast %cst_17 : f32 to vector<24x24xf32>
    %35 = arith.mulf %34, %31 : vector<24x24xf32>
    %36 = arith.select %33, %31, %35 : vector<24x24xi1>, vector<24x24xf32>
    %cst_18 = arith.constant -1.000000e+30 : f32
    %37 = vector.broadcast %cst_18 : f32 to vector<24x24xf32>
    %38 = arith.select %2, %36, %37 : vector<24x24xi1>, vector<24x24xf32>
    %cst_19 = arith.constant dense<0xFF800000> : vector<24xf32>
    %39 = vector.multi_reduction <maximumf>, %38, %cst_19 [1] : vector<24x24xf32> to vector<24xf32>
    %40 = vector.shape_cast %39 : vector<24xf32> to vector<24x1xf32>
    %41 = vector.broadcast %40 : vector<24x1xf32> to vector<24x24xf32>
    %42 = arith.subf %38, %41 : vector<24x24xf32>
    %43 = math.exp %42 : vector<24x24xf32>
    %cst_20 = arith.constant 0.000000e+00 : f32
    %44 = vector.broadcast %cst_20 : f32 to vector<24x24xf32>
    %45 = arith.select %2, %43, %44 : vector<24x24xi1>, vector<24x24xf32>
    %cst_21 = arith.constant dense<0.000000e+00> : vector<24xf32>
    %46 = vector.multi_reduction <add>, %45, %cst_21 [1] : vector<24x24xf32> to vector<24xf32>
    %47 = vector.shape_cast %46 : vector<24xf32> to vector<24x1xf32>
    %cst_22 = arith.constant 1.000000e-30 : f32
    %48 = vector.broadcast %cst_22 : f32 to vector<24x1xf32>
    %49 = arith.maximumf %47, %48 : vector<24x1xf32>
    %50 = tpu.reciprocal %49 {approx = true} : vector<24x1xf32> -> vector<24x1xf32>
    %51 = vector.broadcast %50 : vector<24x1xf32> to vector<24x24xf32>
    %52 = arith.mulf %45, %51 : vector<24x24xf32>
    %53 = arith.truncf %52 : vector<24x24xf32> to vector<24x24xbf16>
    %54 = arith.truncf %10 : vector<24x128xf32> to vector<24x128xbf16>
    %cst_23 = arith.constant dense<0.000000e+00> : vector<24x128xf32>
    %55 = tpu.matmul %53, %54, %cst_23 {dimension_numbers = #tpu.dot_dimension_numbers<[1], [0], [0], [1], [0, 0, 1, 1], [], []>} : vector<24x24xbf16>, vector<24x128xbf16>, vector<24x128xf32> -> vector<24x128xf32>
    %56 = vector.broadcast %7 : vector<1x128xf32> to vector<24x128xf32>
    %57 = arith.addf %55, %56 : vector<24x128xf32>
    %cst_24 = arith.constant 0.000000e+00 : f32
    %58 = vector.broadcast %cst_24 : f32 to vector<24x128xf32>
    %59 = arith.maximumf %57, %58 : vector<24x128xf32>
    %c0_25 = arith.constant 0 : index
    %c0_26 = arith.constant 0 : index
    %60 = vector.load %arg8[%c0_25, %c0_26] : memref<128x256xf32, #tpu.memory_space<vmem>>, vector<128x256xf32>
    %c0_27 = arith.constant 0 : index
    %c0_28 = arith.constant 0 : index
    %61 = vector.load %arg9[%c0_27, %c0_28] : memref<1x256xf32, #tpu.memory_space<vmem>>, vector<1x256xf32>
    %c0_29 = arith.constant 0 : index
    %c0_30 = arith.constant 0 : index
    %62 = vector.load %arg10[%c0_29, %c0_30] : memref<1x256xf32, #tpu.memory_space<vmem>>, vector<1x256xf32>
    %c0_31 = arith.constant 0 : index
    %c0_32 = arith.constant 0 : index
    %63 = vector.load %arg11[%c0_31, %c0_32] : memref<1x256xf32, #tpu.memory_space<vmem>>, vector<1x256xf32>
    %64 = arith.truncf %59 : vector<24x128xf32> to vector<24x128xbf16>
    %65 = arith.truncf %60 : vector<128x256xf32> to vector<128x256xbf16>
    %cst_33 = arith.constant dense<0.000000e+00> : vector<24x256xf32>
    %66 = tpu.matmul %64, %65, %cst_33 {dimension_numbers = #tpu.dot_dimension_numbers<[1], [0], [0], [1], [0, 0, 1, 1], [], []>} : vector<24x128xbf16>, vector<128x256xbf16>, vector<24x256xf32> -> vector<24x256xf32>
    %67 = arith.truncf %66 : vector<24x256xf32> to vector<24x256xbf16>
    %68 = arith.truncf %66 : vector<24x256xf32> to vector<24x256xbf16>
    %cst_34 = arith.constant dense<0.000000e+00> : vector<24x24xf32>
    %69 = tpu.matmul %67, %68, %cst_34 {dimension_numbers = #tpu.dot_dimension_numbers<[1], [1], [0], [0], [0, 0, 1, 0], [], []>} : vector<24x256xbf16>, vector<24x256xbf16>, vector<24x24xf32> -> vector<24x24xf32>
    %70 = vector.broadcast %61 : vector<1x256xf32> to vector<24x256xf32>
    %71 = arith.mulf %66, %70 : vector<24x256xf32>
    %cst_35 = arith.constant dense<0.000000e+00> : vector<24xf32>
    %72 = vector.multi_reduction <add>, %71, %cst_35 [1] : vector<24x256xf32> to vector<24xf32>
    %73 = vector.shape_cast %72 : vector<24xf32> to vector<24x1xf32>
    %74 = vector.broadcast %62 : vector<1x256xf32> to vector<24x256xf32>
    %75 = arith.mulf %66, %74 : vector<24x256xf32>
    %cst_36 = arith.constant dense<0.000000e+00> : vector<24xf32>
    %76 = vector.multi_reduction <add>, %75, %cst_36 [1] : vector<24x256xf32> to vector<24xf32>
    %77 = vector.shape_cast %76 : vector<24xf32> to vector<24x1xf32>
    %78 = tpu.transpose %73, [1, 0] : vector<24x1xf32> -> vector<1x24xf32>
    %79 = vector.broadcast %77 : vector<24x1xf32> to vector<24x24xf32>
    %80 = vector.broadcast %78 : vector<1x24xf32> to vector<24x24xf32>
    %81 = arith.addf %79, %80 : vector<24x24xf32>
    %82 = arith.negf %69 : vector<24x24xf32>
    %83 = math.exp %82 : vector<24x24xf32>
    %cst_37 = arith.constant 1.000000e+00 : f32
    %84 = vector.broadcast %cst_37 : f32 to vector<24x24xf32>
    %85 = arith.addf %84, %83 : vector<24x24xf32>
    %86 = arith.divf %84, %85 : vector<24x24xf32>
    %87 = arith.mulf %81, %86 : vector<24x24xf32>
    %cst_38 = arith.constant 0.000000e+00 : f32
    %88 = vector.broadcast %cst_38 : f32 to vector<24x24xf32>
    %89 = arith.cmpf oge, %87, %88 : vector<24x24xf32>
    %cst_39 = arith.constant 2.000000e-01 : f32
    %90 = vector.broadcast %cst_39 : f32 to vector<24x24xf32>
    %91 = arith.mulf %90, %87 : vector<24x24xf32>
    %92 = arith.select %89, %87, %91 : vector<24x24xi1>, vector<24x24xf32>
    %cst_40 = arith.constant -1.000000e+30 : f32
    %93 = vector.broadcast %cst_40 : f32 to vector<24x24xf32>
    %94 = arith.select %2, %92, %93 : vector<24x24xi1>, vector<24x24xf32>
    %cst_41 = arith.constant dense<0xFF800000> : vector<24xf32>
    %95 = vector.multi_reduction <maximumf>, %94, %cst_41 [1] : vector<24x24xf32> to vector<24xf32>
    %96 = vector.shape_cast %95 : vector<24xf32> to vector<24x1xf32>
    %97 = vector.broadcast %96 : vector<24x1xf32> to vector<24x24xf32>
    %98 = arith.subf %94, %97 : vector<24x24xf32>
    %99 = math.exp %98 : vector<24x24xf32>
    %cst_42 = arith.constant 0.000000e+00 : f32
    %100 = vector.broadcast %cst_42 : f32 to vector<24x24xf32>
    %101 = arith.select %2, %99, %100 : vector<24x24xi1>, vector<24x24xf32>
    %cst_43 = arith.constant dense<0.000000e+00> : vector<24xf32>
    %102 = vector.multi_reduction <add>, %101, %cst_43 [1] : vector<24x24xf32> to vector<24xf32>
    %103 = vector.shape_cast %102 : vector<24xf32> to vector<24x1xf32>
    %cst_44 = arith.constant 1.000000e-30 : f32
    %104 = vector.broadcast %cst_44 : f32 to vector<24x1xf32>
    %105 = arith.maximumf %103, %104 : vector<24x1xf32>
    %106 = tpu.reciprocal %105 {approx = true} : vector<24x1xf32> -> vector<24x1xf32>
    %107 = vector.broadcast %106 : vector<24x1xf32> to vector<24x24xf32>
    %108 = arith.mulf %101, %107 : vector<24x24xf32>
    %109 = arith.truncf %108 : vector<24x24xf32> to vector<24x24xbf16>
    %110 = arith.truncf %66 : vector<24x256xf32> to vector<24x256xbf16>
    %cst_45 = arith.constant dense<0.000000e+00> : vector<24x256xf32>
    %111 = tpu.matmul %109, %110, %cst_45 {dimension_numbers = #tpu.dot_dimension_numbers<[1], [0], [0], [1], [0, 0, 1, 1], [], []>} : vector<24x24xbf16>, vector<24x256xbf16>, vector<24x256xf32> -> vector<24x256xf32>
    %112 = vector.broadcast %63 : vector<1x256xf32> to vector<24x256xf32>
    %113 = arith.addf %111, %112 : vector<24x256xf32>
    %cst_46 = arith.constant 0.000000e+00 : f32
    %114 = vector.broadcast %cst_46 : f32 to vector<24x256xf32>
    %115 = arith.maximumf %113, %114 : vector<24x256xf32>
    %c0_47 = arith.constant 0 : index
    %c0_48 = arith.constant 0 : index
    %116 = vector.load %arg12[%c0_47, %c0_48] : memref<256x384xf32, #tpu.memory_space<vmem>>, vector<256x384xf32>
    %117 = arith.truncf %115 : vector<24x256xf32> to vector<24x256xbf16>
    %118 = arith.truncf %116 : vector<256x384xf32> to vector<256x384xbf16>
    %cst_49 = arith.constant dense<0.000000e+00> : vector<24x384xf32>
    %119 = tpu.matmul %117, %118, %cst_49 {dimension_numbers = #tpu.dot_dimension_numbers<[1], [0], [0], [1], [0, 0, 1, 1], [], []>} : vector<24x256xbf16>, vector<256x384xbf16>, vector<24x384xf32> -> vector<24x384xf32>
    %c0_50 = arith.constant 0 : index
    %c0_51 = arith.constant 0 : index
    %120 = vector.load %arg2[%c0_50, %c0_51] : memref<24x24xf32, #tpu.memory_space<vmem>>, vector<24x24xf32>
    %121 = arith.truncf %120 : vector<24x24xf32> to vector<24x24xbf16>
    %122 = arith.truncf %119 : vector<24x384xf32> to vector<24x384xbf16>
    %cst_52 = arith.constant dense<0.000000e+00> : vector<24x384xf32>
    %123 = tpu.matmul %121, %122, %cst_52 {dimension_numbers = #tpu.dot_dimension_numbers<[1], [0], [0], [1], [0, 0, 1, 1], [], []>} : vector<24x24xbf16>, vector<24x384xbf16>, vector<24x384xf32> -> vector<24x384xf32>
    %c0_53 = arith.constant 0 : index
    %c0_54 = arith.constant 0 : index
    %124 = vector.load %arg13[%c0_53, %c0_54] : memref<1x384xf32, #tpu.memory_space<vmem>>, vector<1x384xf32>
    %125 = vector.broadcast %124 : vector<1x384xf32> to vector<24x384xf32>
    %126 = arith.addf %123, %125 : vector<24x384xf32>
    %cst_55 = arith.constant 0.000000e+00 : f32
    %127 = vector.broadcast %cst_55 : f32 to vector<24x384xf32>
    %128 = arith.maximumf %126, %127 : vector<24x384xf32>
    %c0_56 = arith.constant 0 : index
    %c0_57 = arith.constant 0 : index
    %129 = vector.load %arg3[%c0_56, %c0_57] : memref<2x24xf32, #tpu.memory_space<vmem>>, vector<2x24xf32>
    %130 = arith.truncf %129 : vector<2x24xf32> to vector<2x24xbf16>
    %131 = arith.truncf %128 : vector<24x384xf32> to vector<24x384xbf16>
    %cst_58 = arith.constant dense<0.000000e+00> : vector<2x384xf32>
    %132 = tpu.matmul %130, %131, %cst_58 {dimension_numbers = #tpu.dot_dimension_numbers<[1], [0], [0], [1], [0, 0, 1, 1], [], []>} : vector<2x24xbf16>, vector<24x384xbf16>, vector<2x384xf32> -> vector<2x384xf32>
    %c0_59 = arith.constant 0 : index
    %c0_60 = arith.constant 0 : index
    %133 = vector.load %arg14[%c0_59, %c0_60] : memref<384x1024xf32, #tpu.memory_space<vmem>>, vector<384x1024xf32>
    %134 = arith.truncf %132 : vector<2x384xf32> to vector<2x384xbf16>
    %135 = arith.truncf %133 : vector<384x1024xf32> to vector<384x1024xbf16>
    %cst_61 = arith.constant dense<0.000000e+00> : vector<2x1024xf32>
    %136 = tpu.matmul %134, %135, %cst_61 {dimension_numbers = #tpu.dot_dimension_numbers<[1], [0], [0], [1], [0, 0, 1, 1], [], []>} : vector<2x384xbf16>, vector<384x1024xbf16>, vector<2x1024xf32> -> vector<2x1024xf32>
    %c0_62 = arith.constant 0 : index
    %c0_63 = arith.constant 0 : index
    %137 = vector.load %arg15[%c0_62, %c0_63] : memref<1x1024xf32, #tpu.memory_space<vmem>>, vector<1x1024xf32>
    %138 = vector.broadcast %137 : vector<1x1024xf32> to vector<2x1024xf32>
    %139 = arith.addf %136, %138 : vector<2x1024xf32>
    %cst_64 = arith.constant 0.000000e+00 : f32
    %140 = vector.broadcast %cst_64 : f32 to vector<2x1024xf32>
    %141 = arith.maximumf %139, %140 : vector<2x1024xf32>
    %c0_65 = arith.constant 0 : index
    %c0_66 = arith.constant 0 : index
    %142 = vector.load %arg16[%c0_65, %c0_66] : memref<1024x128xf32, #tpu.memory_space<vmem>>, vector<1024x128xf32>
    %143 = arith.truncf %141 : vector<2x1024xf32> to vector<2x1024xbf16>
    %144 = arith.truncf %142 : vector<1024x128xf32> to vector<1024x128xbf16>
    %cst_67 = arith.constant dense<0.000000e+00> : vector<2x128xf32>
    %145 = tpu.matmul %143, %144, %cst_67 {dimension_numbers = #tpu.dot_dimension_numbers<[1], [0], [0], [1], [0, 0, 1, 1], [], []>} : vector<2x1024xbf16>, vector<1024x128xbf16>, vector<2x128xf32> -> vector<2x128xf32>
    %c0_68 = arith.constant 0 : index
    %c0_69 = arith.constant 0 : index
    %146 = vector.load %arg17[%c0_68, %c0_69] : memref<1x128xf32, #tpu.memory_space<vmem>>, vector<1x128xf32>
    %147 = vector.broadcast %146 : vector<1x128xf32> to vector<2x128xf32>
    %148 = arith.addf %145, %147 : vector<2x128xf32>
    %c0_70 = arith.constant 0 : index
    %c0_71 = arith.constant 0 : index
    %149 = vector.load %arg18[%c0_70, %c0_71] : memref<2x128xf32, #tpu.memory_space<vmem>>, vector<2x128xf32>
    tpu.vector_store %arg18[%c0_70, %c0_71], %148 {strides = array<i32>} : memref<2x128xf32, #tpu.memory_space<vmem>>, vector<2x128xf32>,
    return
  }
}

module attributes {stable_mosaic.version = 11 : i64} {
  func.func @_branch_kernel(%arg0: memref<24x128xf32, #tpu.memory_space<vmem>>, %arg1: memref<24x24xf32, #tpu.memory_space<vmem>>, %arg2: memref<24x24xf32, #tpu.memory_space<vmem>>, %arg3: memref<2x24xf32, #tpu.memory_space<vmem>>, %arg4: memref<128x128xf32, #tpu.memory_space<vmem>>, %arg5: memref<1x128xf32, #tpu.memory_space<vmem>>, %arg6: memref<1x128xf32, #tpu.memory_space<vmem>>, %arg7: memref<1x128xf32, #tpu.memory_space<vmem>>, %arg8: memref<128x128xf32, #tpu.memory_space<vmem>>, %arg9: memref<1x128xf32, #tpu.memory_space<vmem>>, %arg10: memref<1x128xf32, #tpu.memory_space<vmem>>, %arg11: memref<1x128xf32, #tpu.memory_space<vmem>>, %arg12: memref<128x256xf32, #tpu.memory_space<vmem>>, %arg13: memref<1x256xf32, #tpu.memory_space<vmem>>, %arg14: memref<256x1024xf32, #tpu.memory_space<vmem>>, %arg15: memref<1x1024xf32, #tpu.memory_space<vmem>>, %arg16: memref<1024x128xf32, #tpu.memory_space<vmem>>, %arg17: memref<1x128xf32, #tpu.memory_space<vmem>>, %arg18: memref<2x128xf32, #tpu.memory_space<vmem>>) attributes {dimension_semantics = [], scalar_prefetch = 0 : i64, scratch_operands = 0 : i64, tpu.core_type = #tpu.core_type<tc>} {
    %c0 = arith.constant 0 : index
    %c0_0 = arith.constant 0 : index
    %0 = vector.load %arg1[%c0, %c0_0] : memref<24x24xf32, #tpu.memory_space<vmem>>, vector<24x24xf32>
    %cst = arith.constant 0.000000e+00 : f32
    %1 = vector.broadcast %cst : f32 to vector<24x24xf32>
    %2 = arith.cmpf ogt, %0, %1 : vector<24x24xf32>
    %c0_1 = arith.constant 0 : index
    %c0_2 = arith.constant 0 : index
    %3 = vector.load %arg0[%c0_1, %c0_2] : memref<24x128xf32, #tpu.memory_space<vmem>>, vector<24x128xf32>
    %c0_3 = arith.constant 0 : index
    %c0_4 = arith.constant 0 : index
    %4 = vector.load %arg4[%c0_3, %c0_4] : memref<128x128xf32, #tpu.memory_space<vmem>>, vector<128x128xf32>
    %c0_5 = arith.constant 0 : index
    %c0_6 = arith.constant 0 : index
    %5 = vector.load %arg5[%c0_5, %c0_6] : memref<1x128xf32, #tpu.memory_space<vmem>>, vector<1x128xf32>
    %c0_7 = arith.constant 0 : index
    %c0_8 = arith.constant 0 : index
    %6 = vector.load %arg6[%c0_7, %c0_8] : memref<1x128xf32, #tpu.memory_space<vmem>>, vector<1x128xf32>
    %c0_9 = arith.constant 0 : index
    %c0_10 = arith.constant 0 : index
    %7 = vector.load %arg7[%c0_9, %c0_10] : memref<1x128xf32, #tpu.memory_space<vmem>>, vector<1x128xf32>
    %8 = arith.truncf %3 : vector<24x128xf32> to vector<24x128xbf16>
    %9 = arith.truncf %4 : vector<128x128xf32> to vector<128x128xbf16>
    %cst_11 = arith.constant dense<0.000000e+00> : vector<24x128xf32>
    %10 = tpu.matmul %8, %9, %cst_11 {dimension_numbers = #tpu.dot_dimension_numbers<[1], [0], [0], [1], [0, 0, 1, 1], [], []>} : vector<24x128xbf16>, vector<128x128xbf16>, vector<24x128xf32> -> vector<24x128xf32>
    %11 = arith.truncf %10 : vector<24x128xf32> to vector<24x128xbf16>
    %12 = arith.truncf %10 : vector<24x128xf32> to vector<24x128xbf16>
    %cst_12 = arith.constant dense<0.000000e+00> : vector<24x24xf32>
    %13 = tpu.matmul %11, %12, %cst_12 {dimension_numbers = #tpu.dot_dimension_numbers<[1], [1], [0], [0], [0, 0, 1, 0], [], []>} : vector<24x128xbf16>, vector<24x128xbf16>, vector<24x24xf32> -> vector<24x24xf32>
    %14 = vector.broadcast %5 : vector<1x128xf32> to vector<24x128xf32>
    %15 = arith.mulf %10, %14 : vector<24x128xf32>
    %cst_13 = arith.constant dense<0.000000e+00> : vector<24xf32>
    %16 = vector.multi_reduction <add>, %15, %cst_13 [1] : vector<24x128xf32> to vector<24xf32>
    %17 = vector.shape_cast %16 : vector<24xf32> to vector<24x1xf32>
    %18 = vector.broadcast %6 : vector<1x128xf32> to vector<24x128xf32>
    %19 = arith.mulf %10, %18 : vector<24x128xf32>
    %cst_14 = arith.constant dense<0.000000e+00> : vector<24xf32>
    %20 = vector.multi_reduction <add>, %19, %cst_14 [1] : vector<24x128xf32> to vector<24xf32>
    %21 = vector.shape_cast %20 : vector<24xf32> to vector<24x1xf32>
    %22 = tpu.transpose %17, [1, 0] : vector<24x1xf32> -> vector<1x24xf32>
    %23 = vector.broadcast %21 : vector<24x1xf32> to vector<24x24xf32>
    %24 = vector.broadcast %22 : vector<1x24xf32> to vector<24x24xf32>
    %25 = arith.addf %23, %24 : vector<24x24xf32>
    %26 = arith.negf %13 : vector<24x24xf32>
    %27 = math.exp %26 : vector<24x24xf32>
    %cst_15 = arith.constant 1.000000e+00 : f32
    %28 = vector.broadcast %cst_15 : f32 to vector<24x24xf32>
    %29 = arith.addf %28, %27 : vector<24x24xf32>
    %30 = arith.divf %28, %29 : vector<24x24xf32>
    %31 = arith.mulf %25, %30 : vector<24x24xf32>
    %cst_16 = arith.constant 0.000000e+00 : f32
    %32 = vector.broadcast %cst_16 : f32 to vector<24x24xf32>
    %33 = arith.cmpf oge, %31, %32 : vector<24x24xf32>
    %cst_17 = arith.constant 2.000000e-01 : f32
    %34 = vector.broadcast %cst_17 : f32 to vector<24x24xf32>
    %35 = arith.mulf %34, %31 : vector<24x24xf32>
    %36 = arith.select %33, %31, %35 : vector<24x24xi1>, vector<24x24xf32>
    %cst_18 = arith.constant -1.000000e+30 : f32
    %37 = vector.broadcast %cst_18 : f32 to vector<24x24xf32>
    %38 = arith.select %2, %36, %37 : vector<24x24xi1>, vector<24x24xf32>
    %cst_19 = arith.constant dense<0xFF800000> : vector<24xf32>
    %39 = vector.multi_reduction <maximumf>, %38, %cst_19 [1] : vector<24x24xf32> to vector<24xf32>
    %40 = vector.shape_cast %39 : vector<24xf32> to vector<24x1xf32>
    %41 = vector.broadcast %40 : vector<24x1xf32> to vector<24x24xf32>
    %42 = arith.subf %38, %41 : vector<24x24xf32>
    %43 = math.exp %42 : vector<24x24xf32>
    %cst_20 = arith.constant 0.000000e+00 : f32
    %44 = vector.broadcast %cst_20 : f32 to vector<24x24xf32>
    %45 = arith.select %2, %43, %44 : vector<24x24xi1>, vector<24x24xf32>
    %cst_21 = arith.constant dense<0.000000e+00> : vector<24xf32>
    %46 = vector.multi_reduction <add>, %45, %cst_21 [1] : vector<24x24xf32> to vector<24xf32>
    %47 = vector.shape_cast %46 : vector<24xf32> to vector<24x1xf32>
    %cst_22 = arith.constant 1.000000e-30 : f32
    %48 = vector.broadcast %cst_22 : f32 to vector<24x1xf32>
    %49 = arith.maximumf %47, %48 : vector<24x1xf32>
    %50 = tpu.reciprocal %49 {approx = true} : vector<24x1xf32> -> vector<24x1xf32>
    %51 = vector.broadcast %50 : vector<24x1xf32> to vector<24x24xf32>
    %52 = arith.mulf %45, %51 : vector<24x24xf32>
    %53 = arith.truncf %52 : vector<24x24xf32> to vector<24x24xbf16>
    %54 = arith.truncf %10 : vector<24x128xf32> to vector<24x128xbf16>
    %cst_23 = arith.constant dense<0.000000e+00> : vector<24x128xf32>
    %55 = tpu.matmul %53, %54, %cst_23 {dimension_numbers = #tpu.dot_dimension_numbers<[1], [0], [0], [1], [0, 0, 1, 1], [], []>} : vector<24x24xbf16>, vector<24x128xbf16>, vector<24x128xf32> -> vector<24x128xf32>
    %56 = vector.broadcast %7 : vector<1x128xf32> to vector<24x128xf32>
    %57 = arith.addf %55, %56 : vector<24x128xf32>
    %cst_24 = arith.constant 0.000000e+00 : f32
    %58 = vector.broadcast %cst_24 : f32 to vector<24x128xf32>
    %59 = arith.maximumf %57, %58 : vector<24x128xf32>
    %c0_25 = arith.constant 0 : index
    %c0_26 = arith.constant 0 : index
    %60 = vector.load %arg8[%c0_25, %c0_26] : memref<128x128xf32, #tpu.memory_space<vmem>>, vector<128x128xf32>
    %c0_27 = arith.constant 0 : index
    %c0_28 = arith.constant 0 : index
    %61 = vector.load %arg9[%c0_27, %c0_28] : memref<1x128xf32, #tpu.memory_space<vmem>>, vector<1x128xf32>
    %c0_29 = arith.constant 0 : index
    %c0_30 = arith.constant 0 : index
    %62 = vector.load %arg10[%c0_29, %c0_30] : memref<1x128xf32, #tpu.memory_space<vmem>>, vector<1x128xf32>
    %c0_31 = arith.constant 0 : index
    %c0_32 = arith.constant 0 : index
    %63 = vector.load %arg11[%c0_31, %c0_32] : memref<1x128xf32, #tpu.memory_space<vmem>>, vector<1x128xf32>
    %64 = arith.truncf %59 : vector<24x128xf32> to vector<24x128xbf16>
    %65 = arith.truncf %60 : vector<128x128xf32> to vector<128x128xbf16>
    %cst_33 = arith.constant dense<0.000000e+00> : vector<24x128xf32>
    %66 = tpu.matmul %64, %65, %cst_33 {dimension_numbers = #tpu.dot_dimension_numbers<[1], [0], [0], [1], [0, 0, 1, 1], [], []>} : vector<24x128xbf16>, vector<128x128xbf16>, vector<24x128xf32> -> vector<24x128xf32>
    %67 = arith.truncf %66 : vector<24x128xf32> to vector<24x128xbf16>
    %68 = arith.truncf %66 : vector<24x128xf32> to vector<24x128xbf16>
    %cst_34 = arith.constant dense<0.000000e+00> : vector<24x24xf32>
    %69 = tpu.matmul %67, %68, %cst_34 {dimension_numbers = #tpu.dot_dimension_numbers<[1], [1], [0], [0], [0, 0, 1, 0], [], []>} : vector<24x128xbf16>, vector<24x128xbf16>, vector<24x24xf32> -> vector<24x24xf32>
    %70 = vector.broadcast %61 : vector<1x128xf32> to vector<24x128xf32>
    %71 = arith.mulf %66, %70 : vector<24x128xf32>
    %cst_35 = arith.constant dense<0.000000e+00> : vector<24xf32>
    %72 = vector.multi_reduction <add>, %71, %cst_35 [1] : vector<24x128xf32> to vector<24xf32>
    %73 = vector.shape_cast %72 : vector<24xf32> to vector<24x1xf32>
    %74 = vector.broadcast %62 : vector<1x128xf32> to vector<24x128xf32>
    %75 = arith.mulf %66, %74 : vector<24x128xf32>
    %cst_36 = arith.constant dense<0.000000e+00> : vector<24xf32>
    %76 = vector.multi_reduction <add>, %75, %cst_36 [1] : vector<24x128xf32> to vector<24xf32>
    %77 = vector.shape_cast %76 : vector<24xf32> to vector<24x1xf32>
    %78 = tpu.transpose %73, [1, 0] : vector<24x1xf32> -> vector<1x24xf32>
    %79 = vector.broadcast %77 : vector<24x1xf32> to vector<24x24xf32>
    %80 = vector.broadcast %78 : vector<1x24xf32> to vector<24x24xf32>
    %81 = arith.addf %79, %80 : vector<24x24xf32>
    %82 = arith.negf %69 : vector<24x24xf32>
    %83 = math.exp %82 : vector<24x24xf32>
    %cst_37 = arith.constant 1.000000e+00 : f32
    %84 = vector.broadcast %cst_37 : f32 to vector<24x24xf32>
    %85 = arith.addf %84, %83 : vector<24x24xf32>
    %86 = arith.divf %84, %85 : vector<24x24xf32>
    %87 = arith.mulf %81, %86 : vector<24x24xf32>
    %cst_38 = arith.constant 0.000000e+00 : f32
    %88 = vector.broadcast %cst_38 : f32 to vector<24x24xf32>
    %89 = arith.cmpf oge, %87, %88 : vector<24x24xf32>
    %cst_39 = arith.constant 2.000000e-01 : f32
    %90 = vector.broadcast %cst_39 : f32 to vector<24x24xf32>
    %91 = arith.mulf %90, %87 : vector<24x24xf32>
    %92 = arith.select %89, %87, %91 : vector<24x24xi1>, vector<24x24xf32>
    %cst_40 = arith.constant -1.000000e+30 : f32
    %93 = vector.broadcast %cst_40 : f32 to vector<24x24xf32>
    %94 = arith.select %2, %92, %93 : vector<24x24xi1>, vector<24x24xf32>
    %cst_41 = arith.constant dense<0xFF800000> : vector<24xf32>
    %95 = vector.multi_reduction <maximumf>, %94, %cst_41 [1] : vector<24x24xf32> to vector<24xf32>
    %96 = vector.shape_cast %95 : vector<24xf32> to vector<24x1xf32>
    %97 = vector.broadcast %96 : vector<24x1xf32> to vector<24x24xf32>
    %98 = arith.subf %94, %97 : vector<24x24xf32>
    %99 = math.exp %98 : vector<24x24xf32>
    %cst_42 = arith.constant 0.000000e+00 : f32
    %100 = vector.broadcast %cst_42 : f32 to vector<24x24xf32>
    %101 = arith.select %2, %99, %100 : vector<24x24xi1>, vector<24x24xf32>
    %cst_43 = arith.constant dense<0.000000e+00> : vector<24xf32>
    %102 = vector.multi_reduction <add>, %101, %cst_43 [1] : vector<24x24xf32> to vector<24xf32>
    %103 = vector.shape_cast %102 : vector<24xf32> to vector<24x1xf32>
    %cst_44 = arith.constant 1.000000e-30 : f32
    %104 = vector.broadcast %cst_44 : f32 to vector<24x1xf32>
    %105 = arith.maximumf %103, %104 : vector<24x1xf32>
    %106 = tpu.reciprocal %105 {approx = true} : vector<24x1xf32> -> vector<24x1xf32>
    %107 = vector.broadcast %106 : vector<24x1xf32> to vector<24x24xf32>
    %108 = arith.mulf %101, %107 : vector<24x24xf32>
    %109 = arith.truncf %108 : vector<24x24xf32> to vector<24x24xbf16>
    %110 = arith.truncf %66 : vector<24x128xf32> to vector<24x128xbf16>
    %cst_45 = arith.constant dense<0.000000e+00> : vector<24x128xf32>
    %111 = tpu.matmul %109, %110, %cst_45 {dimension_numbers = #tpu.dot_dimension_numbers<[1], [0], [0], [1], [0, 0, 1, 1], [], []>} : vector<24x24xbf16>, vector<24x128xbf16>, vector<24x128xf32> -> vector<24x128xf32>
    %112 = vector.broadcast %63 : vector<1x128xf32> to vector<24x128xf32>
    %113 = arith.addf %111, %112 : vector<24x128xf32>
    %cst_46 = arith.constant 0.000000e+00 : f32
    %114 = vector.broadcast %cst_46 : f32 to vector<24x128xf32>
    %115 = arith.maximumf %113, %114 : vector<24x128xf32>
    %c0_47 = arith.constant 0 : index
    %c0_48 = arith.constant 0 : index
    %116 = vector.load %arg12[%c0_47, %c0_48] : memref<128x256xf32, #tpu.memory_space<vmem>>, vector<128x256xf32>
    %117 = arith.truncf %115 : vector<24x128xf32> to vector<24x128xbf16>
    %118 = arith.truncf %116 : vector<128x256xf32> to vector<128x256xbf16>
    %cst_49 = arith.constant dense<0.000000e+00> : vector<24x256xf32>
    %119 = tpu.matmul %117, %118, %cst_49 {dimension_numbers = #tpu.dot_dimension_numbers<[1], [0], [0], [1], [0, 0, 1, 1], [], []>} : vector<24x128xbf16>, vector<128x256xbf16>, vector<24x256xf32> -> vector<24x256xf32>
    %c0_50 = arith.constant 0 : index
    %c0_51 = arith.constant 0 : index
    %120 = vector.load %arg2[%c0_50, %c0_51] : memref<24x24xf32, #tpu.memory_space<vmem>>, vector<24x24xf32>
    %121 = arith.truncf %120 : vector<24x24xf32> to vector<24x24xbf16>
    %122 = arith.truncf %119 : vector<24x256xf32> to vector<24x256xbf16>
    %cst_52 = arith.constant dense<0.000000e+00> : vector<24x256xf32>
    %123 = tpu.matmul %121, %122, %cst_52 {dimension_numbers = #tpu.dot_dimension_numbers<[1], [0], [0], [1], [0, 0, 1, 1], [], []>} : vector<24x24xbf16>, vector<24x256xbf16>, vector<24x256xf32> -> vector<24x256xf32>
    %c0_53 = arith.constant 0 : index
    %c0_54 = arith.constant 0 : index
    %124 = vector.load %arg13[%c0_53, %c0_54] : memref<1x256xf32, #tpu.memory_space<vmem>>, vector<1x256xf32>
    %125 = vector.broadcast %124 : vector<1x256xf32> to vector<24x256xf32>
    %126 = arith.addf %123, %125 : vector<24x256xf32>
    %cst_55 = arith.constant 0.000000e+00 : f32
    %127 = vector.broadcast %cst_55 : f32 to vector<24x256xf32>
    %128 = arith.maximumf %126, %127 : vector<24x256xf32>
    %c0_56 = arith.constant 0 : index
    %c0_57 = arith.constant 0 : index
    %129 = vector.load %arg3[%c0_56, %c0_57] : memref<2x24xf32, #tpu.memory_space<vmem>>, vector<2x24xf32>
    %130 = arith.truncf %129 : vector<2x24xf32> to vector<2x24xbf16>
    %131 = arith.truncf %128 : vector<24x256xf32> to vector<24x256xbf16>
    %cst_58 = arith.constant dense<0.000000e+00> : vector<2x256xf32>
    %132 = tpu.matmul %130, %131, %cst_58 {dimension_numbers = #tpu.dot_dimension_numbers<[1], [0], [0], [1], [0, 0, 1, 1], [], []>} : vector<2x24xbf16>, vector<24x256xbf16>, vector<2x256xf32> -> vector<2x256xf32>
    %c0_59 = arith.constant 0 : index
    %c0_60 = arith.constant 0 : index
    %133 = vector.load %arg14[%c0_59, %c0_60] : memref<256x1024xf32, #tpu.memory_space<vmem>>, vector<256x1024xf32>
    %134 = arith.truncf %132 : vector<2x256xf32> to vector<2x256xbf16>
    %135 = arith.truncf %133 : vector<256x1024xf32> to vector<256x1024xbf16>
    %cst_61 = arith.constant dense<0.000000e+00> : vector<2x1024xf32>
    %136 = tpu.matmul %134, %135, %cst_61 {dimension_numbers = #tpu.dot_dimension_numbers<[1], [0], [0], [1], [0, 0, 1, 1], [], []>} : vector<2x256xbf16>, vector<256x1024xbf16>, vector<2x1024xf32> -> vector<2x1024xf32>
    %c0_62 = arith.constant 0 : index
    %c0_63 = arith.constant 0 : index
    %137 = vector.load %arg15[%c0_62, %c0_63] : memref<1x1024xf32, #tpu.memory_space<vmem>>, vector<1x1024xf32>
    %138 = vector.broadcast %137 : vector<1x1024xf32> to vector<2x1024xf32>
    %139 = arith.addf %136, %138 : vector<2x1024xf32>
    %cst_64 = arith.constant 0.000000e+00 : f32
    %140 = vector.broadcast %cst_64 : f32 to vector<2x1024xf32>
    %141 = arith.maximumf %139, %140 : vector<2x1024xf32>
    %c0_65 = arith.constant 0 : index
    %c0_66 = arith.constant 0 : index
    %142 = vector.load %arg16[%c0_65, %c0_66] : memref<1024x128xf32, #tpu.memory_space<vmem>>, vector<1024x128xf32>
    %143 = arith.truncf %141 : vector<2x1024xf32> to vector<2x1024xbf16>
    %144 = arith.truncf %142 : vector<1024x128xf32> to vector<1024x128xbf16>
    %cst_67 = arith.constant dense<0.000000e+00> : vector<2x128xf32>
    %145 = tpu.matmul %143, %144, %cst_67 {dimension_numbers = #tpu.dot_dimension_numbers<[1], [0], [0], [1], [0, 0, 1, 1], [], []>} : vector<2x1024xbf16>, vector<1024x128xbf16>, vector<2x128xf32> -> vector<2x128xf32>
    %c0_68 = arith.constant 0 : index
    %c0_69 = arith.constant 0 : index
    %146 = vector.load %arg17[%c0_68, %c0_69] : memref<1x128xf32, #tpu.memory_space<vmem>>, vector<1x128xf32>
    %147 = vector.broadcast %146 : vector<1x128xf32> to vector<2x128xf32>
    %148 = arith.addf %145, %147 : vector<2x128xf32>
    %c0_70 = arith.constant 0 : index
    %c0_71 = arith.constant 0 : index
    %149 = vector.load %arg18[%c0_70, %c0_71] : memref<2x128xf32, #tpu.memory_space<vmem>>, vector<2x128xf32>
    tpu.vector_store %arg18[%c0_70, %c0_71], %148 {strides = array<i32>} : memref<2x128xf32, #tpu.memory_space<vmem>>, vector<2x128xf32>,
    return
  }
}

</mosaic_0001>

<bundles_post_ra>
// kernel: supergat_gcn_forward.4
= control target key start
LH: loop header
LB: loop body
LE: loop exit
PB: predicated region body
PF: predicated region fallthrough
CT: control target
= control target key end

     0   :  { %s3766_s0 = inlined_call_operand.vmem [shape: f32[24,128], index: 0, kind: input, shape index: {}]   ;;  %s3767_s1 = inlined_call_operand.vmem [shape: f32[24,24], index: 1, kind: input, shape index: {}]   ;;  %s3768_s2 = inlined_call_operand.vmem [shape: f32[24,24], index: 2, kind: input, shape index: {}]   ;;  %s3769_s3 = inlined_call_operand.vmem [shape: f32[2,24], index: 3, kind: input, shape index: {}]   ;;  %s3770_s4 = inlined_call_operand.hbm [shape: f32[128,128], index: 4, kind: input, shape index: {}]   ;;  %s3771_s5 = inlined_call_operand.vmem [shape: f32[1,128], index: 5, kind: input, shape index: {}]   ;;  %s3772_s6 = inlined_call_operand.vmem [shape: f32[1,128], index: 6, kind: input, shape index: {}]   ;;  %s3773_s7 = inlined_call_operand.vmem [shape: f32[1,128], index: 7, kind: input, shape index: {}]   ;;  %s3774_s8 = inlined_call_operand.hbm [shape: f32[128,128], index: 8, kind: input, shape index: {}]   ;;  %s3775_s9 = inlined_call_operand.vmem [shape: f32[1,128], index: 9, kind: input, shape index: {}]   ;;  %s3776_s10 = inlined_call_operand.vmem [shape: f32[1,128], index: 10, kind: input, shape index: {}]   ;;  %s3777_s11 = inlined_call_operand.vmem [shape: f32[1,128], index: 11, kind: input, shape index: {}]   ;;  %s3778_s12 = inlined_call_operand.hbm [shape: f32[128,256], index: 12, kind: input, shape index: {}]   ;;  %s3779_s13 = inlined_call_operand.vmem [shape: f32[1,256], index: 13, kind: input, shape index: {}]   ;;  %s3780_s14 = inlined_call_operand.vmem [shape: f32[256,1024], index: 14, kind: input, shape index: {}]   ;;  %s3781_s15 = inlined_call_operand.vmem [shape: f32[1,1024], index: 15, kind: input, shape index: {}]   ;;  %s3782_s16 = inlined_call_operand.vmem [shape: f32[1024,128], index: 16, kind: input, shape index: {}]   ;;  %s3783_s17 = inlined_call_operand.vmem [shape: f32[1,128], index: 17, kind: input, shape index: {}]   ;;  %s3784_s18 = inlined_call_operand.vmem [shape: f32[2,128], index: 18, kind: output, shape index: {}]  }
   0x1   :  { %3788 = sst [smem:[#allocation9_spill]] %s3766_s0 }
   0x2   :  { %3789 = sst [smem:[#allocation10_spill]] %s3767_s1 }
   0x3   :  { %3790 = sst [smem:[#allocation11_spill]] %s3768_s2 }
   0x4   :  { %23 = vsyncpa [#allocation3], 0 }
   0x5   :  { %24 = vsyncpa [#allocation5], 0  ;;  %s2346_s27 = smov [#allocation4]   ;;  %s2347_s29 = smov [#allocation2]  }
   0x6   :  { %s56_s28 = sshll.u32 %s2346_s27, 4  ;;  %s38_s30 = sshll.u32 %s2347_s29, 4  ;;  %s57_s28 = int_to_ptr.vmem [resolvable:$true] %s56_s28  ;;  %s39_s30 = int_to_ptr.vmem [resolvable:$true] %s38_s30 }
   0x7   :  { %s2290_s0 = scalar_lea.vmem %s57_s28, 2048  ;;  %p2295_p1 = scmp.lt.s32.totalorder %s57_s28, %s57_s28 }
   0x8   :  { %p2291_p0 = scmp.ne.s32.totalorder %s57_s28, %s2290_s0  ;;  %p2296_p2 = scmp.lt.s32.totalorder %s2290_s0, %s2290_s0 }
   0xa   :  { %p2297_p3 = por %p2296_p2, %p2295_p1 }
   0xc   :  { %p2298_p4 = pnand %p2297_p3, %p2291_p0 }
   0xe   :  { %2301 = shalt.err (!%p2298_p4)
}
   0xf   :  { %s2348_s19 = smov 128   ;;  %s2349_s1 = smov 8  }
  0x10   :  { %62 = dma.hbm_to_vmem [thread:$0]  %s3774_s8, 2048, %s57_s28, [#allocation5], %s2348_s19, %s2348_s19, %s2349_s1  }
  0x11   :  { %s2310_s22 = scalar_lea.vmem %s39_s30, 2048  ;;  %p2315_p6 = scmp.lt.s32.totalorder %s39_s30, %s39_s30 }
  0x12   :  { %p2311_p5 = scmp.ne.s32.totalorder %s39_s30, %s2310_s22  ;;  %p2316_p7 = scmp.lt.s32.totalorder %s2310_s22, %s2310_s22 }
  0x14   :  { %p2317_p8 = por %p2316_p7, %p2315_p6 }
  0x16   :  { %p2318_p9 = pnand %p2317_p8, %p2311_p5 }
  0x18   :  { %2321 = shalt.err (!%p2318_p9)
}
  0x19   :  { %44 = dma.hbm_to_vmem [thread:$0]  %s3770_s4, 2048, %s39_s30, [#allocation3], %s2348_s19, %s2348_s19, %s2349_s1  }
  0x1a   :  { %s2350_s24 = smov [#allocation6]  }
  0x1b   :  { %s74_s25 = sshll.u32 %s2350_s24, 4  ;;  %s75_s25 = int_to_ptr.vmem [resolvable:$true] %s74_s25 }
  0x1c   :  { %s2330_s26 = scalar_lea.vmem %s75_s25, 4096  ;;  %p2335_p11 = scmp.lt.s32.totalorder %s75_s25, %s75_s25 }
  0x1d   :  { %p2331_p10 = scmp.ne.s32.totalorder %s75_s25, %s2330_s26  ;;  %p2336_p12 = scmp.lt.s32.totalorder %s2330_s26, %s2330_s26 }
  0x1f   :  { %p2337_p13 = por %p2336_p12, %p2335_p11 }
  0x21   :  { %p2338_p0 = pnand %p2337_p13, %p2331_p10 }
  0x23   :  { %2341 = shalt.err (!%p2338_p0)
}
  0x24   :  { %s2351_s8 = smov 256   ;;  %s2352_s27 = smov 16  }
  0x25   :  { %80 = dma.hbm_to_vmem [thread:$0]  %s3778_s12, 4096, %s75_s25, [#allocation5], %s2351_s8, %s2351_s8, %s2352_s27  }
  0x26   :  { %2342 = dma.done.wait [#allocation3], 2048  }
  0x27   :  { %2343 = vsyncadd [#allocation3], 4294965248 }
  0x28   :  { %2344 = dma.done.wait [#allocation5], 6144  }
  0x29   :  { %2345 = vsyncadd [#allocation5], 4294961152  ;;  %v124_v0 = vld [vmem:[#allocation2 + $0x70] sm:$0xff]  ;;  %v125_v1 = vld [vmem:[#allocation2 + $0x78] sm:$0xff]  ;;  %s3791_s0 = sld [smem:[#allocation9_spill]]  ;;  %vm393_vm0 = vcmask 1043456   ;;  %v299_v60 = vlaneseq }
  0x2a   :  { %v122_v2 = vld [vmem:[#allocation2 + $0x60] sm:$0xff]  ;;  %v138_v3 = vpack.c.bf16 %v125_v1, %v124_v0  ;;  %v123_v4 = vld [vmem:[#allocation2 + $0x68] sm:$0xff]  ;;  %v120_v6 = vld [vmem:[#allocation2 + $0x50] sm:$0xff]  ;;  %s3792_s24 = sld [smem:[#allocation10_spill]]  ;;  %vm339_vm4 = vcmask 195584  }
  0x2b   :  { %v137_v5 = vpack.c.bf16 %v123_v4, %v122_v2  ;;  %v121_v7 = vld [vmem:[#allocation2 + $0x58] sm:$0xff]  ;;  %v118_v11 = vld [vmem:[#allocation2 + $0x40] sm:$0xff]  ;;  %v119_v12 = vld [vmem:[#allocation2 + $0x48] sm:$0xff]  ;;  %v2475_v61 = vshrl.u32 %v299_v60, 7  ;;  %s3793_s19 = sld [smem:[#allocation11_spill]] }
  0x2c   :  { %2151 = vmatprep.subr.bf16.mxu0 %v138_v3  ;;  %v136_v8 = vpack.c.bf16 %v121_v7, %v120_v6  ;;  %v135_v14 = vpack.c.bf16 %v119_v12, %v118_v11  ;;  %v116_v15 = vld [vmem:[#allocation2 + $0x30] sm:$0xff]  ;;  %v117_v16 = vld [vmem:[#allocation2 + $0x38] sm:$0xff]  ;;  %v114_v18 = vld [vmem:[#allocation2 + $0x20] sm:$0xff] }
  0x2d   :  { %2152 = vmatpush3.bf16.msra.mxu0 %v138_v3  ;;  %v134_v17 = vpack.c.bf16 %v117_v16, %v116_v15  ;;  %v115_v19 = vld [vmem:[#allocation2 + $0x28] sm:$0xff]  ;;  %v112_v21 = vld [vmem:[#allocation2 + $0x10] sm:$0xff]  ;;  %v113_v22 = vld [vmem:[#allocation2 + $0x18] sm:$0xff]  ;;  %v2478_v0 = vsub.s32 0, %v2475_v61 }
  0x2e   :  { %2153 = vmatprep.subr.bf16.mxu0 %v137_v5  ;;  %v133_v20 = vpack.c.bf16 %v115_v19, %v114_v18  ;;  %v132_v23 = vpack.c.bf16 %v113_v22, %v112_v21  ;;  %v110_v24 = vld [vmem:[#allocation2] sm:$0xff]  ;;  %v111_v25 = vld [vmem:[#allocation2 + $0x8] sm:$0xff] }
  0x2f   :  { %v107_v9 = vld [vmem:[%s3791_s0] sm:$0xff]  ;;  %v108_v10 = vld [vmem:[%s3791_s0 + $0x8] sm:$0xff]  ;;  %v131_v26 = vpack.c.bf16 %v111_v25, %v110_v24  ;;  %v109_v27 = vld [vmem:[%s3791_s0 + $0x10] sm:$0xff] }
  0x30   :  { %v129_v13 = vpack.c.bf16 %v108_v10, %v107_v9  ;;  %v130_v28 = vpack.c.bf16 %v109_v27, %v109_v27  ;;  %v2005_v29 = vld [vmem:[%s3771_s5] ss:$0 sm:$0xff]  ;;  %v2498_v21 = vld [vmem:[%s3792_s24 + $0x10] sm:$0xff] }
  0x31   :  { %2154 = vmatpush3.bf16.msra.mxu0 %v137_v5  ;;  %v2006_v36 = vld [vmem:[%s3772_s6] ss:$0 sm:$0xff]  ;;  %vm106_vm7 = vcmp.gt.f32.partialorder %v2498_v21, 0.0 }
  0x32   :  { %2167 = vmatprep.mubr.bf16.mxu0 %v129_v13  ;;  %2155 = vmatprep.subr.bf16.mxu0 %v136_v8  ;;  %v2484_v9 = vld [vmem:[%s3792_s24] sm:$0xff] }
  0x33   :  { %vm104_vm1 = vcmp.gt.f32.partialorder %v2484_v9, 0.0  ;;  %v815_v9 = vld [vmem:[#allocation6 + $0xf8] sm:$0xff] }
  0x35   :  { %2156 = vmatpush3.bf16.msra.mxu0 %v136_v8 }
  0x36   :  { %2157 = vmatprep.subr.bf16.mxu0 %v135_v14 }
  0x39   :  { %2158 = vmatpush3.bf16.msra.mxu0 %v135_v14  ;;  %v2490_v14 = vld [vmem:[%s3792_s24 + $0x8] sm:$0xff] }
  0x3a   :  { %2159 = vmatprep.subr.bf16.mxu0 %v134_v17  ;;  %vm105_vm5 = vcmp.gt.f32.partialorder %v2490_v14, 0.0 }
  0x3d   :  { %2160 = vmatpush3.bf16.msra.mxu0 %v134_v17 }
  0x3e   :  { %2161 = vmatprep.subr.bf16.mxu0 %v133_v20 }
  0x41   :  { %2162 = vmatpush3.bf16.msra.mxu0 %v133_v20 }
  0x42   :  { %2163 = vmatprep.subr.bf16.mxu0 %v132_v23 }
  0x45   :  { %2164 = vmatpush3.bf16.msra.mxu0 %v132_v23 }
  0x46   :  { %2165 = vmatprep.subr.bf16.mxu0 %v131_v26 }
  0x49   :  { %2166 = vmatpush3.bf16.msra.mxu0 %v131_v26 }
  0x4c   :  { %2168 = vmatmul.mubr.bf16.vlgmr.msra.gmra.mxu0 %v130_v28 }
 0x10c   :  { %v2169_v30 = vpop.f32.mrf.mxu0 }
 0x10d   :  { %v188_v31 = vpack.c.bf16 %v2169_v30, %v2169_v30  ;;  %v245_v32 = vmul.f32 %v2169_v30, %v2005_v29  ;;  %v260_v41 = vmul.f32 %v2169_v30, %v2006_v36 }
 0x10e   :  { %v173_v33 = vpop.f32.mrf.mxu0 }
 0x10f   :  { %250 = vadd.xlane.f32.xlu1 %v245_v32  ;;  %2171 = vmatprep.subr.bf16.mxu1 %v188_v31  ;;  %v243_v34 = vmul.f32 %v2005_v29, %v173_v33  ;;  %v258_v37 = vmul.f32 %v2006_v36, %v173_v33  ;;  %v395_v43 = vsel %vm393_vm0, %v188_v31, 0 }
 0x110   :  { %v2170_v35 = vpop.f32.mrf.mxu0  ;;  %2172 = vmatpush3.bf16.xpose.msra.mxu1 %v188_v31 }
 0x111   :  { %246 = vadd.xlane.f32.xlu0 %v243_v34 }
 0x112   :  { %v176_v38 = vpop.f32.mrf.mxu0 }
 0x113   :  { %v187_v39 = vpack.c.bf16 %v176_v38, %v173_v33  ;;  %261 = vadd.xlane.f32.xlu1 %v258_v37  ;;  %v244_v40 = vmul.f32 %v2005_v29, %v176_v38  ;;  %v259_v42 = vmul.f32 %v2006_v36, %v176_v38 }
 0x115   :  { %248 = vadd.xlane.f32.xlu0 %v244_v40  ;;  %2173 = vmatprep.subr.bf16.mxu1 %v187_v39 }
 0x116   :  { %2175 = vmatprep.mubr.bf16.mxu1 %v187_v39 }
 0x117   :  { %265 = vadd.xlane.f32.xlu1 %v260_v41 }
 0x118   :  { %2174 = vmatpush3.bf16.xpose.msra.mxu1 %v187_v39 }
 0x119   :  { %263 = vadd.xlane.f32.xlu0 %v259_v42  ;;  %2223 = vmatprep.subr.msk.bf16.mxu1 %vm393_vm0, %v188_v31 }
 0x11f   :  { %2176 = vmatmul.mubr.bf16.vlgmr.msra.gmra.mxu1 %v188_v31 }
 0x120   :  { %2180 = vmatpush3.bf16.msra.mxu1 %v395_v43 }
 0x121   :  { %2181 = vmatprep.subr.bf16.mxu1 %v187_v39 }
 0x124   :  { %2182 = vmatpush3.bf16.msra.mxu1 %v187_v39 }
 0x198   :  { %v251_v46 = vpop.xlane.xlu1 %250 }
 0x19a   :  { %v247_v44 = vpop.xlane.xlu0 %246 }
 0x19b   :  { %267 = vxpose.xlu0.b32.start [1/3] (short) (narrow) %v247_v44, 8 }
 0x19c   :  { %v262_v62 = vpop.xlane.xlu1 %261 }
 0x19e   :  { %v249_v45 = vpop.xlane.xlu0 %248 }
 0x19f   :  { %268 = vxpose.xlu0.b32.cont [2/3] (short) (narrow) %v249_v45, 8 }
 0x1a0   :  { %v266_v4 = vpop.xlane.xlu1 %265 }
 0x1a2   :  { %v264_v63 = vpop.xlane.xlu0 %263 }
 0x1a3   :  { %269 = vxpose.xlu0.b32.end [3/3] (short) (narrow) %v251_v46, 8  ;;  %v462_v46 = vld [vmem:[#allocation4 + $0x70] sm:$0xff] }
 0x1df   :  { %v2177_v47 = vpop.f32.mrf.mxu1 }
 0x1e0   :  { %v2009_v51 = vmul.f32 -1.442695, %v2177_v47  ;;  %v463_v47 = vld [vmem:[#allocation4 + $0x78] sm:$0xff] }
 0x1e1   :  { %v223_v48 = vpop.f32.mrf.mxu1 }
 0x1e2   :  { %v2007_v52 = vmul.f32 -1.442695, %v223_v48  ;;  %2234 = vpow2.f32 %v2009_v51  ;;  %v476_v48 = vpack.c.bf16 %v463_v47, %v462_v46 }
 0x1e3   :  { %v2178_v49 = vpop.f32.mrf.mxu1 }
 0x1e4   :  { %2236 = vpow2.f32 %v2007_v52  ;;  %2187 = vmatprep.subr.bf16.mxu1 %v476_v48 }
 0x1e5   :  { %v226_v50 = vpop.f32.mrf.mxu1 }
 0x1e6   :  { %v2008_v53 = vmul.f32 -1.442695, %v226_v50 }
 0x1e8   :  { %2238 = vpow2.f32 %v2008_v53 }
 0x1ef   :  { %v2235_v54 = vpop.eup %2234 }
 0x1f0   :  { %v317_v57 = vadd.f32 1.0, %v2235_v54 }
 0x1f1   :  { %v2237_v55 = vpop.eup %2236 }
 0x1f2   :  { %v315_v58 = vadd.f32 1.0, %v2237_v55  ;;  %2240 = vrcp.f32 %v317_v57 }
 0x1f4   :  { %2242 = vrcp.f32 %v315_v58 }
 0x1f5   :  { %v2239_v56 = vpop.eup %2238 }
 0x1f6   :  { %v316_v59 = vadd.f32 1.0, %v2239_v56 }
 0x1f8   :  { %2244 = vrcp.f32 %v316_v59 }
 0x1ff   :  { %v2241_v3 = vpop.eup %2240 }
 0x201   :  { %v2243_v5 = vpop.eup %2242 }
 0x205   :  { %v2245_v10 = vpop.eup %2244 }
 0x217   :  { %v283_v1 = vpop.trf.xlu0 }
 0x218   :  { %v302_v2 = vrot.slane %v283_v1, %v2478_v0 }
 0x21a   :  { %v303_v6 = vadd.f32 %v302_v2, %v262_v62  ;;  %v304_v7 = vadd.f32 %v302_v2, %v264_v63  ;;  %v305_v8 = vadd.f32 %v302_v2, %v266_v4  ;;  %v460_v62 = vld [vmem:[#allocation4 + $0x60] sm:$0xff]  ;;  %v461_v63 = vld [vmem:[#allocation4 + $0x68] sm:$0xff]  ;;  %v458_v4 = vld [vmem:[#allocation4 + $0x50] sm:$0xff] }
 0x21c   :  { %v324_v11 = vmul.f32 %v2243_v5, %v303_v6  ;;  %v325_v12 = vmul.f32 %v2245_v10, %v304_v7  ;;  %v326_v13 = vmul.f32 %v2241_v3, %v305_v8  ;;  %v475_v3 = vpack.c.bf16 %v461_v63, %v460_v62  ;;  %v459_v5 = vld [vmem:[#allocation4 + $0x58] sm:$0xff]  ;;  %v456_v7 = vld [vmem:[#allocation4 + $0x40] sm:$0xff]  ;;  %v457_v8 = vld [vmem:[#allocation4 + $0x48] sm:$0xff] }
 0x21d   :  { %v474_v6 = vpack.c.bf16 %v459_v5, %v458_v4  ;;  %v473_v10 = vpack.c.bf16 %v457_v8, %v456_v7 }
 0x21e   :  { %vm327_vm2 = vcmp.ge.f32.partialorder %v324_v11, 0.0  ;;  %v330_v15 = vmul.f32 0.2, %v324_v11  ;;  %vm328_vm3 = vcmp.ge.f32.partialorder %v325_v12, 0.0  ;;  %v331_v16 = vmul.f32 0.2, %v325_v12 }
 0x21f   :  { %v332_v19 = vmul.f32 0.2, %v326_v13  ;;  %vm329_vm6 = vcmp.ge.f32.partialorder %v326_v13, 0.0 }
 0x220   :  { %v333_v17 = vsel %vm327_vm2, %v324_v11, %v330_v15  ;;  %v334_v18 = vsel %vm328_vm3, %v325_v12, %v331_v16  ;;  %v454_v11 = vld [vmem:[#allocation4 + $0x30] sm:$0xff]  ;;  %v455_v12 = vld [vmem:[#allocation4 + $0x38] sm:$0xff]  ;;  %v452_v15 = vld [vmem:[#allocation4 + $0x20] sm:$0xff] }
 0x221   :  { %v336_v20 = vsel %vm104_vm1, %v333_v17, -1e+30  ;;  %v337_v23 = vsel %vm105_vm5, %v334_v18, -1e+30  ;;  %v335_v24 = vsel %vm329_vm6, %v326_v13, %v332_v19  ;;  %v472_v13 = vpack.c.bf16 %v455_v12, %v454_v11  ;;  %v453_v16 = vld [vmem:[#allocation4 + $0x28] sm:$0xff]  ;;  %v450_v18 = vld [vmem:[#allocation4 + $0x10] sm:$0xff] }
 0x222   :  { %v340_v22 = vsel %vm339_vm4, %v336_v20, -inf  ;;  %v343_v25 = vsel %vm339_vm4, %v337_v23, -inf  ;;  %v338_v26 = vsel %vm106_vm7, %v335_v24, -1e+30  ;;  %v471_v17 = vpack.c.bf16 %v453_v16, %v452_v15  ;;  %v451_v19 = vld [vmem:[#allocation4 + $0x18] sm:$0xff] }
 0x223   :  { %341 = vmax.xlane.f32.xlu1 %v340_v22  ;;  %v346_v27 = vsel %vm339_vm4, %v338_v26, -inf  ;;  %v448_v22 = vld [vmem:[#allocation4] sm:$0xff] }
 0x227   :  { %344 = vmax.xlane.f32.xlu1 %v343_v25 }
 0x22b   :  { %347 = vmax.xlane.f32.xlu1 %v346_v27 }
 0x2ac   :  { %v342_v28 = vpop.xlane.xlu1 %341 }
 0x2ad   :  { %v349_v29 = vsub.f32 %v336_v20, %v342_v28  ;;  %v470_v20 = vpack.c.bf16 %v451_v19, %v450_v18 }
 0x2af   :  { %v352_v30 = vmul.f32 1.442695, %v349_v29 }
 0x2b0   :  { %v345_v31 = vpop.xlane.xlu1 %344 }
 0x2b1   :  { %2246 = vpow2.f32 %v352_v30  ;;  %v350_v32 = vsub.f32 %v337_v23, %v345_v31  ;;  %v449_v23 = vld [vmem:[#allocation4 + $0x8] sm:$0xff] }
 0x2b2   :  { %v469_v24 = vpack.c.bf16 %v449_v23, %v448_v22 }
 0x2b3   :  { %v354_v33 = vmul.f32 1.442695, %v350_v32 }
 0x2b4   :  { %v348_v34 = vpop.xlane.xlu1 %347 }
 0x2b5   :  { %2248 = vpow2.f32 %v354_v33  ;;  %v351_v35 = vsub.f32 %v338_v26, %v348_v34  ;;  %v2010_v26 = vld [vmem:[%s3773_s7] ss:$0 sm:$0xff] }
 0x2b7   :  { %v356_v36 = vmul.f32 1.442695, %v351_v35 }
 0x2b9   :  { %2250 = vpow2.f32 %v356_v36 }
 0x2be   :  { %v2247_v37 = vpop.eup %2246 }
 0x2bf   :  { %v358_v38 = vsel %vm104_vm1, %v2247_v37, 0.0 }
 0x2c0   :  { %v361_v39 = vsel %vm339_vm4, %v358_v38, 0.0 }
 0x2c1   :  { %362 = vadd.xlane.f32.xlu1 %v361_v39 }
 0x2c2   :  { %v2249_v40 = vpop.eup %2248 }
 0x2c3   :  { %v359_v41 = vsel %vm105_vm5, %v2249_v40, 0.0 }
 0x2c4   :  { %v364_v42 = vsel %vm339_vm4, %v359_v41, 0.0 }
 0x2c5   :  { %365 = vadd.xlane.f32.xlu1 %v364_v42 }
 0x2c6   :  { %v2251_v43 = vpop.eup %2250 }
 0x2c7   :  { %v360_v44 = vsel %vm106_vm7, %v2251_v43, 0.0 }
 0x2c8   :  { %v367_v45 = vsel %vm339_vm4, %v360_v44, 0.0 }
 0x2c9   :  { %368 = vadd.xlane.f32.xlu1 %v367_v45 }
 0x34a   :  { %v363_v49 = vpop.xlane.xlu1 %362 }
 0x34b   :  { %v370_v50 = vmax.f32 %v363_v49, 1e-30 }
 0x34d   :  { %2252 = vrcp.f32 %v370_v50 }
 0x34e   :  { %v366_v51 = vpop.xlane.xlu1 %365 }
 0x34f   :  { %v371_v52 = vmax.f32 %v366_v51, 1e-30 }
 0x351   :  { %2254 = vrcp.f32 %v371_v52 }
 0x352   :  { %v369_v53 = vpop.xlane.xlu1 %368 }
 0x353   :  { %v372_v54 = vmax.f32 %v369_v53, 1e-30 }
 0x355   :  { %2256 = vrcp.f32 %v372_v54 }
 0x35a   :  { %v2253_v55 = vpop.eup %2252 }
 0x35b   :  { %v376_v57 = vmul.f32 %v2253_v55, %v358_v38 }
 0x35e   :  { %v2255_v56 = vpop.eup %2254 }
 0x35f   :  { %v377_v58 = vmul.f32 %v2255_v56, %v359_v41  ;;  %v2013_v41 = vld [vmem:[%s3775_s9] ss:$0 sm:$0xff] }
 0x361   :  { %v379_v59 = vpack.c.bf16 %v377_v58, %v376_v57 }
 0x362   :  { %v2257_v60 = vpop.eup %2256 }
 0x363   :  { %2183 = vmatprep.mubr.msk.bf16.mxu1 %vm339_vm4, %v379_v59  ;;  %v378_v1 = vmul.f32 %v2257_v60, %v360_v44 }
 0x365   :  { %v380_v2 = vpack.c.bf16 %v378_v1, %v378_v1 }
 0x367   :  { %2184 = vmatmul.mubr.msk.bf16.vlgmr.msra.gmra.mxu1 %vm339_vm4, %v380_v2 }
 0x368   :  { %2188 = vmatpush3.bf16.msra.mxu1 %v476_v48  ;;  %v2014_v48 = vld [vmem:[%s3776_s10] ss:$0 sm:$0xff] }
 0x369   :  { %2189 = vmatprep.subr.bf16.mxu1 %v475_v3 }
 0x36c   :  { %2190 = vmatpush3.bf16.msra.mxu1 %v475_v3 }
 0x36d   :  { %2191 = vmatprep.subr.bf16.mxu1 %v474_v6 }
 0x370   :  { %2192 = vmatpush3.bf16.msra.mxu1 %v474_v6 }
 0x371   :  { %2193 = vmatprep.subr.bf16.mxu1 %v473_v10 }
 0x374   :  { %2194 = vmatpush3.bf16.msra.mxu1 %v473_v10 }
 0x375   :  { %2195 = vmatprep.subr.bf16.mxu1 %v472_v13 }
 0x378   :  { %2196 = vmatpush3.bf16.msra.mxu1 %v472_v13 }
 0x379   :  { %2197 = vmatprep.subr.bf16.mxu1 %v471_v17 }
 0x37c   :  { %2198 = vmatpush3.bf16.msra.mxu1 %v471_v17 }
 0x37d   :  { %2199 = vmatprep.subr.bf16.mxu1 %v470_v20 }
 0x380   :  { %2200 = vmatpush3.bf16.msra.mxu1 %v470_v20 }
 0x381   :  { %2201 = vmatprep.subr.bf16.mxu1 %v469_v24 }
 0x384   :  { %2202 = vmatpush3.bf16.msra.mxu1 %v469_v24 }
 0x427   :  { %v2185_v25 = vpop.f32.mrf.mxu1 }
 0x428   :  { %v440_v28 = vadd.f32 %v2185_v25, %v2010_v26 }
 0x429   :  { %v431_v27 = vpop.f32.mrf.mxu1 }
 0x42a   :  { %v432_v30 = vadd.f32 %v2010_v26, %v431_v27  ;;  %v447_v33 = vmax.f32 %v440_v28, 0.0 }
 0x42b   :  { %v2186_v29 = vpop.f32.mrf.mxu1 }
 0x42c   :  { %v445_v34 = vmax.f32 %v432_v30, 0.0  ;;  %v468_v37 = vpack.c.bf16 %v447_v33, %v447_v33 }
 0x42d   :  { %v434_v31 = vpop.f32.mrf.mxu1 }
 0x42e   :  { %v435_v32 = vadd.f32 %v2010_v26, %v434_v31 }
 0x430   :  { %v446_v35 = vmax.f32 %v435_v32, 0.0 }
 0x432   :  { %v467_v36 = vpack.c.bf16 %v446_v35, %v445_v34 }
 0x434   :  { %2203 = vmatprep.mubr.bf16.mxu1 %v467_v36 }
 0x435   :  { %2204 = vmatmul.mubr.bf16.vlgmr.msra.gmra.mxu1 %v468_v37 }
 0x4f5   :  { %v2205_v38 = vpop.f32.mrf.mxu1 }
 0x4f6   :  { %v526_v39 = vpack.c.bf16 %v2205_v38, %v2205_v38  ;;  %v583_v47 = vmul.f32 %v2205_v38, %v2013_v41  ;;  %v598_v51 = vmul.f32 %v2205_v38, %v2014_v48 }
 0x4f7   :  { %v511_v40 = vpop.f32.mrf.mxu1 }
 0x4f8   :  { %2207 = vmatprep.subr.bf16.mxu0 %v526_v39  ;;  %v581_v42 = vmul.f32 %v2013_v41, %v511_v40  ;;  %v596_v49 = vmul.f32 %v2014_v48, %v511_v40  ;;  %v731_v50 = vsel %vm393_vm0, %v526_v39, 0 }
 0x4f9   :  { %v2206_v43 = vpop.f32.mrf.mxu1  ;;  %2208 = vmatpush3.bf16.xpose.msra.mxu0 %v526_v39 }
 0x4fa   :  { %584 = vadd.xlane.f32.xlu1 %v581_v42 }
 0x4fb   :  { %v514_v44 = vpop.f32.mrf.mxu1 }
 0x4fc   :  { %v525_v45 = vpack.c.bf16 %v514_v44, %v511_v40  ;;  %v582_v46 = vmul.f32 %v2013_v41, %v514_v44  ;;  %v597_v52 = vmul.f32 %v2014_v48, %v514_v44 }
 0x4fe   :  { %586 = vadd.xlane.f32.xlu1 %v582_v46  ;;  %2209 = vmatprep.subr.bf16.mxu0 %v525_v45 }
 0x4ff   :  { %2211 = vmatprep.mubr.bf16.mxu0 %v525_v45 }
 0x501   :  { %2210 = vmatpush3.bf16.xpose.msra.mxu0 %v525_v45 }
 0x502   :  { %588 = vadd.xlane.f32.xlu1 %v583_v47  ;;  %2224 = vmatprep.subr.msk.bf16.mxu0 %vm393_vm0, %v526_v39 }
 0x506   :  { %599 = vadd.xlane.f32.xlu1 %v596_v49 }
 0x508   :  { %2212 = vmatmul.mubr.bf16.vlgmr.msra.gmra.mxu0 %v526_v39 }
 0x509   :  { %2216 = vmatpush3.bf16.msra.mxu0 %v731_v50 }
 0x50a   :  { %603 = vadd.xlane.f32.xlu1 %v598_v51  ;;  %2217 = vmatprep.subr.bf16.mxu0 %v525_v45 }
 0x50d   :  { %2218 = vmatpush3.bf16.msra.mxu0 %v525_v45 }
 0x50e   :  { %601 = vadd.xlane.f32.xlu1 %v597_v52 }
 0x583   :  { %v585_v53 = vpop.xlane.xlu1 %584 }
 0x584   :  { %605 = vxpose.xlu1.b32.start [1/3] (short) (narrow) %v585_v53, 8 }
 0x587   :  { %v587_v54 = vpop.xlane.xlu1 %586 }
 0x588   :  { %606 = vxpose.xlu1.b32.cont [2/3] (short) (narrow) %v587_v54, 8  ;;  %v813_v54 = vld [vmem:[#allocation6 + $0xe8] sm:$0xff] }
 0x58b   :  { %v589_v55 = vpop.xlane.xlu1 %588 }
 0x58c   :  { %607 = vxpose.xlu1.b32.end [3/3] (short) (narrow) %v589_v55, 8  ;;  %v833_v55 = vpack.c.bf16 %v815_v9, %v813_v54  ;;  %v2353_v54 = vmov 0  }
 0x58d   :  { %950 = vmatprep.mubr.bf16.mxu1 %v2353_v54 }
 0x58e   :  { %834 = vmatprep.subr.bf16.mxu0 %v833_v55 }
 0x58f   :  { %v600_v4 = vpop.xlane.xlu1 %599 }
 0x593   :  { %v604_v8 = vpop.xlane.xlu1 %603 }
 0x597   :  { %v602_v10 = vpop.xlane.xlu1 %601 }
 0x5c8   :  { %v2213_v56 = vpop.f32.mrf.mxu0 }
 0x5c9   :  { %v2017_v60 = vmul.f32 -1.442695, %v2213_v56 }
 0x5ca   :  { %v561_v57 = vpop.f32.mrf.mxu0 }
 0x5cb   :  { %v2015_v62 = vmul.f32 -1.442695, %v561_v57  ;;  %2258 = vpow2.f32 %v2017_v60 }
 0x5cc   :  { %v2214_v58 = vpop.f32.mrf.mxu0 }
 0x5cd   :  { %2260 = vpow2.f32 %v2015_v62 }
 0x5ce   :  { %v564_v59 = vpop.f32.mrf.mxu0 }
 0x5cf   :  { %v2016_v63 = vmul.f32 -1.442695, %v564_v59 }
 0x5d1   :  { %2262 = vpow2.f32 %v2016_v63 }
 0x5d8   :  { %v2259_v1 = vpop.eup %2258 }
 0x5d9   :  { %v655_v5 = vadd.f32 1.0, %v2259_v1 }
 0x5da   :  { %v2261_v2 = vpop.eup %2260 }
 0x5db   :  { %v653_v6 = vadd.f32 1.0, %v2261_v2  ;;  %2264 = vrcp.f32 %v655_v5 }
 0x5dd   :  { %2266 = vrcp.f32 %v653_v6  ;;  %v809_v6 = vld [vmem:[#allocation6 + $0xc8] sm:$0xff] }
 0x5de   :  { %v2263_v3 = vpop.eup %2262 }
 0x5df   :  { %v654_v7 = vadd.f32 1.0, %v2263_v3  ;;  %v812_v3 = vld [vmem:[#allocation6 + $0xe0] sm:$0xff] }
 0x5e1   :  { %2268 = vrcp.f32 %v654_v7  ;;  %v811_v7 = vld [vmem:[#allocation6 + $0xd8] sm:$0xff] }
 0x5e8   :  { %v2265_v13 = vpop.eup %2264 }
 0x5ea   :  { %v2267_v15 = vpop.eup %2266 }
 0x5ee   :  { %v2269_v19 = vpop.eup %2268 }
 0x600   :  { %v621_v11 = vpop.trf.xlu1 }
 0x601   :  { %v640_v12 = vrot.slane %v621_v11, %v2478_v0 }
 0x603   :  { %v641_v16 = vadd.f32 %v640_v12, %v600_v4  ;;  %v642_v17 = vadd.f32 %v640_v12, %v602_v10  ;;  %v643_v18 = vadd.f32 %v640_v12, %v604_v8  ;;  %v814_v4 = vld [vmem:[#allocation6 + $0xf0] sm:$0xff]  ;;  %v831_v12 = vpack.c.bf16 %v811_v7, %v809_v6 }
 0x604   :  { %v832_v10 = vpack.c.bf16 %v814_v4, %v812_v3 }
 0x605   :  { %v662_v20 = vmul.f32 %v2267_v15, %v641_v16  ;;  %v663_v22 = vmul.f32 %v2269_v19, %v642_v17  ;;  %v664_v23 = vmul.f32 %v2265_v13, %v643_v18  ;;  %v808_v13 = vld [vmem:[#allocation6 + $0xc0] sm:$0xff]  ;;  %v810_v15 = vld [vmem:[#allocation6 + $0xd0] sm:$0xff]  ;;  %v805_v16 = vld [vmem:[#allocation6 + $0xa8] sm:$0xff] }
 0x606   :  { %v807_v17 = vld [vmem:[#allocation6 + $0xb8] sm:$0xff]  ;;  %v830_v18 = vpack.c.bf16 %v810_v15, %v808_v13 }
 0x607   :  { %vm665_vm8 = vcmp.ge.f32.partialorder %v662_v20, 0.0  ;;  %v668_v24 = vmul.f32 0.2, %v662_v20  ;;  %vm666_vm9 = vcmp.ge.f32.partialorder %v663_v22, 0.0  ;;  %v669_v25 = vmul.f32 0.2, %v663_v22 }
 0x608   :  { %v670_v28 = vmul.f32 0.2, %v664_v23  ;;  %vm667_vm10 = vcmp.ge.f32.partialorder %v664_v23, 0.0  ;;  %v829_v19 = vpack.c.bf16 %v807_v17, %v805_v16  ;;  %v885_v17 = vld [vmem:[%s3793_s19] sm:$0xff] }
 0x609   :  { %v671_v26 = vsel %vm665_vm8, %v662_v20, %v668_v24  ;;  %v672_v27 = vsel %vm666_vm9, %v663_v22, %v669_v25  ;;  %v804_v20 = vld [vmem:[#allocation6 + $0xa0] sm:$0xff]  ;;  %v806_v22 = vld [vmem:[#allocation6 + $0xb0] sm:$0xff]  ;;  %v803_v24 = vld [vmem:[#allocation6 + $0x98] sm:$0xff] }
 0x60a   :  { %v674_v29 = vsel %vm104_vm1, %v671_v26, -1e+30  ;;  %v675_v31 = vsel %vm105_vm5, %v672_v27, -1e+30  ;;  %v673_v32 = vsel %vm667_vm10, %v664_v23, %v670_v28  ;;  %v801_v23 = vld [vmem:[#allocation6 + $0x88] sm:$0xff]  ;;  %v828_v25 = vpack.c.bf16 %v806_v22, %v804_v20  ;;  %v800_v27 = vld [vmem:[#allocation6 + $0x80] sm:$0xff] }
 0x60b   :  { %v677_v30 = vsel %vm339_vm4, %v674_v29, -inf  ;;  %v680_v33 = vsel %vm339_vm4, %v675_v31, -inf  ;;  %v676_v34 = vsel %vm106_vm7, %v673_v32, -1e+30  ;;  %v827_v26 = vpack.c.bf16 %v803_v24, %v801_v23  ;;  %v802_v28 = vld [vmem:[#allocation6 + $0x90] sm:$0xff]  ;;  %v1146_v24 = vld [vmem:[%s3780_s14 + $0x398] sm:$0xff] }
 0x60c   :  { %678 = vmax.xlane.f32.xlu0 %v677_v30  ;;  %v683_v35 = vsel %vm339_vm4, %v676_v34, -inf  ;;  %v799_v30 = vld [vmem:[#allocation6 + $0x78] sm:$0xff]  ;;  %v887_v22 = vld [vmem:[%s3793_s19 + $0x10] sm:$0xff] }
 0x60d   :  { %v889_v23 = vpack.c.bf16 %v887_v22, %v887_v22  ;;  %v1242_v22 = vld [vmem:[%s3780_s14 + $0x698] sm:$0xff] }
 0x610   :  { %681 = vmax.xlane.f32.xlu0 %v680_v33  ;;  %v796_v33 = vld [vmem:[#allocation6 + $0x60] sm:$0xff] }
 0x614   :  { %684 = vmax.xlane.f32.xlu0 %v683_v35 }
 0x695   :  { %v679_v36 = vpop.xlane.xlu0 %678 }
 0x696   :  { %v686_v37 = vsub.f32 %v674_v29, %v679_v36  ;;  %v797_v29 = vld [vmem:[#allocation6 + $0x68] sm:$0xff] }
 0x697   :  { %v825_v32 = vpack.c.bf16 %v799_v30, %v797_v29  ;;  %v793_v36 = vld [vmem:[#allocation6 + $0x48] sm:$0xff]  ;;  %v1130_v30 = vld [vmem:[%s3780_s14 + $0x318] sm:$0xff] }
 0x698   :  { %v689_v38 = vmul.f32 1.442695, %v686_v37  ;;  %v795_v37 = vld [vmem:[#allocation6 + $0x58] sm:$0xff] }
 0x699   :  { %v682_v39 = vpop.xlane.xlu0 %681 }
 0x69a   :  { %2270 = vpow2.f32 %v689_v38  ;;  %v687_v40 = vsub.f32 %v675_v31, %v682_v39  ;;  %v826_v31 = vpack.c.bf16 %v802_v28, %v800_v27  ;;  %v823_v38 = vpack.c.bf16 %v795_v37, %v793_v36  ;;  %v792_v39 = vld [vmem:[#allocation6 + $0x40] sm:$0xff]  ;;  %v1145_v27 = vld [vmem:[%s3780_s14 + $0x390] sm:$0xff]  ;;  %v1114_v36 = vld [vmem:[%s3780_s14 + $0x298] sm:$0xff] }
 0x69b   :  { %v1153_v28 = vld [vmem:[%s3780_s14 + $0x3d0] sm:$0xff]  ;;  %v1122_v37 = vld [vmem:[%s3780_s14 + $0x2d8] sm:$0xff] }
 0x69c   :  { %v691_v41 = vmul.f32 1.442695, %v687_v40  ;;  %v794_v40 = vld [vmem:[#allocation6 + $0x50] sm:$0xff]  ;;  %v1347_v29 = vpack.c.bf16 %v1153_v28, %v1145_v27  ;;  %v1226_v28 = vld [vmem:[%s3780_s14 + $0x618] sm:$0xff] }
 0x69d   :  { %v685_v42 = vpop.xlane.xlu0 %684 }
 0x69e   :  { %2272 = vpow2.f32 %v691_v41  ;;  %v688_v43 = vsub.f32 %v676_v34, %v685_v42  ;;  %v798_v34 = vld [vmem:[#allocation6 + $0x70] sm:$0xff]  ;;  %v822_v41 = vpack.c.bf16 %v794_v40, %v792_v39  ;;  %v789_v42 = vld [vmem:[#allocation6 + $0x28] sm:$0xff] }
 0x69f   :  { %v824_v35 = vpack.c.bf16 %v798_v34, %v796_v33  ;;  %v1129_v33 = vld [vmem:[%s3780_s14 + $0x310] sm:$0xff] }
 0x6a0   :  { %v693_v44 = vmul.f32 1.442695, %v688_v43  ;;  %v791_v43 = vld [vmem:[#allocation6 + $0x38] sm:$0xff]  ;;  %v1137_v34 = vld [vmem:[%s3780_s14 + $0x350] sm:$0xff] }
 0x6a1   :  { %v1113_v39 = vld [vmem:[%s3780_s14 + $0x290] sm:$0xff] }
 0x6a2   :  { %2274 = vpow2.f32 %v693_v44  ;;  %v821_v44 = vpack.c.bf16 %v791_v43, %v789_v42  ;;  %v1121_v40 = vld [vmem:[%s3780_s14 + $0x2d0] sm:$0xff]  ;;  %v1098_v42 = vld [vmem:[%s3780_s14 + $0x218] sm:$0xff] }
 0x6a3   :  { %v1106_v43 = vld [vmem:[%s3780_s14 + $0x258] sm:$0xff] }
 0x6a7   :  { %v2271_v45 = vpop.eup %2270 }
 0x6a8   :  { %v695_v46 = vsel %vm104_vm1, %v2271_v45, 0.0  ;;  %v788_v45 = vld [vmem:[#allocation6 + $0x20] sm:$0xff] }
 0x6a9   :  { %v698_v47 = vsel %vm339_vm4, %v695_v46, 0.0 }
 0x6aa   :  { %699 = vadd.xlane.f32.xlu0 %v698_v47 }
 0x6ab   :  { %v2273_v48 = vpop.eup %2272 }
 0x6ac   :  { %v696_v49 = vsel %vm105_vm5, %v2273_v48, 0.0  ;;  %v785_v48 = vld [vmem:[#allocation6 + $0x8] sm:$0xff] }
 0x6ad   :  { %v701_v50 = vsel %vm339_vm4, %v696_v49, 0.0 }
 0x6ae   :  { %702 = vadd.xlane.f32.xlu1 %v701_v50 }
 0x6af   :  { %v2275_v51 = vpop.eup %2274 }
 0x6b0   :  { %v697_v52 = vsel %vm106_vm7, %v2275_v51, 0.0  ;;  %v784_v51 = vld [vmem:[#allocation6] sm:$0xff] }
 0x6b1   :  { %v704_v53 = vsel %vm339_vm4, %v697_v52, 0.0 }
 0x6b2   :  { %705 = vadd.xlane.f32.xlu0 %v704_v53 }
 0x733   :  { %v700_v56 = vpop.xlane.xlu0 %699 }
 0x734   :  { %v707_v57 = vmax.f32 %v700_v56, 1e-30  ;;  %v2018_v56 = vld [vmem:[%s3777_s11] ss:$0 sm:$0xff] }
 0x736   :  { %2276 = vrcp.f32 %v707_v57 }
 0x737   :  { %v703_v58 = vpop.xlane.xlu1 %702 }
 0x738   :  { %v708_v14 = vmax.f32 %v703_v58, 1e-30 }
 0x73a   :  { %2278 = vrcp.f32 %v708_v14 }
 0x73b   :  { %v706_v59 = vpop.xlane.xlu0 %705 }
 0x73c   :  { %v709_v60 = vmax.f32 %v706_v59, 1e-30 }
 0x73e   :  { %2280 = vrcp.f32 %v709_v60 }
 0x743   :  { %v2277_v62 = vpop.eup %2276 }
 0x744   :  { %v713_v21 = vmul.f32 %v2277_v62, %v695_v46  ;;  %v790_v46 = vld [vmem:[#allocation6 + $0x30] sm:$0xff] }
 0x745   :  { %v820_v47 = vpack.c.bf16 %v790_v46, %v788_v45  ;;  %v1097_v45 = vld [vmem:[%s3780_s14 + $0x210] sm:$0xff] }
 0x746   :  { %v1105_v46 = vld [vmem:[%s3780_s14 + $0x250] sm:$0xff] }
 0x747   :  { %v2279_v63 = vpop.eup %2278 }
 0x748   :  { %v714_v1 = vmul.f32 %v2279_v63, %v696_v49  ;;  %v787_v49 = vld [vmem:[#allocation6 + $0x18] sm:$0xff] }
 0x749   :  { %v819_v50 = vpack.c.bf16 %v787_v49, %v785_v48  ;;  %v1082_v48 = vld [vmem:[%s3780_s14 + $0x198] sm:$0xff] }
 0x74a   :  { %v716_v2 = vpack.c.bf16 %v714_v1, %v713_v21  ;;  %v1090_v49 = vld [vmem:[%s3780_s14 + $0x1d8] sm:$0xff] }
 0x74b   :  { %v2281_v5 = vpop.eup %2280 }
 0x74c   :  { %2219 = vmatprep.mubr.msk.bf16.mxu0 %vm339_vm4, %v716_v2  ;;  %v715_v8 = vmul.f32 %v2281_v5, %v697_v52  ;;  %v786_v52 = vld [vmem:[#allocation6 + $0x10] sm:$0xff] }
 0x74d   :  { %v818_v53 = vpack.c.bf16 %v786_v52, %v784_v51  ;;  %v1081_v51 = vld [vmem:[%s3780_s14 + $0x190] sm:$0xff] }
 0x74e   :  { %v717_v11 = vpack.c.bf16 %v715_v8, %v715_v8  ;;  %v1089_v52 = vld [vmem:[%s3780_s14 + $0x1d0] sm:$0xff] }
 0x750   :  { %2220 = vmatmul.mubr.msk.bf16.vlgmr.msra.gmra.mxu0 %vm339_vm4, %v717_v11 }
 0x751   :  { %835 = vmatpush1.bf16.msra.mxu0 %v832_v10  ;;  %866 = vmatprep.mubr.bf16.mxu0 %v2353_v54 }
 0x752   :  { %836 = vmatprep.subr.bf16.mxu0 %v831_v12 }
 0x755   :  { %837 = vmatpush1.bf16.msra.mxu0 %v830_v18  ;;  %v886_v18 = vld [vmem:[%s3793_s19 + $0x8] sm:$0xff] }
 0x756   :  { %838 = vmatprep.subr.bf16.mxu0 %v829_v19  ;;  %v888_v20 = vpack.c.bf16 %v886_v18, %v885_v17  ;;  %v1257_v18 = vld [vmem:[%s3780_s14 + $0x710] sm:$0xff] }
 0x759   :  { %839 = vmatpush1.bf16.msra.mxu0 %v828_v25  ;;  %v1154_v25 = vld [vmem:[%s3780_s14 + $0x3d8] sm:$0xff] }
 0x75a   :  { %840 = vmatprep.subr.bf16.mxu0 %v827_v26  ;;  %v1348_v26 = vpack.c.bf16 %v1154_v25, %v1146_v24  ;;  %v1241_v25 = vld [vmem:[%s3780_s14 + $0x690] sm:$0xff] }
 0x75d   :  { %841 = vmatpush1.bf16.msra.mxu0 %v826_v31  ;;  %v1138_v31 = vld [vmem:[%s3780_s14 + $0x358] sm:$0xff] }
 0x75e   :  { %842 = vmatprep.subr.bf16.mxu0 %v825_v32  ;;  %v1340_v32 = vpack.c.bf16 %v1138_v31, %v1130_v30  ;;  %v1225_v31 = vld [vmem:[%s3780_s14 + $0x610] sm:$0xff] }
 0x761   :  { %843 = vmatpush1.bf16.msra.mxu0 %v824_v35  ;;  %v1339_v35 = vpack.c.bf16 %v1137_v34, %v1129_v33  ;;  %v1210_v34 = vld [vmem:[%s3780_s14 + $0x598] sm:$0xff] }
 0x762   :  { %844 = vmatprep.subr.bf16.mxu0 %v823_v38  ;;  %v1332_v38 = vpack.c.bf16 %v1122_v37, %v1114_v36  ;;  %v1209_v37 = vld [vmem:[%s3780_s14 + $0x590] sm:$0xff] }
 0x765   :  { %845 = vmatpush1.bf16.msra.mxu0 %v822_v41  ;;  %v1331_v41 = vpack.c.bf16 %v1121_v40, %v1113_v39  ;;  %v1194_v40 = vld [vmem:[%s3780_s14 + $0x518] sm:$0xff] }
 0x766   :  { %846 = vmatprep.subr.bf16.mxu0 %v821_v44  ;;  %v1324_v44 = vpack.c.bf16 %v1106_v43, %v1098_v42  ;;  %v1193_v43 = vld [vmem:[%s3780_s14 + $0x510] sm:$0xff] }
 0x769   :  { %847 = vmatpush1.bf16.msra.mxu0 %v820_v47  ;;  %v1323_v47 = vpack.c.bf16 %v1105_v46, %v1097_v45  ;;  %v1178_v46 = vld [vmem:[%s3780_s14 + $0x498] sm:$0xff] }
 0x76a   :  { %848 = vmatprep.subr.bf16.mxu0 %v819_v50  ;;  %v1316_v50 = vpack.c.bf16 %v1090_v49, %v1082_v48  ;;  %v1177_v49 = vld [vmem:[%s3780_s14 + $0x490] sm:$0xff] }
 0x76d   :  { %849 = vmatpush1.bf16.msra.mxu0 %v818_v53  ;;  %v1315_v53 = vpack.c.bf16 %v1089_v52, %v1081_v51 }
 0x76e   :  { %1500 = vmatprep.subr.bf16.mxu0 %v1348_v26  ;;  %v1249_v26 = vld [vmem:[%s3780_s14 + $0x6d0] sm:$0xff] }
 0x76f   :  { %v1395_v27 = vpack.c.bf16 %v1249_v26, %v1241_v25  ;;  %v1128_v25 = vld [vmem:[%s3780_s14 + $0x308] sm:$0xff] }
 0x770   :  { %v1136_v26 = vld [vmem:[%s3780_s14 + $0x348] sm:$0xff] }
 0x810   :  { %v2221_v9 = vpop.f32.mrf.mxu0 }
 0x811   :  { %v776_v63 = vadd.f32 %v2221_v9, %v2018_v56  ;;  %v1074_v9 = vld [vmem:[%s3780_s14 + $0x158] sm:$0xff] }
 0x812   :  { %v767_v55 = vpop.f32.mrf.mxu0 }
 0x813   :  { %v768_v58 = vadd.f32 %v2018_v56, %v767_v55  ;;  %v783_v1 = vmax.f32 %v776_v63, 0.0  ;;  %v1057_v63 = vld [vmem:[%s3780_s14 + $0xd0] sm:$0xff] }
 0x814   :  { %v2222_v57 = vpop.f32.mrf.mxu0 }
 0x815   :  { %v781_v60 = vmax.f32 %v768_v58, 0.0  ;;  %v817_v2 = vpack.c.bf16 %v783_v1, %v783_v1  ;;  %v1073_v57 = vld [vmem:[%s3780_s14 + $0x150] sm:$0xff]  ;;  %v1034_v1 = vld [vmem:[%s3780_s14 + $0x18] sm:$0xff] }
 0x816   :  { %v770_v14 = vpop.f32.mrf.mxu0 }
 0x817   :  { %v771_v59 = vadd.f32 %v2018_v56, %v770_v14  ;;  %v1065_v56 = vld [vmem:[%s3780_s14 + $0x110] sm:$0xff]  ;;  %v1050_v14 = vld [vmem:[%s3780_s14 + $0x98] sm:$0xff] }
 0x818   :  { %v1307_v58 = vpack.c.bf16 %v1073_v57, %v1065_v56 }
 0x819   :  { %v782_v62 = vmax.f32 %v771_v59, 0.0  ;;  %v1058_v59 = vld [vmem:[%s3780_s14 + $0xd8] sm:$0xff] }
 0x81b   :  { %v816_v21 = vpack.c.bf16 %v782_v62, %v781_v60  ;;  %v1300_v60 = vpack.c.bf16 %v1058_v59, %v1050_v14  ;;  %v1049_v62 = vld [vmem:[%s3780_s14 + $0x90] sm:$0xff] }
 0x81d   :  { %867 = vmatmul.mubr.bf16.vlgmr.msra.gmra.mxu0 %v816_v21  ;;  %v1299_v21 = vpack.c.bf16 %v1057_v63, %v1049_v62 }
 0x81e   :  { %876 = vmatprep.mubr.bf16.mxu0 %v2353_v54  ;;  %1501 = vmatpush1.bf16.msra.mxu0 %v1347_v29  ;;  %v1234_v29 = vld [vmem:[%s3780_s14 + $0x658] sm:$0xff] }
 0x81f   :  { %1502 = vmatprep.subr.bf16.mxu0 %v1340_v32  ;;  %v1388_v30 = vpack.c.bf16 %v1234_v29, %v1226_v28  ;;  %v1233_v32 = vld [vmem:[%s3780_s14 + $0x650] sm:$0xff]  ;;  %v1338_v29 = vpack.c.bf16 %v1136_v26, %v1128_v25  ;;  %v1224_v25 = vld [vmem:[%s3780_s14 + $0x608] sm:$0xff] }
 0x820   :  { %v1387_v33 = vpack.c.bf16 %v1233_v32, %v1225_v31  ;;  %v1135_v31 = vld [vmem:[%s3780_s14 + $0x340] sm:$0xff]  ;;  %v1112_v32 = vld [vmem:[%s3780_s14 + $0x288] sm:$0xff] }
 0x821   :  { %v1232_v26 = vld [vmem:[%s3780_s14 + $0x648] sm:$0xff] }
 0x822   :  { %1503 = vmatpush1.bf16.msra.mxu0 %v1339_v35  ;;  %v1218_v35 = vld [vmem:[%s3780_s14 + $0x5d8] sm:$0xff] }
 0x823   :  { %1504 = vmatprep.subr.bf16.mxu0 %v1332_v38  ;;  %v1380_v36 = vpack.c.bf16 %v1218_v35, %v1210_v34  ;;  %v1217_v38 = vld [vmem:[%s3780_s14 + $0x5d0] sm:$0xff] }
 0x824   :  { %v1379_v39 = vpack.c.bf16 %v1217_v38, %v1209_v37  ;;  %v1119_v37 = vld [vmem:[%s3780_s14 + $0x2c0] sm:$0xff]  ;;  %v1096_v38 = vld [vmem:[%s3780_s14 + $0x208] sm:$0xff] }
 0x825   :  { %877 = vmatmul.mubr.bf16.gmra.mxu0 %v817_v2  ;;  %v1042_v2 = vld [vmem:[%s3780_s14 + $0x58] sm:$0xff] }
 0x826   :  { %1505 = vmatpush1.bf16.msra.mxu0 %v1331_v41  ;;  %v1202_v41 = vld [vmem:[%s3780_s14 + $0x558] sm:$0xff] }
 0x827   :  { %1506 = vmatprep.subr.bf16.mxu0 %v1324_v44  ;;  %v1372_v42 = vpack.c.bf16 %v1202_v41, %v1194_v40  ;;  %v1201_v44 = vld [vmem:[%s3780_s14 + $0x550] sm:$0xff] }
 0x828   :  { %v1371_v45 = vpack.c.bf16 %v1201_v44, %v1193_v43  ;;  %v1103_v43 = vld [vmem:[%s3780_s14 + $0x240] sm:$0xff]  ;;  %v1080_v44 = vld [vmem:[%s3780_s14 + $0x188] sm:$0xff] }
 0x82a   :  { %1507 = vmatpush1.bf16.msra.mxu0 %v1323_v47  ;;  %v1186_v47 = vld [vmem:[%s3780_s14 + $0x4d8] sm:$0xff] }
 0x82b   :  { %1508 = vmatprep.subr.bf16.mxu0 %v1316_v50  ;;  %v1364_v48 = vpack.c.bf16 %v1186_v47, %v1178_v46  ;;  %v1185_v50 = vld [vmem:[%s3780_s14 + $0x4d0] sm:$0xff] }
 0x82c   :  { %v1363_v51 = vpack.c.bf16 %v1185_v50, %v1177_v49  ;;  %v1087_v49 = vld [vmem:[%s3780_s14 + $0x1c0] sm:$0xff]  ;;  %v1064_v50 = vld [vmem:[%s3780_s14 + $0x108] sm:$0xff] }
 0x82e   :  { %1509 = vmatpush1.bf16.msra.mxu0 %v1315_v53 }
 0x8dd   :  { %v868_v3 = vpop.f32.mrf.mxu0 }
 0x8df   :  { %v870_v4 = vpop.f32.mrf.mxu0 }
 0x8e1   :  { %v872_v5 = vpop.f32.mrf.mxu0 }
 0x8e2   :  { %v890_v19 = vpack.c.bf16 %v872_v5, %v868_v3  ;;  %v1292_v3 = vpack.c.bf16 %v1042_v2, %v1034_v1  ;;  %v1041_v5 = vld [vmem:[%s3780_s14 + $0x50] sm:$0xff] }
 0x8e3   :  { %v874_v6 = vpop.f32.mrf.mxu0 }
 0x8e4   :  { %v891_v13 = vpack.c.bf16 %v874_v6, %v870_v4  ;;  %v1033_v4 = vld [vmem:[%s3780_s14 + $0x10] sm:$0xff] }
 0x8e5   :  { %v878_v7 = vpop.f32.mrf.mxu0  ;;  %v1291_v6 = vpack.c.bf16 %v1041_v5, %v1033_v4 }
 0x8e6   :  { %v892_v8 = vpack.c.bf16 %v878_v7, %v878_v7  ;;  %v1274_v7 = vld [vmem:[%s3780_s14 + $0x798] sm:$0xff] }
 0x8e7   :  { %v880_v10 = vpop.f32.mrf.mxu0 }
 0x8e8   :  { %v893_v11 = vpack.c.bf16 %v880_v10, %v880_v10  ;;  %v913_v15 = vsel %vm393_vm0, %v892_v8, 0  ;;  %v1282_v8 = vld [vmem:[%s3780_s14 + $0x7d8] sm:$0xff] }
 0x8e9   :  { %v882_v12 = vpop.f32.mrf.mxu0  ;;  %v1412_v10 = vpack.c.bf16 %v1282_v8, %v1274_v7 }
 0x8ea   :  { %2021 = vmatprep.subr.msk.bf16.mxu1 %vm393_vm0, %v893_v11  ;;  %v1273_v11 = vld [vmem:[%s3780_s14 + $0x790] sm:$0xff] }
 0x8eb   :  { %v883_v16 = vpop.f32.mrf.mxu0  ;;  %931 = vmatpush1.bf16.msra.mxu1 %v913_v15  ;;  %v1281_v12 = vld [vmem:[%s3780_s14 + $0x7d0] sm:$0xff]  ;;  %v1258_v15 = vld [vmem:[%s3780_s14 + $0x718] sm:$0xff] }
 0x8ec   :  { %932 = vmatprep.subr.bf16.mxu1 %v891_v13  ;;  %v1411_v13 = vpack.c.bf16 %v1281_v12, %v1273_v11  ;;  %v1266_v16 = vld [vmem:[%s3780_s14 + $0x758] sm:$0xff] }
 0x8ed   :  { %v1404_v17 = vpack.c.bf16 %v1266_v16, %v1258_v15  ;;  %v1152_v15 = vld [vmem:[%s3780_s14 + $0x3c8] sm:$0xff] }
 0x8ef   :  { %933 = vmatpush1.bf16.msra.mxu1 %v890_v19  ;;  %v1265_v19 = vld [vmem:[%s3780_s14 + $0x750] sm:$0xff] }
 0x8f2   :  { %2022 = vmatmul.mubr.msk.bf16.vlgmr.msra.gmra.mxu1 %vm339_vm4, %v888_v20  ;;  %v1403_v20 = vpack.c.bf16 %v1265_v19, %v1257_v18  ;;  %v975_v19 = vld [vmem:[%s3769_s3] sm:$0x3] }
 0x8f3   :  { %960 = vmatprep.mubr.bf16.mxu1 %v2353_v54 }
 0x8fa   :  { %2023 = vmatmul.mubr.msk.bf16.gmra.mxu1 %vm339_vm4, %v889_v23  ;;  %v1250_v23 = vld [vmem:[%s3780_s14 + $0x6d8] sm:$0xff] }
 0x8fb   :  { %1022 = vmatprep.mubr.bf16.mxu1 %v2353_v54  ;;  %v1066_v54 = vld [vmem:[%s3780_s14 + $0x118] sm:$0xff]  ;;  %v1396_v24 = vpack.c.bf16 %v1250_v23, %v1242_v22  ;;  %v1143_v22 = vld [vmem:[%s3780_s14 + $0x380] sm:$0xff] }
 0x8fc   :  { %v1308_v55 = vpack.c.bf16 %v1074_v9, %v1066_v54  ;;  %v902_v54 = vsub.s32 1, %v2475_v61  ;;  %v894_v9 = vld [vmem:[%s3779_s13] sm:$0x3] }
 0x8fd   :  { %v899_v57 = vrot.slane %v894_v9, %v2478_v0  ;;  %v1151_v23 = vld [vmem:[%s3780_s14 + $0x3c0] sm:$0xff] }
 0x8fe   :  { %1510 = vmatprep.subr.bf16.mxu0 %v1308_v55  ;;  %v1345_v28 = vpack.c.bf16 %v1151_v23, %v1143_v22  ;;  %v1239_v23 = vld [vmem:[%s3780_s14 + $0x680] sm:$0xff] }
 0x8ff   :  { %1511 = vmatpush1.bf16.msra.mxu0 %v1307_v58  ;;  %v903_v58 = vrot.slane %v894_v9, %v902_v54  ;;  %v1063_v9 = vld [vmem:[%s3780_s14 + $0x100] sm:$0xff] }
 0x900   :  { %1512 = vmatprep.subr.bf16.mxu0 %v1300_v60 }
 0x903   :  { %1513 = vmatpush1.bf16.msra.mxu0 %v1299_v21 }
 0x904   :  { %1514 = vmatprep.subr.bf16.mxu0 %v1292_v3 }
 0x907   :  { %1515 = vmatpush1.bf16.msra.mxu0 %v1291_v6 }
 0x908   :  { %1516 = vmatprep.subr.bf16.mxu0 %v1412_v10 }
 0x90b   :  { %1517 = vmatpush2.bf16.msra.mxu0 %v1411_v13  ;;  %v1144_v13 = vld [vmem:[%s3780_s14 + $0x388] sm:$0xff] }
 0x90c   :  { %1518 = vmatprep.subr.bf16.mxu0 %v1404_v17 }
 0x90f   :  { %1519 = vmatpush2.bf16.msra.mxu0 %v1403_v20  ;;  %v1346_v20 = vpack.c.bf16 %v1152_v15, %v1144_v13 }
 0x910   :  { %1520 = vmatprep.subr.bf16.mxu0 %v1396_v24 }
 0x913   :  { %1521 = vmatpush2.bf16.msra.mxu0 %v1395_v27  ;;  %v976_v27 = vpack.c.bf16 %v975_v19, %v975_v19  ;;  %v1248_v19 = vld [vmem:[%s3780_s14 + $0x6c8] sm:$0xff] }
 0x914   :  { %1522 = vmatprep.subr.bf16.mxu0 %v1388_v30  ;;  %v1127_v30 = vld [vmem:[%s3780_s14 + $0x300] sm:$0xff] }
 0x915   :  { %v1337_v34 = vpack.c.bf16 %v1135_v31, %v1127_v30  ;;  %v1231_v30 = vld [vmem:[%s3780_s14 + $0x640] sm:$0xff]  ;;  %v1208_v31 = vld [vmem:[%s3780_s14 + $0x588] sm:$0xff] }
 0x917   :  { %1523 = vmatpush2.bf16.msra.mxu0 %v1387_v33  ;;  %v1120_v33 = vld [vmem:[%s3780_s14 + $0x2c8] sm:$0xff] }
 0x918   :  { %1524 = vmatprep.subr.bf16.mxu0 %v1380_v36  ;;  %v1330_v35 = vpack.c.bf16 %v1120_v33, %v1112_v32  ;;  %v1111_v36 = vld [vmem:[%s3780_s14 + $0x280] sm:$0xff]  ;;  %v1216_v32 = vld [vmem:[%s3780_s14 + $0x5c8] sm:$0xff] }
 0x919   :  { %v1329_v40 = vpack.c.bf16 %v1119_v37, %v1111_v36  ;;  %v1215_v36 = vld [vmem:[%s3780_s14 + $0x5c0] sm:$0xff]  ;;  %v1192_v37 = vld [vmem:[%s3780_s14 + $0x508] sm:$0xff] }
 0x91b   :  { %1525 = vmatpush2.bf16.msra.mxu0 %v1379_v39  ;;  %v1104_v39 = vld [vmem:[%s3780_s14 + $0x248] sm:$0xff] }
 0x91c   :  { %1526 = vmatprep.subr.bf16.mxu0 %v1372_v42  ;;  %v1322_v41 = vpack.c.bf16 %v1104_v39, %v1096_v38  ;;  %v1095_v42 = vld [vmem:[%s3780_s14 + $0x200] sm:$0xff]  ;;  %v1200_v38 = vld [vmem:[%s3780_s14 + $0x548] sm:$0xff] }
 0x91d   :  { %v1321_v46 = vpack.c.bf16 %v1103_v43, %v1095_v42  ;;  %v1199_v42 = vld [vmem:[%s3780_s14 + $0x540] sm:$0xff]  ;;  %v1176_v43 = vld [vmem:[%s3780_s14 + $0x488] sm:$0xff] }
 0x91f   :  { %1527 = vmatpush2.bf16.msra.mxu0 %v1371_v45  ;;  %v1088_v45 = vld [vmem:[%s3780_s14 + $0x1c8] sm:$0xff] }
 0x920   :  { %1528 = vmatprep.subr.bf16.mxu0 %v1364_v48  ;;  %v1314_v47 = vpack.c.bf16 %v1088_v45, %v1080_v44  ;;  %v1079_v48 = vld [vmem:[%s3780_s14 + $0x180] sm:$0xff]  ;;  %v1184_v44 = vld [vmem:[%s3780_s14 + $0x4c8] sm:$0xff] }
 0x923   :  { %1529 = vmatpush2.bf16.msra.mxu0 %v1363_v51  ;;  %v1072_v51 = vld [vmem:[%s3780_s14 + $0x148] sm:$0xff] }
 0x9b2   :  { %v952_v52 = vpop.f32.mrf.mxu1 }
 0x9b3   :  { %v953_v7 = vadd.f32 %v952_v52, %v899_v57  ;;  %v1313_v52 = vpack.c.bf16 %v1087_v49, %v1079_v48  ;;  %v1183_v48 = vld [vmem:[%s3780_s14 + $0x4c0] sm:$0xff] }
 0x9b4   :  { %v954_v53 = vpop.f32.mrf.mxu1 }
 0x9b5   :  { %v955_v63 = vadd.f32 %v954_v53, %v903_v58  ;;  %v969_v18 = vmax.f32 %v953_v7, 0.0  ;;  %v1306_v53 = vpack.c.bf16 %v1072_v51, %v1064_v50  ;;  %v1160_v50 = vld [vmem:[%s3780_s14 + $0x408] sm:$0xff] }
 0x9b6   :  { %v956_v55 = vpop.f32.mrf.mxu1  ;;  %v1168_v51 = vld [vmem:[%s3780_s14 + $0x448] sm:$0xff] }
 0x9b7   :  { %v957_v2 = vadd.f32 %v956_v55, %v899_v57  ;;  %v970_v10 = vmax.f32 %v955_v63, 0.0  ;;  %v1071_v55 = vld [vmem:[%s3780_s14 + $0x140] sm:$0xff]  ;;  %v1040_v63 = vld [vmem:[%s3780_s14 + $0x48] sm:$0xff] }
 0x9b8   :  { %v958_v56 = vpop.f32.mrf.mxu1 }
 0x9b9   :  { %v959_v59 = vadd.f32 %v958_v56, %v903_v58  ;;  %v971_v12 = vmax.f32 %v957_v2, 0.0  ;;  %v1048_v56 = vld [vmem:[%s3780_s14 + $0x88] sm:$0xff]  ;;  %v1031_v2 = vld [vmem:[%s3780_s14] sm:$0xff] }
 0x9ba   :  { %v962_v14 = vpop.f32.mrf.mxu1 }
 0x9bb   :  { %v963_v60 = vadd.f32 %v962_v14, %v899_v57  ;;  %v972_v4 = vmax.f32 %v959_v59, 0.0  ;;  %v977_v24 = vpack.c.bf16 %v971_v12, %v969_v18  ;;  %v1056_v57 = vld [vmem:[%s3780_s14 + $0xc8] sm:$0xff]  ;;  %v1047_v59 = vld [vmem:[%s3780_s14 + $0x80] sm:$0xff] }
 0x9bc   :  { %v964_v62 = vpop.f32.mrf.mxu1  ;;  %v1298_v14 = vpack.c.bf16 %v1056_v57, %v1048_v56  ;;  %v1264_v12 = vld [vmem:[%s3780_s14 + $0x748] sm:$0xff]  ;;  %v1167_v56 = vld [vmem:[%s3780_s14 + $0x440] sm:$0xff] }
 0x9bd   :  { %v973_v21 = vmax.f32 %v963_v60, 0.0  ;;  %v965_v1 = vadd.f32 %v964_v62, %v903_v58  ;;  %v978_v16 = vpack.c.bf16 %v972_v4, %v970_v10  ;;  %v1305_v58 = vpack.c.bf16 %v1071_v55, %v1063_v9  ;;  %v1055_v60 = vld [vmem:[%s3780_s14 + $0xc0] sm:$0xff]  ;;  %v1032_v62 = vld [vmem:[%s3780_s14 + $0x8] sm:$0xff]  ;;  %v1170_v9 = vld [vmem:[%s3780_s14 + $0x458] sm:$0xff] }
 0x9be   :  { %v966_v3 = vpop.f32.mrf.mxu1  ;;  %v1272_v4 = vld [vmem:[%s3780_s14 + $0x788] sm:$0xff]  ;;  %v1279_v10 = vld [vmem:[%s3780_s14 + $0x7c0] sm:$0xff] }
 0x9bf   :  { %v979_v5 = vpack.c.bf16 %v973_v21, %v973_v21  ;;  %v974_v6 = vmax.f32 %v965_v1, 0.0  ;;  %v1297_v21 = vpack.c.bf16 %v1055_v60, %v1047_v59  ;;  %v1290_v1 = vpack.c.bf16 %v1040_v63, %v1032_v62  ;;  %v1039_v3 = vld [vmem:[%s3780_s14 + $0x40] sm:$0xff]  ;;  %v1240_v18 = vld [vmem:[%s3780_s14 + $0x688] sm:$0xff]  ;;  %v1169_v59 = vld [vmem:[%s3780_s14 + $0x450] sm:$0xff] }
 0x9c0   :  { %v967_v8 = vpop.f32.mrf.mxu1  ;;  %v1394_v22 = vpack.c.bf16 %v1248_v19, %v1240_v18  ;;  %v1159_v55 = vld [vmem:[%s3780_s14 + $0x400] sm:$0xff]  ;;  %v1148_v62 = vld [vmem:[%s3780_s14 + $0x3a8] sm:$0xff] }
 0x9c1   :  { %v980_v11 = vpack.c.bf16 %v974_v6, %v974_v6  ;;  %v985_v17 = vsel %vm393_vm0, %v979_v5, 0  ;;  %v1280_v5 = vld [vmem:[%s3780_s14 + $0x7c8] sm:$0xff]  ;;  %v1289_v6 = vpack.c.bf16 %v1039_v3, %v1031_v2  ;;  %v1271_v8 = vld [vmem:[%s3780_s14 + $0x780] sm:$0xff]  ;;  %v1158_v2 = vld [vmem:[%s3780_s14 + $0x3f8] sm:$0xff] }
 0x9c2   :  { %v1410_v7 = vpack.c.bf16 %v1280_v5, %v1272_v4  ;;  %v1409_v13 = vpack.c.bf16 %v1279_v10, %v1271_v8  ;;  %v1156_v63 = vld [vmem:[%s3780_s14 + $0x3e8] sm:$0xff]  ;;  %v1147_v4 = vld [vmem:[%s3780_s14 + $0x3a0] sm:$0xff]  ;;  %v1157_v8 = vld [vmem:[%s3780_s14 + $0x3f0] sm:$0xff] }
 0x9c3   :  { %2024 = vmatprep.subr.msk.bf16.mxu1 %vm393_vm0, %v980_v11  ;;  %v1256_v11 = vld [vmem:[%s3780_s14 + $0x708] sm:$0xff]  ;;  %v1155_v5 = vld [vmem:[%s3780_s14 + $0x3e0] sm:$0xff] }
 0x9c4   :  { %1003 = vmatpush1.bf16.msra.mxu1 %v985_v17  ;;  %v1402_v15 = vpack.c.bf16 %v1264_v12, %v1256_v11  ;;  %v1263_v17 = vld [vmem:[%s3780_s14 + $0x740] sm:$0xff]  ;;  %v1132_v10 = vld [vmem:[%s3780_s14 + $0x328] sm:$0xff]  ;;  %v1134_v12 = vld [vmem:[%s3780_s14 + $0x338] sm:$0xff] }
 0x9c5   :  { %1004 = vmatprep.subr.bf16.mxu1 %v978_v16  ;;  %v1255_v16 = vld [vmem:[%s3780_s14 + $0x700] sm:$0xff]  ;;  %v1140_v11 = vld [vmem:[%s3780_s14 + $0x368] sm:$0xff] }
 0x9c6   :  { %v1131_v19 = vld [vmem:[%s3780_s14 + $0x320] sm:$0xff] }
 0x9c8   :  { %1005 = vmatpush1.bf16.msra.mxu1 %v977_v24  ;;  %v1247_v24 = vld [vmem:[%s3780_s14 + $0x6c0] sm:$0xff] }
 0x9c9   :  { %1459 = vmatprep.subr.bf16.mxu1 %v1346_v20  ;;  %v1401_v20 = vpack.c.bf16 %v1263_v17, %v1255_v16  ;;  %v1349_v17 = vpack.c.bf16 %v1155_v5, %v1147_v4  ;;  %v1078_v4 = vld [vmem:[%s3780_s14 + $0x178] sm:$0xff] }
 0x9cb   :  { %2025 = vmatmul.mubr.msk.bf16.vlgmr.msra.gmra.mxu1 %vm339_vm4, %v976_v27  ;;  %v1393_v27 = vpack.c.bf16 %v1247_v24, %v1239_v23  ;;  %v1342_v24 = vpack.c.bf16 %v1140_v11, %v1132_v10 }
 0x9cc   :  { %1460 = vmatpush1.bf16.msra.mxu1 %v1345_v28  ;;  %v1386_v28 = vpack.c.bf16 %v1232_v26, %v1224_v25  ;;  %v1133_v26 = vld [vmem:[%s3780_s14 + $0x330] sm:$0xff] }
 0x9cd   :  { %1461 = vmatprep.subr.bf16.mxu1 %v1338_v29  ;;  %v1223_v29 = vld [vmem:[%s3780_s14 + $0x600] sm:$0xff] }
 0x9ce   :  { %v1385_v33 = vpack.c.bf16 %v1231_v30, %v1223_v29  ;;  %v1124_v29 = vld [vmem:[%s3780_s14 + $0x2e8] sm:$0xff]  ;;  %v1118_v30 = vld [vmem:[%s3780_s14 + $0x2b8] sm:$0xff] }
 0x9d0   :  { %1462 = vmatpush1.bf16.msra.mxu1 %v1337_v34  ;;  %v1378_v34 = vpack.c.bf16 %v1216_v32, %v1208_v31  ;;  %v1126_v31 = vld [vmem:[%s3780_s14 + $0x2f8] sm:$0xff] }
 0x9d1   :  { %1463 = vmatprep.subr.bf16.mxu1 %v1330_v35  ;;  %v1207_v35 = vld [vmem:[%s3780_s14 + $0x580] sm:$0xff] }
 0x9d2   :  { %v1377_v39 = vpack.c.bf16 %v1215_v36, %v1207_v35  ;;  %v1115_v35 = vld [vmem:[%s3780_s14 + $0x2a0] sm:$0xff] }
 0x9d3   :  { %v1123_v36 = vld [vmem:[%s3780_s14 + $0x2e0] sm:$0xff] }
 0x9d4   :  { %1464 = vmatpush1.bf16.msra.mxu1 %v1329_v40  ;;  %v1370_v40 = vpack.c.bf16 %v1200_v38, %v1192_v37  ;;  %v1336_v38 = vpack.c.bf16 %v1126_v31, %v1118_v30  ;;  %v1044_v30 = vld [vmem:[%s3780_s14 + $0x68] sm:$0xff]  ;;  %v1038_v31 = vld [vmem:[%s3780_s14 + $0x38] sm:$0xff] }
 0x9d5   :  { %1465 = vmatprep.subr.bf16.mxu1 %v1322_v41  ;;  %v1191_v41 = vld [vmem:[%s3780_s14 + $0x500] sm:$0xff] }
 0x9d6   :  { %v1369_v45 = vpack.c.bf16 %v1199_v42, %v1191_v41  ;;  %v1100_v41 = vld [vmem:[%s3780_s14 + $0x228] sm:$0xff] }
 0x9d7   :  { %v1108_v42 = vld [vmem:[%s3780_s14 + $0x268] sm:$0xff] }
 0x9d8   :  { %1466 = vmatpush1.bf16.msra.mxu1 %v1321_v46  ;;  %v1362_v46 = vpack.c.bf16 %v1184_v44, %v1176_v43  ;;  %v1102_v43 = vld [vmem:[%s3780_s14 + $0x238] sm:$0xff] }
 0x9d9   :  { %1467 = vmatprep.subr.bf16.mxu1 %v1314_v47  ;;  %v1175_v47 = vld [vmem:[%s3780_s14 + $0x480] sm:$0xff]  ;;  %v1110_v44 = vld [vmem:[%s3780_s14 + $0x278] sm:$0xff] }
 0x9da   :  { %v1361_v49 = vpack.c.bf16 %v1183_v48, %v1175_v47  ;;  %v1099_v47 = vld [vmem:[%s3780_s14 + $0x220] sm:$0xff] }
 0x9db   :  { %v1107_v48 = vld [vmem:[%s3780_s14 + $0x260] sm:$0xff] }
 0x9dc   :  { %1468 = vmatpush1.bf16.msra.mxu1 %v1313_v52  ;;  %v1162_v52 = vld [vmem:[%s3780_s14 + $0x418] sm:$0xff] }
 0x9dd   :  { %1469 = vmatprep.subr.bf16.mxu1 %v1306_v53  ;;  %v1354_v53 = vpack.c.bf16 %v1168_v51, %v1160_v50  ;;  %v1356_v57 = vpack.c.bf16 %v1170_v9, %v1162_v52  ;;  %v1328_v50 = vpack.c.bf16 %v1110_v44, %v1102_v43  ;;  %v1101_v51 = vld [vmem:[%s3780_s14 + $0x230] sm:$0xff]  ;;  %v1092_v9 = vld [vmem:[%s3780_s14 + $0x1e8] sm:$0xff]  ;;  %v1278_v43 = vld [vmem:[%s3780_s14 + $0x7b8] sm:$0xff] }
 0x9de   :  { %v1109_v52 = vld [vmem:[%s3780_s14 + $0x270] sm:$0xff]  ;;  %v1286_v44 = vld [vmem:[%s3780_s14 + $0x7f8] sm:$0xff] }
 0x9df   :  { %1530 = vmatprep.subr.bf16.mxu0 %v1356_v57  ;;  %v1325_v57 = vpack.c.bf16 %v1107_v48, %v1099_v47  ;;  %v1275_v47 = vld [vmem:[%s3780_s14 + $0x7a0] sm:$0xff] }
 0x9e0   :  { %1470 = vmatpush1.bf16.msra.mxu1 %v1305_v58  ;;  %v1353_v58 = vpack.c.bf16 %v1167_v56, %v1159_v55  ;;  %v1086_v55 = vld [vmem:[%s3780_s14 + $0x1b8] sm:$0xff]  ;;  %v1283_v48 = vld [vmem:[%s3780_s14 + $0x7e0] sm:$0xff] }
 0x9e1   :  { %1471 = vmatprep.subr.bf16.mxu1 %v1298_v14  ;;  %v1161_v14 = vld [vmem:[%s3780_s14 + $0x410] sm:$0xff]  ;;  %v1094_v56 = vld [vmem:[%s3780_s14 + $0x1f8] sm:$0xff] }
 0x9e2   :  { %v1355_v60 = vpack.c.bf16 %v1169_v59, %v1161_v14  ;;  %v1083_v14 = vld [vmem:[%s3780_s14 + $0x1a0] sm:$0xff] }
 0x9e3   :  { %v1091_v59 = vld [vmem:[%s3780_s14 + $0x1e0] sm:$0xff] }
 0x9e4   :  { %1472 = vmatpush1.bf16.msra.mxu1 %v1297_v21  ;;  %v1150_v21 = vld [vmem:[%s3780_s14 + $0x3b8] sm:$0xff]  ;;  %1531 = vmatpush2.bf16.msra.mxu0 %v1355_v60  ;;  %v1317_v5 = vpack.c.bf16 %v1091_v59, %v1083_v14  ;;  %v1259_v14 = vld [vmem:[%s3780_s14 + $0x720] sm:$0xff] }
 0x9e5   :  { %1473 = vmatprep.subr.bf16.mxu1 %v1290_v1  ;;  %v1350_v1 = vpack.c.bf16 %v1156_v63, %v1148_v62  ;;  %v1352_v3 = vpack.c.bf16 %v1158_v2, %v1150_v21  ;;  %v1320_v62 = vpack.c.bf16 %v1094_v56, %v1086_v55  ;;  %v1085_v63 = vld [vmem:[%s3780_s14 + $0x1b0] sm:$0xff]  ;;  %v1076_v2 = vld [vmem:[%s3780_s14 + $0x168] sm:$0xff]  ;;  %v1262_v55 = vld [vmem:[%s3780_s14 + $0x738] sm:$0xff] }
 0x9e6   :  { %v1093_v21 = vld [vmem:[%s3780_s14 + $0x1f0] sm:$0xff]  ;;  %v1270_v56 = vld [vmem:[%s3780_s14 + $0x778] sm:$0xff]  ;;  %v1267_v59 = vld [vmem:[%s3780_s14 + $0x760] sm:$0xff] }
 0x9e7   :  { %1582 = vmatprep.subr.bf16.mxu0 %v1352_v3  ;;  %v1070_v3 = vld [vmem:[%s3780_s14 + $0x138] sm:$0xff] }
 0x9e8   :  { %1474 = vmatpush1.bf16.msra.mxu1 %v1289_v6  ;;  %v1312_v11 = vpack.c.bf16 %v1078_v4, %v1070_v3  ;;  %v1246_v3 = vld [vmem:[%s3780_s14 + $0x6b8] sm:$0xff] }
 0x9e9   :  { %1475 = vmatprep.subr.bf16.mxu1 %v1410_v7  ;;  %v1149_v7 = vld [vmem:[%s3780_s14 + $0x3b0] sm:$0xff]  ;;  %v1254_v4 = vld [vmem:[%s3780_s14 + $0x6f8] sm:$0xff] }
 0x9ea   :  { %v1351_v18 = vpack.c.bf16 %v1157_v8, %v1149_v7  ;;  %v1067_v7 = vld [vmem:[%s3780_s14 + $0x120] sm:$0xff] }
 0x9eb   :  { %v1075_v8 = vld [vmem:[%s3780_s14 + $0x160] sm:$0xff] }
 0x9ec   :  { %1476 = vmatpush2.bf16.msra.mxu1 %v1409_v13  ;;  %v1142_v13 = vld [vmem:[%s3780_s14 + $0x378] sm:$0xff] }
 0x9ed   :  { %1477 = vmatprep.subr.bf16.mxu1 %v1402_v15  ;;  %v1344_v25 = vpack.c.bf16 %v1142_v13, %v1134_v12  ;;  %v1069_v12 = vld [vmem:[%s3780_s14 + $0x130] sm:$0xff] }
 0x9ee   :  { %v1077_v13 = vld [vmem:[%s3780_s14 + $0x170] sm:$0xff] }
 0x9f0   :  { %1478 = vmatpush2.bf16.msra.mxu1 %v1401_v20  ;;  %v1139_v20 = vld [vmem:[%s3780_s14 + $0x360] sm:$0xff] }
 0x9f1   :  { %1479 = vmatprep.subr.bf16.mxu1 %v1394_v22 }
 0x9f4   :  { %1480 = vmatpush2.bf16.msra.mxu1 %v1393_v27  ;;  %v1141_v27 = vld [vmem:[%s3780_s14 + $0x370] sm:$0xff] }
 0x9f5   :  { %1481 = vmatprep.subr.bf16.mxu1 %v1386_v28  ;;  %v1116_v28 = vld [vmem:[%s3780_s14 + $0x2a8] sm:$0xff] }
 0x9f6   :  { %v1334_v37 = vpack.c.bf16 %v1124_v29, %v1116_v28  ;;  %v1061_v28 = vld [vmem:[%s3780_s14 + $0xf0] sm:$0xff]  ;;  %v1036_v29 = vld [vmem:[%s3780_s14 + $0x28] sm:$0xff] }
 0x9f8   :  { %1482 = vmatpush2.bf16.msra.mxu1 %v1385_v33  ;;  %v1341_v33 = vpack.c.bf16 %v1139_v20, %v1131_v19  ;;  %v1309_v19 = vpack.c.bf16 %v1075_v8, %v1067_v7  ;;  %v1311_v20 = vpack.c.bf16 %v1077_v13, %v1069_v12  ;;  %v1243_v7 = vld [vmem:[%s3780_s14 + $0x6a0] sm:$0xff]  ;;  %v1245_v12 = vld [vmem:[%s3780_s14 + $0x6b0] sm:$0xff] }
 0x9f9   :  { %1483 = vmatprep.subr.bf16.mxu1 %v1378_v34  ;;  %v1343_v34 = vpack.c.bf16 %v1141_v27, %v1133_v26  ;;  %v1053_v27 = vld [vmem:[%s3780_s14 + $0xb0] sm:$0xff]  ;;  %v1251_v8 = vld [vmem:[%s3780_s14 + $0x6e0] sm:$0xff] }
 0x9fa   :  { %v1253_v13 = vld [vmem:[%s3780_s14 + $0x6f0] sm:$0xff] }
 0x9fc   :  { %1484 = vmatpush2.bf16.msra.mxu1 %v1377_v39  ;;  %v1117_v39 = vld [vmem:[%s3780_s14 + $0x2b0] sm:$0xff] }
 0x9fd   :  { %1485 = vmatprep.subr.bf16.mxu1 %v1370_v40  ;;  %v1125_v40 = vld [vmem:[%s3780_s14 + $0x2f0] sm:$0xff] }
 0xa00   :  { %1486 = vmatpush2.bf16.msra.mxu1 %v1369_v45  ;;  %v1333_v45 = vpack.c.bf16 %v1123_v36, %v1115_v35  ;;  %v1035_v35 = vld [vmem:[%s3780_s14 + $0x20] sm:$0xff] }
 0xa01   :  { %1487 = vmatprep.subr.bf16.mxu1 %v1362_v46  ;;  %v1335_v46 = vpack.c.bf16 %v1125_v40, %v1117_v39  ;;  %v1043_v36 = vld [vmem:[%s3780_s14 + $0x60] sm:$0xff]  ;;  %v1037_v39 = vld [vmem:[%s3780_s14 + $0x30] sm:$0xff] }
 0xa02   :  { %v1045_v40 = vld [vmem:[%s3780_s14 + $0x70] sm:$0xff] }
 0xa04   :  { %1488 = vmatpush2.bf16.msra.mxu1 %v1361_v49  ;;  %v1326_v49 = vpack.c.bf16 %v1108_v42, %v1100_v41  ;;  %v1276_v41 = vld [vmem:[%s3780_s14 + $0x7a8] sm:$0xff] }
 0xa05   :  { %1489 = vmatprep.subr.bf16.mxu1 %v1354_v53  ;;  %v1084_v53 = vld [vmem:[%s3780_s14 + $0x1a8] sm:$0xff] }
 0xa06   :  { %v1318_v60 = vpack.c.bf16 %v1092_v9, %v1084_v53  ;;  %v1284_v42 = vld [vmem:[%s3780_s14 + $0x7e8] sm:$0xff] }
 0xa07   :  { %v1260_v53 = vld [vmem:[%s3780_s14 + $0x728] sm:$0xff] }
 0xa08   :  { %1490 = vmatpush2.bf16.msra.mxu1 %v1353_v58  ;;  %v1327_v58 = vpack.c.bf16 %v1109_v52, %v1101_v51  ;;  %v1277_v51 = vld [vmem:[%s3780_s14 + $0x7b0] sm:$0xff]  ;;  %v1268_v9 = vld [vmem:[%s3780_s14 + $0x768] sm:$0xff] }
 0xa09   :  { %1541 = vmatprep.subr.bf16.mxu1 %v1350_v1  ;;  %v1068_v1 = vld [vmem:[%s3780_s14 + $0x128] sm:$0xff]  ;;  %v1285_v52 = vld [vmem:[%s3780_s14 + $0x7f0] sm:$0xff] }
 0xa0a   :  { %v1310_v10 = vpack.c.bf16 %v1076_v2, %v1068_v1  ;;  %v1244_v1 = vld [vmem:[%s3780_s14 + $0x6a8] sm:$0xff] }
 0xa0b   :  { %v1252_v2 = vld [vmem:[%s3780_s14 + $0x6e8] sm:$0xff] }
 0xa8b   :  { %v1024_v6 = vpop.f32.mrf.mxu1 }
 0xa8c   :  { %v3006_v22 = vpack.c.bf16 %v1024_v6, %v1024_v6  ;;  %v1319_v6 = vpack.c.bf16 %v1093_v21, %v1085_v63  ;;  %v1261_v63 = vld [vmem:[%s3780_s14 + $0x730] sm:$0xff] }
 0xa8d   :  { %v1026_v15 = vpop.f32.mrf.mxu1  ;;  %v1269_v21 = vld [vmem:[%s3780_s14 + $0x770] sm:$0xff] }
 0xa8e   :  { %v1288_v16 = vpack.c.bf16 %v1026_v15, %v1026_v15  ;;  %v1052_v15 = vld [vmem:[%s3780_s14 + $0xa8] sm:$0xff] }
 0xa8f   :  { %v1028_v23 = vpop.f32.mrf.mxu1 }
 0xa90   :  { %1491 = vmatprep.mubr.bf16.mxu1 %v1288_v16  ;;  %1532 = vmatprep.mubr.bf16.mxu0 %v1288_v16  ;;  %v1051_v23 = vld [vmem:[%s3780_s14 + $0xa0] sm:$0xff] }
 0xa91   :  { %1492 = vmatmul.mubr.bf16.vlgmr.msra.gmra.mxu1 %v3006_v22  ;;  %1533 = vmatmul.mubr.bf16.vlgmr.msra.gmra.mxu0 %v3006_v22  ;;  %v1029_v32 = vpop.f32.mrf.mxu1 }
 0xa92   :  { %1542 = vmatpush1.bf16.msra.mxu1 %v1349_v17  ;;  %1583 = vmatpush1.bf16.msra.mxu0 %v1351_v18  ;;  %v1054_v17 = vld [vmem:[%s3780_s14 + $0xb8] sm:$0xff] }
 0xa93   :  { %1543 = vmatprep.subr.bf16.mxu1 %v1342_v24  ;;  %1584 = vmatprep.subr.bf16.mxu0 %v1344_v25  ;;  %v1062_v18 = vld [vmem:[%s3780_s14 + $0xf8] sm:$0xff]  ;;  %v1059_v24 = vld [vmem:[%s3780_s14 + $0xe0] sm:$0xff] }
 0xa94   :  { %1573 = vmatprep.mubr.bf16.mxu1 %v1288_v16  ;;  %1614 = vmatprep.mubr.bf16.mxu0 %v1288_v16  ;;  %v1060_v16 = vld [vmem:[%s3780_s14 + $0xe8] sm:$0xff]  ;;  %v1304_v26 = vpack.c.bf16 %v1062_v18, %v1054_v17  ;;  %v1046_v32 = vld [vmem:[%s3780_s14 + $0x78] sm:$0xff] }
 0xa95   :  { %v1302_v25 = vpack.c.bf16 %v1060_v16, %v1052_v15  ;;  %v1228_v15 = vld [vmem:[%s3780_s14 + $0x628] sm:$0xff]  ;;  %v1230_v17 = vld [vmem:[%s3780_s14 + $0x638] sm:$0xff] }
 0xa96   :  { %1544 = vmatpush1.bf16.msra.mxu1 %v1341_v33  ;;  %1585 = vmatpush1.bf16.msra.mxu0 %v1343_v34  ;;  %v1301_v33 = vpack.c.bf16 %v1059_v24, %v1051_v23  ;;  %v1303_v34 = vpack.c.bf16 %v1061_v28, %v1053_v27  ;;  %v1236_v16 = vld [vmem:[%s3780_s14 + $0x668] sm:$0xff]  ;;  %v1238_v18 = vld [vmem:[%s3780_s14 + $0x678] sm:$0xff]  ;;  %v1227_v23 = vld [vmem:[%s3780_s14 + $0x620] sm:$0xff] }
 0xa97   :  { %1545 = vmatprep.subr.bf16.mxu1 %v1334_v37  ;;  %1586 = vmatprep.subr.bf16.mxu0 %v1336_v38  ;;  %v1294_v37 = vpack.c.bf16 %v1044_v30, %v1036_v29  ;;  %v1296_v38 = vpack.c.bf16 %v1046_v32, %v1038_v31  ;;  %v1235_v24 = vld [vmem:[%s3780_s14 + $0x660] sm:$0xff]  ;;  %v1229_v27 = vld [vmem:[%s3780_s14 + $0x630] sm:$0xff]  ;;  %v1212_v29 = vld [vmem:[%s3780_s14 + $0x5a8] sm:$0xff] }
 0xa98   :  { %v1237_v28 = vld [vmem:[%s3780_s14 + $0x670] sm:$0xff]  ;;  %v1220_v30 = vld [vmem:[%s3780_s14 + $0x5e8] sm:$0xff]  ;;  %v1214_v31 = vld [vmem:[%s3780_s14 + $0x5b8] sm:$0xff] }
 0xa99   :  { %v1222_v32 = vld [vmem:[%s3780_s14 + $0x5f8] sm:$0xff] }
 0xa9a   :  { %1546 = vmatpush1.bf16.msra.mxu1 %v1333_v45  ;;  %1587 = vmatpush1.bf16.msra.mxu0 %v1335_v46  ;;  %v1293_v45 = vpack.c.bf16 %v1043_v36, %v1035_v35  ;;  %v1295_v46 = vpack.c.bf16 %v1045_v40, %v1037_v39  ;;  %v1211_v35 = vld [vmem:[%s3780_s14 + $0x5a0] sm:$0xff]  ;;  %v1213_v39 = vld [vmem:[%s3780_s14 + $0x5b0] sm:$0xff] }
 0xa9b   :  { %1547 = vmatprep.subr.bf16.mxu1 %v1326_v49  ;;  %1588 = vmatprep.subr.bf16.mxu0 %v1328_v50  ;;  %v1414_v49 = vpack.c.bf16 %v1284_v42, %v1276_v41  ;;  %v1416_v50 = vpack.c.bf16 %v1286_v44, %v1278_v43  ;;  %v1219_v36 = vld [vmem:[%s3780_s14 + $0x5e0] sm:$0xff]  ;;  %v1221_v40 = vld [vmem:[%s3780_s14 + $0x5f0] sm:$0xff]  ;;  %v1196_v41 = vld [vmem:[%s3780_s14 + $0x528] sm:$0xff] }
 0xa9c   :  { %v1204_v42 = vld [vmem:[%s3780_s14 + $0x568] sm:$0xff]  ;;  %v1198_v43 = vld [vmem:[%s3780_s14 + $0x538] sm:$0xff] }
 0xa9d   :  { %v1206_v44 = vld [vmem:[%s3780_s14 + $0x578] sm:$0xff] }
 0xa9e   :  { %1548 = vmatpush1.bf16.msra.mxu1 %v1325_v57  ;;  %1589 = vmatpush1.bf16.msra.mxu0 %v1327_v58  ;;  %v1413_v57 = vpack.c.bf16 %v1283_v48, %v1275_v47  ;;  %v1415_v58 = vpack.c.bf16 %v1285_v52, %v1277_v51  ;;  %v1195_v47 = vld [vmem:[%s3780_s14 + $0x520] sm:$0xff]  ;;  %v1197_v51 = vld [vmem:[%s3780_s14 + $0x530] sm:$0xff] }
 0xa9f   :  { %1549 = vmatprep.subr.bf16.mxu1 %v1318_v60  ;;  %1590 = vmatprep.subr.bf16.mxu0 %v1320_v62  ;;  %v1406_v60 = vpack.c.bf16 %v1268_v9, %v1260_v53  ;;  %v1408_v62 = vpack.c.bf16 %v1270_v56, %v1262_v55  ;;  %v1203_v48 = vld [vmem:[%s3780_s14 + $0x560] sm:$0xff]  ;;  %v1205_v52 = vld [vmem:[%s3780_s14 + $0x570] sm:$0xff]  ;;  %v1180_v53 = vld [vmem:[%s3780_s14 + $0x4a8] sm:$0xff] }
 0xaa0   :  { %v1188_v9 = vld [vmem:[%s3780_s14 + $0x4e8] sm:$0xff]  ;;  %v1182_v55 = vld [vmem:[%s3780_s14 + $0x4b8] sm:$0xff] }
 0xaa1   :  { %v1190_v56 = vld [vmem:[%s3780_s14 + $0x4f8] sm:$0xff] }
 0xaa2   :  { %1550 = vmatpush1.bf16.msra.mxu1 %v1317_v5  ;;  %1591 = vmatpush1.bf16.msra.mxu0 %v1319_v6  ;;  %v1405_v5 = vpack.c.bf16 %v1267_v59, %v1259_v14  ;;  %v1407_v6 = vpack.c.bf16 %v1269_v21, %v1261_v63  ;;  %v1179_v14 = vld [vmem:[%s3780_s14 + $0x4a0] sm:$0xff]  ;;  %v1181_v63 = vld [vmem:[%s3780_s14 + $0x4b0] sm:$0xff] }
 0xaa3   :  { %1551 = vmatprep.subr.bf16.mxu1 %v1310_v10  ;;  %1592 = vmatprep.subr.bf16.mxu0 %v1312_v11  ;;  %v1398_v10 = vpack.c.bf16 %v1252_v2, %v1244_v1  ;;  %v1400_v11 = vpack.c.bf16 %v1254_v4, %v1246_v3  ;;  %v1187_v59 = vld [vmem:[%s3780_s14 + $0x4e0] sm:$0xff]  ;;  %v1189_v21 = vld [vmem:[%s3780_s14 + $0x4f0] sm:$0xff]  ;;  %v1164_v1 = vld [vmem:[%s3780_s14 + $0x428] sm:$0xff] }
 0xaa4   :  { %v1172_v2 = vld [vmem:[%s3780_s14 + $0x468] sm:$0xff]  ;;  %v1166_v3 = vld [vmem:[%s3780_s14 + $0x438] sm:$0xff] }
 0xaa5   :  { %v1174_v4 = vld [vmem:[%s3780_s14 + $0x478] sm:$0xff] }
 0xaa6   :  { %1552 = vmatpush1.bf16.msra.mxu1 %v1309_v19  ;;  %1593 = vmatpush1.bf16.msra.mxu0 %v1311_v20  ;;  %v1397_v19 = vpack.c.bf16 %v1251_v8, %v1243_v7  ;;  %v1399_v20 = vpack.c.bf16 %v1253_v13, %v1245_v12  ;;  %v1163_v7 = vld [vmem:[%s3780_s14 + $0x420] sm:$0xff]  ;;  %v1165_v12 = vld [vmem:[%s3780_s14 + $0x430] sm:$0xff] }
 0xaa7   :  { %1553 = vmatprep.subr.bf16.mxu1 %v1302_v25  ;;  %1594 = vmatprep.subr.bf16.mxu0 %v1304_v26  ;;  %v1390_v25 = vpack.c.bf16 %v1236_v16, %v1228_v15  ;;  %v1392_v26 = vpack.c.bf16 %v1238_v18, %v1230_v17  ;;  %v1171_v8 = vld [vmem:[%s3780_s14 + $0x460] sm:$0xff]  ;;  %v1173_v13 = vld [vmem:[%s3780_s14 + $0x470] sm:$0xff]  ;;  %v1662_v16 = vld [vmem:[%s3782_s16 + $0xf8] sm:$0xff] }
 0xaa8   :  { %v1661_v15 = vld [vmem:[%s3782_s16 + $0xf0] sm:$0xff]  ;;  %v1694_v18 = vld [vmem:[%s3782_s16 + $0x1f8] sm:$0xff] }
 0xaa9   :  { %v1693_v17 = vld [vmem:[%s3782_s16 + $0x1f0] sm:$0xff] }
 0xaaa   :  { %1554 = vmatpush1.bf16.msra.mxu1 %v1301_v33  ;;  %1595 = vmatpush1.bf16.msra.mxu0 %v1303_v34  ;;  %v1389_v33 = vpack.c.bf16 %v1235_v24, %v1227_v23  ;;  %v1391_v34 = vpack.c.bf16 %v1237_v28, %v1229_v27  ;;  %v1645_v23 = vld [vmem:[%s3782_s16 + $0x70] sm:$0xff]  ;;  %v1646_v24 = vld [vmem:[%s3782_s16 + $0x78] sm:$0xff] }
 0xaab   :  { %1555 = vmatprep.subr.bf16.mxu1 %v1294_v37  ;;  %1596 = vmatprep.subr.bf16.mxu0 %v1296_v38  ;;  %v1382_v37 = vpack.c.bf16 %v1220_v30, %v1212_v29  ;;  %v1384_v38 = vpack.c.bf16 %v1222_v32, %v1214_v31  ;;  %v1677_v27 = vld [vmem:[%s3782_s16 + $0x170] sm:$0xff]  ;;  %v1678_v28 = vld [vmem:[%s3782_s16 + $0x178] sm:$0xff]  ;;  %v1659_v29 = vld [vmem:[%s3782_s16 + $0xe0] sm:$0xff] }
 0xaac   :  { %v1660_v30 = vld [vmem:[%s3782_s16 + $0xe8] sm:$0xff]  ;;  %v1691_v31 = vld [vmem:[%s3782_s16 + $0x1e0] sm:$0xff] }
 0xaad   :  { %v1692_v32 = vld [vmem:[%s3782_s16 + $0x1e8] sm:$0xff] }
 0xaae   :  { %1556 = vmatpush1.bf16.msra.mxu1 %v1293_v45  ;;  %1597 = vmatpush1.bf16.msra.mxu0 %v1295_v46  ;;  %v1381_v45 = vpack.c.bf16 %v1219_v36, %v1211_v35  ;;  %v1383_v46 = vpack.c.bf16 %v1221_v40, %v1213_v39  ;;  %v1643_v35 = vld [vmem:[%s3782_s16 + $0x60] sm:$0xff]  ;;  %v1644_v36 = vld [vmem:[%s3782_s16 + $0x68] sm:$0xff] }
 0xaaf   :  { %1557 = vmatprep.subr.bf16.mxu1 %v1414_v49  ;;  %1598 = vmatprep.subr.bf16.mxu0 %v1416_v50  ;;  %v1374_v49 = vpack.c.bf16 %v1204_v42, %v1196_v41  ;;  %v1376_v50 = vpack.c.bf16 %v1206_v44, %v1198_v43  ;;  %v1675_v39 = vld [vmem:[%s3782_s16 + $0x160] sm:$0xff]  ;;  %v1676_v40 = vld [vmem:[%s3782_s16 + $0x168] sm:$0xff]  ;;  %v1657_v41 = vld [vmem:[%s3782_s16 + $0xd0] sm:$0xff] }
 0xab0   :  { %v1658_v42 = vld [vmem:[%s3782_s16 + $0xd8] sm:$0xff]  ;;  %v1689_v43 = vld [vmem:[%s3782_s16 + $0x1d0] sm:$0xff] }
 0xab1   :  { %v1690_v44 = vld [vmem:[%s3782_s16 + $0x1d8] sm:$0xff] }
 0xab2   :  { %1558 = vmatpush2.bf16.msra.mxu1 %v1413_v57  ;;  %1599 = vmatpush2.bf16.msra.mxu0 %v1415_v58  ;;  %v1373_v57 = vpack.c.bf16 %v1203_v48, %v1195_v47  ;;  %v1375_v58 = vpack.c.bf16 %v1205_v52, %v1197_v51  ;;  %v1641_v47 = vld [vmem:[%s3782_s16 + $0x50] sm:$0xff]  ;;  %v1642_v48 = vld [vmem:[%s3782_s16 + $0x58] sm:$0xff]  ;;  %v1655_v52 = vld [vmem:[%s3782_s16 + $0xc0] sm:$0xff] }
 0xab3   :  { %1559 = vmatprep.subr.bf16.mxu1 %v1406_v60  ;;  %1600 = vmatprep.subr.bf16.mxu0 %v1408_v62  ;;  %v1366_v60 = vpack.c.bf16 %v1188_v9, %v1180_v53  ;;  %v1368_v62 = vpack.c.bf16 %v1190_v56, %v1182_v55  ;;  %v1674_v51 = vld [vmem:[%s3782_s16 + $0x158] sm:$0xff]  ;;  %v1656_v53 = vld [vmem:[%s3782_s16 + $0xc8] sm:$0xff]  ;;  %v1687_v9 = vld [vmem:[%s3782_s16 + $0x1c0] sm:$0xff]  ;;  %v1772_v56 = vpack.c.bf16 %v1642_v48, %v1641_v47 }
 0xab4   :  { %v1688_v55 = vld [vmem:[%s3782_s16 + $0x1c8] sm:$0xff] }
 0xab5   :  { %v1632_v47 = vld [vmem:[%s3782_s16 + $0x8] sm:$0xff] }
 0xab6   :  { %1560 = vmatpush2.bf16.msra.mxu1 %v1405_v5  ;;  %1601 = vmatpush2.bf16.msra.mxu0 %v1407_v6  ;;  %v1365_v5 = vpack.c.bf16 %v1187_v59, %v1179_v14  ;;  %v1367_v6 = vpack.c.bf16 %v1189_v21, %v1181_v63  ;;  %v1640_v14 = vld [vmem:[%s3782_s16 + $0x48] sm:$0xff]  ;;  %v1779_v59 = vpack.c.bf16 %v1656_v53, %v1655_v52  ;;  %v1653_v21 = vld [vmem:[%s3782_s16 + $0xb0] sm:$0xff]  ;;  %v1726_v52 = vld [vmem:[%s3782_s16 + $0x2f8] sm:$0xff] }
 0xab7   :  { %1561 = vmatprep.subr.bf16.mxu1 %v1398_v10  ;;  %1602 = vmatprep.subr.bf16.mxu0 %v1400_v11  ;;  %v1358_v10 = vpack.c.bf16 %v1172_v2, %v1164_v1  ;;  %v1360_v11 = vpack.c.bf16 %v1174_v4, %v1166_v3  ;;  %v1672_v63 = vld [vmem:[%s3782_s16 + $0x148] sm:$0xff]  ;;  %v1654_v1 = vld [vmem:[%s3782_s16 + $0xb8] sm:$0xff]  ;;  %v1685_v2 = vld [vmem:[%s3782_s16 + $0x1b0] sm:$0xff] }
 0xab8   :  { %v1686_v3 = vld [vmem:[%s3782_s16 + $0x1b8] sm:$0xff]  ;;  %v1757_v53 = vld [vmem:[%s3782_s16 + $0x3f0] sm:$0xff] }
 0xaba   :  { %1562 = vmatpush2.bf16.msra.mxu1 %v1397_v19  ;;  %1603 = vmatpush2.bf16.msra.mxu0 %v1399_v20  ;;  %v1357_v19 = vpack.c.bf16 %v1171_v8, %v1163_v7  ;;  %v1359_v20 = vpack.c.bf16 %v1173_v13, %v1165_v12  ;;  %v1638_v7 = vld [vmem:[%s3782_s16 + $0x38] sm:$0xff]  ;;  %v1778_v8 = vpack.c.bf16 %v1654_v1, %v1653_v21  ;;  %v1651_v13 = vld [vmem:[%s3782_s16 + $0xa0] sm:$0xff] }
 0xabb   :  { %1563 = vmatprep.subr.bf16.mxu1 %v1390_v25  ;;  %1604 = vmatprep.subr.bf16.mxu0 %v1392_v26  ;;  %v1782_v25 = vpack.c.bf16 %v1662_v16, %v1661_v15  ;;  %v1798_v26 = vpack.c.bf16 %v1694_v18, %v1693_v17  ;;  %v1670_v12 = vld [vmem:[%s3782_s16 + $0x138] sm:$0xff]  ;;  %v1652_v15 = vld [vmem:[%s3782_s16 + $0xa8] sm:$0xff]  ;;  %v1683_v16 = vld [vmem:[%s3782_s16 + $0x1a0] sm:$0xff] }
 0xabc   :  { %v1684_v17 = vld [vmem:[%s3782_s16 + $0x1a8] sm:$0xff] }
 0xabe   :  { %1564 = vmatpush2.bf16.msra.mxu1 %v1389_v33  ;;  %1605 = vmatpush2.bf16.msra.mxu0 %v1391_v34  ;;  %v1774_v33 = vpack.c.bf16 %v1646_v24, %v1645_v23  ;;  %v1790_v34 = vpack.c.bf16 %v1678_v28, %v1677_v27  ;;  %v1636_v23 = vld [vmem:[%s3782_s16 + $0x28] sm:$0xff]  ;;  %v1777_v24 = vpack.c.bf16 %v1652_v15, %v1651_v13  ;;  %v1649_v28 = vld [vmem:[%s3782_s16 + $0x90] sm:$0xff] }
 0xabf   :  { %1565 = vmatprep.subr.bf16.mxu1 %v1382_v37  ;;  %1606 = vmatprep.subr.bf16.mxu0 %v1384_v38  ;;  %v1781_v37 = vpack.c.bf16 %v1660_v30, %v1659_v29  ;;  %v1797_v38 = vpack.c.bf16 %v1692_v32, %v1691_v31  ;;  %v1668_v27 = vld [vmem:[%s3782_s16 + $0x128] sm:$0xff]  ;;  %v1650_v29 = vld [vmem:[%s3782_s16 + $0x98] sm:$0xff]  ;;  %v1681_v30 = vld [vmem:[%s3782_s16 + $0x190] sm:$0xff] }
 0xac0   :  { %v1682_v31 = vld [vmem:[%s3782_s16 + $0x198] sm:$0xff] }
 0xac2   :  { %1566 = vmatpush2.bf16.msra.mxu1 %v1381_v45  ;;  %1607 = vmatpush2.bf16.msra.mxu0 %v1383_v46  ;;  %v1773_v45 = vpack.c.bf16 %v1644_v36, %v1643_v35  ;;  %v1789_v46 = vpack.c.bf16 %v1676_v40, %v1675_v39  ;;  %v1634_v35 = vld [vmem:[%s3782_s16 + $0x18] sm:$0xff]  ;;  %v1776_v36 = vpack.c.bf16 %v1650_v29, %v1649_v28  ;;  %v1647_v40 = vld [vmem:[%s3782_s16 + $0x80] sm:$0xff] }
 0xac3   :  { %1567 = vmatprep.subr.bf16.mxu1 %v1374_v49  ;;  %1608 = vmatprep.subr.bf16.mxu0 %v1376_v50  ;;  %v1780_v49 = vpack.c.bf16 %v1658_v42, %v1657_v41  ;;  %v1796_v50 = vpack.c.bf16 %v1690_v44, %v1689_v43  ;;  %v1666_v39 = vld [vmem:[%s3782_s16 + $0x118] sm:$0xff]  ;;  %v1648_v41 = vld [vmem:[%s3782_s16 + $0x88] sm:$0xff]  ;;  %v1679_v42 = vld [vmem:[%s3782_s16 + $0x180] sm:$0xff] }
 0xac4   :  { %v1680_v43 = vld [vmem:[%s3782_s16 + $0x188] sm:$0xff]  ;;  %v1775_v48 = vpack.c.bf16 %v1648_v41, %v1647_v40  ;;  %v1721_v40 = vld [vmem:[%s3782_s16 + $0x2d0] sm:$0xff]  ;;  %v1722_v41 = vld [vmem:[%s3782_s16 + $0x2d8] sm:$0xff] }
 0xac6   :  { %1568 = vmatpush2.bf16.msra.mxu1 %v1373_v57  ;;  %1609 = vmatpush2.bf16.msra.mxu0 %v1375_v58  ;;  %v1639_v58 = vld [vmem:[%s3782_s16 + $0x40] sm:$0xff] }
 0xac7   :  { %1569 = vmatprep.subr.bf16.mxu1 %v1366_v60  ;;  %1610 = vmatprep.subr.bf16.mxu0 %v1368_v62  ;;  %v1795_v60 = vpack.c.bf16 %v1688_v55, %v1687_v9  ;;  %v1671_v62 = vld [vmem:[%s3782_s16 + $0x140] sm:$0xff]  ;;  %v1771_v4 = vpack.c.bf16 %v1640_v14, %v1639_v58  ;;  %v1758_v9 = vld [vmem:[%s3782_s16 + $0x3f8] sm:$0xff]  ;;  %v1429_v14 = vsub.s32 2, %v2475_v61 }
 0xac8   :  { %v1830_v58 = vpack.c.bf16 %v1758_v9, %v1757_v53  ;;  %v1751_v53 = vld [vmem:[%s3782_s16 + $0x3c0] sm:$0xff]  ;;  %v1752_v9 = vld [vmem:[%s3782_s16 + $0x3c8] sm:$0xff] }
 0xaca   :  { %1570 = vmatpush2.bf16.msra.mxu1 %v1365_v5  ;;  %1611 = vmatpush2.bf16.msra.mxu0 %v1367_v6  ;;  %v1787_v5 = vpack.c.bf16 %v1672_v63, %v1671_v62  ;;  %v1637_v6 = vld [vmem:[%s3782_s16 + $0x30] sm:$0xff] }
 0xacb   :  { %1571 = vmatprep.subr.bf16.mxu1 %v1358_v10  ;;  %1612 = vmatprep.subr.bf16.mxu0 %v1360_v11  ;;  %v1794_v10 = vpack.c.bf16 %v1686_v3, %v1685_v2  ;;  %v1669_v11 = vld [vmem:[%s3782_s16 + $0x130] sm:$0xff]  ;;  %v1770_v18 = vpack.c.bf16 %v1638_v7, %v1637_v6 }
 0xace   :  { %1572 = vmatpush2.bf16.msra.mxu1 %v1357_v19  ;;  %1613 = vmatpush2.bf16.msra.mxu0 %v1359_v20  ;;  %v1786_v19 = vpack.c.bf16 %v1670_v12, %v1669_v11  ;;  %v1635_v20 = vld [vmem:[%s3782_s16 + $0x20] sm:$0xff]  ;;  %v1710_v11 = vld [vmem:[%s3782_s16 + $0x278] sm:$0xff] }
 0xacf   :  { %2063 = vmatprep.subr.bf16.mxu1 %v1782_v25  ;;  %2085 = vmatprep.subr.bf16.mxu0 %v1798_v26  ;;  %v1793_v25 = vpack.c.bf16 %v1684_v17, %v1683_v16  ;;  %v1667_v26 = vld [vmem:[%s3782_s16 + $0x120] sm:$0xff]  ;;  %v1769_v32 = vpack.c.bf16 %v1636_v23, %v1635_v20  ;;  %v1741_v16 = vld [vmem:[%s3782_s16 + $0x370] sm:$0xff]  ;;  %v1742_v17 = vld [vmem:[%s3782_s16 + $0x378] sm:$0xff] }
 0xad0   :  { %v1724_v23 = vld [vmem:[%s3782_s16 + $0x2e8] sm:$0xff] }
 0xad1   :  { %1574 = vmatmul.mubr.bf16.vlgmr.msra.gmra.mxu1 %v3006_v22  ;;  %1615 = vmatmul.mubr.bf16.vlgmr.msra.gmra.mxu0 %v3006_v22  ;;  %v1673_v22 = vld [vmem:[%s3782_s16 + $0x150] sm:$0xff] }
 0xad2   :  { %2064 = vmatpush3.bf16.msra.mxu1 %v1774_v33  ;;  %2086 = vmatpush3.bf16.msra.mxu0 %v1790_v34  ;;  %v1788_v57 = vpack.c.bf16 %v1674_v51, %v1673_v22  ;;  %v1785_v33 = vpack.c.bf16 %v1668_v27, %v1667_v26  ;;  %v1633_v34 = vld [vmem:[%s3782_s16 + $0x10] sm:$0xff]  ;;  %v1664_v22 = vld [vmem:[%s3782_s16 + $0x108] sm:$0xff] }
 0xad3   :  { %2065 = vmatprep.subr.bf16.mxu1 %v1781_v37  ;;  %2087 = vmatprep.subr.bf16.mxu0 %v1797_v38  ;;  %v1792_v37 = vpack.c.bf16 %v1682_v31, %v1681_v30  ;;  %v1665_v38 = vld [vmem:[%s3782_s16 + $0x110] sm:$0xff]  ;;  %v1768_v44 = vpack.c.bf16 %v1634_v35, %v1633_v34  ;;  %v1822_v31 = vpack.c.bf16 %v1742_v17, %v1741_v16 }
 0xad4   :  { %v1725_v51 = vld [vmem:[%s3782_s16 + $0x2f0] sm:$0xff] }
 0xad6   :  { %2066 = vmatpush3.bf16.msra.mxu1 %v1773_v45  ;;  %2088 = vmatpush3.bf16.msra.mxu0 %v1789_v46  ;;  %v1784_v45 = vpack.c.bf16 %v1666_v39, %v1665_v38  ;;  %v1631_v46 = vld [vmem:[%s3782_s16] sm:$0xff]  ;;  %v1740_v39 = vld [vmem:[%s3782_s16 + $0x368] sm:$0xff] }
 0xad7   :  { %2067 = vmatprep.subr.bf16.mxu1 %v1780_v49  ;;  %2089 = vmatprep.subr.bf16.mxu0 %v1796_v50  ;;  %v1791_v49 = vpack.c.bf16 %v1680_v43, %v1679_v42  ;;  %v1663_v50 = vld [vmem:[%s3782_s16 + $0x100] sm:$0xff]  ;;  %v1767_v55 = vpack.c.bf16 %v1632_v47, %v1631_v46  ;;  %v1753_v42 = vld [vmem:[%s3782_s16 + $0x3d0] sm:$0xff]  ;;  %v1754_v43 = vld [vmem:[%s3782_s16 + $0x3d8] sm:$0xff] }
 0xad8   :  { %v1739_v38 = vld [vmem:[%s3782_s16 + $0x360] sm:$0xff]  ;;  %v1705_v46 = vld [vmem:[%s3782_s16 + $0x250] sm:$0xff]  ;;  %v1706_v47 = vld [vmem:[%s3782_s16 + $0x258] sm:$0xff] }
 0xada   :  { %2068 = vmatpush3.bf16.msra.mxu1 %v1772_v56  ;;  %2090 = vmatpush3.bf16.msra.mxu0 %v1788_v57  ;;  %v1783_v56 = vpack.c.bf16 %v1664_v22, %v1663_v50  ;;  %v1814_v57 = vpack.c.bf16 %v1726_v52, %v1725_v51  ;;  %v1737_v50 = vld [vmem:[%s3782_s16 + $0x350] sm:$0xff]  ;;  %v1738_v22 = vld [vmem:[%s3782_s16 + $0x358] sm:$0xff]  ;;  %v1719_v51 = vld [vmem:[%s3782_s16 + $0x2c0] sm:$0xff] }
 0xadb   :  { %2069 = vmatprep.subr.bf16.mxu1 %v1779_v59  ;;  %2091 = vmatprep.subr.bf16.mxu0 %v1795_v60  ;;  %v3562_v59 = vld [vmem:[%s3781_s15] sm:$0xff]  ;;  %v1433_v60 = vsub.s32 3, %v2475_v61  ;;  %v1720_v52 = vld [vmem:[%s3782_s16 + $0x2c8] sm:$0xff] }
 0xadc   :  { %v1422_v62 = vrot.slane %v3562_v59, %v2478_v0  ;;  %v1430_v63 = vrot.slane %v3562_v59, %v1429_v14  ;;  %v1426_v21 = vrot.slane %v3562_v59, %v902_v54  ;;  %v1709_v0 = vld [vmem:[%s3782_s16 + $0x270] sm:$0xff]  ;;  %v1811_v14 = vpack.c.bf16 %v1720_v52, %v1719_v51 }
 0xadd   :  { %v1434_v1 = vrot.slane %v3562_v59, %v1433_v60  ;;  %v1806_v30 = vpack.c.bf16 %v1710_v11, %v1709_v0  ;;  %v1827_v60 = vpack.c.bf16 %v1752_v9, %v1751_v53  ;;  %v1733_v0 = vld [vmem:[%s3782_s16 + $0x330] sm:$0xff]  ;;  %v1734_v11 = vld [vmem:[%s3782_s16 + $0x338] sm:$0xff]  ;;  %v1437_v51 = vsub.s32 4, %v2475_v61 }
 0xade   :  { %2070 = vmatpush3.bf16.msra.mxu1 %v1771_v4  ;;  %2092 = vmatpush3.bf16.msra.mxu0 %v1787_v5  ;;  %v1818_v17 = vpack.c.bf16 %v1734_v11, %v1733_v0  ;;  %v1445_v52 = vsub.s32 6, %v2475_v61  ;;  %v1441_v53 = vsub.s32 5, %v2475_v61  ;;  %v1449_v9 = vsub.s32 7, %v2475_v61 }
 0xadf   :  { %2071 = vmatprep.subr.bf16.mxu1 %v1778_v8  ;;  %2093 = vmatprep.subr.bf16.mxu0 %v1794_v10 }
 0xae2   :  { %2072 = vmatpush3.bf16.msra.mxu1 %v1770_v18  ;;  %2094 = vmatpush3.bf16.msra.mxu0 %v1786_v19  ;;  %v1723_v18 = vld [vmem:[%s3782_s16 + $0x2e0] sm:$0xff] }
 0xae3   :  { %2073 = vmatprep.subr.bf16.mxu1 %v1777_v24  ;;  %2095 = vmatprep.subr.bf16.mxu0 %v1793_v25  ;;  %v1755_v24 = vld [vmem:[%s3782_s16 + $0x3e0] sm:$0xff]  ;;  %v1756_v25 = vld [vmem:[%s3782_s16 + $0x3e8] sm:$0xff] }
 0xae6   :  { %2074 = vmatpush3.bf16.msra.mxu1 %v1769_v32  ;;  %2096 = vmatpush3.bf16.msra.mxu0 %v1785_v33  ;;  %v1707_v32 = vld [vmem:[%s3782_s16 + $0x260] sm:$0xff]  ;;  %v1708_v33 = vld [vmem:[%s3782_s16 + $0x268] sm:$0xff] }
 0xae7   :  { %2075 = vmatprep.subr.bf16.mxu1 %v1776_v36  ;;  %2097 = vmatprep.subr.bf16.mxu0 %v1792_v37  ;;  %v1813_v36 = vpack.c.bf16 %v1724_v23, %v1723_v18  ;;  %v1829_v37 = vpack.c.bf16 %v1756_v25, %v1755_v24  ;;  %v1699_v18 = vld [vmem:[%s3782_s16 + $0x220] sm:$0xff]  ;;  %v1732_v25 = vld [vmem:[%s3782_s16 + $0x328] sm:$0xff] }
 0xae8   :  { %v1731_v24 = vld [vmem:[%s3782_s16 + $0x320] sm:$0xff] }
 0xaea   :  { %2076 = vmatpush3.bf16.msra.mxu1 %v1768_v44  ;;  %2098 = vmatpush3.bf16.msra.mxu0 %v1784_v45  ;;  %v1805_v44 = vpack.c.bf16 %v1708_v33, %v1707_v32  ;;  %v1821_v45 = vpack.c.bf16 %v1740_v39, %v1739_v38  ;;  %v1697_v32 = vld [vmem:[%s3782_s16 + $0x210] sm:$0xff]  ;;  %v1698_v33 = vld [vmem:[%s3782_s16 + $0x218] sm:$0xff]  ;;  %v1711_v38 = vld [vmem:[%s3782_s16 + $0x280] sm:$0xff] }
 0xaeb   :  { %2077 = vmatprep.subr.bf16.mxu1 %v1775_v48  ;;  %2099 = vmatprep.subr.bf16.mxu0 %v1791_v49  ;;  %v1812_v48 = vpack.c.bf16 %v1722_v41, %v1721_v40  ;;  %v1828_v49 = vpack.c.bf16 %v1754_v43, %v1753_v42  ;;  %v1712_v39 = vld [vmem:[%s3782_s16 + $0x288] sm:$0xff]  ;;  %v1743_v40 = vld [vmem:[%s3782_s16 + $0x380] sm:$0xff]  ;;  %v1800_v42 = vpack.c.bf16 %v1698_v33, %v1697_v32 }
 0xaec   :  { %v1744_v41 = vld [vmem:[%s3782_s16 + $0x388] sm:$0xff] }
 0xaee   :  { %2078 = vmatpush3.bf16.msra.mxu1 %v1767_v55  ;;  %2100 = vmatpush3.bf16.msra.mxu0 %v1783_v56  ;;  %v1804_v55 = vpack.c.bf16 %v1706_v47, %v1705_v46  ;;  %v1820_v56 = vpack.c.bf16 %v1738_v22, %v1737_v50  ;;  %v1823_v46 = vpack.c.bf16 %v1744_v41, %v1743_v40  ;;  %v1696_v47 = vld [vmem:[%s3782_s16 + $0x208] sm:$0xff] }
 0xaef   :  { %2107 = vmatprep.subr.bf16.mxu1 %v1814_v57  ;;  %2129 = vmatprep.subr.bf16.mxu0 %v1830_v58  ;;  %v1703_v57 = vld [vmem:[%s3782_s16 + $0x240] sm:$0xff]  ;;  %v1704_v58 = vld [vmem:[%s3782_s16 + $0x248] sm:$0xff] }
 0xb51   :  { %v1493_v2 = vpop.f32.mrf.mxu1  ;;  %v1534_v3 = vpop.f32.mrf.mxu0 }
 0xb52   :  { %v1494_v4 = vadd.f32 %v1493_v2, %v1422_v62  ;;  %v1535_v5 = vadd.f32 %v1534_v3, %v1430_v63  ;;  %v1735_v62 = vld [vmem:[%s3782_s16 + $0x340] sm:$0xff]  ;;  %v1736_v63 = vld [vmem:[%s3782_s16 + $0x348] sm:$0xff]  ;;  %v1749_v2 = vld [vmem:[%s3782_s16 + $0x3b0] sm:$0xff] }
 0xb53   :  { %v1495_v6 = vpop.f32.mrf.mxu1  ;;  %v1536_v7 = vpop.f32.mrf.mxu0  ;;  %v1750_v3 = vld [vmem:[%s3782_s16 + $0x3b8] sm:$0xff] }
 0xb54   :  { %v1496_v8 = vadd.f32 %v1495_v6, %v1426_v21  ;;  %v1537_v10 = vadd.f32 %v1536_v7, %v1434_v1  ;;  %v1623_v12 = vmax.f32 %v1494_v4, 0.0  ;;  %v1625_v54 = vmax.f32 %v1535_v5, 0.0  ;;  %v1717_v21 = vld [vmem:[%s3782_s16 + $0x2b0] sm:$0xff]  ;;  %v1718_v1 = vld [vmem:[%s3782_s16 + $0x2b8] sm:$0xff] }
 0xb55   :  { %v1497_v13 = vpop.f32.mrf.mxu1  ;;  %v1538_v15 = vpop.f32.mrf.mxu0  ;;  %v1803_v4 = vpack.c.bf16 %v1704_v58, %v1703_v57  ;;  %v1819_v5 = vpack.c.bf16 %v1736_v63, %v1735_v62  ;;  %v1701_v6 = vld [vmem:[%s3782_s16 + $0x230] sm:$0xff]  ;;  %v1702_v7 = vld [vmem:[%s3782_s16 + $0x238] sm:$0xff]  ;;  %v1442_v57 = vrot.slane %v3562_v59, %v1441_v53  ;;  %v1450_v58 = vrot.slane %v3562_v59, %v1449_v9 }
 0xb56   :  { %v1624_v19 = vmax.f32 %v1496_v8, 0.0  ;;  %v1626_v20 = vmax.f32 %v1537_v10, 0.0  ;;  %v1759_v34 = vpack.c.bf16 %v1623_v12, %v1623_v12  ;;  %v1761_v35 = vpack.c.bf16 %v1625_v54, %v1625_v54  ;;  %v1715_v12 = vld [vmem:[%s3782_s16 + $0x2a0] sm:$0xff]  ;;  %v1716_v54 = vld [vmem:[%s3782_s16 + $0x2a8] sm:$0xff] }
 0xb57   :  { %v1498_v26 = vpop.f32.mrf.mxu1  ;;  %v1539_v27 = vpop.f32.mrf.mxu0  ;;  %v1810_v8 = vpack.c.bf16 %v1718_v1, %v1717_v21  ;;  %v1826_v10 = vpack.c.bf16 %v1750_v3, %v1749_v2  ;;  %v1747_v13 = vld [vmem:[%s3782_s16 + $0x3a0] sm:$0xff]  ;;  %v1748_v15 = vld [vmem:[%s3782_s16 + $0x3a8] sm:$0xff]  ;;  %v1802_v16 = vpack.c.bf16 %v1702_v7, %v1701_v6 }
 0xb58   :  { %v1760_v28 = vpack.c.bf16 %v1624_v19, %v1624_v19  ;;  %v1762_v29 = vpack.c.bf16 %v1626_v20, %v1626_v20  ;;  %v1700_v19 = vld [vmem:[%s3782_s16 + $0x228] sm:$0xff]  ;;  %v1809_v20 = vpack.c.bf16 %v1716_v54, %v1715_v12  ;;  %v1825_v23 = vpack.c.bf16 %v1748_v15, %v1747_v13  ;;  %v1713_v26 = vld [vmem:[%s3782_s16 + $0x290] sm:$0xff]  ;;  %v1714_v27 = vld [vmem:[%s3782_s16 + $0x298] sm:$0xff] }
 0xb5a   :  { %1870 = vmatprep.mubr.bf16.mxu1 %v1760_v28  ;;  %1910 = vmatprep.mubr.bf16.mxu0 %v1762_v29  ;;  %v1745_v28 = vld [vmem:[%s3782_s16 + $0x390] sm:$0xff]  ;;  %v1746_v29 = vld [vmem:[%s3782_s16 + $0x398] sm:$0xff] }
 0xb5b   :  { %1871 = vmatmul.mubr.bf16.vlgmr.msra.gmra.mxu1 %v1759_v34  ;;  %1911 = vmatmul.mubr.bf16.vlgmr.msra.gmra.mxu0 %v1761_v35  ;;  %v1808_v34 = vpack.c.bf16 %v1714_v27, %v1713_v26  ;;  %v1824_v35 = vpack.c.bf16 %v1746_v29, %v1745_v28 }
 0xb5c   :  { %2108 = vmatpush3.bf16.msra.mxu1 %v1806_v30  ;;  %2130 = vmatpush3.bf16.msra.mxu0 %v1822_v31  ;;  %v1801_v30 = vpack.c.bf16 %v1700_v19, %v1699_v18  ;;  %v1817_v31 = vpack.c.bf16 %v1732_v25, %v1731_v24  ;;  %v2026_v25 = vld [vmem:[%s3783_s17] ss:$0 sm:$0xff] }
 0xb5d   :  { %2109 = vmatprep.subr.bf16.mxu1 %v1813_v36  ;;  %2131 = vmatprep.subr.bf16.mxu0 %v1829_v37  ;;  %v1729_v36 = vld [vmem:[%s3782_s16 + $0x310] sm:$0xff]  ;;  %v1730_v37 = vld [vmem:[%s3782_s16 + $0x318] sm:$0xff] }
 0xb5e   :  { %v1816_v43 = vpack.c.bf16 %v1730_v37, %v1729_v36 }
 0xb60   :  { %2110 = vmatpush3.bf16.msra.mxu1 %v1805_v44  ;;  %2132 = vmatpush3.bf16.msra.mxu0 %v1821_v45  ;;  %v1695_v44 = vld [vmem:[%s3782_s16 + $0x200] sm:$0xff]  ;;  %v1807_v45 = vpack.c.bf16 %v1712_v39, %v1711_v38 }
 0xb61   :  { %2111 = vmatprep.subr.bf16.mxu1 %v1812_v48  ;;  %2133 = vmatprep.subr.bf16.mxu0 %v1828_v49  ;;  %v1727_v48 = vld [vmem:[%s3782_s16 + $0x300] sm:$0xff]  ;;  %v1728_v49 = vld [vmem:[%s3782_s16 + $0x308] sm:$0xff]  ;;  %v1799_v50 = vpack.c.bf16 %v1696_v47, %v1695_v44 }
 0xb62   :  { %v1815_v22 = vpack.c.bf16 %v1728_v49, %v1727_v48 }
 0xb64   :  { %2112 = vmatpush3.bf16.msra.mxu1 %v1804_v55  ;;  %2134 = vmatpush3.bf16.msra.mxu0 %v1820_v56  ;;  %v1438_v55 = vrot.slane %v3562_v59, %v1437_v51  ;;  %v1446_v56 = vrot.slane %v3562_v59, %v1445_v52 }
 0xb65   :  { %2113 = vmatprep.subr.bf16.mxu1 %v1811_v14  ;;  %2135 = vmatprep.subr.bf16.mxu0 %v1827_v60 }
 0xb68   :  { %2114 = vmatpush3.bf16.msra.mxu1 %v1803_v4  ;;  %2136 = vmatpush3.bf16.msra.mxu0 %v1819_v5 }
 0xb69   :  { %2115 = vmatprep.subr.bf16.mxu1 %v1810_v8  ;;  %2137 = vmatprep.subr.bf16.mxu0 %v1826_v10 }
 0xb6c   :  { %2116 = vmatpush3.bf16.msra.mxu1 %v1802_v16  ;;  %2138 = vmatpush3.bf16.msra.mxu0 %v1818_v17 }
 0xb6d   :  { %2117 = vmatprep.subr.bf16.mxu1 %v1809_v20  ;;  %2139 = vmatprep.subr.bf16.mxu0 %v1825_v23 }
 0xb70   :  { %2118 = vmatpush3.bf16.msra.mxu1 %v1801_v30  ;;  %2140 = vmatpush3.bf16.msra.mxu0 %v1817_v31 }
 0xb71   :  { %2119 = vmatprep.subr.bf16.mxu1 %v1808_v34  ;;  %2141 = vmatprep.subr.bf16.mxu0 %v1824_v35 }
 0xb74   :  { %2120 = vmatpush3.bf16.msra.mxu1 %v1800_v42  ;;  %2142 = vmatpush3.bf16.msra.mxu0 %v1816_v43 }
 0xb75   :  { %2121 = vmatprep.subr.bf16.mxu1 %v1807_v45  ;;  %2143 = vmatprep.subr.bf16.mxu0 %v1823_v46 }
 0xb78   :  { %2122 = vmatpush3.bf16.msra.mxu1 %v1799_v50  ;;  %2144 = vmatpush3.bf16.msra.mxu0 %v1815_v22 }
 0xb91   :  { %v1575_v14 = vpop.f32.mrf.mxu1  ;;  %v1616_v60 = vpop.f32.mrf.mxu0 }
 0xb92   :  { %v1576_v62 = vadd.f32 %v1575_v14, %v1438_v55  ;;  %v1617_v63 = vadd.f32 %v1616_v60, %v1446_v56 }
 0xb93   :  { %v1577_v21 = vpop.f32.mrf.mxu1  ;;  %v1618_v1 = vpop.f32.mrf.mxu0 }
 0xb94   :  { %v1578_v2 = vadd.f32 %v1577_v21, %v1442_v57  ;;  %v1619_v3 = vadd.f32 %v1618_v1, %v1450_v58  ;;  %v1627_v4 = vmax.f32 %v1576_v62, 0.0  ;;  %v1629_v5 = vmax.f32 %v1617_v63, 0.0 }
 0xb95   :  { %v1579_v6 = vpop.f32.mrf.mxu1  ;;  %v1620_v61 = vpop.f32.mrf.mxu0 }
 0xb96   :  { %v1628_v7 = vmax.f32 %v1578_v2, 0.0  ;;  %v1630_v8 = vmax.f32 %v1619_v3, 0.0  ;;  %v1763_v54 = vpack.c.bf16 %v1627_v4, %v1627_v4  ;;  %v1765_v59 = vpack.c.bf16 %v1629_v5, %v1629_v5 }
 0xb97   :  { %v1580_v10 = vpop.f32.mrf.mxu1  ;;  %v1621_v0 = vpop.f32.mrf.mxu0 }
 0xb98   :  { %v1764_v11 = vpack.c.bf16 %v1628_v7, %v1628_v7  ;;  %v1766_v12 = vpack.c.bf16 %v1630_v8, %v1630_v8 }
 0xb9a   :  { %1950 = vmatprep.mubr.bf16.mxu1 %v1764_v11  ;;  %1990 = vmatprep.mubr.bf16.mxu0 %v1766_v12 }
 0xb9b   :  { %1951 = vmatmul.mubr.bf16.vlgmr.msra.gmra.mxu1 %v1763_v54  ;;  %1991 = vmatmul.mubr.bf16.vlgmr.msra.gmra.mxu0 %v1765_v59 }
 0xc1b   :  { %v2079_v13 = vpop.f32.mrf.mxu1  ;;  %v2101_v15 = vpop.f32.mrf.mxu0 }
 0xc1d   :  { %v2080_v16 = vpop.f32.mrf.mxu1  ;;  %v2102_v17 = vpop.f32.mrf.mxu0 }
 0xc1e   :  { %v2081_v24 = vadd.f32 %v2080_v16, %v2079_v13  ;;  %v2103_v29 = vadd.f32 %v2102_v17, %v2101_v15 }
 0xc1f   :  { %v2082_v18 = vpop.f32.mrf.mxu1  ;;  %v2104_v19 = vpop.f32.mrf.mxu0 }
 0xc20   :  { %v1873_v26 = vadd.f32 %v2081_v24, %v2026_v25 }
 0xc21   :  { %v2083_v20 = vpop.f32.mrf.mxu1  ;;  %v2105_v23 = vpop.f32.mrf.mxu0 }
 0xc22   :  { %v1913_v32 = vadd.f32 %v2103_v29, %v1873_v26 }
 0xc5b   :  { %v2123_v27 = vpop.f32.mrf.mxu1  ;;  %v2145_v28 = vpop.f32.mrf.mxu0 }
 0xc5d   :  { %v2124_v30 = vpop.f32.mrf.mxu1  ;;  %v2146_v31 = vpop.f32.mrf.mxu0 }
 0xc5e   :  { %v2125_v33 = vadd.f32 %v2124_v30, %v2123_v27  ;;  %v2147_v37 = vadd.f32 %v2146_v31, %v2145_v28 }
 0xc5f   :  { %v2126_v34 = vpop.f32.mrf.mxu1  ;;  %v2148_v35 = vpop.f32.mrf.mxu0 }
 0xc60   :  { %v1953_v36 = vadd.f32 %v2125_v33, %v1913_v32 }
 0xc61   :  { %v2127_v38 = vpop.f32.mrf.mxu1  ;;  %v2149_v39 = vpop.f32.mrf.mxu0 }
 0xc62   :  { %v1993_v40 = vadd.f32 %v2147_v37, %v1953_v36 }
 0xc64   :  { %1998 = vst [vmem:[%s3784_s18] sm:$0x3] %v1993_v40 }
 0xc65   :  { %2003 = vsyncpa [#allocation3], 1 }
 0xc66   :  { %2004 = vsyncpa [#allocation5], 1 }

// kernel: supergat_gcn_forward.3
= control target key start
LH: loop header
LB: loop body
LE: loop exit
PB: predicated region body
PF: predicated region fallthrough
CT: control target
= control target key end

     0   :  { %s5007_s0 = inlined_call_operand.vmem [shape: f32[24,128], index: 0, kind: input, shape index: {}]   ;;  %s5008_s1 = inlined_call_operand.vmem [shape: f32[24,24], index: 1, kind: input, shape index: {}]   ;;  %s5009_s2 = inlined_call_operand.vmem [shape: f32[24,24], index: 2, kind: input, shape index: {}]   ;;  %s5010_s3 = inlined_call_operand.vmem [shape: f32[2,24], index: 3, kind: input, shape index: {}]   ;;  %s5011_s4 = inlined_call_operand.hbm [shape: f32[128,128], index: 4, kind: input, shape index: {}]   ;;  %s5012_s5 = inlined_call_operand.vmem [shape: f32[1,128], index: 5, kind: input, shape index: {}]   ;;  %s5013_s6 = inlined_call_operand.vmem [shape: f32[1,128], index: 6, kind: input, shape index: {}]   ;;  %s5014_s7 = inlined_call_operand.hbm [shape: f32[1,128], index: 7, kind: input, shape index: {}]   ;;  %s5015_s8 = inlined_call_operand.vmem [shape: f32[128,256], index: 8, kind: input, shape index: {}]   ;;  %s5016_s9 = inlined_call_operand.vmem [shape: f32[1,256], index: 9, kind: input, shape index: {}]   ;;  %s5017_s10 = inlined_call_operand.vmem [shape: f32[1,256], index: 10, kind: input, shape index: {}]   ;;  %s5018_s11 = inlined_call_operand.vmem [shape: f32[1,256], index: 11, kind: input, shape index: {}]   ;;  %s5019_s12 = inlined_call_operand.hbm [shape: f32[256,384], index: 12, kind: input, shape index: {}]   ;;  %s5020_s13 = inlined_call_operand.vmem [shape: f32[1,384], index: 13, kind: input, shape index: {}]   ;;  %s5021_s14 = inlined_call_operand.vmem [shape: f32[384,1024], index: 14, kind: input, shape index: {}]   ;;  %s5022_s15 = inlined_call_operand.vmem [shape: f32[1,1024], index: 15, kind: input, shape index: {}]   ;;  %s5023_s16 = inlined_call_operand.vmem [shape: f32[1024,128], index: 16, kind: input, shape index: {}]   ;;  %s5024_s17 = inlined_call_operand.hbm [shape: f32[1,128], index: 17, kind: input, shape index: {}]   ;;  %s5025_s18 = inlined_call_operand.vmem [shape: f32[2,128], index: 18, kind: output, shape index: {}]  }
   0x1   :  { %5029 = sst [smem:[#allocation12_spill]] %s5007_s0 }
   0x2   :  { %5030 = sst [smem:[#allocation13_spill]] %s5008_s1 }
   0x3   :  { %5031 = sst [smem:[#allocation14_spill]] %s5009_s2 }
   0x4   :  { %23 = vsyncpa [#allocation3], 0 }
   0x5   :  { %24 = vsyncpa [#allocation5], 0 }
   0x6   :  { %25 = vsyncpa [#allocation8], 0  ;;  %s3053_s27 = smov [#allocation4]   ;;  %s3054_s29 = smov [#allocation2]  }
   0x7   :  { %s56_s28 = sshll.u32 %s3053_s27, 4  ;;  %s39_s30 = sshll.u32 %s3054_s29, 4  ;;  %s57_s28 = int_to_ptr.vmem [resolvable:$true] %s56_s28  ;;  %s40_s30 = int_to_ptr.vmem [resolvable:$true] %s39_s30 }
   0x8   :  { %s2975_s0 = scalar_lea.vmem %s57_s28, 16  ;;  %s2979_s19 = scalar_lea.vmem %s57_s28, 32 }
   0x9   :  { %p2976_p0 = scmp.ne.s32.totalorder %s57_s28, %s2975_s0  ;;  %p2980_p1 = scmp.lt.s32.totalorder %s57_s28, %s57_s28 }
   0xa   :  { %p2981_p2 = scmp.lt.s32.totalorder %s2979_s19, %s2975_s0 }
   0xc   :  { %p2982_p3 = por %p2981_p2, %p2980_p1 }
   0xe   :  { %p2983_p4 = pnand %p2982_p3, %p2976_p0 }
  0x10   :  { %2986 = shalt.err (!%p2983_p4)
}
  0x11   :  { %59 = dma.hbm_to_vmem [thread:$0]  %s5014_s7, 16, %s57_s28, [#allocation5]  }
  0x12   :  { %s2995_s21 = scalar_lea.vmem %s40_s30, 2048  ;;  %p3000_p6 = scmp.lt.s32.totalorder %s40_s30, %s40_s30 }
  0x13   :  { %p2996_p5 = scmp.ne.s32.totalorder %s40_s30, %s2995_s21  ;;  %p3001_p7 = scmp.lt.s32.totalorder %s2995_s21, %s2995_s21 }
  0x15   :  { %p3002_p8 = por %p3001_p7, %p3000_p6 }
  0x17   :  { %p3003_p9 = pnand %p3002_p8, %p2996_p5 }
  0x19   :  { %3006 = shalt.err (!%p3003_p9)
}
  0x1a   :  { %s3055_s22 = smov 128   ;;  %s3056_s2 = smov 8  }
  0x1b   :  { %45 = dma.hbm_to_vmem [thread:$0]  %s5011_s4, 2048, %s40_s30, [#allocation3], %s3055_s22, %s3055_s22, %s3056_s2  }
  0x1c   :  { %s3057_s25 = smov [#allocation6]  }
  0x1d   :  { %s73_s26 = sshll.u32 %s3057_s25, 4  ;;  %s74_s26 = int_to_ptr.vmem [resolvable:$true] %s73_s26 }
  0x1e   :  { %s3015_s27 = scalar_lea.vmem %s74_s26, 12288  ;;  %p3020_p11 = scmp.lt.s32.totalorder %s74_s26, %s74_s26 }
  0x1f   :  { %p3016_p10 = scmp.ne.s32.totalorder %s74_s26, %s3015_s27  ;;  %p3021_p12 = scmp.lt.s32.totalorder %s3015_s27, %s3015_s27 }
  0x21   :  { %p3022_p13 = por %p3021_p12, %p3020_p11 }
  0x23   :  { %p3023_p0 = pnand %p3022_p13, %p3016_p10 }
  0x25   :  { %3026 = shalt.err (!%p3023_p0)
}
  0x26   :  { %s3058_s7 = smov 384   ;;  %s3059_s28 = smov 24  }
  0x27   :  { %79 = dma.hbm_to_vmem [thread:$0]  %s5019_s12, 12288, %s74_s26, [#allocation5], %s3058_s7, %s3058_s7, %s3059_s28  }
  0x28   :  { %s3060_s19 = smov [#allocation7]  }
  0x29   :  { %s94_s1 = sshll.u32 %s3060_s19, 4  ;;  %s95_s1 = int_to_ptr.vmem [resolvable:$true] %s94_s1 }
  0x2a   :  { %s3035_s4 = scalar_lea.vmem %s95_s1, 16  ;;  %s3039_s30 = scalar_lea.vmem %s95_s1, 32 }
  0x2b   :  { %p3036_p1 = scmp.ne.s32.totalorder %s95_s1, %s3035_s4  ;;  %p3040_p2 = scmp.lt.s32.totalorder %s95_s1, %s95_s1 }
  0x2c   :  { %p3041_p3 = scmp.lt.s32.totalorder %s3039_s30, %s3035_s4 }
  0x2e   :  { %p3042_p4 = por %p3041_p3, %p3040_p2 }
  0x30   :  { %p3043_p5 = pnand %p3042_p4, %p3036_p1 }
  0x32   :  { %3046 = shalt.err (!%p3043_p5)
}
  0x33   :  { %97 = dma.hbm_to_vmem [thread:$0]  %s5024_s17, 16, %s95_s1, [#allocation8]  }
  0x34   :  { %3047 = dma.done.wait [#allocation3], 2048  }
  0x35   :  { %3048 = vsyncadd [#allocation3], 4294965248 }
  0x36   :  { %3049 = dma.done.wait [#allocation5], 12304  }
  0x37   :  { %3050 = vsyncadd [#allocation5], 4294954992 }
  0x38   :  { %3051 = dma.done.wait [#allocation8], 16  }
  0x39   :  { %3052 = vsyncadd [#allocation8], 4294967280  ;;  %v134_v0 = vld [vmem:[#allocation2 + $0x70] sm:$0xff]  ;;  %v135_v1 = vld [vmem:[#allocation2 + $0x78] sm:$0xff]  ;;  %s5032_s22 = sld [smem:[#allocation12_spill]]  ;;  %vm403_vm0 = vcmask 1043456   ;;  %v309_v60 = vlaneseq }
  0x3a   :  { %v132_v2 = vld [vmem:[#allocation2 + $0x60] sm:$0xff]  ;;  %v148_v3 = vpack.c.bf16 %v135_v1, %v134_v0  ;;  %v133_v4 = vld [vmem:[#allocation2 + $0x68] sm:$0xff]  ;;  %v130_v6 = vld [vmem:[#allocation2 + $0x50] sm:$0xff]  ;;  %s5033_s29 = sld [smem:[#allocation13_spill]]  ;;  %vm349_vm4 = vcmask 195584   ;;  %vm3063_vm11 = vmmov 0  }
  0x3b   :  { %v147_v5 = vpack.c.bf16 %v133_v4, %v132_v2  ;;  %v131_v7 = vld [vmem:[#allocation2 + $0x58] sm:$0xff]  ;;  %v128_v11 = vld [vmem:[#allocation2 + $0x40] sm:$0xff]  ;;  %v129_v12 = vld [vmem:[#allocation2 + $0x48] sm:$0xff]  ;;  %v3188_v61 = vshrl.u32 %v309_v60, 7 }
  0x3c   :  { %2854 = vmatprep.subr.bf16.mxu0 %v148_v3  ;;  %v146_v8 = vpack.c.bf16 %v131_v7, %v130_v6  ;;  %v145_v14 = vpack.c.bf16 %v129_v12, %v128_v11  ;;  %v126_v15 = vld [vmem:[#allocation2 + $0x30] sm:$0xff]  ;;  %v127_v16 = vld [vmem:[#allocation2 + $0x38] sm:$0xff]  ;;  %v124_v18 = vld [vmem:[#allocation2 + $0x20] sm:$0xff] }
  0x3d   :  { %2855 = vmatpush3.bf16.msra.mxu0 %v148_v3  ;;  %v144_v17 = vpack.c.bf16 %v127_v16, %v126_v15  ;;  %v125_v19 = vld [vmem:[#allocation2 + $0x28] sm:$0xff]  ;;  %v122_v21 = vld [vmem:[#allocation2 + $0x10] sm:$0xff]  ;;  %v123_v22 = vld [vmem:[#allocation2 + $0x18] sm:$0xff]  ;;  %v3191_v0 = vsub.s32 0, %v3188_v61 }
  0x3e   :  { %2856 = vmatprep.subr.bf16.mxu0 %v147_v5  ;;  %v143_v20 = vpack.c.bf16 %v125_v19, %v124_v18  ;;  %v142_v23 = vpack.c.bf16 %v123_v22, %v122_v21  ;;  %v120_v24 = vld [vmem:[#allocation2] sm:$0xff]  ;;  %v121_v25 = vld [vmem:[#allocation2 + $0x8] sm:$0xff] }
  0x3f   :  { %v117_v9 = vld [vmem:[%s5032_s22] sm:$0xff]  ;;  %v118_v10 = vld [vmem:[%s5032_s22 + $0x8] sm:$0xff]  ;;  %v141_v26 = vpack.c.bf16 %v121_v25, %v120_v24  ;;  %v119_v27 = vld [vmem:[%s5032_s22 + $0x10] sm:$0xff]  ;;  %s5034_s22 = sld [smem:[#allocation14_spill]] }
  0x40   :  { %v139_v13 = vpack.c.bf16 %v118_v10, %v117_v9  ;;  %v140_v28 = vpack.c.bf16 %v119_v27, %v119_v27  ;;  %v2690_v29 = vld [vmem:[%s5012_s5] ss:$0 sm:$0xff]  ;;  %v3211_v21 = vld [vmem:[%s5033_s29 + $0x10] sm:$0xff] }
  0x41   :  { %2857 = vmatpush3.bf16.msra.mxu0 %v147_v5  ;;  %v2691_v36 = vld [vmem:[%s5013_s6] ss:$0 sm:$0xff]  ;;  %vm116_vm7 = vcmp.gt.f32.partialorder %v3211_v21, 0.0  ;;  %v893_v21 = vld [vmem:[#allocation6 + $0x110] sm:$0xff] }
  0x42   :  { %2870 = vmatprep.mubr.bf16.mxu0 %v139_v13  ;;  %2858 = vmatprep.subr.bf16.mxu0 %v146_v8  ;;  %v3197_v9 = vld [vmem:[%s5033_s29] sm:$0xff] }
  0x43   :  { %vm114_vm1 = vcmp.gt.f32.partialorder %v3197_v9, 0.0  ;;  %v486_v60 = vld [vmem:[%s5015_s8 + $0xe0] sm:$0xff] }
  0x45   :  { %2859 = vmatpush3.bf16.msra.mxu0 %v146_v8 }
  0x46   :  { %2860 = vmatprep.subr.bf16.mxu0 %v145_v14 }
  0x49   :  { %2861 = vmatpush3.bf16.msra.mxu0 %v145_v14  ;;  %v3203_v14 = vld [vmem:[%s5033_s29 + $0x8] sm:$0xff] }
  0x4a   :  { %2862 = vmatprep.subr.bf16.mxu0 %v144_v17  ;;  %vm115_vm5 = vcmp.gt.f32.partialorder %v3203_v14, 0.0  ;;  %v904_v14 = vld [vmem:[#allocation6 + $0x168] sm:$0xff] }
  0x4d   :  { %2863 = vmatpush3.bf16.msra.mxu0 %v144_v17 }
  0x4e   :  { %2864 = vmatprep.subr.bf16.mxu0 %v143_v20 }
  0x51   :  { %2865 = vmatpush3.bf16.msra.mxu0 %v143_v20 }
  0x52   :  { %2866 = vmatprep.subr.bf16.mxu0 %v142_v23 }
  0x55   :  { %2867 = vmatpush3.bf16.msra.mxu0 %v142_v23 }
  0x56   :  { %2868 = vmatprep.subr.bf16.mxu0 %v141_v26 }
  0x59   :  { %2869 = vmatpush3.bf16.msra.mxu0 %v141_v26 }
  0x5c   :  { %2871 = vmatmul.mubr.bf16.vlgmr.msra.gmra.mxu0 %v140_v28 }
 0x11c   :  { %v2872_v30 = vpop.f32.mrf.mxu0 }
 0x11d   :  { %v198_v31 = vpack.c.bf16 %v2872_v30, %v2872_v30  ;;  %v255_v32 = vmul.f32 %v2872_v30, %v2690_v29  ;;  %v270_v41 = vmul.f32 %v2872_v30, %v2691_v36 }
 0x11e   :  { %v183_v33 = vpop.f32.mrf.mxu0 }
 0x11f   :  { %260 = vadd.xlane.f32.xlu1 %v255_v32  ;;  %2874 = vmatprep.subr.bf16.mxu1 %v198_v31  ;;  %v253_v34 = vmul.f32 %v2690_v29, %v183_v33  ;;  %v268_v37 = vmul.f32 %v2691_v36, %v183_v33  ;;  %v405_v43 = vsel %vm403_vm0, %v198_v31, 0 }
 0x120   :  { %v2873_v35 = vpop.f32.mrf.mxu0  ;;  %2875 = vmatpush3.bf16.xpose.msra.mxu1 %v198_v31 }
 0x121   :  { %256 = vadd.xlane.f32.xlu0 %v253_v34 }
 0x122   :  { %v186_v38 = vpop.f32.mrf.mxu0 }
 0x123   :  { %v197_v39 = vpack.c.bf16 %v186_v38, %v183_v33  ;;  %271 = vadd.xlane.f32.xlu1 %v268_v37  ;;  %v254_v40 = vmul.f32 %v2690_v29, %v186_v38  ;;  %v269_v42 = vmul.f32 %v2691_v36, %v186_v38 }
 0x125   :  { %258 = vadd.xlane.f32.xlu0 %v254_v40  ;;  %2876 = vmatprep.subr.bf16.mxu1 %v197_v39 }
 0x126   :  { %2878 = vmatprep.mubr.bf16.mxu1 %v197_v39 }
 0x127   :  { %275 = vadd.xlane.f32.xlu1 %v270_v41 }
 0x128   :  { %2877 = vmatpush3.bf16.xpose.msra.mxu1 %v197_v39 }
 0x129   :  { %273 = vadd.xlane.f32.xlu0 %v269_v42  ;;  %2906 = vmatprep.subr.msk.bf16.mxu1 %vm403_vm0, %v198_v31 }
 0x12f   :  { %2879 = vmatmul.mubr.bf16.vlgmr.msra.gmra.mxu1 %v198_v31 }
 0x130   :  { %2883 = vmatpush3.bf16.msra.mxu1 %v405_v43 }
 0x131   :  { %2884 = vmatprep.subr.bf16.mxu1 %v197_v39 }
 0x134   :  { %2885 = vmatpush3.bf16.msra.mxu1 %v197_v39 }
 0x1a8   :  { %v261_v46 = vpop.xlane.xlu1 %260 }
 0x1aa   :  { %v257_v44 = vpop.xlane.xlu0 %256 }
 0x1ab   :  { %277 = vxpose.xlu0.b32.start [1/3] (short) (narrow) %v257_v44, 8 }
 0x1ac   :  { %v272_v62 = vpop.xlane.xlu1 %271 }
 0x1ae   :  { %v259_v45 = vpop.xlane.xlu0 %258 }
 0x1af   :  { %278 = vxpose.xlu0.b32.cont [2/3] (short) (narrow) %v259_v45, 8 }
 0x1b0   :  { %v276_v4 = vpop.xlane.xlu1 %275 }
 0x1b2   :  { %v274_v63 = vpop.xlane.xlu0 %273 }
 0x1b3   :  { %279 = vxpose.xlu0.b32.end [3/3] (short) (narrow) %v261_v46, 8  ;;  %v487_v46 = vld [vmem:[%s5015_s8 + $0xe8] sm:$0xff] }
 0x1ef   :  { %v2880_v47 = vpop.f32.mrf.mxu1 }
 0x1f0   :  { %v2694_v51 = vmul.f32 -1.442695, %v2880_v47  ;;  %v489_v47 = vld [vmem:[%s5015_s8 + $0xf8] sm:$0xff] }
 0x1f1   :  { %v233_v48 = vpop.f32.mrf.mxu1 }
 0x1f2   :  { %v2692_v52 = vmul.f32 -1.442695, %v233_v48  ;;  %2919 = vpow2.f32 %v2694_v51  ;;  %v510_v48 = vpack.c.bf16 %v489_v47, %v487_v46  ;;  %v458_v46 = vld [vmem:[%s5015_s8] sm:$0xff]  ;;  %v460_v47 = vld [vmem:[%s5015_s8 + $0x10] sm:$0xff] }
 0x1f3   :  { %v2881_v49 = vpop.f32.mrf.mxu1 }
 0x1f4   :  { %2921 = vpow2.f32 %v2692_v52  ;;  %511 = vmatprep.subr.bf16.mxu1 %v510_v48  ;;  %v495_v48 = vpack.c.bf16 %v460_v47, %v458_v46 }
 0x1f5   :  { %v236_v50 = vpop.f32.mrf.mxu1 }
 0x1f6   :  { %v2693_v53 = vmul.f32 -1.442695, %v236_v50 }
 0x1f8   :  { %2923 = vpow2.f32 %v2693_v53 }
 0x1ff   :  { %v2920_v54 = vpop.eup %2919 }
 0x200   :  { %v327_v57 = vadd.f32 1.0, %v2920_v54 }
 0x201   :  { %v2922_v55 = vpop.eup %2921 }
 0x202   :  { %v325_v58 = vadd.f32 1.0, %v2922_v55  ;;  %2925 = vrcp.f32 %v327_v57 }
 0x204   :  { %2927 = vrcp.f32 %v325_v58 }
 0x205   :  { %v2924_v56 = vpop.eup %2923 }
 0x206   :  { %v326_v59 = vadd.f32 1.0, %v2924_v56 }
 0x208   :  { %2929 = vrcp.f32 %v326_v59 }
 0x20f   :  { %v2926_v3 = vpop.eup %2925 }
 0x211   :  { %v2928_v5 = vpop.eup %2927 }
 0x215   :  { %v2930_v10 = vpop.eup %2929 }
 0x227   :  { %v293_v1 = vpop.trf.xlu0 }
 0x228   :  { %v312_v2 = vrot.slane %v293_v1, %v3191_v0  ;;  %v483_v1 = vld [vmem:[%s5015_s8 + $0xc8] sm:$0xff] }
 0x22a   :  { %v313_v6 = vadd.f32 %v312_v2, %v272_v62  ;;  %v314_v7 = vadd.f32 %v312_v2, %v274_v63  ;;  %v315_v8 = vadd.f32 %v312_v2, %v276_v4  ;;  %v488_v62 = vld [vmem:[%s5015_s8 + $0xf0] sm:$0xff]  ;;  %v485_v2 = vld [vmem:[%s5015_s8 + $0xd8] sm:$0xff] }
 0x22b   :  { %v509_v4 = vpack.c.bf16 %v488_v62, %v486_v60 }
 0x22c   :  { %v334_v11 = vmul.f32 %v2928_v5, %v313_v6  ;;  %v335_v12 = vmul.f32 %v2930_v10, %v314_v7  ;;  %v336_v13 = vmul.f32 %v2926_v3, %v315_v8  ;;  %v508_v6 = vpack.c.bf16 %v485_v2, %v483_v1  ;;  %v482_v7 = vld [vmem:[%s5015_s8 + $0xc0] sm:$0xff]  ;;  %v484_v8 = vld [vmem:[%s5015_s8 + $0xd0] sm:$0xff]  ;;  %v479_v10 = vld [vmem:[%s5015_s8 + $0xa8] sm:$0xff] }
 0x22d   :  { %v3331_v1 = vsub.s32 1, %v3188_v61  ;;  %v490_v2 = vld [vmem:[%s5016_s9] sm:$0x3] }
 0x22e   :  { %vm337_vm2 = vcmp.ge.f32.partialorder %v334_v11, 0.0  ;;  %v340_v15 = vmul.f32 0.2, %v334_v11  ;;  %vm338_vm3 = vcmp.ge.f32.partialorder %v335_v12, 0.0  ;;  %v341_v16 = vmul.f32 0.2, %v335_v12 }
 0x22f   :  { %v342_v19 = vmul.f32 0.2, %v336_v13  ;;  %vm339_vm6 = vcmp.ge.f32.partialorder %v336_v13, 0.0 }
 0x230   :  { %v343_v17 = vsel %vm337_vm2, %v334_v11, %v340_v15  ;;  %v344_v18 = vsel %vm338_vm3, %v335_v12, %v341_v16  ;;  %v481_v11 = vld [vmem:[%s5015_s8 + $0xb8] sm:$0xff]  ;;  %v507_v12 = vpack.c.bf16 %v484_v8, %v482_v7  ;;  %v478_v15 = vld [vmem:[%s5015_s8 + $0xa0] sm:$0xff]  ;;  %v480_v16 = vld [vmem:[%s5015_s8 + $0xb0] sm:$0xff] }
 0x231   :  { %v346_v20 = vsel %vm114_vm1, %v343_v17, -1e+30  ;;  %v347_v23 = vsel %vm115_vm5, %v344_v18, -1e+30  ;;  %v345_v24 = vsel %vm339_vm6, %v336_v13, %v342_v19  ;;  %v506_v13 = vpack.c.bf16 %v481_v11, %v479_v10  ;;  %v475_v17 = vld [vmem:[%s5015_s8 + $0x88] sm:$0xff]  ;;  %v477_v18 = vld [vmem:[%s5015_s8 + $0x98] sm:$0xff] }
 0x232   :  { %v350_v22 = vsel %vm349_vm4, %v346_v20, -inf  ;;  %v353_v25 = vsel %vm349_vm4, %v347_v23, -inf  ;;  %v348_v26 = vsel %vm116_vm7, %v345_v24, -1e+30  ;;  %v505_v19 = vpack.c.bf16 %v480_v16, %v478_v15  ;;  %v471_v24 = vld [vmem:[%s5015_s8 + $0x68] sm:$0xff] }
 0x233   :  { %351 = vmax.xlane.f32.xlu1 %v350_v22  ;;  %v356_v27 = vsel %vm349_vm4, %v348_v26, -inf  ;;  %v474_v22 = vld [vmem:[%s5015_s8 + $0x80] sm:$0xff] }
 0x237   :  { %354 = vmax.xlane.f32.xlu1 %v353_v25  ;;  %v473_v25 = vld [vmem:[%s5015_s8 + $0x78] sm:$0xff] }
 0x23b   :  { %357 = vmax.xlane.f32.xlu1 %v356_v27  ;;  %v502_v27 = vpack.c.bf16 %v473_v25, %v471_v24 }
 0x2bc   :  { %v352_v28 = vpop.xlane.xlu1 %351 }
 0x2bd   :  { %v359_v29 = vsub.f32 %v346_v20, %v352_v28  ;;  %v504_v20 = vpack.c.bf16 %v477_v18, %v475_v17  ;;  %v470_v28 = vld [vmem:[%s5015_s8 + $0x60] sm:$0xff] }
 0x2be   :  { %v491_v18 = vld [vmem:[%s5017_s10] sm:$0x3] }
 0x2bf   :  { %v362_v30 = vmul.f32 1.442695, %v359_v29  ;;  %v472_v29 = vld [vmem:[%s5015_s8 + $0x70] sm:$0xff] }
 0x2c0   :  { %v355_v31 = vpop.xlane.xlu1 %354 }
 0x2c1   :  { %2931 = vpow2.f32 %v362_v30  ;;  %v360_v32 = vsub.f32 %v347_v23, %v355_v31  ;;  %v476_v23 = vld [vmem:[%s5015_s8 + $0x90] sm:$0xff]  ;;  %v501_v30 = vpack.c.bf16 %v472_v29, %v470_v28  ;;  %v467_v31 = vld [vmem:[%s5015_s8 + $0x48] sm:$0xff] }
 0x2c3   :  { %v364_v33 = vmul.f32 1.442695, %v360_v32  ;;  %v469_v32 = vld [vmem:[%s5015_s8 + $0x58] sm:$0xff] }
 0x2c4   :  { %v358_v34 = vpop.xlane.xlu1 %357 }
 0x2c5   :  { %2933 = vpow2.f32 %v364_v33  ;;  %v361_v35 = vsub.f32 %v348_v26, %v358_v34  ;;  %v503_v26 = vpack.c.bf16 %v476_v23, %v474_v22  ;;  %v500_v33 = vpack.c.bf16 %v469_v32, %v467_v31  ;;  %v466_v34 = vld [vmem:[%s5015_s8 + $0x40] sm:$0xff] }
 0x2c7   :  { %v366_v36 = vmul.f32 1.442695, %v361_v35  ;;  %v468_v35 = vld [vmem:[%s5015_s8 + $0x50] sm:$0xff] }
 0x2c9   :  { %2935 = vpow2.f32 %v366_v36  ;;  %v499_v36 = vpack.c.bf16 %v468_v35, %v466_v34 }
 0x2ce   :  { %v2932_v37 = vpop.eup %2931 }
 0x2cf   :  { %v368_v38 = vsel %vm114_vm1, %v2932_v37, 0.0  ;;  %v463_v37 = vld [vmem:[%s5015_s8 + $0x28] sm:$0xff] }
 0x2d0   :  { %v371_v39 = vsel %vm349_vm4, %v368_v38, 0.0 }
 0x2d1   :  { %372 = vadd.xlane.f32.xlu1 %v371_v39 }
 0x2d2   :  { %v2934_v40 = vpop.eup %2933 }
 0x2d3   :  { %v369_v41 = vsel %vm115_vm5, %v2934_v40, 0.0  ;;  %v462_v40 = vld [vmem:[%s5015_s8 + $0x20] sm:$0xff] }
 0x2d4   :  { %v374_v42 = vsel %vm349_vm4, %v369_v41, 0.0 }
 0x2d5   :  { %375 = vadd.xlane.f32.xlu1 %v374_v42 }
 0x2d6   :  { %v2936_v43 = vpop.eup %2935 }
 0x2d7   :  { %v370_v44 = vsel %vm116_vm7, %v2936_v43, 0.0  ;;  %v459_v43 = vld [vmem:[%s5015_s8 + $0x8] sm:$0xff] }
 0x2d8   :  { %v377_v45 = vsel %vm349_vm4, %v370_v44, 0.0 }
 0x2d9   :  { %378 = vadd.xlane.f32.xlu1 %v377_v45 }
 0x35a   :  { %v373_v49 = vpop.xlane.xlu1 %372 }
 0x35b   :  { %v380_v50 = vmax.f32 %v373_v49, 1e-30  ;;  %v3061_v49 = vmov 0  }
 0x35d   :  { %2937 = vrcp.f32 %v380_v50 }
 0x35e   :  { %v376_v51 = vpop.xlane.xlu1 %375 }
 0x35f   :  { %v381_v52 = vmax.f32 %v376_v51, 1e-30 }
 0x361   :  { %2939 = vrcp.f32 %v381_v52  ;;  %v2695_v52 = vld [vmem:[#allocation4] ss:$0 sm:$0xff] }
 0x362   :  { %v379_v53 = vpop.xlane.xlu1 %378 }
 0x363   :  { %v382_v54 = vmax.f32 %v379_v53, 1e-30 }
 0x365   :  { %2941 = vrcp.f32 %v382_v54 }
 0x36a   :  { %v2938_v55 = vpop.eup %2937 }
 0x36b   :  { %v386_v57 = vmul.f32 %v2938_v55, %v368_v38  ;;  %v465_v38 = vld [vmem:[%s5015_s8 + $0x38] sm:$0xff] }
 0x36c   :  { %v498_v39 = vpack.c.bf16 %v465_v38, %v463_v37 }
 0x36e   :  { %v2940_v56 = vpop.eup %2939 }
 0x36f   :  { %v387_v58 = vmul.f32 %v2940_v56, %v369_v41  ;;  %v464_v41 = vld [vmem:[%s5015_s8 + $0x30] sm:$0xff] }
 0x370   :  { %v497_v42 = vpack.c.bf16 %v464_v41, %v462_v40 }
 0x371   :  { %v389_v59 = vpack.c.bf16 %v387_v58, %v386_v57 }
 0x372   :  { %v2942_v63 = vpop.eup %2941 }
 0x373   :  { %2886 = vmatprep.mubr.msk.bf16.mxu1 %vm349_vm4, %v389_v59  ;;  %v388_v3 = vmul.f32 %v2942_v63, %v370_v44  ;;  %v461_v44 = vld [vmem:[%s5015_s8 + $0x18] sm:$0xff] }
 0x374   :  { %v496_v45 = vpack.c.bf16 %v461_v44, %v459_v43 }
 0x375   :  { %v390_v5 = vpack.c.bf16 %v388_v3, %v388_v3  ;;  %v618_v3 = vrot.slane %v490_v2, %v3191_v0 }
 0x377   :  { %2887 = vmatmul.mubr.msk.bf16.vlgmr.msra.gmra.mxu1 %vm349_vm4, %v390_v5 }
 0x378   :  { %512 = vmatpush1.bf16.msra.mxu1 %v509_v4  ;;  %543 = vmatprep.mubr.bf16.mxu1 %v3061_v49  ;;  %v622_v4 = vrot.slane %v490_v2, %v3331_v1 }
 0x379   :  { %513 = vmatprep.subr.bf16.mxu1 %v508_v6 }
 0x37c   :  { %514 = vmatpush1.bf16.msra.mxu1 %v507_v12 }
 0x37d   :  { %515 = vmatprep.subr.bf16.mxu1 %v506_v13 }
 0x380   :  { %516 = vmatpush1.bf16.msra.mxu1 %v505_v19 }
 0x381   :  { %517 = vmatprep.subr.bf16.mxu1 %v504_v20  ;;  %v648_v20 = vrot.slane %v491_v18, %v3331_v1 }
 0x384   :  { %518 = vmatpush1.bf16.msra.mxu1 %v503_v26  ;;  %v644_v26 = vrot.slane %v491_v18, %v3191_v0 }
 0x385   :  { %519 = vmatprep.subr.bf16.mxu1 %v502_v27 }
 0x388   :  { %520 = vmatpush1.bf16.msra.mxu1 %v501_v30 }
 0x389   :  { %521 = vmatprep.subr.bf16.mxu1 %v500_v33 }
 0x38c   :  { %522 = vmatpush1.bf16.msra.mxu1 %v499_v36 }
 0x38d   :  { %523 = vmatprep.subr.bf16.mxu1 %v498_v39 }
 0x390   :  { %524 = vmatpush1.bf16.msra.mxu1 %v497_v42 }
 0x391   :  { %525 = vmatprep.subr.bf16.mxu1 %v496_v45 }
 0x394   :  { %526 = vmatpush1.bf16.msra.mxu1 %v495_v48 }
 0x437   :  { %v2888_v50 = vpop.f32.mrf.mxu1 }
 0x438   :  { %v450_v59 = vadd.f32 %v2888_v50, %v2695_v52 }
 0x439   :  { %v441_v51 = vpop.f32.mrf.mxu1 }
 0x43a   :  { %v442_v54 = vadd.f32 %v2695_v52, %v441_v51  ;;  %v457_v62 = vmax.f32 %v450_v59, 0.0 }
 0x43b   :  { %v2889_v53 = vpop.f32.mrf.mxu1 }
 0x43c   :  { %v455_v57 = vmax.f32 %v442_v54, 0.0  ;;  %v494_v63 = vpack.c.bf16 %v457_v62, %v457_v62 }
 0x43d   :  { %v444_v55 = vpop.f32.mrf.mxu1 }
 0x43e   :  { %v445_v56 = vadd.f32 %v2695_v52, %v444_v55 }
 0x440   :  { %v456_v58 = vmax.f32 %v445_v56, 0.0 }
 0x442   :  { %v493_v60 = vpack.c.bf16 %v456_v58, %v455_v57 }
 0x444   :  { %544 = vmatmul.mubr.bf16.vlgmr.msra.gmra.mxu1 %v493_v60 }
 0x445   :  { %553 = vmatprep.mubr.bf16.mxu1 %v3061_v49 }
 0x44c   :  { %554 = vmatmul.mubr.bf16.gmra.mxu1 %v494_v63 }
 0x504   :  { %v545_v5 = vpop.f32.mrf.mxu1 }
 0x505   :  { %v625_v7 = vmul.f32 %v618_v3, %v545_v5  ;;  %v651_v32 = vmul.f32 %v644_v26, %v545_v5 }
 0x506   :  { %v547_v6 = vpop.f32.mrf.mxu1 }
 0x507   :  { %v626_v8 = vmul.f32 %v622_v4, %v547_v6  ;;  %v652_v30 = vmul.f32 %v648_v20, %v547_v6 }
 0x508   :  { %v549_v10 = vpop.f32.mrf.mxu1 }
 0x509   :  { %v631_v11 = vadd.f32 %v626_v8, %v625_v7  ;;  %v627_v15 = vmul.f32 %v618_v3, %v549_v10  ;;  %v657_v33 = vadd.f32 %v652_v30, %v651_v32  ;;  %v653_v35 = vmul.f32 %v644_v26, %v549_v10 }
 0x50a   :  { %v551_v12 = vpop.f32.mrf.mxu1  ;;  %v562_v36 = vpack.c.bf16 %v549_v10, %v545_v5 }
 0x50b   :  { %v563_v13 = vpack.c.bf16 %v551_v12, %v547_v6  ;;  %632 = vadd.xlane.f32.xlu1 %v631_v11  ;;  %v628_v16 = vmul.f32 %v622_v4, %v551_v12  ;;  %v654_v34 = vmul.f32 %v648_v20, %v551_v12 }
 0x50c   :  { %v555_v17 = vpop.f32.mrf.mxu1 }
 0x50d   :  { %598 = vmatprep.mubr.bf16.mxu0 %v563_v13  ;;  %v634_v19 = vadd.f32 %v628_v16, %v627_v15  ;;  %v629_v24 = vmul.f32 %v618_v3, %v555_v17  ;;  %v564_v27 = vpack.c.bf16 %v555_v17, %v555_v17  ;;  %v660_v37 = vadd.f32 %v654_v34, %v653_v35 }
 0x50e   :  { %v557_v22 = vpop.f32.mrf.mxu1  ;;  %v655_v39 = vmul.f32 %v644_v26, %v555_v17 }
 0x50f   :  { %v565_v23 = vpack.c.bf16 %v557_v22, %v557_v22  ;;  %635 = vadd.xlane.f32.xlu1 %v634_v19  ;;  %v630_v25 = vmul.f32 %v622_v4, %v557_v22  ;;  %v656_v38 = vmul.f32 %v648_v20, %v557_v22  ;;  %v797_v41 = vsel %vm403_vm0, %v564_v27, 0 }
 0x510   :  { %v559_v28 = vpop.f32.mrf.mxu1 }
 0x511   :  { %578 = vmatprep.subr.bf16.mxu0 %v565_v23  ;;  %v637_v29 = vadd.f32 %v630_v25, %v629_v24  ;;  %v663_v40 = vadd.f32 %v656_v38, %v655_v39 }
 0x512   :  { %v560_v31 = vpop.f32.mrf.mxu1  ;;  %579 = vmatpush1.bf16.xpose.msra.mxu0 %v564_v27 }
 0x513   :  { %638 = vadd.xlane.f32.xlu1 %v637_v29  ;;  %580 = vmatprep.subr.bf16.mxu0 %v563_v13 }
 0x517   :  { %658 = vadd.xlane.f32.xlu1 %v657_v33 }
 0x51a   :  { %581 = vmatpush1.bf16.xpose.msra.mxu0 %v562_v36 }
 0x51b   :  { %661 = vadd.xlane.f32.xlu1 %v660_v37  ;;  %2701 = vmatprep.subr.msk.bf16.mxu0 %vm403_vm0, %v565_v23 }
 0x51f   :  { %664 = vadd.xlane.f32.xlu1 %v663_v40 }
 0x521   :  { %599 = vmatmul.mubr.bf16.vlgmr.msra.gmra.mxu0 %v562_v36 }
 0x522   :  { %606 = vmatprep.mubr.bf16.mxu0 %v565_v23  ;;  %815 = vmatpush1.bf16.msra.mxu0 %v797_v41 }
 0x523   :  { %816 = vmatprep.subr.bf16.mxu0 %v563_v13 }
 0x526   :  { %817 = vmatpush1.bf16.msra.mxu0 %v562_v36 }
 0x529   :  { %607 = vmatmul.mubr.bf16.gmra.mxu0 %v564_v27 }
 0x52a   :  { %834 = vmatprep.mubr.bf16.mxu0 %v3061_v49 }
 0x594   :  { %v633_v42 = vpop.xlane.xlu1 %632 }
 0x595   :  { %666 = vxpose.xlu1.b32.start [1/3] (short) (narrow) %v633_v42, 8 }
 0x598   :  { %v636_v43 = vpop.xlane.xlu1 %635 }
 0x599   :  { %667 = vxpose.xlu1.b32.cont [2/3] (short) (narrow) %v636_v43, 8 }
 0x59c   :  { %v639_v44 = vpop.xlane.xlu1 %638 }
 0x59d   :  { %668 = vxpose.xlu1.b32.end [3/3] (short) (narrow) %v639_v44, 8 }
 0x5a0   :  { %v659_v60 = vpop.xlane.xlu1 %658 }
 0x5a4   :  { %v662_v3 = vpop.xlane.xlu1 %661 }
 0x5a8   :  { %v665_v4 = vpop.xlane.xlu1 %664 }
 0x5e1   :  { %v600_v45 = vpop.f32.mrf.mxu0 }
 0x5e2   :  { %v2698_v53 = vmul.f32 -1.442695, %v600_v45 }
 0x5e3   :  { %v602_v46 = vpop.f32.mrf.mxu0 }
 0x5e4   :  { %2943 = vpow2.f32 %v2698_v53  ;;  %v896_v53 = vld [vmem:[#allocation6 + $0x128] sm:$0xff] }
 0x5e5   :  { %v603_v47 = vpop.f32.mrf.mxu0 }
 0x5e6   :  { %v2699_v54 = vmul.f32 -1.442695, %v603_v47 }
 0x5e7   :  { %v605_v48 = vpop.f32.mrf.mxu0 }
 0x5e8   :  { %2945 = vpow2.f32 %v2699_v54  ;;  %v902_v48 = vld [vmem:[#allocation6 + $0x158] sm:$0xff]  ;;  %v899_v54 = vld [vmem:[#allocation6 + $0x140] sm:$0xff] }
 0x5e9   :  { %v608_v50 = vpop.f32.mrf.mxu0 }
 0x5ea   :  { %v2700_v56 = vmul.f32 -1.442695, %v608_v50  ;;  %v905_v50 = vld [vmem:[#allocation6 + $0x170] sm:$0xff] }
 0x5eb   :  { %v610_v51 = vpop.f32.mrf.mxu0 }
 0x5ec   :  { %2947 = vpow2.f32 %v2700_v56  ;;  %v901_v51 = vld [vmem:[#allocation6 + $0x150] sm:$0xff]  ;;  %v978_v56 = vpack.c.bf16 %v899_v54, %v896_v53  ;;  %v938_v53 = vld [vmem:[#allocation6 + $0x278] sm:$0xff] }
 0x5ed   :  { %v611_v52 = vpop.f32.mrf.mxu0  ;;  %v941_v54 = vld [vmem:[#allocation6 + $0x290] sm:$0xff] }
 0x5ee   :  { %v981_v52 = vpack.c.bf16 %v905_v50, %v902_v48  ;;  %v947_v48 = vld [vmem:[#allocation6 + $0x2c0] sm:$0xff] }
 0x5ef   :  { %v612_v55 = vpop.f32.mrf.mxu0 }
 0x5f0   :  { %v980_v55 = vpack.c.bf16 %v904_v14, %v901_v51  ;;  %1007 = vmatprep.subr.bf16.mxu1 %v981_v52  ;;  %v943_v52 = vld [vmem:[#allocation6 + $0x2a0] sm:$0xff]  ;;  %v946_v14 = vld [vmem:[#allocation6 + $0x2b8] sm:$0xff] }
 0x5f1   :  { %v2944_v57 = vpop.eup %2943 }
 0x5f2   :  { %v714_v62 = vadd.f32 1.0, %v2944_v57  ;;  %v895_v57 = vld [vmem:[#allocation6 + $0x120] sm:$0xff]  ;;  %1008 = vmatpush1.bf16.msra.mxu1 %v980_v55  ;;  %v1001_v55 = vpack.c.bf16 %v946_v14, %v943_v52  ;;  %v882_v52 = vld [vmem:[#allocation6 + $0xb8] sm:$0xff] }
 0x5f3   :  { %1009 = vmatprep.subr.bf16.mxu1 %v978_v56  ;;  %v999_v56 = vpack.c.bf16 %v941_v54, %v938_v53  ;;  %v920_v53 = vld [vmem:[#allocation6 + $0x1e8] sm:$0xff]  ;;  %v923_v54 = vld [vmem:[#allocation6 + $0x200] sm:$0xff] }
 0x5f4   :  { %2949 = vrcp.f32 %v714_v62 }
 0x5f5   :  { %v2946_v58 = vpop.eup %2945 }
 0x5f6   :  { %v715_v63 = vadd.f32 1.0, %v2946_v58  ;;  %v898_v58 = vld [vmem:[#allocation6 + $0x138] sm:$0xff] }
 0x5f8   :  { %2951 = vrcp.f32 %v715_v63  ;;  %v889_v63 = vld [vmem:[#allocation6 + $0xf0] sm:$0xff] }
 0x5f9   :  { %v2948_v59 = vpop.eup %2947 }
 0x5fa   :  { %v716_v2 = vadd.f32 1.0, %v2948_v59  ;;  %v890_v59 = vld [vmem:[#allocation6 + $0xf8] sm:$0xff] }
 0x5fb   :  { %v975_v62 = vpack.c.bf16 %v893_v21, %v890_v59  ;;  %v932_v59 = vld [vmem:[#allocation6 + $0x248] sm:$0xff]  ;;  %v935_v21 = vld [vmem:[#allocation6 + $0x260] sm:$0xff] }
 0x5fc   :  { %2953 = vrcp.f32 %v716_v2  ;;  %v892_v2 = vld [vmem:[#allocation6 + $0x108] sm:$0xff] }
 0x601   :  { %v2950_v7 = vpop.eup %2949 }
 0x605   :  { %v2952_v8 = vpop.eup %2951 }
 0x609   :  { %v2954_v13 = vpop.eup %2953 }
 0x611   :  { %v682_v5 = vpop.trf.xlu1 }
 0x612   :  { %v701_v6 = vrot.slane %v682_v5, %v3191_v0  ;;  %v974_v5 = vpack.c.bf16 %v892_v2, %v889_v63  ;;  %v931_v63 = vld [vmem:[#allocation6 + $0x240] sm:$0xff]  ;;  %v934_v2 = vld [vmem:[#allocation6 + $0x258] sm:$0xff] }
 0x614   :  { %v702_v10 = vadd.f32 %v701_v6, %v659_v60  ;;  %v703_v11 = vadd.f32 %v701_v6, %v662_v3  ;;  %v704_v12 = vadd.f32 %v701_v6, %v665_v4  ;;  %v977_v60 = vpack.c.bf16 %v898_v58, %v895_v57  ;;  %v884_v3 = vld [vmem:[#allocation6 + $0xc8] sm:$0xff]  ;;  %v887_v4 = vld [vmem:[#allocation6 + $0xe0] sm:$0xff]  ;;  %v937_v57 = vld [vmem:[#allocation6 + $0x270] sm:$0xff] }
 0x615   :  { %v972_v6 = vpack.c.bf16 %v887_v4, %v884_v3  ;;  %v940_v58 = vld [vmem:[#allocation6 + $0x288] sm:$0xff]  ;;  %v926_v3 = vld [vmem:[#allocation6 + $0x218] sm:$0xff]  ;;  %v929_v4 = vld [vmem:[#allocation6 + $0x230] sm:$0xff] }
 0x616   :  { %v723_v15 = vmul.f32 %v2950_v7, %v702_v10  ;;  %v724_v16 = vmul.f32 %v2952_v8, %v703_v11  ;;  %v725_v17 = vmul.f32 %v2954_v13, %v704_v12  ;;  %1010 = vmatpush1.bf16.msra.mxu1 %v977_v60  ;;  %v883_v7 = vld [vmem:[#allocation6 + $0xc0] sm:$0xff]  ;;  %v886_v8 = vld [vmem:[#allocation6 + $0xd8] sm:$0xff]  ;;  %v881_v11 = vld [vmem:[#allocation6 + $0xb0] sm:$0xff]  ;;  %v998_v60 = vpack.c.bf16 %v940_v58, %v937_v57 }
 0x617   :  { %1011 = vmatprep.subr.bf16.mxu1 %v975_v62  ;;  %v878_v10 = vld [vmem:[#allocation6 + $0x98] sm:$0xff]  ;;  %v951_v12 = vld [vmem:[#allocation6 + $0x2e0] sm:$0xff]  ;;  %v996_v62 = vpack.c.bf16 %v935_v21, %v932_v59  ;;  %v924_v57 = vld [vmem:[#allocation6 + $0x208] sm:$0xff] }
 0x618   :  { %vm726_vm8 = vcmp.ge.f32.partialorder %v723_v15, 0.0  ;;  %v729_v18 = vmul.f32 0.2, %v723_v15  ;;  %vm727_vm9 = vcmp.ge.f32.partialorder %v724_v16, 0.0  ;;  %v730_v19 = vmul.f32 0.2, %v724_v16 }
 0x619   :  { %v731_v23 = vmul.f32 0.2, %v725_v17  ;;  %vm728_vm10 = vcmp.ge.f32.partialorder %v725_v17, 0.0  ;;  %v954_v13 = vld [vmem:[#allocation6 + $0x2f8] sm:$0xff]  ;;  %v919_v58 = vld [vmem:[#allocation6 + $0x1e0] sm:$0xff] }
 0x61a   :  { %v732_v20 = vsel %vm726_vm8, %v723_v15, %v729_v18  ;;  %v733_v22 = vsel %vm727_vm9, %v724_v16, %v730_v19  ;;  %1012 = vmatpush1.bf16.msra.mxu1 %v974_v5  ;;  %v971_v15 = vpack.c.bf16 %v886_v8, %v883_v7  ;;  %v1006_v16 = vpack.c.bf16 %v954_v13, %v951_v12  ;;  %v877_v18 = vld [vmem:[#allocation6 + $0x90] sm:$0xff]  ;;  %v880_v19 = vld [vmem:[#allocation6 + $0xa8] sm:$0xff]  ;;  %v922_v59 = vld [vmem:[#allocation6 + $0x1f8] sm:$0xff] }
 0x61b   :  { %v735_v24 = vsel %vm114_vm1, %v732_v20, -1e+30  ;;  %v736_v26 = vsel %vm115_vm5, %v733_v22, -1e+30  ;;  %v734_v27 = vsel %vm728_vm10, %v725_v17, %v731_v23  ;;  %1013 = vmatprep.subr.bf16.mxu1 %v972_v6  ;;  %v969_v17 = vpack.c.bf16 %v881_v11, %v878_v10  ;;  %v872_v20 = vld [vmem:[#allocation6 + $0x68] sm:$0xff]  ;;  %v875_v22 = vld [vmem:[#allocation6 + $0x80] sm:$0xff] }
 0x61c   :  { %v738_v25 = vsel %vm349_vm4, %v735_v24, -inf  ;;  %v741_v28 = vsel %vm349_vm4, %v736_v26, -inf  ;;  %v737_v29 = vsel %vm116_vm7, %v734_v27, -1e+30  ;;  %2731 = vmatprep.subr.bf16.mxu0 %v1006_v16  ;;  %v968_v23 = vpack.c.bf16 %v880_v19, %v877_v18  ;;  %v866_v27 = vld [vmem:[#allocation6 + $0x38] sm:$0xff]  ;;  %v925_v7 = vld [vmem:[#allocation6 + $0x210] sm:$0xff] }
 0x61d   :  { %739 = vmax.xlane.f32.xlu0 %v738_v25  ;;  %v744_v30 = vsel %vm349_vm4, %v737_v29, -inf  ;;  %v871_v25 = vld [vmem:[#allocation6 + $0x60] sm:$0xff]  ;;  %v995_v5 = vpack.c.bf16 %v934_v2, %v931_v63  ;;  %v993_v6 = vpack.c.bf16 %v929_v4, %v926_v3  ;;  %v928_v8 = vld [vmem:[#allocation6 + $0x228] sm:$0xff]  ;;  %v914_v3 = vld [vmem:[#allocation6 + $0x1b8] sm:$0xff] }
 0x61e   :  { %1014 = vmatpush1.bf16.msra.mxu1 %v971_v15  ;;  %v992_v10 = vpack.c.bf16 %v928_v8, %v925_v7  ;;  %v903_v19 = vld [vmem:[#allocation6 + $0x160] sm:$0xff]  ;;  %v876_v63 = vld [vmem:[#allocation6 + $0x88] sm:$0xff]  ;;  %v917_v4 = vld [vmem:[#allocation6 + $0x1d0] sm:$0xff] }
 0x61f   :  { %1015 = vmatprep.subr.bf16.mxu1 %v969_v17  ;;  %v918_v7 = vld [vmem:[#allocation6 + $0x1d8] sm:$0xff]  ;;  %v913_v8 = vld [vmem:[#allocation6 + $0x1b0] sm:$0xff] }
 0x621   :  { %742 = vmax.xlane.f32.xlu0 %v741_v28  ;;  %v869_v28 = vld [vmem:[#allocation6 + $0x50] sm:$0xff] }
 0x622   :  { %1016 = vmatpush1.bf16.msra.mxu1 %v968_v23  ;;  %v945_v23 = vld [vmem:[#allocation6 + $0x2b0] sm:$0xff] }
 0x625   :  { %745 = vmax.xlane.f32.xlu0 %v744_v30  ;;  %v963_v30 = vpack.c.bf16 %v869_v28, %v866_v27 }
 0x6a6   :  { %v740_v31 = vpop.xlane.xlu0 %739 }
 0x6a7   :  { %v747_v32 = vsub.f32 %v735_v24, %v740_v31  ;;  %v966_v24 = vpack.c.bf16 %v875_v22, %v872_v20  ;;  %v865_v31 = vld [vmem:[#allocation6 + $0x30] sm:$0xff]  ;;  %v906_v20 = vld [vmem:[#allocation6 + $0x178] sm:$0xff] }
 0x6a8   :  { %v982_v27 = vpack.c.bf16 %v906_v20, %v903_v19  ;;  %v909_v19 = vld [vmem:[#allocation6 + $0x190] sm:$0xff] }
 0x6a9   :  { %v750_v33 = vmul.f32 1.442695, %v747_v32  ;;  %1017 = vmatprep.subr.bf16.mxu1 %v966_v24  ;;  %v868_v32 = vld [vmem:[#allocation6 + $0x48] sm:$0xff] }
 0x6aa   :  { %v743_v34 = vpop.xlane.xlu0 %742  ;;  %v948_v24 = vld [vmem:[#allocation6 + $0x2c8] sm:$0xff] }
 0x6ab   :  { %2955 = vpow2.f32 %v750_v33  ;;  %v748_v35 = vsub.f32 %v736_v26, %v743_v34  ;;  %v874_v26 = vld [vmem:[#allocation6 + $0x78] sm:$0xff]  ;;  %v860_v33 = vld [vmem:[#allocation6 + $0x8] sm:$0xff]  ;;  %v863_v34 = vld [vmem:[#allocation6 + $0x20] sm:$0xff] }
 0x6ad   :  { %v752_v36 = vmul.f32 1.442695, %v748_v35  ;;  %v962_v35 = vpack.c.bf16 %v868_v32, %v865_v31  ;;  %v900_v31 = vld [vmem:[#allocation6 + $0x148] sm:$0xff] }
 0x6ae   :  { %v746_v37 = vpop.xlane.xlu0 %745 }
 0x6af   :  { %2957 = vpow2.f32 %v752_v36  ;;  %v749_v38 = vsub.f32 %v737_v29, %v746_v37  ;;  %v965_v29 = vpack.c.bf16 %v874_v26, %v871_v25  ;;  %v960_v36 = vpack.c.bf16 %v863_v34, %v860_v33  ;;  %v859_v37 = vld [vmem:[#allocation6] sm:$0xff]  ;;  %v942_v34 = vld [vmem:[#allocation6 + $0x298] sm:$0xff] }
 0x6b0   :  { %v939_v33 = vld [vmem:[#allocation6 + $0x280] sm:$0xff] }
 0x6b1   :  { %v754_v39 = vmul.f32 1.442695, %v749_v38  ;;  %1018 = vmatpush1.bf16.msra.mxu1 %v965_v29  ;;  %v862_v38 = vld [vmem:[#allocation6 + $0x18] sm:$0xff]  ;;  %v1003_v29 = vpack.c.bf16 %v948_v24, %v945_v23  ;;  %v907_v23 = vld [vmem:[#allocation6 + $0x180] sm:$0xff] }
 0x6b2   :  { %1019 = vmatprep.subr.bf16.mxu1 %v963_v30  ;;  %v897_v30 = vld [vmem:[#allocation6 + $0x130] sm:$0xff]  ;;  %v910_v24 = vld [vmem:[#allocation6 + $0x198] sm:$0xff] }
 0x6b3   :  { %2959 = vpow2.f32 %v754_v39  ;;  %v950_v39 = vld [vmem:[#allocation6 + $0x2d8] sm:$0xff] }
 0x6b5   :  { %1020 = vmatpush1.bf16.msra.mxu1 %v962_v35  ;;  %v979_v35 = vpack.c.bf16 %v900_v31, %v897_v30  ;;  %v492_v30 = vld [vmem:[%s5018_s11] sm:$0x3] }
 0x6b6   :  { %1021 = vmatprep.subr.bf16.mxu1 %v960_v36 }
 0x6b8   :  { %v2956_v40 = vpop.eup %2955 }
 0x6b9   :  { %v3358_v41 = vsel %vm114_vm1, %v2956_v40, 0.0  ;;  %v953_v40 = vld [vmem:[#allocation6 + $0x2f0] sm:$0xff] }
 0x6ba   :  { %v759_v42 = vsel %vm349_vm4, %v3358_v41, 0.0 }
 0x6bb   :  { %760 = vadd.xlane.f32.xlu0 %v759_v42  ;;  %v959_v42 = vpack.c.bf16 %v862_v38, %v859_v37  ;;  %v891_v37 = vld [vmem:[#allocation6 + $0x100] sm:$0xff]  ;;  %v933_v38 = vld [vmem:[#allocation6 + $0x250] sm:$0xff] }
 0x6bc   :  { %v2958_v43 = vpop.eup %2957 }
 0x6bd   :  { %v3364_v44 = vsel %vm115_vm5, %v2958_v43, 0.0  ;;  %v1005_v43 = vpack.c.bf16 %v953_v40, %v950_v39  ;;  %1022 = vmatpush1.bf16.msra.mxu1 %v959_v42  ;;  %v936_v39 = vld [vmem:[#allocation6 + $0x268] sm:$0xff] }
 0x6be   :  { %v762_v45 = vsel %vm349_vm4, %v3364_v44, 0.0 }
 0x6bf   :  { %763 = vadd.xlane.f32.xlu1 %v762_v45  ;;  %v949_v45 = vld [vmem:[#allocation6 + $0x2d0] sm:$0xff]  ;;  %1023 = vmatprep.subr.bf16.mxu1 %v1005_v43  ;;  %v997_v43 = vpack.c.bf16 %v936_v39, %v933_v38 }
 0x6c0   :  { %v2960_v46 = vpop.eup %2959 }
 0x6c1   :  { %v3370_v47 = vsel %vm116_vm7, %v2960_v46, 0.0  ;;  %v952_v46 = vld [vmem:[#allocation6 + $0x2e8] sm:$0xff] }
 0x6c2   :  { %v765_v9 = vsel %vm349_vm4, %v3370_v47, 0.0  ;;  %v1004_v50 = vpack.c.bf16 %v952_v46, %v949_v45  ;;  %v885_v45 = vld [vmem:[#allocation6 + $0xd0] sm:$0xff]  ;;  %v888_v46 = vld [vmem:[#allocation6 + $0xe8] sm:$0xff] }
 0x6c3   :  { %766 = vadd.xlane.f32.xlu0 %v765_v9  ;;  %v944_v9 = vld [vmem:[#allocation6 + $0x2a8] sm:$0xff] }
 0x6c4   :  { %v1002_v51 = vpack.c.bf16 %v947_v48, %v944_v9  ;;  %1024 = vmatpush2.bf16.msra.mxu1 %v1004_v50  ;;  %v927_v9 = vld [vmem:[#allocation6 + $0x220] sm:$0xff]  ;;  %v930_v48 = vld [vmem:[#allocation6 + $0x238] sm:$0xff]  ;;  %v973_v50 = vpack.c.bf16 %v888_v46, %v885_v45 }
 0x6c6   :  { %1025 = vmatprep.subr.bf16.mxu1 %v1002_v51  ;;  %v879_v51 = vld [vmem:[#allocation6 + $0xa0] sm:$0xff] }
 0x6c7   :  { %v970_v14 = vpack.c.bf16 %v882_v52, %v879_v51 }
 0x6c8   :  { %1026 = vmatpush2.bf16.msra.mxu1 %v1001_v55  ;;  %v921_v55 = vld [vmem:[#allocation6 + $0x1f0] sm:$0xff] }
 0x6c9   :  { %1027 = vmatprep.subr.bf16.mxu1 %v999_v56  ;;  %v990_v56 = vpack.c.bf16 %v923_v54, %v920_v53  ;;  %v991_v21 = vpack.c.bf16 %v924_v57, %v921_v55 }
 0x6cc   :  { %1028 = vmatpush2.bf16.msra.mxu1 %v998_v60  ;;  %v989_v60 = vpack.c.bf16 %v922_v59, %v919_v58 }
 0x6cd   :  { %1029 = vmatprep.subr.bf16.mxu1 %v996_v62  ;;  %v873_v62 = vld [vmem:[#allocation6 + $0x70] sm:$0xff] }
 0x6ce   :  { %v967_v2 = vpack.c.bf16 %v876_v63, %v873_v62 }
 0x6d0   :  { %1030 = vmatpush2.bf16.msra.mxu1 %v995_v5  ;;  %v915_v5 = vld [vmem:[#allocation6 + $0x1c0] sm:$0xff] }
 0x6d1   :  { %1031 = vmatprep.subr.bf16.mxu1 %v993_v6  ;;  %v987_v6 = vpack.c.bf16 %v917_v4, %v914_v3 }
 0x6d4   :  { %1032 = vmatpush2.bf16.msra.mxu1 %v992_v10  ;;  %v916_v10 = vld [vmem:[#allocation6 + $0x1c8] sm:$0xff] }
 0x6d5   :  { %1033 = vmatprep.subr.bf16.mxu1 %v990_v56 }
 0x6d8   :  { %1034 = vmatpush2.bf16.msra.mxu1 %v989_v60 }
 0x6d9   :  { %1035 = vmatprep.subr.bf16.mxu1 %v987_v6 }
 0x744   :  { %v761_v11 = vpop.xlane.xlu0 %760 }
 0x745   :  { %v768_v12 = vmax.f32 %v761_v11, 1e-30  ;;  %v988_v11 = vpack.c.bf16 %v918_v7, %v915_v5 }
 0x747   :  { %2961 = vrcp.f32 %v768_v12  ;;  %v986_v12 = vpack.c.bf16 %v916_v10, %v913_v8 }
 0x748   :  { %v764_v13 = vpop.xlane.xlu1 %763 }
 0x749   :  { %v769_v15 = vmax.f32 %v764_v13, 1e-30  ;;  %v867_v13 = vld [vmem:[#allocation6 + $0x40] sm:$0xff]  ;;  %1036 = vmatpush2.bf16.msra.mxu1 %v986_v12 }
 0x74b   :  { %2963 = vrcp.f32 %v769_v15  ;;  %v870_v15 = vld [vmem:[#allocation6 + $0x58] sm:$0xff] }
 0x74c   :  { %v767_v16 = vpop.xlane.xlu0 %766 }
 0x74d   :  { %v770_v17 = vmax.f32 %v767_v16, 1e-30  ;;  %v964_v16 = vpack.c.bf16 %v870_v15, %v867_v13 }
 0x74f   :  { %2965 = vrcp.f32 %v770_v17  ;;  %v908_v17 = vld [vmem:[#allocation6 + $0x188] sm:$0xff] }
 0x754   :  { %v2962_v18 = vpop.eup %2961 }
 0x755   :  { %v774_v25 = vmul.f32 %v2962_v18, %v3358_v41  ;;  %v1000_v41 = vpack.c.bf16 %v942_v34, %v939_v33  ;;  %v911_v18 = vld [vmem:[#allocation6 + $0x1a0] sm:$0xff]  ;;  %v783_v33 = vrot.slane %v492_v30, %v3191_v0 }
 0x756   :  { %v984_v20 = vpack.c.bf16 %v911_v18, %v908_v17  ;;  %v1106_v17 = vld [vmem:[%s5034_s22] sm:$0xff]  ;;  %v1107_v18 = vld [vmem:[%s5034_s22 + $0x8] sm:$0xff] }
 0x758   :  { %v2964_v22 = vpop.eup %2963  ;;  %1037 = vmatprep.subr.bf16.mxu1 %v984_v20 }
 0x759   :  { %v775_v26 = vmul.f32 %v2964_v22, %v3364_v44  ;;  %v894_v44 = vld [vmem:[#allocation6 + $0x118] sm:$0xff]  ;;  %v912_v22 = vld [vmem:[#allocation6 + $0x1a8] sm:$0xff] }
 0x75a   :  { %v976_v40 = vpack.c.bf16 %v894_v44, %v891_v37 }
 0x75b   :  { %v777_v28 = vpack.c.bf16 %v775_v26, %v774_v25  ;;  %v985_v25 = vpack.c.bf16 %v912_v22, %v909_v19  ;;  %v983_v26 = vpack.c.bf16 %v910_v24, %v907_v23  ;;  %v1109_v23 = vpack.c.bf16 %v1107_v18, %v1106_v17  ;;  %v1454_v17 = vld [vmem:[%s5021_s14 + $0x300] sm:$0xff] }
 0x75c   :  { %v2966_v32 = vpop.eup %2965 }
 0x75d   :  { %2702 = vmatmul.mubr.msk.bf16.vlgmr.msra.gmra.mxu0 %vm349_vm4, %v777_v28  ;;  %v776_v36 = vmul.f32 %v2966_v32, %v3370_v47  ;;  %v994_v47 = vpack.c.bf16 %v930_v48, %v927_v9  ;;  %v864_v28 = vld [vmem:[#allocation6 + $0x28] sm:$0xff]  ;;  %1038 = vmatpush2.bf16.msra.mxu1 %v983_v26  ;;  %v787_v32 = vrot.slane %v492_v30, %v3331_v1 }
 0x75e   :  { %844 = vmatprep.mubr.bf16.mxu0 %v3061_v49  ;;  %2732 = vmatpush3.bf16.msra.mxu0 %v982_v27  ;;  %v861_v27 = vld [vmem:[#allocation6 + $0x10] sm:$0xff] }
 0x75f   :  { %2733 = vmatprep.subr.bf16.mxu0 %v1003_v29  ;;  %v778_v42 = vpack.c.bf16 %v776_v36, %v776_v36  ;;  %v961_v29 = vpack.c.bf16 %v864_v28, %v861_v27  ;;  %v1108_v27 = vld [vmem:[%s5034_s22 + $0x10] sm:$0xff] }
 0x760   :  { %v1110_v28 = vpack.c.bf16 %v1108_v27, %v1108_v27 }
 0x762   :  { %2734 = vmatpush3.bf16.msra.mxu0 %v979_v35 }
 0x763   :  { %2735 = vmatprep.subr.bf16.mxu0 %v1000_v41 }
 0x765   :  { %2703 = vmatmul.mubr.msk.bf16.gmra.mxu0 %vm349_vm4, %v778_v42 }
 0x766   :  { %2736 = vmatpush3.bf16.msra.mxu0 %v976_v40 }
 0x767   :  { %2737 = vmatprep.subr.bf16.mxu0 %v997_v43 }
 0x76a   :  { %2738 = vmatpush3.bf16.msra.mxu0 %v973_v50 }
 0x76b   :  { %2739 = vmatprep.subr.bf16.mxu0 %v994_v47 }
 0x76e   :  { %2740 = vmatpush3.bf16.msra.mxu0 %v970_v14 }
 0x76f   :  { %2741 = vmatprep.subr.bf16.mxu0 %v991_v21 }
 0x772   :  { %2742 = vmatpush3.bf16.msra.mxu0 %v967_v2 }
 0x773   :  { %2743 = vmatprep.subr.bf16.mxu0 %v988_v11 }
 0x776   :  { %2744 = vmatpush3.bf16.msra.mxu0 %v964_v16 }
 0x777   :  { %2745 = vmatprep.subr.bf16.mxu0 %v985_v25 }
 0x77a   :  { %2746 = vmatpush3.bf16.msra.mxu0 %v961_v29  ;;  %v3062_v29 = vmov 0.0  }
 0x77b   :  { %2898 = vmatprep.subr.bf16.mxu1 %v3062_v29 }
 0x81d   :  { %v836_v31 = vpop.f32.mrf.mxu0 }
 0x81e   :  { %v837_v37 = vadd.f32 %v836_v31, %v783_v33 }
 0x81f   :  { %v838_v34 = vpop.f32.mrf.mxu0 }
 0x820   :  { %v839_v36 = vadd.f32 %v838_v34, %v787_v32  ;;  %v853_v45 = vmax.f32 %v837_v37, 0.0 }
 0x821   :  { %v840_v35 = vpop.f32.mrf.mxu0 }
 0x822   :  { %v841_v41 = vadd.f32 %v840_v35, %v783_v33  ;;  %v854_v42 = vmax.f32 %v839_v36, 0.0 }
 0x823   :  { %v842_v44 = vpop.f32.mrf.mxu0 }
 0x824   :  { %v843_v38 = vadd.f32 %v842_v44, %v787_v32  ;;  %v855_v39 = vmax.f32 %v841_v41, 0.0 }
 0x825   :  { %v846_v40 = vpop.f32.mrf.mxu0 }
 0x826   :  { %v856_v43 = vmax.f32 %v843_v38, 0.0  ;;  %v955_v50 = vpack.c.bf16 %v855_v39, %v853_v45  ;;  %v847_v47 = vadd.f32 %v846_v40, %v783_v33  ;;  %v1129_v38 = vsub.s32 2, %v3188_v61 }
 0x827   :  { %v848_v46 = vpop.f32.mrf.mxu0 }
 0x828   :  { %v956_v9 = vpack.c.bf16 %v856_v43, %v854_v42  ;;  %v849_v48 = vadd.f32 %v848_v46, %v787_v32  ;;  %v857_v54 = vmax.f32 %v847_v47, 0.0  ;;  %v1117_v32 = vld [vmem:[%s5020_s13] sm:$0x7] }
 0x829   :  { %v850_v51 = vpop.f32.mrf.mxu0  ;;  %v1122_v35 = vrot.slane %v1117_v32, %v3191_v0  ;;  %v1126_v36 = vrot.slane %v1117_v32, %v3331_v1  ;;  %v1130_v47 = vrot.slane %v1117_v32, %v1129_v38 }
 0x82a   :  { %v858_v52 = vmax.f32 %v849_v48, 0.0  ;;  %1039 = vmatprep.mubr.bf16.mxu1 %v956_v9  ;;  %1090 = vmatprep.mubr.bf16.mxu0 %v956_v9  ;;  %v957_v55 = vpack.c.bf16 %v857_v54, %v857_v54 }
 0x82b   :  { %v851_v14 = vpop.f32.mrf.mxu0  ;;  %1040 = vmatmul.mubr.bf16.vlgmr.msra.gmra.mxu1 %v955_v50  ;;  %1091 = vmatmul.mubr.bf16.vlgmr.msra.gmra.mxu0 %v955_v50 }
 0x82c   :  { %v958_v53 = vpack.c.bf16 %v858_v52, %v858_v52 }
 0x82e   :  { %1049 = vmatprep.mubr.bf16.mxu1 %v958_v53  ;;  %1098 = vmatprep.mubr.bf16.mxu0 %v958_v53 }
 0x833   :  { %1050 = vmatmul.mubr.bf16.gmra.mxu1 %v957_v55  ;;  %1099 = vmatmul.mubr.bf16.gmra.mxu0 %v957_v55 }
 0x834   :  { %1181 = vmatprep.mubr.bf16.mxu0 %v3061_v49  ;;  %2902 = vmatprep.mubr.msk.bf16.mxu1 %vm3063_vm11, %v3062_v29 }
 0x8eb   :  { %v1041_v56 = vpop.f32.mrf.mxu1  ;;  %v2747_v57 = vpop.f32.mrf.mxu0 }
 0x8ed   :  { %v1043_v58 = vpop.f32.mrf.mxu1  ;;  %v2748_v59 = vpop.f32.mrf.mxu0 }
 0x8ee   :  { %v2749_v24 = vadd.f32 %v2748_v59, %v2747_v57  ;;  %v1479_v57 = vld [vmem:[%s5021_s14 + $0x3c8] sm:$0xff] }
 0x8ef   :  { %v1045_v21 = vpop.f32.mrf.mxu1  ;;  %v2750_v60 = vpop.f32.mrf.mxu0 }
 0x8f0   :  { %v1111_v19 = vpack.c.bf16 %v1045_v21, %v1041_v56  ;;  %v1471_v56 = vld [vmem:[%s5021_s14 + $0x388] sm:$0xff] }
 0x8f1   :  { %v1047_v62 = vpop.f32.mrf.mxu1  ;;  %v2751_v63 = vpop.f32.mrf.mxu0 }
 0x8f2   :  { %v1112_v11 = vpack.c.bf16 %v1047_v62, %v1043_v58  ;;  %v2752_v20 = vadd.f32 %v2751_v63, %v2750_v60  ;;  %v1257_v63 = vld [vmem:[%s5010_s3] sm:$0x3] }
 0x8f3   :  { %v1051_v2 = vpop.f32.mrf.mxu1  ;;  %v2753_v3 = vpop.f32.mrf.mxu0 }
 0x8f4   :  { %v1114_v4 = vpack.c.bf16 %v1051_v2, %v1051_v2  ;;  %v1113_v25 = vpack.c.bf16 %v2752_v20, %v2749_v24  ;;  %v1735_v24 = vld [vmem:[%s5021_s14 + $0xbc8] sm:$0xff] }
 0x8f5   :  { %v1053_v5 = vpop.f32.mrf.mxu1  ;;  %v2754_v6 = vpop.f32.mrf.mxu0 }
 0x8f6   :  { %v1115_v7 = vpack.c.bf16 %v1053_v5, %v1053_v5  ;;  %v1141_v12 = vsel %vm403_vm0, %v1114_v4, 0  ;;  %v2755_v13 = vadd.f32 %v2754_v6, %v2753_v3  ;;  %v1802_v3 = vpack.c.bf16 %v1479_v57, %v1471_v56  ;;  %v1470_v4 = vld [vmem:[%s5021_s14 + $0x380] sm:$0xff] }
 0x8f7   :  { %v1055_v8 = vpop.f32.mrf.mxu1  ;;  %v2756_v10 = vpop.f32.mrf.mxu0  ;;  %v1478_v5 = vld [vmem:[%s5021_s14 + $0x3c0] sm:$0xff] }
 0x8f8   :  { %2704 = vmatprep.subr.msk.bf16.mxu0 %vm403_vm0, %v1115_v7  ;;  %v1116_v22 = vpack.c.bf16 %v2755_v13, %v2755_v13  ;;  %v1455_v8 = vld [vmem:[%s5021_s14 + $0x308] sm:$0xff]  ;;  %v1258_v13 = vpack.c.bf16 %v1257_v63, %v1257_v63  ;;  %v1694_v57 = vld [vmem:[%s5021_s14 + $0xa80] sm:$0xff] }
 0x8f9   :  { %v1056_v15 = vpop.f32.mrf.mxu1  ;;  %v2757_v16 = vpop.f32.mrf.mxu0  ;;  %1162 = vmatpush1.bf16.msra.mxu0 %v1141_v12  ;;  %v1463_v10 = vld [vmem:[%s5021_s14 + $0x348] sm:$0xff] }
 0x8fa   :  { %1163 = vmatprep.subr.bf16.mxu0 %v1112_v11  ;;  %v1147_v26 = vsel %vm403_vm0, %v1116_v22, 0  ;;  %v1801_v16 = vpack.c.bf16 %v1478_v5, %v1470_v4  ;;  %v1794_v20 = vpack.c.bf16 %v1463_v10, %v1455_v8  ;;  %v1391_v63 = vld [vmem:[%s5021_s14 + $0x108] sm:$0xff]  ;;  %v1390_v5 = vld [vmem:[%s5021_s14 + $0x100] sm:$0xff] }
 0x8fb   :  { %v1686_v8 = vld [vmem:[%s5021_s14 + $0xa40] sm:$0xff] }
 0x8fd   :  { %1164 = vmatpush1.bf16.msra.mxu0 %v1111_v19 }
 0x8fe   :  { %2907 = vmatprep.subr.msk.bf16.mxu0 %vm403_vm0, %v1116_v22  ;;  %v1462_v22 = vld [vmem:[%s5021_s14 + $0x340] sm:$0xff] }
 0x900   :  { %2705 = vmatmul.mubr.msk.bf16.vlgmr.msra.gmra.mxu0 %vm349_vm4, %v1109_v23 }
 0x901   :  { %2891 = vmatpush3.bf16.msra.mxu0 %v1147_v26  ;;  %1191 = vmatprep.mubr.bf16.mxu0 %v3061_v49  ;;  %v1447_v26 = vld [vmem:[%s5021_s14 + $0x2c8] sm:$0xff] }
 0x902   :  { %2892 = vmatprep.subr.bf16.mxu0 %v1113_v25 }
 0x905   :  { %2893 = vmatpush3.bf16.msra.mxu0 %v1113_v25  ;;  %v1439_v25 = vld [vmem:[%s5021_s14 + $0x288] sm:$0xff] }
 0x908   :  { %2706 = vmatmul.mubr.msk.bf16.gmra.mxu0 %vm349_vm4, %v1110_v28 }
 0x909   :  { %2894 = vmatprep.mubr.msk.bf16.mxu0 %vm349_vm4, %v1109_v23  ;;  %v1727_v23 = vld [vmem:[%s5021_s14 + $0xb88] sm:$0xff] }
 0x90a   :  { %v1930_v32 = vpack.c.bf16 %v1735_v24, %v1727_v23  ;;  %v1670_v23 = vld [vmem:[%s5021_s14 + $0x9c0] sm:$0xff] }
 0x910   :  { %2895 = vmatmul.mubr.msk.bf16.vlgmr.msra.gmra.mxu0 %vm349_vm4, %v1110_v28 }
 0x911   :  { %1309 = vmatprep.mubr.bf16.mxu0 %v3061_v49 }
 0x9c0   :  { %v1183_v30 = vpop.f32.mrf.mxu0 }
 0x9c1   :  { %v1184_v51 = vadd.f32 %v1183_v30, %v1122_v35  ;;  %v1793_v30 = vpack.c.bf16 %v1462_v22, %v1454_v17  ;;  %v1662_v22 = vld [vmem:[%s5021_s14 + $0x980] sm:$0xff] }
 0x9c2   :  { %v1185_v31 = vpop.f32.mrf.mxu0 }
 0x9c3   :  { %v1186_v40 = vadd.f32 %v1185_v31, %v1126_v36  ;;  %v1248_v60 = vmax.f32 %v1184_v51, 0.0  ;;  %v1438_v31 = vld [vmem:[%s5021_s14 + $0x280] sm:$0xff]  ;;  %v1703_v51 = vld [vmem:[%s5021_s14 + $0xac8] sm:$0xff] }
 0x9c4   :  { %v1187_v33 = vpop.f32.mrf.mxu0 }
 0x9c5   :  { %v1188_v45 = vadd.f32 %v1187_v33, %v1122_v35  ;;  %v1249_v14 = vmax.f32 %v1186_v40, 0.0  ;;  %v1726_v33 = vld [vmem:[%s5021_s14 + $0xb80] sm:$0xff] }
 0x9c6   :  { %v1189_v34 = vpop.f32.mrf.mxu0 }
 0x9c7   :  { %v1190_v37 = vadd.f32 %v1189_v34, %v1126_v36  ;;  %v1251_v54 = vmax.f32 %v1188_v45, 0.0  ;;  %v1734_v34 = vld [vmem:[%s5021_s14 + $0xbc0] sm:$0xff] }
 0x9c8   :  { %v1193_v41 = vpop.f32.mrf.mxu0  ;;  %v1929_v40 = vpack.c.bf16 %v1734_v34, %v1726_v33  ;;  %v1646_v34 = vld [vmem:[%s5021_s14 + $0x900] sm:$0xff] }
 0x9c9   :  { %v1194_v44 = vadd.f32 %v1193_v41, %v1122_v35  ;;  %v1252_v9 = vmax.f32 %v1190_v37, 0.0  ;;  %v1259_v6 = vpack.c.bf16 %v1251_v54, %v1248_v60  ;;  %v1711_v41 = vld [vmem:[%s5021_s14 + $0xb08] sm:$0xff] }
 0x9ca   :  { %v1195_v39 = vpop.f32.mrf.mxu0  ;;  %v1719_v37 = vld [vmem:[%s5021_s14 + $0xb48] sm:$0xff] }
 0x9cb   :  { %v1254_v42 = vmax.f32 %v1194_v44, 0.0  ;;  %v1196_v43 = vadd.f32 %v1195_v39, %v1126_v36  ;;  %v1260_v58 = vpack.c.bf16 %v1252_v9, %v1249_v14  ;;  %v1786_v36 = vpack.c.bf16 %v1447_v26, %v1439_v25  ;;  %v1423_v44 = vld [vmem:[%s5021_s14 + $0x208] sm:$0xff]  ;;  %v1718_v9 = vld [vmem:[%s5021_s14 + $0xb40] sm:$0xff] }
 0x9cc   :  { %v1197_v46 = vpop.f32.mrf.mxu0  ;;  %v1431_v39 = vld [vmem:[%s5021_s14 + $0x248] sm:$0xff]  ;;  %v1922_v45 = vpack.c.bf16 %v1719_v37, %v1711_v41  ;;  %v1382_v25 = vld [vmem:[%s5021_s14 + $0xc0] sm:$0xff] }
 0x9cd   :  { %v1262_v48 = vpack.c.bf16 %v1254_v42, %v1254_v42  ;;  %v1255_v50 = vmax.f32 %v1196_v43, 0.0  ;;  %v1422_v43 = vld [vmem:[%s5021_s14 + $0x200] sm:$0xff]  ;;  %v1415_v14 = vld [vmem:[%s5021_s14 + $0x1c8] sm:$0xff] }
 0x9ce   :  { %v1198_v52 = vpop.f32.mrf.mxu0  ;;  %v1710_v46 = vld [vmem:[%s5021_s14 + $0xb00] sm:$0xff]  ;;  %v1679_v60 = vld [vmem:[%s5021_s14 + $0xa08] sm:$0xff] }
 0x9cf   :  { %v1263_v53 = vpack.c.bf16 %v1255_v50, %v1255_v50  ;;  %v1269_v21 = vsel %vm403_vm0, %v1262_v48, 0  ;;  %v1778_v48 = vpack.c.bf16 %v1431_v39, %v1423_v44  ;;  %v1430_v50 = vld [vmem:[%s5021_s14 + $0x240] sm:$0xff]  ;;  %v1407_v52 = vld [vmem:[%s5021_s14 + $0x188] sm:$0xff] }
 0x9d0   :  { %v2896_v55 = vpop.f32.mrf.mxu0  ;;  %v1777_v54 = vpack.c.bf16 %v1430_v50, %v1422_v43  ;;  %v1647_v26 = vld [vmem:[%s5021_s14 + $0x908] sm:$0xff]  ;;  %v1366_v41 = vld [vmem:[%s5021_s14 + $0x40] sm:$0xff] }
 0x9d1   :  { %v1243_v59 = vadd.f32 %v2896_v55, %v1130_v47  ;;  %2709 = vmatprep.subr.msk.bf16.mxu0 %vm403_vm0, %v1263_v53  ;;  %v1921_v53 = vpack.c.bf16 %v1718_v9, %v1710_v46  ;;  %v1406_v55 = vld [vmem:[%s5021_s14 + $0x180] sm:$0xff]  ;;  %v1599_v37 = vld [vmem:[%s5021_s14 + $0x788] sm:$0xff] }
 0x9d2   :  { %v1234_v62 = vpop.f32.mrf.mxu0  ;;  %1290 = vmatpush1.bf16.msra.mxu0 %v1269_v21  ;;  %v1414_v21 = vld [vmem:[%s5021_s14 + $0x1c0] sm:$0xff]  ;;  %v1607_v44 = vld [vmem:[%s5021_s14 + $0x7c8] sm:$0xff] }
 0x9d3   :  { %v1256_v2 = vmax.f32 %v1243_v59, 0.0  ;;  %1291 = vmatprep.subr.bf16.mxu0 %v1260_v58  ;;  %v1235_v12 = vadd.f32 %v1234_v62, %v1130_v47  ;;  %v1702_v58 = vld [vmem:[%s5021_s14 + $0xac0] sm:$0xff]  ;;  %v1770_v59 = vpack.c.bf16 %v1415_v14, %v1407_v52  ;;  %v1687_v62 = vld [vmem:[%s5021_s14 + $0xa48] sm:$0xff]  ;;  %v1769_v4 = vpack.c.bf16 %v1414_v21, %v1406_v55 }
 0x9d4   :  { %v2897_v7 = vpop.f32.mrf.mxu0  ;;  %v1598_v43 = vld [vmem:[%s5021_s14 + $0x780] sm:$0xff]  ;;  %v1583_v46 = vld [vmem:[%s5021_s14 + $0x708] sm:$0xff] }
 0x9d5   :  { %v1264_v11 = vpack.c.bf16 %v1256_v2, %v1256_v2  ;;  %v1250_v27 = vmax.f32 %v1235_v12, 0.0  ;;  %v1399_v2 = vld [vmem:[%s5021_s14 + $0x148] sm:$0xff]  ;;  %v1678_v7 = vld [vmem:[%s5021_s14 + $0xa00] sm:$0xff] }
 0x9d6   :  { %v1237_v15 = vpop.f32.mrf.mxu0  ;;  %1292 = vmatpush1.bf16.msra.mxu0 %v1259_v6  ;;  %v1906_v6 = vpack.c.bf16 %v1687_v62, %v1679_v60  ;;  %v1762_v10 = vpack.c.bf16 %v1399_v2, %v1391_v63  ;;  %v1663_v12 = vld [vmem:[%s5021_s14 + $0x988] sm:$0xff]  ;;  %v1905_v17 = vpack.c.bf16 %v1686_v8, %v1678_v7  ;;  %v1566_v55 = vld [vmem:[%s5021_s14 + $0x680] sm:$0xff] }
 0x9d7   :  { %v1238_v18 = vadd.f32 %v1237_v15, %v1130_v47  ;;  %v1275_v19 = vsel %vm403_vm0, %v1264_v11, 0  ;;  %1979 = vmatprep.subr.bf16.mxu0 %v1802_v3  ;;  %v1695_v47 = vld [vmem:[%s5021_s14 + $0xa88] sm:$0xff]  ;;  %v1913_v3 = vpack.c.bf16 %v1702_v58, %v1694_v57  ;;  %v1398_v11 = vld [vmem:[%s5021_s14 + $0x140] sm:$0xff] }
 0x9d8   :  { %2899 = vmatpush3.bf16.msra.mxu1 %v1275_v19  ;;  %v1914_v56 = vpack.c.bf16 %v1703_v51, %v1695_v47  ;;  %v1375_v15 = vld [vmem:[%s5021_s14 + $0x88] sm:$0xff]  ;;  %v1374_v19 = vld [vmem:[%s5021_s14 + $0x80] sm:$0xff] }
 0x9d9   :  { %v1253_v28 = vmax.f32 %v1238_v18, 0.0  ;;  %2710 = vmatmul.mubr.msk.bf16.vlgmr.msra.gmra.mxu0 %vm349_vm4, %v1258_v13  ;;  %2900 = vmatprep.subr.bf16.mxu1 %v3062_v29  ;;  %v1446_v29 = vld [vmem:[%s5021_s14 + $0x2c0] sm:$0xff]  ;;  %v1761_v18 = vpack.c.bf16 %v1398_v11, %v1390_v5  ;;  %v1591_v9 = vld [vmem:[%s5021_s14 + $0x748] sm:$0xff] }
 0x9da   :  { %1980 = vmatpush1.bf16.msra.mxu0 %v1801_v16  ;;  %v1785_v42 = vpack.c.bf16 %v1446_v29, %v1438_v31  ;;  %v1383_v16 = vld [vmem:[%s5021_s14 + $0xc8] sm:$0xff]  ;;  %v1897_v31 = vpack.c.bf16 %v1670_v23, %v1662_v22  ;;  %v1358_v29 = vld [vmem:[%s5021_s14] sm:$0xff]  ;;  %v1858_v50 = vpack.c.bf16 %v1591_v9, %v1583_v46  ;;  %v1481_v46 = vld [vmem:[%s5021_s14 + $0x3d8] sm:$0xff] }
 0x9db   :  { %v1261_v35 = vpack.c.bf16 %v1253_v28, %v1250_v27  ;;  %1981 = vmatprep.subr.bf16.mxu0 %v1794_v20  ;;  %v1754_v24 = vpack.c.bf16 %v1383_v16, %v1375_v15  ;;  %v1655_v27 = vld [vmem:[%s5021_s14 + $0x948] sm:$0xff]  ;;  %v1582_v47 = vld [vmem:[%s5021_s14 + $0x700] sm:$0xff] }
 0x9dc   :  { %v1359_v28 = vld [vmem:[%s5021_s14 + $0x8] sm:$0xff]  ;;  %v1890_v33 = vpack.c.bf16 %v1655_v27, %v1647_v26  ;;  %v1590_v51 = vld [vmem:[%s5021_s14 + $0x740] sm:$0xff] }
 0x9dd   :  { %2901 = vmatpush3.bf16.msra.mxu1 %v1261_v35  ;;  %v1654_v35 = vld [vmem:[%s5021_s14 + $0x940] sm:$0xff]  ;;  %v1567_v52 = vld [vmem:[%s5021_s14 + $0x688] sm:$0xff] }
 0x9de   :  { %1982 = vmatpush1.bf16.msra.mxu0 %v1793_v30  ;;  %2020 = vmatprep.subr.bf16.mxu1 %v1930_v32  ;;  %v1367_v30 = vld [vmem:[%s5021_s14 + $0x48] sm:$0xff]  ;;  %v1753_v32 = vpack.c.bf16 %v1382_v25, %v1374_v19  ;;  %v1889_v39 = vpack.c.bf16 %v1654_v35, %v1646_v34  ;;  %v1550_v60 = vld [vmem:[%s5021_s14 + $0x600] sm:$0xff] }
 0x9df   :  { %1983 = vmatprep.subr.bf16.mxu0 %v1786_v36  ;;  %v1746_v36 = vpack.c.bf16 %v1367_v30, %v1359_v28  ;;  %v1575_v14 = vld [vmem:[%s5021_s14 + $0x6c8] sm:$0xff]  ;;  %v1558_v62 = vld [vmem:[%s5021_s14 + $0x640] sm:$0xff] }
 0x9e0   :  { %2903 = vmatmul.mubr.msk.bf16.vlgmr.msra.gmra.mxu1 %vm349_vm4, %v1258_v13  ;;  %v1671_v13 = vld [vmem:[%s5021_s14 + $0x9c8] sm:$0xff]  ;;  %v1534_v5 = vld [vmem:[%s5021_s14 + $0x580] sm:$0xff] }
 0x9e1   :  { %2021 = vmatpush1.bf16.msra.mxu1 %v1929_v40  ;;  %2052 = vmatprep.mubr.bf16.mxu1 %v3061_v49  ;;  %v1898_v20 = vpack.c.bf16 %v1671_v13, %v1663_v12  ;;  %v1745_v40 = vpack.c.bf16 %v1366_v41, %v1358_v29  ;;  %v1551_v57 = vld [vmem:[%s5021_s14 + $0x608] sm:$0xff]  ;;  %v1518_v12 = vld [vmem:[%s5021_s14 + $0x500] sm:$0xff]  ;;  %v1729_v41 = vld [vmem:[%s5021_s14 + $0xb98] sm:$0xff] }
 0x9e2   :  { %1984 = vmatpush1.bf16.msra.mxu0 %v1785_v42  ;;  %2022 = vmatprep.subr.bf16.mxu1 %v1922_v45  ;;  %v1866_v42 = vpack.c.bf16 %v1607_v44, %v1599_v37  ;;  %v1606_v45 = vld [vmem:[%s5021_s14 + $0x7c0] sm:$0xff]  ;;  %v1559_v58 = vld [vmem:[%s5021_s14 + $0x648] sm:$0xff]  ;;  %v1737_v44 = vld [vmem:[%s5021_s14 + $0xbd8] sm:$0xff] }
 0x9e3   :  { %1985 = vmatprep.subr.bf16.mxu0 %v1778_v48  ;;  %v1865_v48 = vpack.c.bf16 %v1606_v45, %v1598_v43  ;;  %v1842_v21 = vpack.c.bf16 %v1559_v58, %v1551_v57  ;;  %v1535_v63 = vld [vmem:[%s5021_s14 + $0x588] sm:$0xff]  ;;  %v1526_v13 = vld [vmem:[%s5021_s14 + $0x540] sm:$0xff]  ;;  %v1473_v45 = vld [vmem:[%s5021_s14 + $0x398] sm:$0xff] }
 0x9e4   :  { %v1543_v2 = vld [vmem:[%s5021_s14 + $0x5c8] sm:$0xff]  ;;  %v1502_v19 = vld [vmem:[%s5021_s14 + $0x480] sm:$0xff]  ;;  %v1804_v9 = vpack.c.bf16 %v1481_v46, %v1473_v45  ;;  %v1480_v57 = vld [vmem:[%s5021_s14 + $0x3d0] sm:$0xff] }
 0x9e5   :  { %2023 = vmatpush1.bf16.msra.mxu1 %v1921_v53  ;;  %v1857_v53 = vpack.c.bf16 %v1590_v51, %v1582_v47  ;;  %v1519_v7 = vld [vmem:[%s5021_s14 + $0x508] sm:$0xff]  ;;  %v1486_v28 = vld [vmem:[%s5021_s14 + $0x400] sm:$0xff]  ;;  %v1736_v47 = vld [vmem:[%s5021_s14 + $0xbd0] sm:$0xff] }
 0x9e6   :  { %1986 = vmatpush1.bf16.msra.mxu0 %v1777_v54  ;;  %2024 = vmatprep.subr.bf16.mxu1 %v1914_v56  ;;  %v1850_v54 = vpack.c.bf16 %v1575_v14, %v1567_v52  ;;  %v1574_v56 = vld [vmem:[%s5021_s14 + $0x6c0] sm:$0xff]  ;;  %v1527_v8 = vld [vmem:[%s5021_s14 + $0x548] sm:$0xff]  ;;  %v1713_v51 = vld [vmem:[%s5021_s14 + $0xb18] sm:$0xff] }
 0x9e7   :  { %1987 = vmatprep.subr.bf16.mxu0 %v1770_v59  ;;  %v1849_v59 = vpack.c.bf16 %v1574_v56, %v1566_v55  ;;  %v1826_v11 = vpack.c.bf16 %v1527_v8, %v1519_v7  ;;  %v1503_v15 = vld [vmem:[%s5021_s14 + $0x488] sm:$0xff]  ;;  %v1494_v30 = vld [vmem:[%s5021_s14 + $0x440] sm:$0xff]  ;;  %v1721_v52 = vld [vmem:[%s5021_s14 + $0xb58] sm:$0xff] }
 0x9e8   :  { %v1511_v16 = vld [vmem:[%s5021_s14 + $0x4c8] sm:$0xff]  ;;  %v1638_v34 = vld [vmem:[%s5021_s14 + $0x8c0] sm:$0xff]  ;;  %v1472_v56 = vld [vmem:[%s5021_s14 + $0x390] sm:$0xff]  ;;  %v1924_v58 = vpack.c.bf16 %v1721_v52, %v1713_v51 }
 0x9e9   :  { %2025 = vmatpush1.bf16.msra.mxu1 %v1913_v3  ;;  %v1841_v3 = vpack.c.bf16 %v1558_v62, %v1550_v60  ;;  %v1487_v23 = vld [vmem:[%s5021_s14 + $0x408] sm:$0xff]  ;;  %v1457_v60 = vld [vmem:[%s5021_s14 + $0x318] sm:$0xff]  ;;  %v1456_v8 = vld [vmem:[%s5021_s14 + $0x310] sm:$0xff] }
 0x9ea   :  { %1988 = vmatpush1.bf16.msra.mxu0 %v1769_v4  ;;  %2026 = vmatprep.subr.bf16.mxu1 %v1906_v6  ;;  %v1834_v4 = vpack.c.bf16 %v1543_v2, %v1535_v63  ;;  %v1542_v6 = vld [vmem:[%s5021_s14 + $0x5c0] sm:$0xff]  ;;  %v1631_v25 = vld [vmem:[%s5021_s14 + $0x888] sm:$0xff]  ;;  %v1465_v63 = vld [vmem:[%s5021_s14 + $0x358] sm:$0xff] }
 0x9eb   :  { %1989 = vmatprep.subr.bf16.mxu0 %v1762_v10  ;;  %v1833_v10 = vpack.c.bf16 %v1542_v6, %v1534_v5  ;;  %v1639_v27 = vld [vmem:[%s5021_s14 + $0x8c8] sm:$0xff]  ;;  %v1697_v2 = vld [vmem:[%s5021_s14 + $0xa98] sm:$0xff]  ;;  %v1803_v6 = vpack.c.bf16 %v1480_v57, %v1472_v56  ;;  %v1672_v45 = vld [vmem:[%s5021_s14 + $0x9d0] sm:$0xff] }
 0x9ec   :  { %v1623_v29 = vld [vmem:[%s5021_s14 + $0x848] sm:$0xff]  ;;  %v1409_v46 = vld [vmem:[%s5021_s14 + $0x198] sm:$0xff]  ;;  %v1408_v52 = vld [vmem:[%s5021_s14 + $0x190] sm:$0xff] }
 0x9ed   :  { %2027 = vmatpush1.bf16.msra.mxu1 %v1905_v17  ;;  %v1825_v17 = vpack.c.bf16 %v1526_v13, %v1518_v12  ;;  %v1796_v12 = vpack.c.bf16 %v1465_v63, %v1457_v60  ;;  %v1648_v57 = vld [vmem:[%s5021_s14 + $0x910] sm:$0xff]  ;;  %v1633_v60 = vld [vmem:[%s5021_s14 + $0x898] sm:$0xff] }
 0x9ee   :  { %1990 = vmatpush1.bf16.msra.mxu0 %v1761_v18  ;;  %2028 = vmatprep.subr.bf16.mxu1 %v1898_v20  ;;  %v1818_v18 = vpack.c.bf16 %v1511_v16, %v1503_v15  ;;  %v1510_v20 = vld [vmem:[%s5021_s14 + $0x4c0] sm:$0xff]  ;;  %v1696_v15 = vld [vmem:[%s5021_s14 + $0xa90] sm:$0xff] }
 0x9ef   :  { %1991 = vmatprep.subr.bf16.mxu0 %v1754_v24  ;;  %v1817_v22 = vpack.c.bf16 %v1510_v20, %v1502_v19  ;;  %v1495_v24 = vld [vmem:[%s5021_s14 + $0x448] sm:$0xff]  ;;  %v1704_v16 = vld [vmem:[%s5021_s14 + $0xad0] sm:$0xff]  ;;  %v1449_v19 = vld [vmem:[%s5021_s14 + $0x2d8] sm:$0xff] }
 0x9f0   :  { %v1810_v26 = vpack.c.bf16 %v1495_v24, %v1487_v23  ;;  %v1681_v20 = vld [vmem:[%s5021_s14 + $0xa18] sm:$0xff] }
 0x9f1   :  { %2029 = vmatpush1.bf16.msra.mxu1 %v1897_v31  ;;  %v1882_v31 = vpack.c.bf16 %v1639_v27, %v1631_v25  ;;  %v1915_v25 = vpack.c.bf16 %v1704_v16, %v1696_v15  ;;  %v1448_v27 = vld [vmem:[%s5021_s14 + $0x2d0] sm:$0xff]  ;;  %v1625_v15 = vld [vmem:[%s5021_s14 + $0x858] sm:$0xff] }
 0x9f2   :  { %1992 = vmatpush1.bf16.msra.mxu0 %v1753_v32  ;;  %2030 = vmatprep.subr.bf16.mxu1 %v1890_v33  ;;  %v1809_v32 = vpack.c.bf16 %v1494_v30, %v1486_v28  ;;  %v1630_v33 = vld [vmem:[%s5021_s14 + $0x880] sm:$0xff] }
 0x9f3   :  { %1993 = vmatprep.subr.bf16.mxu0 %v1746_v36  ;;  %v1881_v35 = vpack.c.bf16 %v1638_v34, %v1630_v33  ;;  %v1615_v36 = vld [vmem:[%s5021_s14 + $0x808] sm:$0xff]  ;;  %v1425_v33 = vld [vmem:[%s5021_s14 + $0x218] sm:$0xff] }
 0x9f4   :  { %v1874_v37 = vpack.c.bf16 %v1623_v29, %v1615_v36  ;;  %v1665_v36 = vld [vmem:[%s5021_s14 + $0x998] sm:$0xff] }
 0x9f5   :  { %2031 = vmatpush1.bf16.msra.mxu1 %v1889_v39  ;;  %v1614_v39 = vld [vmem:[%s5021_s14 + $0x800] sm:$0xff]  ;;  %v1673_v29 = vld [vmem:[%s5021_s14 + $0x9d8] sm:$0xff] }
 0x9f6   :  { %1994 = vmatpush1.bf16.msra.mxu0 %v1745_v40  ;;  %2032 = vmatprep.subr.bf16.mxu1 %v1882_v31  ;;  %v1622_v40 = vld [vmem:[%s5021_s14 + $0x840] sm:$0xff]  ;;  %v1680_v31 = vld [vmem:[%s5021_s14 + $0xa10] sm:$0xff] }
 0x9f7   :  { %1995 = vmatprep.subr.bf16.mxu0 %v1866_v42  ;;  %v1932_v42 = vpack.c.bf16 %v1737_v44, %v1729_v41  ;;  %v1873_v43 = vpack.c.bf16 %v1622_v40, %v1614_v39  ;;  %v1424_v44 = vld [vmem:[%s5021_s14 + $0x210] sm:$0xff] }
 0x9f8   :  { %v1432_v39 = vld [vmem:[%s5021_s14 + $0x250] sm:$0xff] }
 0x9f9   :  { %2033 = vmatpush1.bf16.msra.mxu1 %v1881_v35  ;;  %v1433_v35 = vld [vmem:[%s5021_s14 + $0x258] sm:$0xff] }
 0x9fa   :  { %1996 = vmatpush2.bf16.msra.mxu0 %v1865_v48  ;;  %2034 = vmatprep.subr.bf16.mxu1 %v1874_v37  ;;  %v1780_v40 = vpack.c.bf16 %v1433_v35, %v1425_v33  ;;  %v1368_v33 = vld [vmem:[%s5021_s14 + $0x50] sm:$0xff] }
 0x9fb   :  { %1997 = vmatprep.subr.bf16.mxu0 %v1858_v50  ;;  %v1728_v50 = vld [vmem:[%s5021_s14 + $0xb90] sm:$0xff] }
 0x9fc   :  { %v1931_v55 = vpack.c.bf16 %v1736_v47, %v1728_v50  ;;  %v1657_v50 = vld [vmem:[%s5021_s14 + $0x958] sm:$0xff]  ;;  %v1779_v47 = vpack.c.bf16 %v1432_v39, %v1424_v44  ;;  %v1459_v44 = vld [vmem:[%s5021_s14 + $0x328] sm:$0xff] }
 0x9fd   :  { %2035 = vmatpush1.bf16.msra.mxu1 %v1873_v43  ;;  %v1664_v43 = vld [vmem:[%s5021_s14 + $0x990] sm:$0xff]  ;;  %v1467_v39 = vld [vmem:[%s5021_s14 + $0x368] sm:$0xff] }
 0x9fe   :  { %1998 = vmatpush2.bf16.msra.mxu0 %v1857_v53  ;;  %2061 = vmatprep.subr.bf16.mxu1 %v1804_v9  ;;  %v1417_v9 = vld [vmem:[%s5021_s14 + $0x1d8] sm:$0xff]  ;;  %v1899_v51 = vpack.c.bf16 %v1672_v45, %v1664_v43  ;;  %v1600_v43 = vld [vmem:[%s5021_s14 + $0x790] sm:$0xff] }
 0x9ff   :  { %1999 = vmatprep.subr.bf16.mxu0 %v1850_v54  ;;  %v1608_v45 = vld [vmem:[%s5021_s14 + $0x7d0] sm:$0xff] }
 0xa02   :  { %2000 = vmatpush2.bf16.msra.mxu0 %v1849_v59  ;;  %v1712_v59 = vld [vmem:[%s5021_s14 + $0xb10] sm:$0xff] }
 0xa03   :  { %2001 = vmatprep.subr.bf16.mxu0 %v1842_v21  ;;  %v1720_v21 = vld [vmem:[%s5021_s14 + $0xb50] sm:$0xff] }
 0xa04   :  { %v1923_v7 = vpack.c.bf16 %v1720_v21, %v1712_v59  ;;  %v1393_v59 = vld [vmem:[%s5021_s14 + $0x118] sm:$0xff] }
 0xa05   :  { %v1401_v21 = vld [vmem:[%s5021_s14 + $0x158] sm:$0xff] }
 0xa06   :  { %2002 = vmatpush2.bf16.msra.mxu0 %v1841_v3  ;;  %v1705_v3 = vld [vmem:[%s5021_s14 + $0xad8] sm:$0xff] }
 0xa07   :  { %2003 = vmatprep.subr.bf16.mxu0 %v1834_v4  ;;  %v1916_v13 = vpack.c.bf16 %v1705_v3, %v1697_v2  ;;  %v1392_v3 = vld [vmem:[%s5021_s14 + $0x110] sm:$0xff] }
 0xa0a   :  { %2004 = vmatpush2.bf16.msra.mxu0 %v1833_v10  ;;  %v1464_v10 = vld [vmem:[%s5021_s14 + $0x350] sm:$0xff] }
 0xa0b   :  { %2005 = vmatprep.subr.bf16.mxu0 %v1826_v11  ;;  %v1795_v24 = vpack.c.bf16 %v1464_v10, %v1456_v8  ;;  %v1640_v8 = vld [vmem:[%s5021_s14 + $0x8d0] sm:$0xff]  ;;  %v1377_v10 = vld [vmem:[%s5021_s14 + $0x98] sm:$0xff] }
 0xa0e   :  { %2006 = vmatpush2.bf16.msra.mxu0 %v1825_v17  ;;  %v1441_v17 = vld [vmem:[%s5021_s14 + $0x298] sm:$0xff] }
 0xa0f   :  { %2007 = vmatprep.subr.bf16.mxu0 %v1818_v18  ;;  %v1788_v28 = vpack.c.bf16 %v1449_v19, %v1441_v17  ;;  %v1384_v19 = vld [vmem:[%s5021_s14 + $0xd0] sm:$0xff] }
 0xa12   :  { %2008 = vmatpush2.bf16.msra.mxu0 %v1817_v22  ;;  %v1689_v22 = vld [vmem:[%s5021_s14 + $0xa58] sm:$0xff] }
 0xa13   :  { %2009 = vmatprep.subr.bf16.mxu0 %v1810_v26  ;;  %v1440_v26 = vld [vmem:[%s5021_s14 + $0x290] sm:$0xff]  ;;  %v1908_v30 = vpack.c.bf16 %v1689_v22, %v1681_v20 }
 0xa14   :  { %v1787_v41 = vpack.c.bf16 %v1448_v27, %v1440_v26  ;;  %v1369_v26 = vld [vmem:[%s5021_s14 + $0x58] sm:$0xff]  ;;  %v1475_v27 = vld [vmem:[%s5021_s14 + $0x3a8] sm:$0xff] }
 0xa16   :  { %2010 = vmatpush2.bf16.msra.mxu0 %v1809_v32  ;;  %v1688_v32 = vld [vmem:[%s5021_s14 + $0xa50] sm:$0xff] }
 0xa17   :  { %2102 = vmatprep.subr.bf16.mxu0 %v1932_v42  ;;  %v1907_v37 = vpack.c.bf16 %v1688_v32, %v1680_v31  ;;  %v1900_v42 = vpack.c.bf16 %v1673_v29, %v1665_v36  ;;  %v1360_v32 = vld [vmem:[%s5021_s14 + $0x10] sm:$0xff]  ;;  %v1474_v36 = vld [vmem:[%s5021_s14 + $0x3a0] sm:$0xff] }
 0xa18   :  { %v1482_v29 = vld [vmem:[%s5021_s14 + $0x3e0] sm:$0xff] }
 0xa99   :  { %v1311_v48 = vpop.f32.mrf.mxu0 }
 0xa9a   :  { %v3737_v14 = vpack.c.bf16 %v1311_v48, %v1311_v48  ;;  %v1649_v48 = vld [vmem:[%s5021_s14 + $0x918] sm:$0xff] }
 0xa9b   :  { %v1313_v53 = vpop.f32.mrf.mxu0  ;;  %v1892_v56 = vpack.c.bf16 %v1657_v50, %v1649_v48  ;;  %v1458_v48 = vld [vmem:[%s5021_s14 + $0x320] sm:$0xff] }
 0xa9c   :  { %v3739_v54 = vpack.c.bf16 %v1313_v53, %v1313_v53  ;;  %v1416_v53 = vld [vmem:[%s5021_s14 + $0x1d0] sm:$0xff]  ;;  %v1466_v50 = vld [vmem:[%s5021_s14 + $0x360] sm:$0xff] }
 0xa9d   :  { %v1315_v62 = vpop.f32.mrf.mxu0  ;;  %v1771_v63 = vpack.c.bf16 %v1416_v53, %v1408_v52  ;;  %v1443_v52 = vld [vmem:[%s5021_s14 + $0x2a8] sm:$0xff] }
 0xa9e   :  { %2011 = vmatprep.mubr.bf16.mxu0 %v3739_v54  ;;  %v1641_v62 = vld [vmem:[%s5021_s14 + $0x8d8] sm:$0xff]  ;;  %v1451_v53 = vld [vmem:[%s5021_s14 + $0x2e8] sm:$0xff] }
 0xa9f   :  { %2012 = vmatmul.mubr.bf16.vlgmr.msra.gmra.mxu0 %v3737_v14  ;;  %v1316_v4 = vpop.f32.mrf.mxu0 }
 0xaa0   :  { %2103 = vmatpush1.bf16.msra.mxu0 %v1931_v55  ;;  %v1352_v5 = vpop.f32.mrf.mxu1  ;;  %2134 = vmatprep.mubr.bf16.mxu0 %v3061_v49  ;;  %v1772_v55 = vpack.c.bf16 %v1417_v9, %v1409_v46  ;;  %v1400_v4 = vld [vmem:[%s5021_s14 + $0x150] sm:$0xff]  ;;  %v1798_v9 = vpack.c.bf16 %v1467_v39, %v1459_v44  ;;  %v1394_v44 = vld [vmem:[%s5021_s14 + $0x120] sm:$0xff] }
 0xaa1   :  { %v3774_v11 = vpack.c.bf16 %v1352_v5, %v1352_v5  ;;  %2104 = vmatprep.subr.bf16.mxu0 %v1924_v58  ;;  %v1656_v58 = vld [vmem:[%s5021_s14 + $0x950] sm:$0xff]  ;;  %v1764_v5 = vpack.c.bf16 %v1401_v21, %v1393_v59  ;;  %v1763_v16 = vpack.c.bf16 %v1400_v4, %v1392_v3  ;;  %v1790_v21 = vpack.c.bf16 %v1451_v53, %v1443_v52  ;;  %v1427_v3 = vld [vmem:[%s5021_s14 + $0x228] sm:$0xff]  ;;  %v1402_v39 = vld [vmem:[%s5021_s14 + $0x160] sm:$0xff] }
 0xaa2   :  { %v2904_v18 = vpop.f32.mrf.mxu1  ;;  %v1891_v2 = vpack.c.bf16 %v1656_v58, %v1648_v57  ;;  %v1584_v57 = vld [vmem:[%s5021_s14 + $0x710] sm:$0xff]  ;;  %v1435_v4 = vld [vmem:[%s5021_s14 + $0x268] sm:$0xff]  ;;  %v1378_v52 = vld [vmem:[%s5021_s14 + $0xa0] sm:$0xff] }
 0xaa3   :  { %2053 = vmatmul.mubr.bf16.vlgmr.msra.gmra.mxu1 %v3774_v11  ;;  %v1376_v18 = vld [vmem:[%s5021_s14 + $0x90] sm:$0xff]  ;;  %v1386_v53 = vld [vmem:[%s5021_s14 + $0xe0] sm:$0xff] }
 0xaa4   :  { %2062 = vmatpush1.bf16.msra.mxu1 %v1803_v6  ;;  %2105 = vmatpush1.bf16.msra.mxu0 %v1923_v7  ;;  %v1355_v23 = vpop.f32.mrf.mxu1  ;;  %v1884_v6 = vpack.c.bf16 %v1641_v62, %v1633_v60  ;;  %v1632_v7 = vld [vmem:[%s5021_s14 + $0x890] sm:$0xff]  ;;  %v1442_v60 = vld [vmem:[%s5021_s14 + $0x2a0] sm:$0xff] }
 0xaa5   :  { %2063 = vmatprep.subr.bf16.mxu1 %v1796_v12  ;;  %2106 = vmatprep.subr.bf16.mxu0 %v1916_v13  ;;  %v1385_v12 = vld [vmem:[%s5021_s14 + $0xd8] sm:$0xff]  ;;  %v1883_v17 = vpack.c.bf16 %v1640_v8, %v1632_v7  ;;  %v1616_v23 = vld [vmem:[%s5021_s14 + $0x810] sm:$0xff]  ;;  %v1450_v62 = vld [vmem:[%s5021_s14 + $0x2e0] sm:$0xff] }
 0xaa6   :  { %v2905_v34 = vpop.f32.mrf.mxu1  ;;  %2093 = vmatprep.mubr.bf16.mxu1 %v3739_v54  ;;  %v1617_v13 = vld [vmem:[%s5021_s14 + $0x818] sm:$0xff]  ;;  %v1756_v20 = vpack.c.bf16 %v1385_v12, %v1377_v10  ;;  %v1592_v58 = vld [vmem:[%s5021_s14 + $0x750] sm:$0xff]  ;;  %v1782_v12 = vpack.c.bf16 %v1435_v4, %v1427_v3  ;;  %v1362_v3 = vld [vmem:[%s5021_s14 + $0x20] sm:$0xff] }
 0xaa7   :  { %v1876_v22 = vpack.c.bf16 %v1625_v15, %v1617_v13  ;;  %v1568_v7 = vld [vmem:[%s5021_s14 + $0x690] sm:$0xff]  ;;  %v1426_v13 = vld [vmem:[%s5021_s14 + $0x220] sm:$0xff] }
 0xaa8   :  { %2064 = vmatpush1.bf16.msra.mxu1 %v1795_v24  ;;  %2107 = vmatpush1.bf16.msra.mxu0 %v1915_v25  ;;  %v1624_v24 = vld [vmem:[%s5021_s14 + $0x850] sm:$0xff]  ;;  %v1361_v25 = vld [vmem:[%s5021_s14 + $0x18] sm:$0xff]  ;;  %v1434_v15 = vld [vmem:[%s5021_s14 + $0x260] sm:$0xff] }
 0xaa9   :  { %2065 = vmatprep.subr.bf16.mxu1 %v1788_v28  ;;  %2108 = vmatprep.subr.bf16.mxu0 %v1908_v30  ;;  %v1483_v28 = vld [vmem:[%s5021_s14 + $0x3e8] sm:$0xff]  ;;  %v1755_v30 = vpack.c.bf16 %v1384_v19, %v1376_v18  ;;  %v1875_v31 = vpack.c.bf16 %v1624_v24, %v1616_v23  ;;  %v1748_v34 = vpack.c.bf16 %v1369_v26, %v1361_v25  ;;  %v1576_v8 = vld [vmem:[%s5021_s14 + $0x6d0] sm:$0xff]  ;;  %v1370_v4 = vld [vmem:[%s5021_s14 + $0x60] sm:$0xff] }
 0xaaa   :  { %v1806_v35 = vpack.c.bf16 %v1483_v28, %v1475_v27  ;;  %v1411_v18 = vld [vmem:[%s5021_s14 + $0x1a8] sm:$0xff]  ;;  %v1552_v23 = vld [vmem:[%s5021_s14 + $0x610] sm:$0xff]  ;;  %v1410_v27 = vld [vmem:[%s5021_s14 + $0x1a0] sm:$0xff] }
 0xaab   :  { %v1419_v19 = vld [vmem:[%s5021_s14 + $0x1e8] sm:$0xff]  ;;  %v1560_v24 = vld [vmem:[%s5021_s14 + $0x650] sm:$0xff]  ;;  %v1418_v28 = vld [vmem:[%s5021_s14 + $0x1e0] sm:$0xff] }
 0xaac   :  { %2066 = vmatpush1.bf16.msra.mxu1 %v1787_v41  ;;  %2109 = vmatpush1.bf16.msra.mxu0 %v1907_v37  ;;  %v1601_v41 = vld [vmem:[%s5021_s14 + $0x798] sm:$0xff]  ;;  %v1774_v26 = vpack.c.bf16 %v1419_v19, %v1411_v18  ;;  %v1602_v18 = vld [vmem:[%s5021_s14 + $0x7a0] sm:$0xff] }
 0xaad   :  { %2067 = vmatprep.subr.bf16.mxu1 %v1780_v40  ;;  %2110 = vmatprep.subr.bf16.mxu0 %v1900_v42  ;;  %v1609_v37 = vld [vmem:[%s5021_s14 + $0x7d8] sm:$0xff]  ;;  %v1747_v40 = vpack.c.bf16 %v1368_v33, %v1360_v32  ;;  %v1805_v42 = vpack.c.bf16 %v1482_v29, %v1474_v36  ;;  %v1395_v32 = vld [vmem:[%s5021_s14 + $0x128] sm:$0xff]  ;;  %v1536_v36 = vld [vmem:[%s5021_s14 + $0x590] sm:$0xff] }
 0xaae   :  { %v1868_v46 = vpack.c.bf16 %v1609_v37, %v1601_v41  ;;  %v1403_v33 = vld [vmem:[%s5021_s14 + $0x168] sm:$0xff]  ;;  %v1544_v29 = vld [vmem:[%s5021_s14 + $0x5d0] sm:$0xff]  ;;  %v1610_v19 = vld [vmem:[%s5021_s14 + $0x7e0] sm:$0xff] }
 0xaaf   :  { %v1766_v37 = vpack.c.bf16 %v1403_v33, %v1395_v32  ;;  %v1730_v32 = vld [vmem:[%s5021_s14 + $0xba0] sm:$0xff] }
 0xab0   :  { %2068 = vmatpush1.bf16.msra.mxu1 %v1779_v47  ;;  %2111 = vmatpush1.bf16.msra.mxu0 %v1899_v51  ;;  %v1585_v47 = vld [vmem:[%s5021_s14 + $0x718] sm:$0xff]  ;;  %v1738_v33 = vld [vmem:[%s5021_s14 + $0xbe0] sm:$0xff] }
 0xab1   :  { %2069 = vmatprep.subr.bf16.mxu1 %v1772_v55  ;;  %2112 = vmatprep.subr.bf16.mxu0 %v1892_v56  ;;  %v1593_v51 = vld [vmem:[%s5021_s14 + $0x758] sm:$0xff]  ;;  %v1867_v55 = vpack.c.bf16 %v1608_v45, %v1600_v43  ;;  %v1797_v56 = vpack.c.bf16 %v1466_v50, %v1458_v48  ;;  %v1379_v43 = vld [vmem:[%s5021_s14 + $0xa8] sm:$0xff]  ;;  %v1520_v48 = vld [vmem:[%s5021_s14 + $0x510] sm:$0xff] }
 0xab2   :  { %v1860_v59 = vpack.c.bf16 %v1593_v51, %v1585_v47  ;;  %v1387_v45 = vld [vmem:[%s5021_s14 + $0xe8] sm:$0xff]  ;;  %v1528_v50 = vld [vmem:[%s5021_s14 + $0x550] sm:$0xff] }
 0xab3   :  { %v1758_v51 = vpack.c.bf16 %v1387_v45, %v1379_v43  ;;  %v1714_v43 = vld [vmem:[%s5021_s14 + $0xb20] sm:$0xff] }
 0xab4   :  { %2070 = vmatpush1.bf16.msra.mxu1 %v1771_v63  ;;  %2113 = vmatpush1.bf16.msra.mxu0 %v1891_v2  ;;  %v1569_v63 = vld [vmem:[%s5021_s14 + $0x698] sm:$0xff]  ;;  %v1722_v45 = vld [vmem:[%s5021_s14 + $0xb60] sm:$0xff] }
 0xab5   :  { %2071 = vmatprep.subr.bf16.mxu1 %v1764_v5  ;;  %2114 = vmatprep.subr.bf16.mxu0 %v1884_v6  ;;  %v1577_v2 = vld [vmem:[%s5021_s14 + $0x6d8] sm:$0xff]  ;;  %v1859_v5 = vpack.c.bf16 %v1592_v58, %v1584_v57  ;;  %v1789_v6 = vpack.c.bf16 %v1450_v62, %v1442_v60  ;;  %v1363_v57 = vld [vmem:[%s5021_s14 + $0x28] sm:$0xff]  ;;  %v1504_v60 = vld [vmem:[%s5021_s14 + $0x490] sm:$0xff] }
 0xab6   :  { %v1852_v10 = vpack.c.bf16 %v1577_v2, %v1569_v63  ;;  %v1371_v58 = vld [vmem:[%s5021_s14 + $0x68] sm:$0xff]  ;;  %v1512_v62 = vld [vmem:[%s5021_s14 + $0x4d0] sm:$0xff] }
 0xab7   :  { %v1750_v2 = vpack.c.bf16 %v1371_v58, %v1363_v57  ;;  %v1698_v57 = vld [vmem:[%s5021_s14 + $0xaa0] sm:$0xff] }
 0xab8   :  { %2072 = vmatpush1.bf16.msra.mxu1 %v1763_v16  ;;  %2115 = vmatpush1.bf16.msra.mxu0 %v1883_v17  ;;  %v1553_v16 = vld [vmem:[%s5021_s14 + $0x618] sm:$0xff]  ;;  %v1706_v58 = vld [vmem:[%s5021_s14 + $0xae0] sm:$0xff] }
 0xab9   :  { %2073 = vmatprep.subr.bf16.mxu1 %v1756_v20  ;;  %2116 = vmatprep.subr.bf16.mxu0 %v1876_v22  ;;  %v1561_v17 = vld [vmem:[%s5021_s14 + $0x658] sm:$0xff]  ;;  %v1851_v20 = vpack.c.bf16 %v1576_v8, %v1568_v7  ;;  %v1781_v22 = vpack.c.bf16 %v1434_v15, %v1426_v13  ;;  %v1603_v7 = vld [vmem:[%s5021_s14 + $0x7a8] sm:$0xff]  ;;  %v1488_v13 = vld [vmem:[%s5021_s14 + $0x410] sm:$0xff] }
 0xaba   :  { %v1844_v25 = vpack.c.bf16 %v1561_v17, %v1553_v16  ;;  %v1611_v8 = vld [vmem:[%s5021_s14 + $0x7e8] sm:$0xff]  ;;  %v1496_v15 = vld [vmem:[%s5021_s14 + $0x450] sm:$0xff] }
 0xabb   :  { %v1870_v17 = vpack.c.bf16 %v1611_v8, %v1603_v7  ;;  %v1682_v7 = vld [vmem:[%s5021_s14 + $0xa20] sm:$0xff] }
 0xabc   :  { %2074 = vmatpush1.bf16.msra.mxu1 %v1755_v30  ;;  %2117 = vmatpush1.bf16.msra.mxu0 %v1875_v31  ;;  %v1537_v30 = vld [vmem:[%s5021_s14 + $0x598] sm:$0xff]  ;;  %v1690_v8 = vld [vmem:[%s5021_s14 + $0xa60] sm:$0xff] }
 0xabd   :  { %2075 = vmatprep.subr.bf16.mxu1 %v1748_v34  ;;  %2143 = vmatprep.subr.bf16.mxu0 %v1806_v35  ;;  %v1545_v31 = vld [vmem:[%s5021_s14 + $0x5d8] sm:$0xff]  ;;  %v1843_v34 = vpack.c.bf16 %v1560_v24, %v1552_v23  ;;  %v1773_v35 = vpack.c.bf16 %v1418_v28, %v1410_v27  ;;  %v1731_v23 = vld [vmem:[%s5021_s14 + $0xba8] sm:$0xff]  ;;  %v1586_v27 = vld [vmem:[%s5021_s14 + $0x720] sm:$0xff] }
 0xabe   :  { %v1836_v41 = vpack.c.bf16 %v1545_v31, %v1537_v30  ;;  %v1739_v24 = vld [vmem:[%s5021_s14 + $0xbe8] sm:$0xff]  ;;  %v1594_v28 = vld [vmem:[%s5021_s14 + $0x760] sm:$0xff] }
 0xabf   :  { %2135 = vmatmul.mubr.bf16.vlgmr.msra.gmra.mxu0 %v3774_v11  ;;  %v1934_v31 = vpack.c.bf16 %v1739_v24, %v1731_v23  ;;  %v1666_v23 = vld [vmem:[%s5021_s14 + $0x9a0] sm:$0xff] }
 0xac0   :  { %2076 = vmatpush1.bf16.msra.mxu1 %v1747_v40  ;;  %2144 = vmatpush1.bf16.msra.mxu0 %v1805_v42  ;;  %v1521_v40 = vld [vmem:[%s5021_s14 + $0x518] sm:$0xff]  ;;  %v1674_v24 = vld [vmem:[%s5021_s14 + $0x9e0] sm:$0xff] }
 0xac1   :  { %2077 = vmatprep.subr.bf16.mxu1 %v1868_v46  ;;  %2145 = vmatprep.subr.bf16.mxu0 %v1798_v9  ;;  %v1529_v42 = vld [vmem:[%s5021_s14 + $0x558] sm:$0xff]  ;;  %v1835_v46 = vpack.c.bf16 %v1544_v29, %v1536_v36  ;;  %v1765_v9 = vpack.c.bf16 %v1402_v39, %v1394_v44  ;;  %v1715_v36 = vld [vmem:[%s5021_s14 + $0xb28] sm:$0xff]  ;;  %v1570_v44 = vld [vmem:[%s5021_s14 + $0x6a0] sm:$0xff] }
 0xac2   :  { %2175 = vmatprep.mubr.bf16.mxu0 %v3739_v54  ;;  %v1828_v47 = vpack.c.bf16 %v1529_v42, %v1521_v40  ;;  %v1723_v29 = vld [vmem:[%s5021_s14 + $0xb68] sm:$0xff]  ;;  %v1578_v39 = vld [vmem:[%s5021_s14 + $0x6e0] sm:$0xff] }
 0xac3   :  { %v1926_v42 = vpack.c.bf16 %v1723_v29, %v1715_v36  ;;  %v1650_v36 = vld [vmem:[%s5021_s14 + $0x920] sm:$0xff] }
 0xac4   :  { %2078 = vmatpush2.bf16.msra.mxu1 %v1867_v55  ;;  %2146 = vmatpush1.bf16.msra.mxu0 %v1797_v56  ;;  %v1505_v55 = vld [vmem:[%s5021_s14 + $0x498] sm:$0xff]  ;;  %v1658_v29 = vld [vmem:[%s5021_s14 + $0x960] sm:$0xff] }
 0xac5   :  { %2079 = vmatprep.subr.bf16.mxu1 %v1860_v59  ;;  %2147 = vmatprep.subr.bf16.mxu0 %v1790_v21  ;;  %v1513_v56 = vld [vmem:[%s5021_s14 + $0x4d8] sm:$0xff]  ;;  %v1827_v59 = vpack.c.bf16 %v1528_v50, %v1520_v48  ;;  %v1757_v21 = vpack.c.bf16 %v1386_v53, %v1378_v52  ;;  %v1699_v48 = vld [vmem:[%s5021_s14 + $0xaa8] sm:$0xff]  ;;  %v1554_v52 = vld [vmem:[%s5021_s14 + $0x620] sm:$0xff] }
 0xac6   :  { %v1820_v63 = vpack.c.bf16 %v1513_v56, %v1505_v55  ;;  %v1707_v50 = vld [vmem:[%s5021_s14 + $0xae8] sm:$0xff]  ;;  %v1562_v53 = vld [vmem:[%s5021_s14 + $0x660] sm:$0xff] }
 0xac7   :  { %v1918_v56 = vpack.c.bf16 %v1707_v50, %v1699_v48  ;;  %v1634_v48 = vld [vmem:[%s5021_s14 + $0x8a0] sm:$0xff] }
 0xac8   :  { %2080 = vmatpush2.bf16.msra.mxu1 %v1859_v5  ;;  %2148 = vmatpush1.bf16.msra.mxu0 %v1789_v6  ;;  %v1489_v5 = vld [vmem:[%s5021_s14 + $0x418] sm:$0xff]  ;;  %v1642_v50 = vld [vmem:[%s5021_s14 + $0x8e0] sm:$0xff] }
 0xac9   :  { %2081 = vmatprep.subr.bf16.mxu1 %v1852_v10  ;;  %2149 = vmatprep.subr.bf16.mxu0 %v1782_v12  ;;  %v1497_v6 = vld [vmem:[%s5021_s14 + $0x458] sm:$0xff]  ;;  %v1819_v10 = vpack.c.bf16 %v1512_v62, %v1504_v60  ;;  %v1749_v12 = vpack.c.bf16 %v1370_v4, %v1362_v3  ;;  %v1683_v60 = vld [vmem:[%s5021_s14 + $0xa28] sm:$0xff]  ;;  %v1538_v3 = vld [vmem:[%s5021_s14 + $0x5a0] sm:$0xff] }
 0xaca   :  { %v1812_v16 = vpack.c.bf16 %v1497_v6, %v1489_v5  ;;  %v1691_v62 = vld [vmem:[%s5021_s14 + $0xa68] sm:$0xff]  ;;  %v1546_v4 = vld [vmem:[%s5021_s14 + $0x5e0] sm:$0xff] }
 0xacb   :  { %v1910_v6 = vpack.c.bf16 %v1691_v62, %v1683_v60  ;;  %v1732_v60 = vld [vmem:[%s5021_s14 + $0xbb0] sm:$0xff] }
 0xacc   :  { %2082 = vmatpush2.bf16.msra.mxu1 %v1851_v20  ;;  %2150 = vmatpush1.bf16.msra.mxu0 %v1781_v22  ;;  %v1587_v20 = vld [vmem:[%s5021_s14 + $0x728] sm:$0xff]  ;;  %v1740_v62 = vld [vmem:[%s5021_s14 + $0xbf0] sm:$0xff] }
 0xacd   :  { %2083 = vmatprep.subr.bf16.mxu1 %v1844_v25  ;;  %2151 = vmatprep.subr.bf16.mxu0 %v1774_v26  ;;  %v1595_v22 = vld [vmem:[%s5021_s14 + $0x768] sm:$0xff]  ;;  %v1811_v25 = vpack.c.bf16 %v1496_v15, %v1488_v13  ;;  %v1869_v26 = vpack.c.bf16 %v1610_v19, %v1602_v18  ;;  %v1522_v18 = vld [vmem:[%s5021_s14 + $0x520] sm:$0xff] }
 0xace   :  { %v1862_v30 = vpack.c.bf16 %v1595_v22, %v1587_v20  ;;  %v1667_v13 = vld [vmem:[%s5021_s14 + $0x9a8] sm:$0xff]  ;;  %v1530_v19 = vld [vmem:[%s5021_s14 + $0x560] sm:$0xff] }
 0xacf   :  { %v1675_v15 = vld [vmem:[%s5021_s14 + $0x9e8] sm:$0xff] }
 0xad0   :  { %2084 = vmatpush2.bf16.msra.mxu1 %v1843_v34  ;;  %2152 = vmatpush1.bf16.msra.mxu0 %v1773_v35  ;;  %v1571_v34 = vld [vmem:[%s5021_s14 + $0x6a8] sm:$0xff]  ;;  %v1902_v22 = vpack.c.bf16 %v1675_v15, %v1667_v13  ;;  %v1716_v13 = vld [vmem:[%s5021_s14 + $0xb30] sm:$0xff] }
 0xad1   :  { %2085 = vmatprep.subr.bf16.mxu1 %v1836_v41  ;;  %2153 = vmatprep.subr.bf16.mxu0 %v1766_v37  ;;  %v1579_v35 = vld [vmem:[%s5021_s14 + $0x6e8] sm:$0xff]  ;;  %v1861_v41 = vpack.c.bf16 %v1594_v28, %v1586_v27  ;;  %v1933_v37 = vpack.c.bf16 %v1738_v33, %v1730_v32  ;;  %v1506_v32 = vld [vmem:[%s5021_s14 + $0x4a0] sm:$0xff]  ;;  %v1724_v15 = vld [vmem:[%s5021_s14 + $0xb70] sm:$0xff] }
 0xad2   :  { %v1854_v40 = vpack.c.bf16 %v1579_v35, %v1571_v34  ;;  %v1651_v27 = vld [vmem:[%s5021_s14 + $0x928] sm:$0xff]  ;;  %v1514_v33 = vld [vmem:[%s5021_s14 + $0x4e0] sm:$0xff] }
 0xad3   :  { %v1659_v28 = vld [vmem:[%s5021_s14 + $0x968] sm:$0xff] }
 0xad4   :  { %2086 = vmatpush2.bf16.msra.mxu1 %v1835_v46  ;;  %2154 = vmatpush1.bf16.msra.mxu0 %v1765_v9  ;;  %v1555_v46 = vld [vmem:[%s5021_s14 + $0x628] sm:$0xff]  ;;  %v1894_v35 = vpack.c.bf16 %v1659_v28, %v1651_v27  ;;  %v1708_v28 = vld [vmem:[%s5021_s14 + $0xaf0] sm:$0xff] }
 0xad5   :  { %2087 = vmatprep.subr.bf16.mxu1 %v1828_v47  ;;  %2155 = vmatprep.subr.bf16.mxu0 %v1758_v51  ;;  %v1563_v9 = vld [vmem:[%s5021_s14 + $0x668] sm:$0xff]  ;;  %v1853_v47 = vpack.c.bf16 %v1578_v39, %v1570_v44  ;;  %v1925_v51 = vpack.c.bf16 %v1722_v45, %v1714_v43  ;;  %v1490_v43 = vld [vmem:[%s5021_s14 + $0x420] sm:$0xff] }
 0xad6   :  { %v1846_v55 = vpack.c.bf16 %v1563_v9, %v1555_v46  ;;  %v1635_v44 = vld [vmem:[%s5021_s14 + $0x8a8] sm:$0xff]  ;;  %v1498_v45 = vld [vmem:[%s5021_s14 + $0x460] sm:$0xff] }
 0xad7   :  { %v1643_v39 = vld [vmem:[%s5021_s14 + $0x8e8] sm:$0xff] }
 0xad8   :  { %2088 = vmatpush2.bf16.msra.mxu1 %v1827_v59  ;;  %2156 = vmatpush1.bf16.msra.mxu0 %v1757_v21  ;;  %v1539_v59 = vld [vmem:[%s5021_s14 + $0x5a8] sm:$0xff]  ;;  %v1886_v9 = vpack.c.bf16 %v1643_v39, %v1635_v44  ;;  %v1429_v44 = vld [vmem:[%s5021_s14 + $0x238] sm:$0xff] }
 0xad9   :  { %2089 = vmatprep.subr.bf16.mxu1 %v1820_v63  ;;  %2157 = vmatprep.subr.bf16.mxu0 %v1750_v2  ;;  %v1547_v21 = vld [vmem:[%s5021_s14 + $0x5e8] sm:$0xff]  ;;  %v1845_v63 = vpack.c.bf16 %v1562_v53, %v1554_v52  ;;  %v1917_v2 = vpack.c.bf16 %v1706_v58, %v1698_v57  ;;  %v1733_v52 = vld [vmem:[%s5021_s14 + $0xbb8] sm:$0xff]  ;;  %v1618_v57 = vld [vmem:[%s5021_s14 + $0x820] sm:$0xff] }
 0xada   :  { %v1838_v5 = vpack.c.bf16 %v1547_v21, %v1539_v59  ;;  %v1741_v53 = vld [vmem:[%s5021_s14 + $0xbf8] sm:$0xff]  ;;  %v1626_v58 = vld [vmem:[%s5021_s14 + $0x860] sm:$0xff] }
 0xadb   :  { %v1936_v21 = vpack.c.bf16 %v1741_v53, %v1733_v52  ;;  %v1437_v39 = vld [vmem:[%s5021_s14 + $0x278] sm:$0xff] }
 0xadc   :  { %2090 = vmatpush2.bf16.msra.mxu1 %v1819_v10  ;;  %2158 = vmatpush1.bf16.msra.mxu0 %v1749_v12  ;;  %v1523_v10 = vld [vmem:[%s5021_s14 + $0x528] sm:$0xff]  ;;  %v1413_v52 = vld [vmem:[%s5021_s14 + $0x1b8] sm:$0xff] }
 0xadd   :  { %2091 = vmatprep.subr.bf16.mxu1 %v1812_v16  ;;  %2159 = vmatprep.subr.bf16.mxu0 %v1870_v17  ;;  %v1531_v12 = vld [vmem:[%s5021_s14 + $0x568] sm:$0xff]  ;;  %v1837_v16 = vpack.c.bf16 %v1546_v4, %v1538_v3  ;;  %v1909_v17 = vpack.c.bf16 %v1690_v8, %v1682_v7  ;;  %v1717_v3 = vld [vmem:[%s5021_s14 + $0xb38] sm:$0xff] }
 0xade   :  { %v1830_v20 = vpack.c.bf16 %v1531_v12, %v1523_v10  ;;  %v1725_v4 = vld [vmem:[%s5021_s14 + $0xb78] sm:$0xff]  ;;  %v1476_v10 = vld [vmem:[%s5021_s14 + $0x3b0] sm:$0xff] }
 0xadf   :  { %v1928_v8 = vpack.c.bf16 %v1725_v4, %v1717_v3  ;;  %v1484_v12 = vld [vmem:[%s5021_s14 + $0x3f0] sm:$0xff]  ;;  %v1421_v53 = vld [vmem:[%s5021_s14 + $0x1f8] sm:$0xff] }
 0xae0   :  { %2092 = vmatpush2.bf16.msra.mxu1 %v1811_v25  ;;  %2160 = vmatpush2.bf16.msra.mxu0 %v1869_v26  ;;  %v1507_v25 = vld [vmem:[%s5021_s14 + $0x4a8] sm:$0xff]  ;;  %v1397_v3 = vld [vmem:[%s5021_s14 + $0x138] sm:$0xff] }
 0xae1   :  { %2161 = vmatprep.subr.bf16.mxu0 %v1862_v30  ;;  %2184 = vmatprep.subr.bf16.mxu1 %v1934_v31  ;;  %v1515_v26 = vld [vmem:[%s5021_s14 + $0x4e8] sm:$0xff]  ;;  %v1829_v30 = vpack.c.bf16 %v1530_v19, %v1522_v18  ;;  %v1901_v31 = vpack.c.bf16 %v1674_v24, %v1666_v23  ;;  %v1701_v18 = vld [vmem:[%s5021_s14 + $0xab8] sm:$0xff]  ;;  %v1460_v24 = vld [vmem:[%s5021_s14 + $0x330] sm:$0xff] }
 0xae2   :  { %v1822_v34 = vpack.c.bf16 %v1515_v26, %v1507_v25  ;;  %v1709_v19 = vld [vmem:[%s5021_s14 + $0xaf8] sm:$0xff]  ;;  %v1468_v25 = vld [vmem:[%s5021_s14 + $0x370] sm:$0xff] }
 0xae3   :  { %2094 = vmatmul.mubr.bf16.vlgmr.msra.gmra.mxu1 %v3737_v14  ;;  %v1700_v26 = vld [vmem:[%s5021_s14 + $0xab0] sm:$0xff]  ;;  %v1920_v27 = vpack.c.bf16 %v1709_v19, %v1701_v18  ;;  %v1405_v4 = vld [vmem:[%s5021_s14 + $0x178] sm:$0xff] }
 0xae4   :  { %2162 = vmatpush2.bf16.msra.mxu0 %v1861_v41  ;;  %2185 = vmatpush1.bf16.msra.mxu1 %v1933_v37  ;;  %v1491_v41 = vld [vmem:[%s5021_s14 + $0x428] sm:$0xff]  ;;  %v1381_v18 = vld [vmem:[%s5021_s14 + $0xb8] sm:$0xff] }
 0xae5   :  { %2163 = vmatprep.subr.bf16.mxu0 %v1854_v40  ;;  %2186 = vmatprep.subr.bf16.mxu1 %v1926_v42  ;;  %v1499_v37 = vld [vmem:[%s5021_s14 + $0x468] sm:$0xff]  ;;  %v1821_v40 = vpack.c.bf16 %v1514_v33, %v1506_v32  ;;  %v1893_v42 = vpack.c.bf16 %v1658_v29, %v1650_v36  ;;  %v1685_v32 = vld [vmem:[%s5021_s14 + $0xa38] sm:$0xff]  ;;  %v1452_v29 = vld [vmem:[%s5021_s14 + $0x2f0] sm:$0xff] }
 0xae6   :  { %2216 = vmatprep.mubr.bf16.mxu1 %v3061_v49  ;;  %v1814_v46 = vpack.c.bf16 %v1499_v37, %v1491_v41  ;;  %v1693_v33 = vld [vmem:[%s5021_s14 + $0xa78] sm:$0xff]  ;;  %v1684_v41 = vld [vmem:[%s5021_s14 + $0xa30] sm:$0xff] }
 0xae7   :  { %v1912_v37 = vpack.c.bf16 %v1693_v33, %v1685_v32  ;;  %v1389_v19 = vld [vmem:[%s5021_s14 + $0xf8] sm:$0xff] }
 0xae8   :  { %2164 = vmatpush2.bf16.msra.mxu0 %v1853_v47  ;;  %2187 = vmatpush1.bf16.msra.mxu1 %v1925_v51  ;;  %v1619_v47 = vld [vmem:[%s5021_s14 + $0x828] sm:$0xff]  ;;  %v1365_v32 = vld [vmem:[%s5021_s14 + $0x38] sm:$0xff] }
 0xae9   :  { %2165 = vmatprep.subr.bf16.mxu0 %v1846_v55  ;;  %2188 = vmatprep.subr.bf16.mxu1 %v1918_v56  ;;  %v1627_v51 = vld [vmem:[%s5021_s14 + $0x868] sm:$0xff]  ;;  %v1813_v55 = vpack.c.bf16 %v1498_v45, %v1490_v43  ;;  %v1885_v56 = vpack.c.bf16 %v1642_v50, %v1634_v48  ;;  %v1436_v48 = vld [vmem:[%s5021_s14 + $0x270] sm:$0xff]  ;;  %v1373_v33 = vld [vmem:[%s5021_s14 + $0x78] sm:$0xff] }
 0xaea   :  { %v1878_v59 = vpack.c.bf16 %v1627_v51, %v1619_v47  ;;  %v1668_v50 = vld [vmem:[%s5021_s14 + $0x9b0] sm:$0xff] }
 0xaeb   :  { %v1676_v51 = vld [vmem:[%s5021_s14 + $0x9f0] sm:$0xff] }
 0xaec   :  { %2166 = vmatpush2.bf16.msra.mxu0 %v1845_v63  ;;  %2189 = vmatpush1.bf16.msra.mxu1 %v1917_v2  ;;  %v1477_v63 = vld [vmem:[%s5021_s14 + $0x3b8] sm:$0xff] }
 0xaed   :  { %2167 = vmatprep.subr.bf16.mxu0 %v1838_v5  ;;  %2190 = vmatprep.subr.bf16.mxu1 %v1910_v6  ;;  %v1485_v2 = vld [vmem:[%s5021_s14 + $0x3f8] sm:$0xff]  ;;  %v1877_v5 = vpack.c.bf16 %v1626_v58, %v1618_v57  ;;  %v1935_v6 = vpack.c.bf16 %v1740_v62, %v1732_v60  ;;  %v1903_v58 = vpack.c.bf16 %v1676_v51, %v1668_v50  ;;  %v1420_v60 = vld [vmem:[%s5021_s14 + $0x1f0] sm:$0xff] }
 0xaee   :  { %v1808_v7 = vpack.c.bf16 %v1485_v2, %v1477_v63  ;;  %v1652_v62 = vld [vmem:[%s5021_s14 + $0x930] sm:$0xff] }
 0xaef   :  { %v1660_v2 = vld [vmem:[%s5021_s14 + $0x970] sm:$0xff] }
 0xaf0   :  { %2168 = vmatpush2.bf16.msra.mxu0 %v1837_v16  ;;  %2191 = vmatpush1.bf16.msra.mxu1 %v1909_v17  ;;  %v1461_v16 = vld [vmem:[%s5021_s14 + $0x338] sm:$0xff]  ;;  %v1612_v50 = vld [vmem:[%s5021_s14 + $0x7f0] sm:$0xff] }
 0xaf1   :  { %2169 = vmatprep.subr.bf16.mxu0 %v1830_v20  ;;  %2192 = vmatprep.subr.bf16.mxu1 %v1902_v22  ;;  %v1469_v17 = vld [vmem:[%s5021_s14 + $0x378] sm:$0xff]  ;;  %v1807_v20 = vpack.c.bf16 %v1484_v12, %v1476_v10  ;;  %v1927_v22 = vpack.c.bf16 %v1724_v15, %v1716_v13  ;;  %v1768_v10 = vpack.c.bf16 %v1405_v4, %v1397_v3  ;;  %v1396_v12 = vld [vmem:[%s5021_s14 + $0x130] sm:$0xff] }
 0xaf2   :  { %v1800_v23 = vpack.c.bf16 %v1469_v17, %v1461_v16  ;;  %v1404_v13 = vld [vmem:[%s5021_s14 + $0x170] sm:$0xff] }
 0xaf3   :  { %v1636_v15 = vld [vmem:[%s5021_s14 + $0x8b0] sm:$0xff] }
 0xaf4   :  { %2170 = vmatpush2.bf16.msra.mxu0 %v1829_v30  ;;  %2193 = vmatpush1.bf16.msra.mxu1 %v1901_v31  ;;  %v1445_v30 = vld [vmem:[%s5021_s14 + $0x2b8] sm:$0xff]  ;;  %v1644_v17 = vld [vmem:[%s5021_s14 + $0x8f0] sm:$0xff] }
 0xaf5   :  { %2171 = vmatprep.subr.bf16.mxu0 %v1822_v34  ;;  %2194 = vmatprep.subr.bf16.mxu1 %v1894_v35  ;;  %v1453_v31 = vld [vmem:[%s5021_s14 + $0x2f8] sm:$0xff]  ;;  %v1799_v34 = vpack.c.bf16 %v1468_v25, %v1460_v24  ;;  %v1919_v35 = vpack.c.bf16 %v1708_v28, %v1700_v26  ;;  %v1887_v24 = vpack.c.bf16 %v1644_v17, %v1636_v15  ;;  %v1380_v26 = vld [vmem:[%s5021_s14 + $0xb0] sm:$0xff] }
 0xaf6   :  { %v1792_v36 = vpack.c.bf16 %v1453_v31, %v1445_v30  ;;  %v1760_v25 = vpack.c.bf16 %v1389_v19, %v1381_v18  ;;  %v1620_v28 = vld [vmem:[%s5021_s14 + $0x830] sm:$0xff]  ;;  %v1557_v15 = vld [vmem:[%s5021_s14 + $0x638] sm:$0xff]  ;;  %v2323_v19 = vld [vmem:[%s5023_s16 + $0x40] sm:$0xff] }
 0xaf7   :  { %v1628_v31 = vld [vmem:[%s5021_s14 + $0x870] sm:$0xff]  ;;  %v1565_v17 = vld [vmem:[%s5021_s14 + $0x678] sm:$0xff] }
 0xaf8   :  { %2172 = vmatpush2.bf16.msra.mxu0 %v1821_v40  ;;  %2195 = vmatpush1.bf16.msra.mxu1 %v1893_v42  ;;  %v1669_v40 = vld [vmem:[%s5021_s14 + $0x9b8] sm:$0xff]  ;;  %v2325_v4 = vld [vmem:[%s5023_s16 + $0x50] sm:$0xff] }
 0xaf9   :  { %2173 = vmatprep.subr.bf16.mxu0 %v1814_v46  ;;  %2196 = vmatprep.subr.bf16.mxu1 %v1886_v9  ;;  %v1677_v42 = vld [vmem:[%s5021_s14 + $0x9f8] sm:$0xff]  ;;  %v1784_v46 = vpack.c.bf16 %v1437_v39, %v1429_v44  ;;  %v1428_v9 = vld [vmem:[%s5021_s14 + $0x230] sm:$0xff] }
 0xafa   :  { %v1904_v47 = vpack.c.bf16 %v1677_v42, %v1669_v40  ;;  %v1783_v57 = vpack.c.bf16 %v1436_v48, %v1428_v9  ;;  %v1613_v44 = vld [vmem:[%s5021_s14 + $0x7f8] sm:$0xff]  ;;  %v2329_v40 = vld [vmem:[%s5023_s16 + $0x70] sm:$0xff] }
 0xafb   :  { %v2330_v42 = vld [vmem:[%s5023_s16 + $0x78] sm:$0xff]  ;;  %v1604_v48 = vld [vmem:[%s5021_s14 + $0x7b0] sm:$0xff] }
 0xafc   :  { %2174 = vmatpush2.bf16.msra.mxu0 %v1813_v55  ;;  %2197 = vmatpush1.bf16.msra.mxu1 %v1885_v56  ;;  %v1653_v55 = vld [vmem:[%s5021_s14 + $0x938] sm:$0xff]  ;;  %v2458_v51 = vpack.c.bf16 %v2330_v42, %v2329_v40  ;;  %v2319_v42 = vld [vmem:[%s5023_s16 + $0x20] sm:$0xff] }
 0xafd   :  { %2198 = vmatprep.subr.bf16.mxu1 %v1878_v59  ;;  %2266 = vmatprep.subr.bf16.mxu0 %v1936_v21  ;;  %v1661_v56 = vld [vmem:[%s5021_s14 + $0x978] sm:$0xff]  ;;  %v1776_v59 = vpack.c.bf16 %v1421_v53, %v1413_v52  ;;  %v1412_v21 = vld [vmem:[%s5021_s14 + $0x1b0] sm:$0xff] }
 0xafe   :  { %v1896_v63 = vpack.c.bf16 %v1661_v56, %v1653_v55  ;;  %v1597_v52 = vld [vmem:[%s5021_s14 + $0x778] sm:$0xff]  ;;  %v2327_v55 = vld [vmem:[%s5023_s16 + $0x60] sm:$0xff]  ;;  %v2328_v56 = vld [vmem:[%s5023_s16 + $0x68] sm:$0xff] }
 0xaff   :  { %2176 = vmatmul.mubr.bf16.vlgmr.msra.gmra.mxu0 %v3737_v14 }
 0xb00   :  { %2199 = vmatpush1.bf16.msra.mxu1 %v1877_v5  ;;  %2267 = vmatpush1.bf16.msra.mxu0 %v1935_v6  ;;  %v1637_v5 = vld [vmem:[%s5021_s14 + $0x8b8] sm:$0xff] }
 0xb01   :  { %2225 = vmatprep.subr.bf16.mxu1 %v1808_v7  ;;  %2268 = vmatprep.subr.bf16.mxu0 %v1928_v8  ;;  %v1645_v6 = vld [vmem:[%s5021_s14 + $0x8f8] sm:$0xff]  ;;  %v1775_v7 = vpack.c.bf16 %v1420_v60, %v1412_v21  ;;  %v1895_v8 = vpack.c.bf16 %v1660_v2, %v1652_v62  ;;  %v1588_v60 = vld [vmem:[%s5021_s14 + $0x730] sm:$0xff]  ;;  %v2457_v2 = vpack.c.bf16 %v2328_v56, %v2327_v55 }
 0xb02   :  { %2298 = vmatprep.mubr.bf16.mxu0 %v3061_v49  ;;  %v1444_v49 = vld [vmem:[%s5021_s14 + $0x2b0] sm:$0xff]  ;;  %v1888_v16 = vpack.c.bf16 %v1645_v6, %v1637_v5  ;;  %v2326_v5 = vld [vmem:[%s5023_s16 + $0x58] sm:$0xff]  ;;  %v2339_v6 = vld [vmem:[%s5023_s16 + $0xc0] sm:$0xff] }
 0xb03   :  { %2217 = vmatmul.mubr.bf16.vlgmr.msra.gmra.mxu1 %v3774_v11  ;;  %v1791_v43 = vpack.c.bf16 %v1452_v29, %v1444_v49  ;;  %v1879_v49 = vpack.c.bf16 %v1628_v31, %v1620_v28  ;;  %v1752_v29 = vpack.c.bf16 %v1373_v33, %v1365_v32  ;;  %v1596_v62 = vld [vmem:[%s5021_s14 + $0x770] sm:$0xff]  ;;  %v1541_v28 = vld [vmem:[%s5021_s14 + $0x5b8] sm:$0xff] }
 0xb04   :  { %2226 = vmatpush1.bf16.msra.mxu1 %v1807_v20  ;;  %2257 = vmatprep.mubr.bf16.mxu1 %v3739_v54  ;;  %v1692_v54 = vld [vmem:[%s5021_s14 + $0xa70] sm:$0xff]  ;;  %v1621_v20 = vld [vmem:[%s5021_s14 + $0x838] sm:$0xff] }
 0xb05   :  { %2269 = vmatpush1.bf16.msra.mxu0 %v1927_v22  ;;  %2227 = vmatprep.subr.bf16.mxu1 %v1800_v23  ;;  %v1911_v45 = vpack.c.bf16 %v1692_v54, %v1684_v41  ;;  %v1629_v22 = vld [vmem:[%s5021_s14 + $0x878] sm:$0xff]  ;;  %v1767_v23 = vpack.c.bf16 %v1404_v13, %v1396_v12  ;;  %v1364_v41 = vld [vmem:[%s5021_s14 + $0x30] sm:$0xff] }
 0xb06   :  { %2270 = vmatprep.subr.bf16.mxu0 %v1920_v27  ;;  %v1388_v27 = vld [vmem:[%s5021_s14 + $0xf0] sm:$0xff]  ;;  %v1880_v30 = vpack.c.bf16 %v1629_v22, %v1621_v20  ;;  %v1605_v54 = vld [vmem:[%s5021_s14 + $0x7b8] sm:$0xff]  ;;  %v2324_v20 = vld [vmem:[%s5023_s16 + $0x48] sm:$0xff] }
 0xb07   :  { %v1872_v9 = vpack.c.bf16 %v1613_v44, %v1605_v54  ;;  %v1572_v12 = vld [vmem:[%s5021_s14 + $0x6b0] sm:$0xff]  ;;  %v1549_v31 = vld [vmem:[%s5021_s14 + $0x5f8] sm:$0xff] }
 0xb08   :  { %2228 = vmatpush1.bf16.msra.mxu1 %v1799_v34  ;;  %v2345_v34 = vld [vmem:[%s5023_s16 + $0xf0] sm:$0xff]  ;;  %v1525_v54 = vld [vmem:[%s5021_s14 + $0x538] sm:$0xff] }
 0xb09   :  { %2271 = vmatpush1.bf16.msra.mxu0 %v1919_v35  ;;  %2229 = vmatprep.subr.bf16.mxu1 %v1792_v36  ;;  %v2346_v35 = vld [vmem:[%s5023_s16 + $0xf8] sm:$0xff]  ;;  %v1759_v36 = vpack.c.bf16 %v1388_v27, %v1380_v26  ;;  %v1580_v13 = vld [vmem:[%s5021_s14 + $0x6f0] sm:$0xff] }
 0xb0a   :  { %2272 = vmatprep.subr.bf16.mxu0 %v1912_v37  ;;  %v1372_v37 = vld [vmem:[%s5021_s14 + $0x70] sm:$0xff]  ;;  %v2466_v39 = vpack.c.bf16 %v2346_v35, %v2345_v34  ;;  %v2322_v34 = vld [vmem:[%s5023_s16 + $0x38] sm:$0xff]  ;;  %v2335_v35 = vld [vmem:[%s5023_s16 + $0xa0] sm:$0xff] }
 0xb0b   :  { %v2337_v22 = vld [vmem:[%s5023_s16 + $0xb0] sm:$0xff] }
 0xb0c   :  { %2230 = vmatpush1.bf16.msra.mxu1 %v1791_v43  ;;  %v2343_v43 = vld [vmem:[%s5023_s16 + $0xe0] sm:$0xff]  ;;  %v1556_v26 = vld [vmem:[%s5021_s14 + $0x630] sm:$0xff] }
 0xb0d   :  { %2273 = vmatpush1.bf16.msra.mxu0 %v1911_v45  ;;  %2231 = vmatprep.subr.bf16.mxu1 %v1784_v46  ;;  %v2344_v45 = vld [vmem:[%s5023_s16 + $0xe8] sm:$0xff]  ;;  %v1751_v46 = vpack.c.bf16 %v1372_v37, %v1364_v41  ;;  %v1564_v27 = vld [vmem:[%s5021_s14 + $0x670] sm:$0xff] }
 0xb0e   :  { %2274 = vmatprep.subr.bf16.mxu0 %v1904_v47  ;;  %v1589_v47 = vld [vmem:[%s5021_s14 + $0x738] sm:$0xff]  ;;  %v2465_v53 = vpack.c.bf16 %v2344_v45, %v2343_v43  ;;  %v2321_v33 = vld [vmem:[%s5023_s16 + $0x30] sm:$0xff]  ;;  %v2320_v43 = vld [vmem:[%s5023_s16 + $0x28] sm:$0xff] }
 0xb0f   :  { %v1864_v21 = vpack.c.bf16 %v1597_v52, %v1589_v47  ;;  %v1540_v41 = vld [vmem:[%s5021_s14 + $0x5b0] sm:$0xff]  ;;  %v2454_v44 = vpack.c.bf16 %v2322_v34, %v2321_v33  ;;  %v2453_v52 = vpack.c.bf16 %v2320_v43, %v2319_v42  ;;  %v2374_v33 = vld [vmem:[%s5023_s16 + $0x1d8] sm:$0xff] }
 0xb10   :  { %2232 = vmatpush1.bf16.msra.mxu1 %v1783_v57  ;;  %v2341_v57 = vld [vmem:[%s5023_s16 + $0xd0] sm:$0xff] }
 0xb11   :  { %2275 = vmatpush1.bf16.msra.mxu0 %v1903_v58  ;;  %2233 = vmatprep.subr.bf16.mxu1 %v1776_v59  ;;  %v2342_v58 = vld [vmem:[%s5023_s16 + $0xd8] sm:$0xff]  ;;  %v1871_v59 = vpack.c.bf16 %v1612_v50, %v1604_v48  ;;  %v1548_v37 = vld [vmem:[%s5021_s14 + $0x5f0] sm:$0xff] }
 0xb12   :  { %2276 = vmatprep.subr.bf16.mxu0 %v1896_v63  ;;  %v1573_v63 = vld [vmem:[%s5021_s14 + $0x6b8] sm:$0xff]  ;;  %v2464_v3 = vpack.c.bf16 %v2342_v58, %v2341_v57  ;;  %v2333_v45 = vld [vmem:[%s5023_s16 + $0x90] sm:$0xff]  ;;  %v2331_v58 = vld [vmem:[%s5023_s16 + $0x80] sm:$0xff] }
 0xb13   :  { %v1524_v50 = vld [vmem:[%s5021_s14 + $0x530] sm:$0xff]  ;;  %v2318_v57 = vld [vmem:[%s5023_s16 + $0x18] sm:$0xff] }
 0xb14   :  { %2234 = vmatpush1.bf16.msra.mxu1 %v1775_v7  ;;  %v2340_v7 = vld [vmem:[%s5023_s16 + $0xc8] sm:$0xff]  ;;  %v1532_v47 = vld [vmem:[%s5021_s14 + $0x570] sm:$0xff] }
 0xb15   :  { %2277 = vmatpush1.bf16.msra.mxu0 %v1895_v8  ;;  %2235 = vmatprep.subr.bf16.mxu1 %v1768_v10  ;;  %v1863_v8 = vpack.c.bf16 %v1596_v62, %v1588_v60  ;;  %v2463_v18 = vpack.c.bf16 %v2340_v7, %v2339_v6  ;;  %v2317_v56 = vld [vmem:[%s5023_s16 + $0x10] sm:$0xff]  ;;  %v2316_v6 = vld [vmem:[%s5023_s16 + $0x8] sm:$0xff] }
 0xb16   :  { %2278 = vmatprep.subr.bf16.mxu0 %v1888_v16  ;;  %v2456_v16 = vpack.c.bf16 %v2326_v5, %v2325_v4  ;;  %v1508_v62 = vld [vmem:[%s5021_s14 + $0x4b0] sm:$0xff]  ;;  %v2315_v5 = vld [vmem:[%s5023_s16] sm:$0xff] }
 0xb17   :  { %v2409_v7 = vld [vmem:[%s5023_s16 + $0x2f0] sm:$0xff] }
 0xb18   :  { %2236 = vmatpush1.bf16.msra.mxu1 %v1767_v23  ;;  %v2338_v23 = vld [vmem:[%s5023_s16 + $0xb8] sm:$0xff] }
 0xb19   :  { %2279 = vmatpush1.bf16.msra.mxu0 %v1887_v24  ;;  %2237 = vmatprep.subr.bf16.mxu1 %v1760_v25  ;;  %v1855_v24 = vpack.c.bf16 %v1580_v13, %v1572_v12  ;;  %v1848_v25 = vpack.c.bf16 %v1565_v17, %v1557_v15  ;;  %v2462_v32 = vpack.c.bf16 %v2338_v23, %v2337_v22  ;;  %v1492_v13 = vld [vmem:[%s5021_s14 + $0x430] sm:$0xff] }
 0xb1a   :  { %2280 = vmatprep.subr.bf16.mxu0 %v1880_v30  ;;  %v2455_v30 = vpack.c.bf16 %v2324_v20, %v2323_v19  ;;  %v1500_v15 = vld [vmem:[%s5021_s14 + $0x470] sm:$0xff] }
 0xb1b   :  { %v2377_v17 = vld [vmem:[%s5023_s16 + $0x1f0] sm:$0xff]  ;;  %v1815_v20 = vpack.c.bf16 %v1500_v15, %v1492_v13 }
 0xb1c   :  { %2238 = vmatpush1.bf16.msra.mxu1 %v1759_v36  ;;  %v2336_v36 = vld [vmem:[%s5023_s16 + $0xa8] sm:$0xff]  ;;  %v2361_v23 = vld [vmem:[%s5023_s16 + $0x170] sm:$0xff] }
 0xb1d   :  { %2281 = vmatpush1.bf16.msra.mxu0 %v1879_v49  ;;  %2239 = vmatprep.subr.bf16.mxu1 %v1752_v29  ;;  %v1847_v49 = vpack.c.bf16 %v1564_v27, %v1556_v26  ;;  %v1840_v29 = vpack.c.bf16 %v1549_v31, %v1541_v28  ;;  %v2461_v40 = vpack.c.bf16 %v2336_v36, %v2335_v35  ;;  %v2376_v26 = vld [vmem:[%s5023_s16 + $0x1e8] sm:$0xff]  ;;  %v2357_v36 = vld [vmem:[%s5023_s16 + $0x150] sm:$0xff] }
 0xb1e   :  { %2766 = vmatprep.subr.bf16.mxu0 %v2466_v39  ;;  %v1533_v39 = vld [vmem:[%s5021_s14 + $0x578] sm:$0xff]  ;;  %v2360_v31 = vld [vmem:[%s5023_s16 + $0x168] sm:$0xff] }
 0xb1f   :  { %v1832_v48 = vpack.c.bf16 %v1533_v39, %v1525_v54  ;;  %v2355_v54 = vld [vmem:[%s5023_s16 + $0x140] sm:$0xff]  ;;  %v2369_v39 = vld [vmem:[%s5023_s16 + $0x1b0] sm:$0xff] }
 0xb20   :  { %2299 = vmatmul.mubr.bf16.vlgmr.msra.gmra.mxu0 %v3774_v11  ;;  %2240 = vmatpush1.bf16.msra.mxu1 %v1751_v46  ;;  %v1581_v11 = vld [vmem:[%s5021_s14 + $0x6f8] sm:$0xff] }
 0xb21   :  { %2241 = vmatprep.subr.bf16.mxu1 %v1872_v9  ;;  %2767 = vmatpush3.bf16.msra.mxu0 %v2458_v51  ;;  %v1856_v10 = vpack.c.bf16 %v1581_v11, %v1573_v63  ;;  %v2334_v46 = vld [vmem:[%s5023_s16 + $0x98] sm:$0xff]  ;;  %v1839_v9 = vpack.c.bf16 %v1548_v37, %v1540_v41  ;;  %v1516_v63 = vld [vmem:[%s5021_s14 + $0x4f0] sm:$0xff]  ;;  %v2452_v11 = vpack.c.bf16 %v2318_v57, %v2317_v56 }
 0xb22   :  { %2768 = vmatprep.subr.bf16.mxu0 %v2465_v53  ;;  %v1509_v51 = vld [vmem:[%s5021_s14 + $0x4b8] sm:$0xff]  ;;  %v2460_v55 = vpack.c.bf16 %v2334_v46, %v2333_v45  ;;  %v2353_v45 = vld [vmem:[%s5023_s16 + $0x130] sm:$0xff] }
 0xb23   :  { %v1517_v53 = vld [vmem:[%s5021_s14 + $0x4f8] sm:$0xff] }
 0xb24   :  { %2242 = vmatpush2.bf16.msra.mxu1 %v1871_v59  ;;  %v2332_v59 = vld [vmem:[%s5023_s16 + $0x88] sm:$0xff]  ;;  %v1824_v60 = vpack.c.bf16 %v1517_v53, %v1509_v51  ;;  %v2354_v46 = vld [vmem:[%s5023_s16 + $0x138] sm:$0xff]  ;;  %v2351_v51 = vld [vmem:[%s5023_s16 + $0x120] sm:$0xff] }
 0xb25   :  { %2243 = vmatprep.subr.bf16.mxu1 %v1864_v21  ;;  %2769 = vmatpush3.bf16.msra.mxu0 %v2457_v2  ;;  %v1831_v21 = vpack.c.bf16 %v1532_v47, %v1524_v50  ;;  %v1493_v2 = vld [vmem:[%s5021_s14 + $0x438] sm:$0xff]  ;;  %v2459_v4 = vpack.c.bf16 %v2332_v59, %v2331_v58  ;;  %v2470_v50 = vpack.c.bf16 %v2354_v46, %v2353_v45  ;;  %v2365_v53 = vld [vmem:[%s5023_s16 + $0x190] sm:$0xff]  ;;  %v2388_v45 = vld [vmem:[%s5023_s16 + $0x248] sm:$0xff] }
 0xb26   :  { %2770 = vmatprep.subr.bf16.mxu0 %v2464_v3  ;;  %v1501_v3 = vld [vmem:[%s5021_s14 + $0x478] sm:$0xff]  ;;  %v2349_v58 = vld [vmem:[%s5023_s16 + $0x110] sm:$0xff] }
 0xb27   :  { %v1816_v12 = vpack.c.bf16 %v1501_v3, %v1493_v2  ;;  %v2350_v59 = vld [vmem:[%s5023_s16 + $0x118] sm:$0xff]  ;;  %v2348_v3 = vld [vmem:[%s5023_s16 + $0x108] sm:$0xff]  ;;  %v2401_v46 = vld [vmem:[%s5023_s16 + $0x2b0] sm:$0xff] }
 0xb28   :  { %2244 = vmatpush2.bf16.msra.mxu1 %v1863_v8  ;;  %v2410_v8 = vld [vmem:[%s5023_s16 + $0x2f8] sm:$0xff] }
 0xb29   :  { %2245 = vmatprep.subr.bf16.mxu1 %v1856_v10  ;;  %2771 = vmatpush3.bf16.msra.mxu0 %v2456_v16  ;;  %v1823_v10 = vpack.c.bf16 %v1516_v63, %v1508_v62  ;;  %v2451_v16 = vpack.c.bf16 %v2316_v6, %v2315_v5  ;;  %v2498_v19 = vpack.c.bf16 %v2410_v8, %v2409_v7  ;;  %v4793_v63 = vld [vmem:[%s5022_s15] sm:$0xff] }
 0xb2a   :  { %2772 = vmatprep.subr.bf16.mxu0 %v2463_v18  ;;  %v2378_v18 = vld [vmem:[%s5023_s16 + $0x1f8] sm:$0xff]  ;;  %v2468_v62 = vpack.c.bf16 %v2350_v59, %v2349_v58  ;;  %v1946_v6 = vrot.slane %v4793_v63, %v3331_v1  ;;  %v2384_v58 = vld [vmem:[%s5023_s16 + $0x228] sm:$0xff]  ;;  %v2397_v59 = vld [vmem:[%s5023_s16 + $0x290] sm:$0xff] }
 0xb2b   :  { %v2482_v22 = vpack.c.bf16 %v2378_v18, %v2377_v17 }
 0xb2c   :  { %2246 = vmatpush2.bf16.msra.mxu1 %v1855_v24  ;;  %v2362_v24 = vld [vmem:[%s5023_s16 + $0x178] sm:$0xff] }
 0xb2d   :  { %2247 = vmatprep.subr.bf16.mxu1 %v1848_v25  ;;  %2773 = vmatpush3.bf16.msra.mxu0 %v2455_v30  ;;  %v2375_v25 = vld [vmem:[%s5023_s16 + $0x1e0] sm:$0xff]  ;;  %v2474_v27 = vpack.c.bf16 %v2362_v24, %v2361_v23  ;;  %v2393_v23 = vld [vmem:[%s5023_s16 + $0x270] sm:$0xff]  ;;  %v2394_v24 = vld [vmem:[%s5023_s16 + $0x278] sm:$0xff] }
 0xb2e   :  { %2774 = vmatprep.subr.bf16.mxu0 %v2462_v32  ;;  %v2481_v28 = vpack.c.bf16 %v2376_v26, %v2375_v25  ;;  %v2359_v30 = vld [vmem:[%s5023_s16 + $0x160] sm:$0xff]  ;;  %v2373_v32 = vld [vmem:[%s5023_s16 + $0x1d0] sm:$0xff] }
 0xb2f   :  { %v2473_v34 = vpack.c.bf16 %v2360_v31, %v2359_v30  ;;  %v2480_v35 = vpack.c.bf16 %v2374_v33, %v2373_v32  ;;  %v2490_v32 = vpack.c.bf16 %v2394_v24, %v2393_v23 }
 0xb30   :  { %2248 = vmatpush2.bf16.msra.mxu1 %v1847_v49  ;;  %v2358_v49 = vld [vmem:[%s5023_s16 + $0x158] sm:$0xff] }
 0xb31   :  { %2249 = vmatprep.subr.bf16.mxu1 %v1840_v29  ;;  %2775 = vmatpush3.bf16.msra.mxu0 %v2454_v44  ;;  %v2371_v29 = vld [vmem:[%s5023_s16 + $0x1c0] sm:$0xff]  ;;  %v2472_v41 = vpack.c.bf16 %v2358_v49, %v2357_v36  ;;  %v2356_v44 = vld [vmem:[%s5023_s16 + $0x148] sm:$0xff]  ;;  %v2405_v49 = vld [vmem:[%s5023_s16 + $0x2d0] sm:$0xff] }
 0xb32   :  { %2776 = vmatprep.subr.bf16.mxu0 %v2461_v40  ;;  %v2370_v40 = vld [vmem:[%s5023_s16 + $0x1b8] sm:$0xff]  ;;  %v2471_v42 = vpack.c.bf16 %v2356_v44, %v2355_v54  ;;  %v2392_v36 = vld [vmem:[%s5023_s16 + $0x268] sm:$0xff]  ;;  %v2403_v44 = vld [vmem:[%s5023_s16 + $0x2c0] sm:$0xff] }
 0xb33   :  { %v2478_v43 = vpack.c.bf16 %v2370_v40, %v2369_v39  ;;  %v2390_v54 = vld [vmem:[%s5023_s16 + $0x258] sm:$0xff]  ;;  %v2404_v39 = vld [vmem:[%s5023_s16 + $0x2c8] sm:$0xff] }
 0xb34   :  { %2250 = vmatpush2.bf16.msra.mxu1 %v1839_v9  ;;  %v2367_v9 = vld [vmem:[%s5023_s16 + $0x1a0] sm:$0xff] }
 0xb35   :  { %2251 = vmatprep.subr.bf16.mxu1 %v1832_v48  ;;  %2777 = vmatpush3.bf16.msra.mxu0 %v2453_v52  ;;  %v2368_v48 = vld [vmem:[%s5023_s16 + $0x1a8] sm:$0xff] }
 0xb36   :  { %2778 = vmatprep.subr.bf16.mxu0 %v2460_v55  ;;  %v2477_v47 = vpack.c.bf16 %v2368_v48, %v2367_v9  ;;  %v2352_v52 = vld [vmem:[%s5023_s16 + $0x128] sm:$0xff]  ;;  %v2366_v55 = vld [vmem:[%s5023_s16 + $0x198] sm:$0xff] }
 0xb37   :  { %v2469_v56 = vpack.c.bf16 %v2352_v52, %v2351_v51  ;;  %v2476_v57 = vpack.c.bf16 %v2366_v55, %v2365_v53  ;;  %v2402_v9 = vld [vmem:[%s5023_s16 + $0x2b8] sm:$0xff]  ;;  %v2399_v52 = vld [vmem:[%s5023_s16 + $0x2a0] sm:$0xff]  ;;  %v2400_v53 = vld [vmem:[%s5023_s16 + $0x2a8] sm:$0xff] }
 0xb38   :  { %2252 = vmatpush2.bf16.msra.mxu1 %v1831_v21  ;;  %v2363_v21 = vld [vmem:[%s5023_s16 + $0x180] sm:$0xff]  ;;  %v2386_v51 = vld [vmem:[%s5023_s16 + $0x238] sm:$0xff] }
 0xb39   :  { %2253 = vmatprep.subr.bf16.mxu1 %v1824_v60  ;;  %2779 = vmatpush3.bf16.msra.mxu0 %v2452_v11  ;;  %v2364_v60 = vld [vmem:[%s5023_s16 + $0x188] sm:$0xff]  ;;  %v2347_v11 = vld [vmem:[%s5023_s16 + $0x100] sm:$0xff] }
 0xb3a   :  { %2780 = vmatprep.subr.bf16.mxu0 %v2459_v4  ;;  %v2475_v2 = vpack.c.bf16 %v2364_v60, %v2363_v21  ;;  %v1942_v4 = vrot.slane %v4793_v63, %v3191_v0  ;;  %v2467_v5 = vpack.c.bf16 %v2348_v3, %v2347_v11  ;;  %v2441_v0 = vld [vmem:[%s5023_s16 + $0x3f0] sm:$0xff]  ;;  %v2398_v21 = vld [vmem:[%s5023_s16 + $0x298] sm:$0xff] }
 0xb3b   :  { %v2381_v11 = vld [vmem:[%s5023_s16 + $0x210] sm:$0xff]  ;;  %v2382_v3 = vld [vmem:[%s5023_s16 + $0x218] sm:$0xff] }
 0xb3c   :  { %2254 = vmatpush2.bf16.msra.mxu1 %v1823_v10 }
 0xb3d   :  { %2255 = vmatprep.subr.bf16.mxu1 %v1816_v12  ;;  %2781 = vmatpush3.bf16.msra.mxu0 %v2451_v16 }
 0xb3e   :  { %2810 = vmatprep.subr.bf16.mxu0 %v2498_v19 }
 0xb40   :  { %2256 = vmatpush2.bf16.msra.mxu1 %v1815_v20  ;;  %v2442_v20 = vld [vmem:[%s5023_s16 + $0x3f8] sm:$0xff] }
 0xb41   :  { %2788 = vmatprep.subr.bf16.mxu1 %v2482_v22  ;;  %v2514_v25 = vpack.c.bf16 %v2442_v20, %v2441_v0 }
 0xb43   :  { %2258 = vmatmul.mubr.bf16.vlgmr.msra.gmra.mxu1 %v3737_v14  ;;  %v2372_v14 = vld [vmem:[%s5023_s16 + $0x1c8] sm:$0xff] }
 0xb44   :  { %2789 = vmatpush3.bf16.msra.mxu1 %v2474_v27  ;;  %v2479_v37 = vpack.c.bf16 %v2372_v14, %v2371_v29  ;;  %v2407_v27 = vld [vmem:[%s5023_s16 + $0x2e0] sm:$0xff]  ;;  %v2406_v29 = vld [vmem:[%s5023_s16 + $0x2d8] sm:$0xff] }
 0xb45   :  { %2790 = vmatprep.subr.bf16.mxu1 %v2481_v28  ;;  %v2408_v28 = vld [vmem:[%s5023_s16 + $0x2e8] sm:$0xff] }
 0xb48   :  { %2791 = vmatpush3.bf16.msra.mxu1 %v2473_v34  ;;  %v2497_v34 = vpack.c.bf16 %v2408_v28, %v2407_v27  ;;  %v2425_v28 = vld [vmem:[%s5023_s16 + $0x370] sm:$0xff] }
 0xb49   :  { %2792 = vmatprep.subr.bf16.mxu1 %v2480_v35  ;;  %v2391_v35 = vld [vmem:[%s5023_s16 + $0x260] sm:$0xff] }
 0xb4a   :  { %v2489_v14 = vpack.c.bf16 %v2392_v36, %v2391_v35 }
 0xb4c   :  { %2793 = vmatpush3.bf16.msra.mxu1 %v2472_v41  ;;  %v2496_v41 = vpack.c.bf16 %v2406_v29, %v2405_v49  ;;  %v2423_v49 = vld [vmem:[%s5023_s16 + $0x360] sm:$0xff]  ;;  %v2424_v29 = vld [vmem:[%s5023_s16 + $0x368] sm:$0xff] }
 0xb4d   :  { %2794 = vmatprep.subr.bf16.mxu1 %v2479_v37  ;;  %v2389_v37 = vld [vmem:[%s5023_s16 + $0x250] sm:$0xff] }
 0xb4e   :  { %v2488_v40 = vpack.c.bf16 %v2390_v54, %v2389_v37  ;;  %v2505_v37 = vpack.c.bf16 %v2424_v29, %v2423_v49  ;;  %v1965_v29 = vsub.s32 6, %v3188_v61 }
 0xb50   :  { %2795 = vmatpush3.bf16.msra.mxu1 %v2471_v42  ;;  %v2495_v42 = vpack.c.bf16 %v2404_v39, %v2403_v44  ;;  %v2421_v44 = vld [vmem:[%s5023_s16 + $0x350] sm:$0xff]  ;;  %v2422_v39 = vld [vmem:[%s5023_s16 + $0x358] sm:$0xff] }
 0xb51   :  { %2796 = vmatprep.subr.bf16.mxu1 %v2478_v43  ;;  %v2387_v43 = vld [vmem:[%s5023_s16 + $0x240] sm:$0xff] }
 0xb52   :  { %v2487_v48 = vpack.c.bf16 %v2388_v45, %v2387_v43  ;;  %v2504_v43 = vpack.c.bf16 %v2422_v39, %v2421_v44 }
 0xb54   :  { %2797 = vmatpush3.bf16.msra.mxu1 %v2470_v50  ;;  %v2494_v50 = vpack.c.bf16 %v2402_v9, %v2401_v46  ;;  %v2419_v46 = vld [vmem:[%s5023_s16 + $0x340] sm:$0xff]  ;;  %v2420_v9 = vld [vmem:[%s5023_s16 + $0x348] sm:$0xff] }
 0xb55   :  { %2798 = vmatprep.subr.bf16.mxu1 %v2477_v47  ;;  %v2385_v47 = vld [vmem:[%s5023_s16 + $0x230] sm:$0xff] }
 0xb56   :  { %v2486_v55 = vpack.c.bf16 %v2386_v51, %v2385_v47  ;;  %v2503_v47 = vpack.c.bf16 %v2420_v9, %v2419_v46 }
 0xb58   :  { %2799 = vmatpush3.bf16.msra.mxu1 %v2469_v56  ;;  %v2493_v56 = vpack.c.bf16 %v2400_v53, %v2399_v52  ;;  %v2417_v52 = vld [vmem:[%s5023_s16 + $0x330] sm:$0xff]  ;;  %v2418_v53 = vld [vmem:[%s5023_s16 + $0x338] sm:$0xff] }
 0xb59   :  { %2800 = vmatprep.subr.bf16.mxu1 %v2476_v57  ;;  %v2383_v57 = vld [vmem:[%s5023_s16 + $0x220] sm:$0xff] }
 0xb5a   :  { %v2485_v60 = vpack.c.bf16 %v2384_v58, %v2383_v57  ;;  %v2432_v57 = vld [vmem:[%s5023_s16 + $0x3a8] sm:$0xff]  ;;  %v1961_v58 = vsub.s32 5, %v3188_v61 }
 0xb5c   :  { %2801 = vmatpush3.bf16.msra.mxu1 %v2468_v62 }
 0xb5d   :  { %2802 = vmatprep.subr.bf16.mxu1 %v2475_v2  ;;  %v2492_v2 = vpack.c.bf16 %v2398_v21, %v2397_v59  ;;  %v2502_v59 = vpack.c.bf16 %v2418_v53, %v2417_v52 }
 0xb5f   :  { %v2013_v7 = vpop.f32.mrf.mxu0 }
 0xb60   :  { %v2014_v8 = vadd.f32 %v2013_v7, %v1942_v4  ;;  %2803 = vmatpush3.bf16.msra.mxu1 %v2467_v5  ;;  %v2395_v4 = vld [vmem:[%s5023_s16 + $0x280] sm:$0xff]  ;;  %v2396_v5 = vld [vmem:[%s5023_s16 + $0x288] sm:$0xff]  ;;  %v2484_v7 = vpack.c.bf16 %v2382_v3, %v2381_v11  ;;  %v2429_v11 = vld [vmem:[%s5023_s16 + $0x390] sm:$0xff] }
 0xb61   :  { %v2015_v10 = vpop.f32.mrf.mxu0  ;;  %2832 = vmatprep.subr.bf16.mxu1 %v2514_v25  ;;  %v2430_v3 = vld [vmem:[%s5023_s16 + $0x398] sm:$0xff] }
 0xb62   :  { %v2016_v12 = vadd.f32 %v2015_v10, %v1946_v6  ;;  %v2491_v10 = vpack.c.bf16 %v2396_v5, %v2395_v4  ;;  %v1962_v5 = vrot.slane %v4793_v63, %v1961_v58 }
 0xb63   :  { %v2054_v13 = vpop.f32.mrf.mxu1  ;;  %v2017_v15 = vpop.f32.mrf.mxu0 }
 0xb64   :  { %v2055_v16 = vadd.f32 %v2054_v13, %v2014_v8  ;;  %v2380_v13 = vld [vmem:[%s5023_s16 + $0x208] sm:$0xff] }
 0xb65   :  { %v2056_v17 = vpop.f32.mrf.mxu1  ;;  %v2018_v18 = vpop.f32.mrf.mxu0 }
 0xb66   :  { %v2057_v19 = vadd.f32 %v2056_v17, %v2016_v12  ;;  %v2307_v1 = vmax.f32 %v2055_v16, 0.0  ;;  %v2379_v12 = vld [vmem:[%s5023_s16 + $0x200] sm:$0xff]  ;;  %v1953_v17 = vsub.s32 3, %v3188_v61  ;;  %v1950_v18 = vrot.slane %v4793_v63, %v1129_v38 }
 0xb67   :  { %v2058_v22 = vpop.f32.mrf.mxu1  ;;  %v2483_v16 = vpack.c.bf16 %v2380_v13, %v2379_v12  ;;  %v2414_v12 = vld [vmem:[%s5023_s16 + $0x318] sm:$0xff] }
 0xb68   :  { %v2308_v26 = vmax.f32 %v2057_v19, 0.0  ;;  %v2443_v33 = vpack.c.bf16 %v2307_v1, %v2307_v1  ;;  %v1954_v19 = vrot.slane %v4793_v63, %v1953_v17 }
 0xb69   :  { %v2059_v30 = vpop.f32.mrf.mxu1 }
 0xb6a   :  { %v2444_v31 = vpack.c.bf16 %v2308_v26, %v2308_v26  ;;  %v2426_v30 = vld [vmem:[%s5023_s16 + $0x378] sm:$0xff] }
 0xb6c   :  { %2554 = vmatprep.mubr.bf16.mxu0 %v2444_v31  ;;  %v2439_v31 = vld [vmem:[%s5023_s16 + $0x3e0] sm:$0xff] }
 0xb6d   :  { %2555 = vmatmul.mubr.bf16.vlgmr.msra.gmra.mxu0 %v2443_v33 }
 0xb6e   :  { %2811 = vmatpush3.bf16.msra.mxu0 %v2490_v32  ;;  %v2440_v32 = vld [vmem:[%s5023_s16 + $0x3e8] sm:$0xff] }
 0xb6f   :  { %2812 = vmatprep.subr.bf16.mxu0 %v2497_v34  ;;  %v2506_v34 = vpack.c.bf16 %v2426_v30, %v2425_v28  ;;  %v2513_v36 = vpack.c.bf16 %v2440_v32, %v2439_v31 }
 0xb72   :  { %2813 = vmatpush3.bf16.msra.mxu0 %v2489_v14  ;;  %v2437_v14 = vld [vmem:[%s5023_s16 + $0x3d0] sm:$0xff] }
 0xb73   :  { %2814 = vmatprep.subr.bf16.mxu0 %v2496_v41  ;;  %v2438_v41 = vld [vmem:[%s5023_s16 + $0x3d8] sm:$0xff] }
 0xb74   :  { %v2512_v54 = vpack.c.bf16 %v2438_v41, %v2437_v14  ;;  %v1969_v14 = vsub.s32 7, %v3188_v61  ;;  %v1966_v41 = vrot.slane %v4793_v63, %v1965_v29 }
 0xb76   :  { %2815 = vmatpush3.bf16.msra.mxu0 %v2488_v40  ;;  %v2435_v40 = vld [vmem:[%s5023_s16 + $0x3c0] sm:$0xff] }
 0xb77   :  { %2816 = vmatprep.subr.bf16.mxu0 %v2495_v42  ;;  %v2436_v42 = vld [vmem:[%s5023_s16 + $0x3c8] sm:$0xff] }
 0xb78   :  { %v2511_v45 = vpack.c.bf16 %v2436_v42, %v2435_v40 }
 0xb7a   :  { %2817 = vmatpush3.bf16.msra.mxu0 %v2487_v48  ;;  %v2433_v48 = vld [vmem:[%s5023_s16 + $0x3b0] sm:$0xff] }
 0xb7b   :  { %2818 = vmatprep.subr.bf16.mxu0 %v2494_v50  ;;  %v2434_v50 = vld [vmem:[%s5023_s16 + $0x3b8] sm:$0xff] }
 0xb7c   :  { %v2510_v51 = vpack.c.bf16 %v2434_v50, %v2433_v48 }
 0xb7e   :  { %2819 = vmatpush3.bf16.msra.mxu0 %v2486_v55  ;;  %v1957_v55 = vsub.s32 4, %v3188_v61 }
 0xb7f   :  { %v2136_v62 = vpop.f32.mrf.mxu0  ;;  %2820 = vmatprep.subr.bf16.mxu0 %v2493_v56  ;;  %v2431_v56 = vld [vmem:[%s5023_s16 + $0x3a0] sm:$0xff] }
 0xb80   :  { %v2509_v21 = vpack.c.bf16 %v2432_v57, %v2431_v56 }
 0xb81   :  { %v2138_v6 = vpop.f32.mrf.mxu0 }
 0xb82   :  { %2821 = vmatpush3.bf16.msra.mxu0 %v2485_v60  ;;  %v2415_v60 = vld [vmem:[%s5023_s16 + $0x320] sm:$0xff] }
 0xb83   :  { %v2140_v8 = vpop.f32.mrf.mxu0  ;;  %2822 = vmatprep.subr.bf16.mxu0 %v2492_v2  ;;  %v1958_v2 = vrot.slane %v4793_v63, %v1957_v55 }
 0xb84   :  { %v2508_v8 = vpack.c.bf16 %v2430_v3, %v2429_v11 }
 0xb85   :  { %v2141_v15 = vpop.f32.mrf.mxu0 }
 0xb86   :  { %2823 = vmatpush3.bf16.msra.mxu0 %v2484_v7  ;;  %v2427_v15 = vld [vmem:[%s5023_s16 + $0x380] sm:$0xff] }
 0xb87   :  { %2824 = vmatprep.subr.bf16.mxu0 %v2491_v10  ;;  %v2413_v10 = vld [vmem:[%s5023_s16 + $0x310] sm:$0xff] }
 0xb8a   :  { %2825 = vmatpush3.bf16.msra.mxu0 %v2483_v16  ;;  %v2428_v16 = vld [vmem:[%s5023_s16 + $0x388] sm:$0xff] }
 0xba3   :  { %v2095_v0 = vpop.f32.mrf.mxu1 }
 0xba4   :  { %v2096_v20 = vadd.f32 %v2095_v0, %v1950_v18 }
 0xba5   :  { %v2097_v1 = vpop.f32.mrf.mxu1 }
 0xba6   :  { %v2137_v22 = vadd.f32 %v2136_v62, %v2096_v20  ;;  %v2098_v23 = vadd.f32 %v2097_v1, %v1954_v19  ;;  %v2416_v62 = vld [vmem:[%s5023_s16 + $0x328] sm:$0xff]  ;;  %v2500_v20 = vpack.c.bf16 %v2414_v12, %v2413_v10 }
 0xba7   :  { %v2099_v24 = vpop.f32.mrf.mxu1 }
 0xba8   :  { %v2139_v25 = vadd.f32 %v2138_v6, %v2098_v23  ;;  %v2309_v26 = vmax.f32 %v2137_v22, 0.0  ;;  %v2501_v6 = vpack.c.bf16 %v2416_v62, %v2415_v60  ;;  %v2507_v23 = vpack.c.bf16 %v2428_v16, %v2427_v15  ;;  %v2411_v24 = vld [vmem:[%s5023_s16 + $0x300] sm:$0xff] }
 0xba9   :  { %v2100_v27 = vpop.f32.mrf.mxu1 }
 0xbaa   :  { %v2310_v38 = vmax.f32 %v2139_v25, 0.0  ;;  %v2445_v35 = vpack.c.bf16 %v2309_v26, %v2309_v26  ;;  %v2412_v25 = vld [vmem:[%s5023_s16 + $0x308] sm:$0xff] }
 0xbac   :  { %v2446_v33 = vpack.c.bf16 %v2310_v38, %v2310_v38  ;;  %v2499_v38 = vpack.c.bf16 %v2412_v25, %v2411_v24 }
 0xbae   :  { %2594 = vmatprep.mubr.bf16.mxu1 %v2446_v33 }
 0xbaf   :  { %2595 = vmatmul.mubr.bf16.vlgmr.msra.gmra.mxu1 %v2445_v35 }
 0xbb0   :  { %2833 = vmatpush3.bf16.msra.mxu1 %v2506_v34 }
 0xbb1   :  { %2834 = vmatprep.subr.bf16.mxu1 %v2513_v36 }
 0xbb4   :  { %2835 = vmatpush3.bf16.msra.mxu1 %v2505_v37  ;;  %v1970_v37 = vrot.slane %v4793_v63, %v1969_v14  ;;  %v2712_v63 = vld [vmem:[#allocation7] ss:$0 sm:$0xff] }
 0xbb5   :  { %2836 = vmatprep.subr.bf16.mxu1 %v2512_v54 }
 0xbb8   :  { %2837 = vmatpush3.bf16.msra.mxu1 %v2504_v43 }
 0xbb9   :  { %2838 = vmatprep.subr.bf16.mxu1 %v2511_v45 }
 0xbbc   :  { %2839 = vmatpush3.bf16.msra.mxu1 %v2503_v47 }
 0xbbd   :  { %2840 = vmatprep.subr.bf16.mxu1 %v2510_v51 }
 0xbbf   :  { %v2177_v4 = vpop.f32.mrf.mxu0 }
 0xbc0   :  { %2841 = vmatpush3.bf16.msra.mxu1 %v2502_v59  ;;  %v2178_v13 = vadd.f32 %v2177_v4, %v1958_v2 }
 0xbc1   :  { %v2179_v7 = vpop.f32.mrf.mxu0  ;;  %2842 = vmatprep.subr.bf16.mxu1 %v2509_v21 }
 0xbc2   :  { %v2180_v19 = vadd.f32 %v2179_v7, %v1962_v5 }
 0xbc3   :  { %v2181_v17 = vpop.f32.mrf.mxu0  ;;  %v2218_v18 = vpop.f32.mrf.mxu1 }
 0xbc4   :  { %v2219_v0 = vadd.f32 %v2218_v18, %v2178_v13  ;;  %2843 = vmatpush3.bf16.msra.mxu1 %v2501_v6 }
 0xbc5   :  { %v2182_v1 = vpop.f32.mrf.mxu0  ;;  %v2220_v22 = vpop.f32.mrf.mxu1  ;;  %2844 = vmatprep.subr.bf16.mxu1 %v2508_v8 }
 0xbc6   :  { %v2221_v26 = vadd.f32 %v2220_v22, %v2180_v19  ;;  %v2311_v27 = vmax.f32 %v2219_v0, 0.0 }
 0xbc7   :  { %v2222_v28 = vpop.f32.mrf.mxu1 }
 0xbc8   :  { %v2312_v30 = vmax.f32 %v2221_v26, 0.0  ;;  %2845 = vmatpush3.bf16.msra.mxu1 %v2500_v20  ;;  %v2447_v33 = vpack.c.bf16 %v2311_v27, %v2311_v27 }
 0xbc9   :  { %v2223_v31 = vpop.f32.mrf.mxu1  ;;  %2846 = vmatprep.subr.bf16.mxu1 %v2507_v23 }
 0xbca   :  { %v2448_v32 = vpack.c.bf16 %v2312_v30, %v2312_v30 }
 0xbcc   :  { %2634 = vmatprep.mubr.bf16.mxu0 %v2448_v32  ;;  %2847 = vmatpush3.bf16.msra.mxu1 %v2499_v38 }
 0xbcd   :  { %2635 = vmatmul.mubr.bf16.vlgmr.msra.gmra.mxu0 %v2447_v33 }
 0xbe0   :  { %v2300_v34 = vpop.f32.mrf.mxu0 }
 0xbe2   :  { %v2302_v35 = vpop.f32.mrf.mxu0 }
 0xbe4   :  { %v2304_v36 = vpop.f32.mrf.mxu0 }
 0xbe6   :  { %v2305_v49 = vpop.f32.mrf.mxu0 }
 0xc03   :  { %v2259_v54 = vpop.f32.mrf.mxu1 }
 0xc04   :  { %v2260_v44 = vadd.f32 %v2259_v54, %v1966_v41 }
 0xc05   :  { %v2261_v39 = vpop.f32.mrf.mxu1 }
 0xc06   :  { %v2301_v40 = vadd.f32 %v2300_v34, %v2260_v44  ;;  %v2262_v42 = vadd.f32 %v2261_v39, %v1970_v37 }
 0xc07   :  { %v2263_v43 = vpop.f32.mrf.mxu1 }
 0xc08   :  { %v2303_v45 = vadd.f32 %v2302_v35, %v2262_v42  ;;  %v2313_v46 = vmax.f32 %v2301_v40, 0.0 }
 0xc09   :  { %v2264_v9 = vpop.f32.mrf.mxu1 }
 0xc0a   :  { %v2314_v48 = vmax.f32 %v2303_v45, 0.0  ;;  %v2449_v47 = vpack.c.bf16 %v2313_v46, %v2313_v46 }
 0xc0c   :  { %v2450_v50 = vpack.c.bf16 %v2314_v48, %v2314_v48 }
 0xc0e   :  { %2674 = vmatprep.mubr.bf16.mxu1 %v2450_v50 }
 0xc0f   :  { %2675 = vmatmul.mubr.bf16.vlgmr.msra.gmra.mxu1 %v2449_v47 }
 0xc2d   :  { %v2782_v51 = vpop.f32.mrf.mxu0 }
 0xc2f   :  { %v2783_v61 = vpop.f32.mrf.mxu0 }
 0xc30   :  { %v2784_v52 = vadd.f32 %v2783_v61, %v2782_v51 }
 0xc31   :  { %v2785_v53 = vpop.f32.mrf.mxu0 }
 0xc32   :  { %v2557_v58 = vadd.f32 %v2784_v52, %v2712_v63 }
 0xc33   :  { %v2786_v55 = vpop.f32.mrf.mxu0 }
 0xc6f   :  { %v2804_v56 = vpop.f32.mrf.mxu1 }
 0xc71   :  { %v2805_v57 = vpop.f32.mrf.mxu1 }
 0xc72   :  { %v2806_v59 = vadd.f32 %v2805_v57, %v2804_v56 }
 0xc73   :  { %v2807_v21 = vpop.f32.mrf.mxu1 }
 0xc74   :  { %v2597_v60 = vadd.f32 %v2806_v59, %v2557_v58 }
 0xc75   :  { %v2808_v62 = vpop.f32.mrf.mxu1 }
 0xc8d   :  { %v2826_v2 = vpop.f32.mrf.mxu0 }
 0xc8f   :  { %v2827_v11 = vpop.f32.mrf.mxu0 }
 0xc90   :  { %v2828_v3 = vadd.f32 %v2827_v11, %v2826_v2 }
 0xc91   :  { %v2829_v4 = vpop.f32.mrf.mxu0 }
 0xc92   :  { %v2637_v5 = vadd.f32 %v2828_v3, %v2597_v60 }
 0xc93   :  { %v2830_v6 = vpop.f32.mrf.mxu0 }
 0xccf   :  { %v2848_v7 = vpop.f32.mrf.mxu1 }
 0xcd1   :  { %v2849_v8 = vpop.f32.mrf.mxu1 }
 0xcd2   :  { %v2850_v10 = vadd.f32 %v2849_v8, %v2848_v7 }
 0xcd3   :  { %v2851_v12 = vpop.f32.mrf.mxu1 }
 0xcd4   :  { %v2677_v13 = vadd.f32 %v2850_v10, %v2637_v5 }
 0xcd5   :  { %v2852_v15 = vpop.f32.mrf.mxu1 }
 0xcd6   :  { %2682 = vst [vmem:[%s5025_s18] sm:$0x3] %v2677_v13 }
 0xcd7   :  { %2687 = vsyncpa [#allocation3], 1 }
 0xcd8   :  { %2688 = vsyncpa [#allocation5], 1 }
 0xcd9   :  { %2689 = vsyncpa [#allocation8], 1 }

// kernel: supergat_gcn_forward.5
= control target key start
LH: loop header
LB: loop body
LE: loop exit
PB: predicated region body
PF: predicated region fallthrough
CT: control target
= control target key end

     0   :  { %14 = vsyncpa [#allocation3], 0  ;;  %s4755_s0 = inlined_call_operand.vmem [shape: f32[2,128], index: 0, kind: input, shape index: {}]   ;;  %s4756_s1 = inlined_call_operand.vmem [shape: f32[2,128], index: 1, kind: input, shape index: {}]   ;;  %s4757_s2 = inlined_call_operand.vmem [shape: f32[128,1024], index: 2, kind: input, shape index: {}]   ;;  %s4758_s3 = inlined_call_operand.vmem [shape: f32[128,1024], index: 3, kind: input, shape index: {}]   ;;  %s4759_s4 = inlined_call_operand.vmem [shape: f32[1,1024], index: 4, kind: input, shape index: {}]   ;;  %s4760_s5 = inlined_call_operand.vmem [shape: f32[1024,512], index: 5, kind: input, shape index: {}]   ;;  %s4761_s6 = inlined_call_operand.vmem [shape: f32[1,512], index: 6, kind: input, shape index: {}]   ;;  %s4762_s7 = inlined_call_operand.hbm [shape: f32[512,128], index: 7, kind: input, shape index: {}]   ;;  %s4763_s8 = inlined_call_operand.hbm [shape: f32[1,128], index: 8, kind: input, shape index: {}]   ;;  %s4764_s9 = inlined_call_operand.vmem [shape: f32[2,128], index: 9, kind: output, shape index: {}]  }
   0x1   :  { %15 = vsyncpa [#allocation5], 0  ;;  %s2251_s30 = smov [#allocation2]  }
   0x2   :  { %s35_s10 = sshll.u32 %s2251_s30, 4  ;;  %s36_s10 = int_to_ptr.vmem [resolvable:$true] %s35_s10 }
   0x3   :  { %s2215_s11 = scalar_lea.vmem %s36_s10, 8192  ;;  %p2220_p1 = scmp.lt.s32.totalorder %s36_s10, %s36_s10 }
   0x4   :  { %p2216_p0 = scmp.ne.s32.totalorder %s36_s10, %s2215_s11  ;;  %p2221_p2 = scmp.lt.s32.totalorder %s2215_s11, %s2215_s11 }
   0x6   :  { %p2222_p3 = por %p2221_p2, %p2220_p1 }
   0x8   :  { %p2223_p4 = pnand %p2222_p3, %p2216_p0 }
   0xa   :  { %2226 = shalt.err (!%p2223_p4)
}
   0xb   :  { %s2252_s12 = smov 128   ;;  %s2253_s13 = smov 8  }
   0xc   :  { %41 = dma.hbm_to_vmem [thread:$0]  %s4762_s7, 8192, %s36_s10, [#allocation3], %s2252_s12, %s2252_s12, %s2253_s13  }
   0xd   :  { %s2254_s16 = smov [#allocation4]  }
   0xe   :  { %s48_s17 = sshll.u32 %s2254_s16, 4  ;;  %s49_s17 = int_to_ptr.vmem [resolvable:$true] %s48_s17 }
   0xf   :  { %s2235_s18 = scalar_lea.vmem %s49_s17, 16  ;;  %s2239_s19 = scalar_lea.vmem %s49_s17, 32 }
  0x10   :  { %p2236_p5 = scmp.ne.s32.totalorder %s49_s17, %s2235_s18  ;;  %p2240_p6 = scmp.lt.s32.totalorder %s49_s17, %s49_s17 }
  0x11   :  { %p2241_p7 = scmp.lt.s32.totalorder %s2239_s19, %s2235_s18 }
  0x13   :  { %p2242_p8 = por %p2241_p7, %p2240_p6 }
  0x15   :  { %p2243_p9 = pnand %p2242_p8, %p2236_p5 }
  0x17   :  { %2246 = shalt.err (!%p2243_p9)
}
  0x18   :  { %51 = dma.hbm_to_vmem [thread:$0]  %s4763_s8, 16, %s49_s17, [#allocation5]  }
  0x19   :  { %2247 = dma.done.wait [#allocation3], 8192  }
  0x1a   :  { %2248 = vsyncadd [#allocation3], 4294959104 }
  0x1b   :  { %2249 = dma.done.wait [#allocation5], 16  }
  0x1c   :  { %2250 = vsyncadd [#allocation5], 4294967280  ;;  %v2255_v0 = vmov 0   ;;  %v367_v1 = vld [vmem:[%s4758_s3 + $0x388] sm:$0xff]  ;;  %v369_v3 = vld [vmem:[%s4758_s3 + $0x398] sm:$0xff] }
  0x1d   :  { %479 = vmatprep.mubr.bf16.mxu0 %v2255_v0  ;;  %520 = vmatprep.mubr.bf16.mxu1 %v2255_v0  ;;  %v375_v2 = vld [vmem:[%s4758_s3 + $0x3c8] sm:$0xff]  ;;  %v377_v5 = vld [vmem:[%s4758_s3 + $0x3d8] sm:$0xff]  ;;  %v366_v6 = vld [vmem:[%s4758_s3 + $0x380] sm:$0xff] }
  0x1e   :  { %v440_v4 = vpack.c.bf16 %v375_v2, %v367_v1  ;;  %v374_v7 = vld [vmem:[%s4758_s3 + $0x3c0] sm:$0xff]  ;;  %v442_v8 = vpack.c.bf16 %v377_v5, %v369_v3  ;;  %v368_v10 = vld [vmem:[%s4758_s3 + $0x390] sm:$0xff]  ;;  %v351_v12 = vld [vmem:[%s4758_s3 + $0x308] sm:$0xff] }
  0x1f   :  { %v439_v9 = vpack.c.bf16 %v374_v7, %v366_v6  ;;  %v376_v11 = vld [vmem:[%s4758_s3 + $0x3d0] sm:$0xff]  ;;  %v359_v14 = vld [vmem:[%s4758_s3 + $0x348] sm:$0xff]  ;;  %v353_v15 = vld [vmem:[%s4758_s3 + $0x318] sm:$0xff] }
  0x20   :  { %447 = vmatprep.subr.bf16.mxu0 %v440_v4  ;;  %v441_v13 = vpack.c.bf16 %v376_v11, %v368_v10  ;;  %v361_v16 = vld [vmem:[%s4758_s3 + $0x358] sm:$0xff]  ;;  %488 = vmatprep.subr.bf16.mxu1 %v442_v8  ;;  %v432_v17 = vpack.c.bf16 %v359_v14, %v351_v12  ;;  %v350_v19 = vld [vmem:[%s4758_s3 + $0x300] sm:$0xff]  ;;  %v352_v21 = vld [vmem:[%s4758_s3 + $0x310] sm:$0xff] }
  0x21   :  { %448 = vmatpush1.bf16.msra.mxu0 %v439_v9  ;;  %v434_v18 = vpack.c.bf16 %v361_v16, %v353_v15  ;;  %v358_v20 = vld [vmem:[%s4758_s3 + $0x340] sm:$0xff]  ;;  %v360_v23 = vld [vmem:[%s4758_s3 + $0x350] sm:$0xff]  ;;  %v335_v24 = vld [vmem:[%s4758_s3 + $0x288] sm:$0xff] }
  0x22   :  { %489 = vmatpush1.bf16.msra.mxu1 %v441_v13  ;;  %v431_v22 = vpack.c.bf16 %v358_v20, %v350_v19  ;;  %v343_v25 = vld [vmem:[%s4758_s3 + $0x2c8] sm:$0xff]  ;;  %449 = vmatprep.subr.bf16.mxu0 %v432_v17  ;;  %v433_v26 = vpack.c.bf16 %v360_v23, %v352_v21  ;;  %v337_v28 = vld [vmem:[%s4758_s3 + $0x298] sm:$0xff]  ;;  %v334_v30 = vld [vmem:[%s4758_s3 + $0x280] sm:$0xff] }
  0x23   :  { %490 = vmatprep.subr.bf16.mxu1 %v434_v18  ;;  %v424_v27 = vpack.c.bf16 %v343_v25, %v335_v24  ;;  %v345_v29 = vld [vmem:[%s4758_s3 + $0x2d8] sm:$0xff]  ;;  %v342_v32 = vld [vmem:[%s4758_s3 + $0x2c0] sm:$0xff]  ;;  %v336_v33 = vld [vmem:[%s4758_s3 + $0x290] sm:$0xff] }
  0x24   :  { %v426_v31 = vpack.c.bf16 %v345_v29, %v337_v28  ;;  %v344_v34 = vld [vmem:[%s4758_s3 + $0x2d0] sm:$0xff]  ;;  %v423_v35 = vpack.c.bf16 %v342_v32, %v334_v30  ;;  %v319_v36 = vld [vmem:[%s4758_s3 + $0x208] sm:$0xff]  ;;  %v321_v38 = vld [vmem:[%s4758_s3 + $0x218] sm:$0xff] }
  0x25   :  { %450 = vmatpush1.bf16.msra.mxu0 %v431_v22  ;;  %v327_v37 = vld [vmem:[%s4758_s3 + $0x248] sm:$0xff]  ;;  %v425_v39 = vpack.c.bf16 %v344_v34, %v336_v33  ;;  %v329_v41 = vld [vmem:[%s4758_s3 + $0x258] sm:$0xff]  ;;  %v318_v42 = vld [vmem:[%s4758_s3 + $0x200] sm:$0xff] }
  0x26   :  { %491 = vmatpush1.bf16.msra.mxu1 %v433_v26  ;;  %451 = vmatprep.subr.bf16.mxu0 %v424_v27  ;;  %v416_v40 = vpack.c.bf16 %v327_v37, %v319_v36  ;;  %v326_v43 = vld [vmem:[%s4758_s3 + $0x240] sm:$0xff]  ;;  %v418_v44 = vpack.c.bf16 %v329_v41, %v321_v38  ;;  %v320_v45 = vld [vmem:[%s4758_s3 + $0x210] sm:$0xff]  ;;  %v303_v47 = vld [vmem:[%s4758_s3 + $0x188] sm:$0xff] }
  0x27   :  { %492 = vmatprep.subr.bf16.mxu1 %v426_v31  ;;  %v328_v46 = vld [vmem:[%s4758_s3 + $0x250] sm:$0xff]  ;;  %v311_v48 = vld [vmem:[%s4758_s3 + $0x1c8] sm:$0xff]  ;;  %v305_v49 = vld [vmem:[%s4758_s3 + $0x198] sm:$0xff]  ;;  %v415_v51 = vpack.c.bf16 %v326_v43, %v318_v42 }
  0x28   :  { %v313_v50 = vld [vmem:[%s4758_s3 + $0x1d8] sm:$0xff]  ;;  %v417_v52 = vpack.c.bf16 %v328_v46, %v320_v45  ;;  %v408_v53 = vpack.c.bf16 %v311_v48, %v303_v47  ;;  %v302_v54 = vld [vmem:[%s4758_s3 + $0x180] sm:$0xff]  ;;  %v304_v56 = vld [vmem:[%s4758_s3 + $0x190] sm:$0xff] }
  0x29   :  { %452 = vmatpush1.bf16.msra.mxu0 %v423_v35  ;;  %v310_v55 = vld [vmem:[%s4758_s3 + $0x1c0] sm:$0xff]  ;;  %v410_v57 = vpack.c.bf16 %v313_v50, %v305_v49  ;;  %v312_v58 = vld [vmem:[%s4758_s3 + $0x1d0] sm:$0xff]  ;;  %v287_v59 = vld [vmem:[%s4758_s3 + $0x108] sm:$0xff] }
  0x2a   :  { %493 = vmatpush1.bf16.msra.mxu1 %v425_v39  ;;  %453 = vmatprep.subr.bf16.mxu0 %v416_v40  ;;  %v295_v60 = vld [vmem:[%s4758_s3 + $0x148] sm:$0xff]  ;;  %v289_v61 = vld [vmem:[%s4758_s3 + $0x118] sm:$0xff]  ;;  %v407_v63 = vpack.c.bf16 %v310_v55, %v302_v54  ;;  %v409_v1 = vpack.c.bf16 %v312_v58, %v304_v56  ;;  %v286_v3 = vld [vmem:[%s4758_s3 + $0x100] sm:$0xff] }
  0x2b   :  { %494 = vmatprep.subr.bf16.mxu1 %v418_v44  ;;  %v297_v62 = vld [vmem:[%s4758_s3 + $0x158] sm:$0xff]  ;;  %v400_v2 = vpack.c.bf16 %v295_v60, %v287_v59  ;;  %v294_v4 = vld [vmem:[%s4758_s3 + $0x140] sm:$0xff]  ;;  %v288_v5 = vld [vmem:[%s4758_s3 + $0x110] sm:$0xff] }
  0x2c   :  { %v402_v6 = vpack.c.bf16 %v297_v62, %v289_v61  ;;  %v296_v7 = vld [vmem:[%s4758_s3 + $0x150] sm:$0xff]  ;;  %v271_v8 = vld [vmem:[%s4758_s3 + $0x88] sm:$0xff]  ;;  %v273_v10 = vld [vmem:[%s4758_s3 + $0x98] sm:$0xff]  ;;  %v399_v12 = vpack.c.bf16 %v294_v4, %v286_v3 }
  0x2d   :  { %454 = vmatpush1.bf16.msra.mxu0 %v415_v51  ;;  %v279_v9 = vld [vmem:[%s4758_s3 + $0xc8] sm:$0xff]  ;;  %v281_v11 = vld [vmem:[%s4758_s3 + $0xd8] sm:$0xff]  ;;  %v401_v13 = vpack.c.bf16 %v296_v7, %v288_v5  ;;  %v270_v15 = vld [vmem:[%s4758_s3 + $0x80] sm:$0xff] }
  0x2e   :  { %495 = vmatpush1.bf16.msra.mxu1 %v417_v52  ;;  %455 = vmatprep.subr.bf16.mxu0 %v408_v53  ;;  %v392_v14 = vpack.c.bf16 %v279_v9, %v271_v8  ;;  %v278_v16 = vld [vmem:[%s4758_s3 + $0xc0] sm:$0xff]  ;;  %v272_v17 = vld [vmem:[%s4758_s3 + $0x90] sm:$0xff]  ;;  %v394_v18 = vpack.c.bf16 %v281_v11, %v273_v10  ;;  %v255_v20 = vld [vmem:[%s4758_s3 + $0x8] sm:$0xff] }
  0x2f   :  { %496 = vmatprep.subr.bf16.mxu1 %v410_v57  ;;  %v280_v19 = vld [vmem:[%s4758_s3 + $0xd0] sm:$0xff]  ;;  %v263_v21 = vld [vmem:[%s4758_s3 + $0x48] sm:$0xff]  ;;  %v257_v22 = vld [vmem:[%s4758_s3 + $0x18] sm:$0xff]  ;;  %v391_v24 = vpack.c.bf16 %v278_v16, %v270_v15 }
  0x30   :  { %v265_v23 = vld [vmem:[%s4758_s3 + $0x58] sm:$0xff]  ;;  %v393_v25 = vpack.c.bf16 %v280_v19, %v272_v17  ;;  %v384_v26 = vpack.c.bf16 %v263_v21, %v255_v20  ;;  %v254_v27 = vld [vmem:[%s4758_s3] sm:$0xff]  ;;  %v256_v29 = vld [vmem:[%s4758_s3 + $0x10] sm:$0xff] }
  0x31   :  { %456 = vmatpush1.bf16.msra.mxu0 %v407_v63  ;;  %v262_v28 = vld [vmem:[%s4758_s3 + $0x40] sm:$0xff]  ;;  %v386_v30 = vpack.c.bf16 %v265_v23, %v257_v22  ;;  %v264_v31 = vld [vmem:[%s4758_s3 + $0x50] sm:$0xff]  ;;  %v371_v32 = vld [vmem:[%s4758_s3 + $0x3a8] sm:$0xff] }
  0x32   :  { %497 = vmatpush1.bf16.msra.mxu1 %v409_v1  ;;  %457 = vmatprep.subr.bf16.mxu0 %v400_v2  ;;  %v379_v33 = vld [vmem:[%s4758_s3 + $0x3e8] sm:$0xff]  ;;  %v373_v34 = vld [vmem:[%s4758_s3 + $0x3b8] sm:$0xff]  ;;  %v383_v36 = vpack.c.bf16 %v262_v28, %v254_v27  ;;  %v253_v37 = vld [vmem:[%s4756_s1] sm:$0x3]  ;;  %v385_v38 = vpack.c.bf16 %v264_v31, %v256_v29 }
  0x33   :  { %498 = vmatprep.subr.bf16.mxu1 %v402_v6  ;;  %v381_v35 = vld [vmem:[%s4758_s3 + $0x3f8] sm:$0xff]  ;;  %v444_v39 = vpack.c.bf16 %v379_v33, %v371_v32  ;;  %v370_v40 = vld [vmem:[%s4758_s3 + $0x3a0] sm:$0xff]  ;;  %v372_v42 = vld [vmem:[%s4758_s3 + $0x3b0] sm:$0xff]  ;;  %v2539_v47 = vpack.c.bf16 %v253_v37, %v253_v37 }
  0x34   :  { %v378_v41 = vld [vmem:[%s4758_s3 + $0x3e0] sm:$0xff]  ;;  %v446_v43 = vpack.c.bf16 %v381_v35, %v373_v34  ;;  %v380_v44 = vld [vmem:[%s4758_s3 + $0x3f0] sm:$0xff]  ;;  %v355_v45 = vld [vmem:[%s4758_s3 + $0x328] sm:$0xff] }
  0x35   :  { %458 = vmatpush1.bf16.msra.mxu0 %v399_v12  ;;  %v363_v46 = vld [vmem:[%s4758_s3 + $0x368] sm:$0xff]  ;;  %v357_v48 = vld [vmem:[%s4758_s3 + $0x338] sm:$0xff]  ;;  %v443_v50 = vpack.c.bf16 %v378_v41, %v370_v40  ;;  %v445_v51 = vpack.c.bf16 %v380_v44, %v372_v42  ;;  %v354_v53 = vld [vmem:[%s4758_s3 + $0x320] sm:$0xff] }
  0x36   :  { %499 = vmatpush1.bf16.msra.mxu1 %v401_v13  ;;  %459 = vmatprep.subr.bf16.mxu0 %v392_v14  ;;  %v365_v49 = vld [vmem:[%s4758_s3 + $0x378] sm:$0xff]  ;;  %v436_v52 = vpack.c.bf16 %v363_v46, %v355_v45  ;;  %v362_v54 = vld [vmem:[%s4758_s3 + $0x360] sm:$0xff]  ;;  %v356_v55 = vld [vmem:[%s4758_s3 + $0x330] sm:$0xff] }
  0x37   :  { %500 = vmatprep.subr.bf16.mxu1 %v394_v18  ;;  %v438_v56 = vpack.c.bf16 %v365_v49, %v357_v48  ;;  %v364_v57 = vld [vmem:[%s4758_s3 + $0x370] sm:$0xff]  ;;  %v339_v58 = vld [vmem:[%s4758_s3 + $0x2a8] sm:$0xff]  ;;  %v341_v60 = vld [vmem:[%s4758_s3 + $0x2b8] sm:$0xff]  ;;  %v435_v62 = vpack.c.bf16 %v362_v54, %v354_v53 }
  0x38   :  { %v347_v59 = vld [vmem:[%s4758_s3 + $0x2e8] sm:$0xff]  ;;  %v349_v61 = vld [vmem:[%s4758_s3 + $0x2f8] sm:$0xff]  ;;  %v437_v63 = vpack.c.bf16 %v364_v57, %v356_v55  ;;  %v338_v2 = vld [vmem:[%s4758_s3 + $0x2a0] sm:$0xff] }
  0x39   :  { %460 = vmatpush1.bf16.msra.mxu0 %v391_v24  ;;  %v428_v1 = vpack.c.bf16 %v347_v59, %v339_v58  ;;  %v346_v3 = vld [vmem:[%s4758_s3 + $0x2e0] sm:$0xff]  ;;  %v340_v4 = vld [vmem:[%s4758_s3 + $0x2b0] sm:$0xff]  ;;  %v430_v5 = vpack.c.bf16 %v349_v61, %v341_v60  ;;  %v323_v7 = vld [vmem:[%s4758_s3 + $0x228] sm:$0xff] }
  0x3a   :  { %501 = vmatpush1.bf16.msra.mxu1 %v393_v25  ;;  %461 = vmatprep.subr.bf16.mxu0 %v384_v26  ;;  %v348_v6 = vld [vmem:[%s4758_s3 + $0x2f0] sm:$0xff]  ;;  %v331_v8 = vld [vmem:[%s4758_s3 + $0x268] sm:$0xff]  ;;  %v325_v9 = vld [vmem:[%s4758_s3 + $0x238] sm:$0xff]  ;;  %v427_v11 = vpack.c.bf16 %v346_v3, %v338_v2 }
  0x3b   :  { %502 = vmatprep.subr.bf16.mxu1 %v386_v30  ;;  %v333_v10 = vld [vmem:[%s4758_s3 + $0x278] sm:$0xff]  ;;  %v429_v12 = vpack.c.bf16 %v348_v6, %v340_v4  ;;  %v420_v13 = vpack.c.bf16 %v331_v8, %v323_v7  ;;  %v322_v14 = vld [vmem:[%s4758_s3 + $0x220] sm:$0xff]  ;;  %v324_v16 = vld [vmem:[%s4758_s3 + $0x230] sm:$0xff] }
  0x3c   :  { %v330_v15 = vld [vmem:[%s4758_s3 + $0x260] sm:$0xff]  ;;  %v422_v17 = vpack.c.bf16 %v333_v10, %v325_v9  ;;  %v332_v18 = vld [vmem:[%s4758_s3 + $0x270] sm:$0xff]  ;;  %v307_v19 = vld [vmem:[%s4758_s3 + $0x1a8] sm:$0xff] }
  0x3d   :  { %462 = vmatpush1.bf16.msra.mxu0 %v383_v36  ;;  %v315_v20 = vld [vmem:[%s4758_s3 + $0x1e8] sm:$0xff]  ;;  %v309_v21 = vld [vmem:[%s4758_s3 + $0x1b8] sm:$0xff]  ;;  %v419_v23 = vpack.c.bf16 %v330_v15, %v322_v14  ;;  %v421_v24 = vpack.c.bf16 %v332_v18, %v324_v16  ;;  %v306_v26 = vld [vmem:[%s4758_s3 + $0x1a0] sm:$0xff] }
  0x3e   :  { %503 = vmatpush1.bf16.msra.mxu1 %v385_v38  ;;  %529 = vmatprep.subr.bf16.mxu0 %v444_v39  ;;  %v317_v22 = vld [vmem:[%s4758_s3 + $0x1f8] sm:$0xff]  ;;  %v412_v25 = vpack.c.bf16 %v315_v20, %v307_v19  ;;  %v314_v27 = vld [vmem:[%s4758_s3 + $0x1e0] sm:$0xff]  ;;  %v308_v28 = vld [vmem:[%s4758_s3 + $0x1b0] sm:$0xff] }
  0x3f   :  { %570 = vmatprep.subr.bf16.mxu1 %v446_v43  ;;  %v414_v29 = vpack.c.bf16 %v317_v22, %v309_v21  ;;  %v316_v30 = vld [vmem:[%s4758_s3 + $0x1f0] sm:$0xff]  ;;  %v291_v31 = vld [vmem:[%s4758_s3 + $0x128] sm:$0xff]  ;;  %v293_v33 = vld [vmem:[%s4758_s3 + $0x138] sm:$0xff]  ;;  %v411_v35 = vpack.c.bf16 %v314_v27, %v306_v26 }
  0x40   :  { %480 = vmatmul.mubr.bf16.vlgmr.msra.gmra.mxu0 %v2539_v47  ;;  %v299_v32 = vld [vmem:[%s4758_s3 + $0x168] sm:$0xff]  ;;  %v301_v34 = vld [vmem:[%s4758_s3 + $0x178] sm:$0xff]  ;;  %v413_v36 = vpack.c.bf16 %v316_v30, %v308_v28  ;;  %v290_v38 = vld [vmem:[%s4758_s3 + $0x120] sm:$0xff] }
  0x41   :  { %521 = vmatmul.mubr.bf16.vlgmr.msra.gmra.mxu1 %v2539_v47  ;;  %530 = vmatpush1.bf16.msra.mxu0 %v443_v50  ;;  %v404_v37 = vpack.c.bf16 %v299_v32, %v291_v31  ;;  %v298_v39 = vld [vmem:[%s4758_s3 + $0x160] sm:$0xff]  ;;  %v292_v40 = vld [vmem:[%s4758_s3 + $0x130] sm:$0xff]  ;;  %v406_v41 = vpack.c.bf16 %v301_v34, %v293_v33  ;;  %v275_v43 = vld [vmem:[%s4758_s3 + $0xa8] sm:$0xff] }
  0x42   :  { %571 = vmatpush1.bf16.msra.mxu1 %v445_v51  ;;  %531 = vmatprep.subr.bf16.mxu0 %v436_v52  ;;  %v300_v42 = vld [vmem:[%s4758_s3 + $0x170] sm:$0xff]  ;;  %v283_v44 = vld [vmem:[%s4758_s3 + $0xe8] sm:$0xff]  ;;  %v277_v45 = vld [vmem:[%s4758_s3 + $0xb8] sm:$0xff]  ;;  %v403_v48 = vpack.c.bf16 %v298_v39, %v290_v38 }
  0x43   :  { %572 = vmatprep.subr.bf16.mxu1 %v438_v56  ;;  %561 = vmatprep.mubr.bf16.mxu0 %v2255_v0  ;;  %v285_v46 = vld [vmem:[%s4758_s3 + $0xf8] sm:$0xff]  ;;  %v405_v49 = vpack.c.bf16 %v300_v42, %v292_v40  ;;  %v396_v50 = vpack.c.bf16 %v283_v44, %v275_v43  ;;  %v274_v51 = vld [vmem:[%s4758_s3 + $0xa0] sm:$0xff]  ;;  %v276_v53 = vld [vmem:[%s4758_s3 + $0xb0] sm:$0xff] }
  0x44   :  { %602 = vmatprep.mubr.bf16.mxu1 %v2255_v0  ;;  %v282_v52 = vld [vmem:[%s4758_s3 + $0xe0] sm:$0xff]  ;;  %v398_v54 = vpack.c.bf16 %v285_v46, %v277_v45  ;;  %v284_v55 = vld [vmem:[%s4758_s3 + $0xf0] sm:$0xff]  ;;  %v259_v56 = vld [vmem:[%s4758_s3 + $0x28] sm:$0xff] }
  0x45   :  { %532 = vmatpush1.bf16.msra.mxu0 %v435_v62  ;;  %v267_v57 = vld [vmem:[%s4758_s3 + $0x68] sm:$0xff]  ;;  %v261_v58 = vld [vmem:[%s4758_s3 + $0x38] sm:$0xff]  ;;  %v395_v60 = vpack.c.bf16 %v282_v52, %v274_v51  ;;  %v397_v61 = vpack.c.bf16 %v284_v55, %v276_v53  ;;  %v260_v2 = vld [vmem:[%s4758_s3 + $0x30] sm:$0xff] }
  0x46   :  { %573 = vmatpush1.bf16.msra.mxu1 %v437_v63  ;;  %533 = vmatprep.subr.bf16.mxu0 %v428_v1  ;;  %v269_v59 = vld [vmem:[%s4758_s3 + $0x78] sm:$0xff]  ;;  %v388_v62 = vpack.c.bf16 %v267_v57, %v259_v56  ;;  %v258_v63 = vld [vmem:[%s4758_s3 + $0x20] sm:$0xff]  ;;  %v268_v4 = vld [vmem:[%s4758_s3 + $0x70] sm:$0xff] }
  0x47   :  { %574 = vmatprep.subr.bf16.mxu1 %v430_v5  ;;  %v266_v1 = vld [vmem:[%s4758_s3 + $0x60] sm:$0xff]  ;;  %v390_v3 = vpack.c.bf16 %v269_v59, %v261_v58  ;;  %v173_v5 = vld [vmem:[%s4757_s2 + $0x388] sm:$0xff]  ;;  %v175_v7 = vld [vmem:[%s4757_s2 + $0x398] sm:$0xff]  ;;  %v389_v10 = vpack.c.bf16 %v268_v4, %v260_v2 }
  0x48   :  { %v181_v6 = vld [vmem:[%s4757_s2 + $0x3c8] sm:$0xff]  ;;  %v183_v8 = vld [vmem:[%s4757_s2 + $0x3d8] sm:$0xff]  ;;  %v387_v9 = vpack.c.bf16 %v266_v1, %v258_v63  ;;  %v174_v14 = vld [vmem:[%s4757_s2 + $0x390] sm:$0xff] }
  0x49   :  { %534 = vmatpush1.bf16.msra.mxu0 %v427_v11  ;;  %v246_v11 = vpack.c.bf16 %v181_v6, %v173_v5  ;;  %v248_v15 = vpack.c.bf16 %v183_v8, %v175_v7  ;;  %v182_v16 = vld [vmem:[%s4757_s2 + $0x3d0] sm:$0xff]  ;;  %v165_v18 = vld [vmem:[%s4757_s2 + $0x348] sm:$0xff]  ;;  %v159_v19 = vld [vmem:[%s4757_s2 + $0x318] sm:$0xff] }
  0x4a   :  { %575 = vmatpush1.bf16.msra.mxu1 %v429_v12  ;;  %535 = vmatprep.subr.bf16.mxu0 %v420_v13  ;;  %v172_v12 = vld [vmem:[%s4757_s2 + $0x380] sm:$0xff]  ;;  %v167_v20 = vld [vmem:[%s4757_s2 + $0x358] sm:$0xff]  ;;  %v247_v22 = vpack.c.bf16 %v182_v16, %v174_v14  ;;  %v158_v26 = vld [vmem:[%s4757_s2 + $0x310] sm:$0xff] }
  0x4b   :  { %576 = vmatprep.subr.bf16.mxu1 %v422_v17  ;;  %v180_v13 = vld [vmem:[%s4757_s2 + $0x3c0] sm:$0xff]  ;;  %v157_v17 = vld [vmem:[%s4757_s2 + $0x308] sm:$0xff]  ;;  %v240_v27 = vpack.c.bf16 %v167_v20, %v159_v19  ;;  %v166_v28 = vld [vmem:[%s4757_s2 + $0x350] sm:$0xff] }
  0x4c   :  { %v245_v21 = vpack.c.bf16 %v180_v13, %v172_v12  ;;  %v149_v30 = vld [vmem:[%s4757_s2 + $0x2c8] sm:$0xff]  ;;  %v143_v31 = vld [vmem:[%s4757_s2 + $0x298] sm:$0xff]  ;;  %v239_v34 = vpack.c.bf16 %v166_v28, %v158_v26  ;;  %v142_v38 = vld [vmem:[%s4757_s2 + $0x290] sm:$0xff] }
  0x4d   :  { %536 = vmatpush1.bf16.msra.mxu0 %v419_v23  ;;  %v238_v23 = vpack.c.bf16 %v165_v18, %v157_v17  ;;  %v151_v32 = vld [vmem:[%s4757_s2 + $0x2d8] sm:$0xff]  ;;  %v150_v39 = vld [vmem:[%s4757_s2 + $0x2d0] sm:$0xff]  ;;  %v125_v40 = vld [vmem:[%s4757_s2 + $0x208] sm:$0xff] }
  0x4e   :  { %577 = vmatpush1.bf16.msra.mxu1 %v421_v24  ;;  %537 = vmatprep.subr.bf16.mxu0 %v412_v25  ;;  %v156_v24 = vld [vmem:[%s4757_s2 + $0x300] sm:$0xff]  ;;  %v127_v42 = vld [vmem:[%s4757_s2 + $0x218] sm:$0xff]  ;;  %v231_v45 = vpack.c.bf16 %v150_v39, %v142_v38  ;;  %v134_v52 = vld [vmem:[%s4757_s2 + $0x250] sm:$0xff] }
  0x4f   :  { %578 = vmatprep.subr.bf16.mxu1 %v414_v29  ;;  %v164_v25 = vld [vmem:[%s4757_s2 + $0x340] sm:$0xff]  ;;  %v141_v29 = vld [vmem:[%s4757_s2 + $0x288] sm:$0xff]  ;;  %v135_v43 = vld [vmem:[%s4757_s2 + $0x258] sm:$0xff] }
  0x50   :  { %v237_v33 = vpack.c.bf16 %v164_v25, %v156_v24  ;;  %v224_v51 = vpack.c.bf16 %v135_v43, %v127_v42  ;;  %v109_v53 = vld [vmem:[%s4757_s2 + $0x188] sm:$0xff]  ;;  %v111_v55 = vld [vmem:[%s4757_s2 + $0x198] sm:$0xff]  ;;  %v118_v1 = vld [vmem:[%s4757_s2 + $0x1d0] sm:$0xff] }
  0x51   :  { %538 = vmatpush1.bf16.msra.mxu0 %v411_v35  ;;  %v230_v35 = vpack.c.bf16 %v149_v30, %v141_v29  ;;  %v119_v56 = vld [vmem:[%s4757_s2 + $0x1d8] sm:$0xff]  ;;  %v93_v2 = vld [vmem:[%s4757_s2 + $0x108] sm:$0xff]  ;;  %v102_v13 = vld [vmem:[%s4757_s2 + $0x150] sm:$0xff] }
  0x52   :  { %579 = vmatpush1.bf16.msra.mxu1 %v413_v36  ;;  %539 = vmatprep.subr.bf16.mxu0 %v404_v37  ;;  %v140_v36 = vld [vmem:[%s4757_s2 + $0x280] sm:$0xff]  ;;  %v216_v63 = vpack.c.bf16 %v119_v56, %v111_v55  ;;  %v95_v4 = vld [vmem:[%s4757_s2 + $0x118] sm:$0xff]  ;;  %v77_v14 = vld [vmem:[%s4757_s2 + $0x88] sm:$0xff] }
  0x53   :  { %580 = vmatprep.subr.bf16.mxu1 %v406_v41  ;;  %v148_v37 = vld [vmem:[%s4757_s2 + $0x2c0] sm:$0xff]  ;;  %v133_v41 = vld [vmem:[%s4757_s2 + $0x248] sm:$0xff]  ;;  %v103_v5 = vld [vmem:[%s4757_s2 + $0x158] sm:$0xff] }
  0x54   :  { %v229_v44 = vpack.c.bf16 %v148_v37, %v140_v36  ;;  %v222_v46 = vpack.c.bf16 %v133_v41, %v125_v40  ;;  %v208_v12 = vpack.c.bf16 %v103_v5, %v95_v4  ;;  %v79_v16 = vld [vmem:[%s4757_s2 + $0x98] sm:$0xff]  ;;  %v86_v25 = vld [vmem:[%s4757_s2 + $0xd0] sm:$0xff]  ;;  %v61_v26 = vld [vmem:[%s4757_s2 + $0x8] sm:$0xff] }
  0x55   :  { %540 = vmatpush1.bf16.msra.mxu0 %v403_v48  ;;  %v124_v48 = vld [vmem:[%s4757_s2 + $0x200] sm:$0xff]  ;;  %v87_v17 = vld [vmem:[%s4757_s2 + $0xd8] sm:$0xff]  ;;  %v70_v37 = vld [vmem:[%s4757_s2 + $0x50] sm:$0xff] }
  0x56   :  { %581 = vmatpush1.bf16.msra.mxu1 %v405_v49  ;;  %541 = vmatprep.subr.bf16.mxu0 %v396_v50  ;;  %v132_v49 = vld [vmem:[%s4757_s2 + $0x240] sm:$0xff]  ;;  %v126_v50 = vld [vmem:[%s4757_s2 + $0x210] sm:$0xff]  ;;  %v200_v24 = vpack.c.bf16 %v87_v17, %v79_v16  ;;  %v63_v28 = vld [vmem:[%s4757_s2 + $0x18] sm:$0xff] }
  0x57   :  { %582 = vmatprep.subr.bf16.mxu1 %v398_v54  ;;  %v117_v54 = vld [vmem:[%s4757_s2 + $0x1c8] sm:$0xff]  ;;  %v221_v57 = vpack.c.bf16 %v132_v49, %v124_v48  ;;  %v223_v58 = vpack.c.bf16 %v134_v52, %v126_v50  ;;  %v71_v29 = vld [vmem:[%s4757_s2 + $0x58] sm:$0xff]  ;;  %v59_v42 = vld [vmem:[%s4755_s0] sm:$0x3] }
  0x58   :  { %v214_v59 = vpack.c.bf16 %v117_v54, %v109_v53  ;;  %v192_v36 = vpack.c.bf16 %v71_v29, %v63_v28  ;;  %v177_v38 = vld [vmem:[%s4757_s2 + $0x3a8] sm:$0xff]  ;;  %v179_v39 = vld [vmem:[%s4757_s2 + $0x3b8] sm:$0xff]  ;;  %v178_v48 = vld [vmem:[%s4757_s2 + $0x3b0] sm:$0xff]  ;;  %v2936_v53 = vpack.c.bf16 %v59_v42, %v59_v42 }
  0x59   :  { %542 = vmatpush1.bf16.msra.mxu0 %v395_v60  ;;  %v108_v60 = vld [vmem:[%s4757_s2 + $0x180] sm:$0xff]  ;;  %v187_v40 = vld [vmem:[%s4757_s2 + $0x3f8] sm:$0xff]  ;;  %v186_v50 = vld [vmem:[%s4757_s2 + $0x3f0] sm:$0xff] }
  0x5a   :  { %583 = vmatpush1.bf16.msra.mxu1 %v397_v61  ;;  %543 = vmatprep.subr.bf16.mxu0 %v388_v62  ;;  %v116_v61 = vld [vmem:[%s4757_s2 + $0x1c0] sm:$0xff]  ;;  %v110_v62 = vld [vmem:[%s4757_s2 + $0x190] sm:$0xff]  ;;  %v252_v49 = vpack.c.bf16 %v187_v40, %v179_v39  ;;  %v169_v52 = vld [vmem:[%s4757_s2 + $0x368] sm:$0xff] }
  0x5b   :  { %584 = vmatprep.subr.bf16.mxu1 %v390_v3  ;;  %v101_v3 = vld [vmem:[%s4757_s2 + $0x148] sm:$0xff]  ;;  %v213_v6 = vpack.c.bf16 %v116_v61, %v108_v60  ;;  %v215_v7 = vpack.c.bf16 %v118_v1, %v110_v62  ;;  %v163_v54 = vld [vmem:[%s4757_s2 + $0x338] sm:$0xff]  ;;  %v168_v60 = vld [vmem:[%s4757_s2 + $0x360] sm:$0xff] }
  0x5c   :  { %v206_v8 = vpack.c.bf16 %v101_v3, %v93_v2  ;;  %v171_v55 = vld [vmem:[%s4757_s2 + $0x378] sm:$0xff]  ;;  %v162_v61 = vld [vmem:[%s4757_s2 + $0x330] sm:$0xff]  ;;  %v145_v1 = vld [vmem:[%s4757_s2 + $0x2a8] sm:$0xff] }
  0x5d   :  { %544 = vmatpush1.bf16.msra.mxu0 %v387_v9  ;;  %v92_v9 = vld [vmem:[%s4757_s2 + $0x100] sm:$0xff]  ;;  %v244_v62 = vpack.c.bf16 %v171_v55, %v163_v54  ;;  %v153_v2 = vld [vmem:[%s4757_s2 + $0x2e8] sm:$0xff]  ;;  %v147_v3 = vld [vmem:[%s4757_s2 + $0x2b8] sm:$0xff] }
  0x5e   :  { %585 = vmatpush1.bf16.msra.mxu1 %v389_v10  ;;  %611 = vmatprep.subr.bf16.mxu0 %v246_v11  ;;  %v100_v10 = vld [vmem:[%s4757_s2 + $0x140] sm:$0xff]  ;;  %v94_v11 = vld [vmem:[%s4757_s2 + $0x110] sm:$0xff]  ;;  %v155_v4 = vld [vmem:[%s4757_s2 + $0x2f8] sm:$0xff] }
  0x5f   :  { %652 = vmatprep.subr.bf16.mxu1 %v248_v15  ;;  %v85_v15 = vld [vmem:[%s4757_s2 + $0xc8] sm:$0xff]  ;;  %v205_v18 = vpack.c.bf16 %v100_v10, %v92_v9  ;;  %v207_v19 = vpack.c.bf16 %v102_v13, %v94_v11  ;;  %v152_v9 = vld [vmem:[%s4757_s2 + $0x2e0] sm:$0xff]  ;;  %v146_v10 = vld [vmem:[%s4757_s2 + $0x2b0] sm:$0xff]  ;;  %v236_v11 = vpack.c.bf16 %v155_v4, %v147_v3 }
  0x60   :  { %562 = vmatmul.mubr.bf16.vlgmr.msra.gmra.mxu0 %v2539_v47  ;;  %v198_v20 = vpack.c.bf16 %v85_v15, %v77_v14  ;;  %v129_v13 = vld [vmem:[%s4757_s2 + $0x228] sm:$0xff]  ;;  %v131_v15 = vld [vmem:[%s4757_s2 + $0x238] sm:$0xff]  ;;  %v96_v42 = vld [vmem:[%s4757_s2 + $0x120] sm:$0xff] }
  0x61   :  { %603 = vmatmul.mubr.bf16.vlgmr.msra.gmra.mxu1 %v2539_v47  ;;  %612 = vmatpush1.bf16.msra.mxu0 %v245_v21  ;;  %v232_v47 = vpack.c.bf16 %v151_v32, %v143_v31  ;;  %v76_v21 = vld [vmem:[%s4757_s2 + $0x80] sm:$0xff]  ;;  %v137_v14 = vld [vmem:[%s4757_s2 + $0x268] sm:$0xff]  ;;  %v139_v16 = vld [vmem:[%s4757_s2 + $0x278] sm:$0xff] }
  0x62   :  { %653 = vmatpush1.bf16.msra.mxu1 %v247_v22  ;;  %613 = vmatprep.subr.bf16.mxu0 %v238_v23  ;;  %v84_v22 = vld [vmem:[%s4757_s2 + $0xc0] sm:$0xff]  ;;  %v78_v23 = vld [vmem:[%s4757_s2 + $0x90] sm:$0xff] }
  0x63   :  { %654 = vmatprep.subr.bf16.mxu1 %v240_v27  ;;  %643 = vmatprep.mubr.bf16.mxu0 %v2255_v0  ;;  %v69_v27 = vld [vmem:[%s4757_s2 + $0x48] sm:$0xff]  ;;  %v197_v30 = vpack.c.bf16 %v84_v22, %v76_v21  ;;  %v199_v31 = vpack.c.bf16 %v86_v25, %v78_v23  ;;  %v136_v21 = vld [vmem:[%s4757_s2 + $0x260] sm:$0xff]  ;;  %v130_v22 = vld [vmem:[%s4757_s2 + $0x230] sm:$0xff] }
  0x64   :  { %684 = vmatprep.mubr.bf16.mxu1 %v2255_v0  ;;  %v190_v32 = vpack.c.bf16 %v69_v27, %v61_v26  ;;  %v138_v23 = vld [vmem:[%s4757_s2 + $0x270] sm:$0xff]  ;;  %v121_v25 = vld [vmem:[%s4757_s2 + $0x1e8] sm:$0xff]  ;;  %v115_v26 = vld [vmem:[%s4757_s2 + $0x1b8] sm:$0xff] }
  0x65   :  { %614 = vmatpush1.bf16.msra.mxu0 %v237_v33  ;;  %v60_v33 = vld [vmem:[%s4757_s2] sm:$0xff]  ;;  %v123_v27 = vld [vmem:[%s4757_s2 + $0x1f8] sm:$0xff]  ;;  %v227_v29 = vpack.c.bf16 %v138_v23, %v130_v22  ;;  %v882_v22 = vld [vmem:[%s4760_s5 + $0x188] sm:$0xff] }
  0x66   :  { %655 = vmatpush1.bf16.msra.mxu1 %v239_v34  ;;  %615 = vmatprep.subr.bf16.mxu0 %v230_v35  ;;  %v68_v34 = vld [vmem:[%s4757_s2 + $0x40] sm:$0xff]  ;;  %v62_v35 = vld [vmem:[%s4757_s2 + $0x10] sm:$0xff]  ;;  %v1010_v23 = vld [vmem:[%s4760_s5 + $0x588] sm:$0xff] }
  0x67   :  { %656 = vmatprep.subr.bf16.mxu1 %v232_v47  ;;  %v185_v47 = vld [vmem:[%s4757_s2 + $0x3e8] sm:$0xff]  ;;  %v189_v41 = vpack.c.bf16 %v68_v34, %v60_v33  ;;  %v191_v43 = vpack.c.bf16 %v70_v37, %v62_v35  ;;  %v114_v33 = vld [vmem:[%s4757_s2 + $0x1b0] sm:$0xff]  ;;  %v220_v34 = vpack.c.bf16 %v123_v27, %v115_v26 }
  0x68   :  { %v122_v35 = vld [vmem:[%s4757_s2 + $0x1f0] sm:$0xff]  ;;  %v105_v37 = vld [vmem:[%s4757_s2 + $0x168] sm:$0xff] }
  0x69   :  { %616 = vmatpush1.bf16.msra.mxu0 %v229_v44  ;;  %v250_v44 = vpack.c.bf16 %v185_v47, %v177_v38  ;;  %v99_v38 = vld [vmem:[%s4757_s2 + $0x138] sm:$0xff]  ;;  %v219_v40 = vpack.c.bf16 %v122_v35, %v114_v33  ;;  %v874_v33 = vld [vmem:[%s4760_s5 + $0x148] sm:$0xff] }
  0x6a   :  { %657 = vmatpush1.bf16.msra.mxu1 %v231_v45  ;;  %617 = vmatprep.subr.bf16.mxu0 %v222_v46  ;;  %v176_v45 = vld [vmem:[%s4757_s2 + $0x3a0] sm:$0xff]  ;;  %v107_v47 = vld [vmem:[%s4757_s2 + $0x178] sm:$0xff]  ;;  %v1002_v35 = vld [vmem:[%s4760_s5 + $0x548] sm:$0xff] }
  0x6b   :  { %658 = vmatprep.subr.bf16.mxu1 %v224_v51  ;;  %v184_v46 = vld [vmem:[%s4757_s2 + $0x3e0] sm:$0xff]  ;;  %v161_v51 = vld [vmem:[%s4757_s2 + $0x328] sm:$0xff] }
  0x6c   :  { %v249_v56 = vpack.c.bf16 %v184_v46, %v176_v45  ;;  %v212_v45 = vpack.c.bf16 %v107_v47, %v99_v38  ;;  %v106_v46 = vld [vmem:[%s4757_s2 + $0x170] sm:$0xff] }
  0x6d   :  { %618 = vmatpush1.bf16.msra.mxu0 %v221_v57  ;;  %v251_v57 = vpack.c.bf16 %v186_v50, %v178_v48  ;;  %v81_v48 = vld [vmem:[%s4757_s2 + $0xa8] sm:$0xff]  ;;  %v83_v50 = vld [vmem:[%s4757_s2 + $0xb8] sm:$0xff] }
  0x6e   :  { %659 = vmatpush1.bf16.msra.mxu1 %v223_v58  ;;  %619 = vmatprep.subr.bf16.mxu0 %v214_v59  ;;  %v242_v58 = vpack.c.bf16 %v169_v52, %v161_v51  ;;  %v160_v59 = vld [vmem:[%s4757_s2 + $0x320] sm:$0xff]  ;;  %v91_v51 = vld [vmem:[%s4757_s2 + $0xf8] sm:$0xff] }
  0x6f   :  { %660 = vmatprep.subr.bf16.mxu1 %v216_v63  ;;  %v170_v63 = vld [vmem:[%s4757_s2 + $0x370] sm:$0xff]  ;;  %v241_v5 = vpack.c.bf16 %v168_v60, %v160_v59  ;;  %v204_v59 = vpack.c.bf16 %v91_v51, %v83_v50  ;;  %v865_v51 = vld [vmem:[%s4760_s5 + $0x100] sm:$0xff] }
  0x70   :  { %v90_v60 = vld [vmem:[%s4757_s2 + $0xf0] sm:$0xff] }
  0x71   :  { %620 = vmatpush1.bf16.msra.mxu0 %v213_v6  ;;  %v243_v6 = vpack.c.bf16 %v170_v63, %v162_v61  ;;  %v65_v61 = vld [vmem:[%s4757_s2 + $0x28] sm:$0xff]  ;;  %v67_v63 = vld [vmem:[%s4757_s2 + $0x38] sm:$0xff] }
  0x72   :  { %661 = vmatpush1.bf16.msra.mxu1 %v215_v7  ;;  %621 = vmatprep.subr.bf16.mxu0 %v206_v8  ;;  %v234_v7 = vpack.c.bf16 %v153_v2, %v145_v1  ;;  %v144_v8 = vld [vmem:[%s4757_s2 + $0x2a0] sm:$0xff]  ;;  %v75_v1 = vld [vmem:[%s4757_s2 + $0x78] sm:$0xff] }
  0x73   :  { %662 = vmatprep.subr.bf16.mxu1 %v208_v12  ;;  %v154_v12 = vld [vmem:[%s4757_s2 + $0x2f0] sm:$0xff]  ;;  %v233_v17 = vpack.c.bf16 %v152_v9, %v144_v8  ;;  %v196_v8 = vpack.c.bf16 %v75_v1, %v67_v63  ;;  %v857_v1 = vld [vmem:[%s4760_s5 + $0xc0] sm:$0xff] }
  0x74   :  { %v74_v9 = vld [vmem:[%s4757_s2 + $0x70] sm:$0xff] }
  0x75   :  { %622 = vmatpush1.bf16.msra.mxu0 %v205_v18  ;;  %v235_v18 = vpack.c.bf16 %v154_v12, %v146_v10  ;;  %v890_v10 = vld [vmem:[%s4760_s5 + $0x1c8] sm:$0xff] }
  0x76   :  { %663 = vmatpush1.bf16.msra.mxu1 %v207_v19  ;;  %623 = vmatprep.subr.bf16.mxu0 %v198_v20  ;;  %v226_v19 = vpack.c.bf16 %v137_v14, %v129_v13  ;;  %v128_v20 = vld [vmem:[%s4757_s2 + $0x220] sm:$0xff]  ;;  %v1018_v12 = vld [vmem:[%s4760_s5 + $0x5c8] sm:$0xff] }
  0x77   :  { %664 = vmatprep.subr.bf16.mxu1 %v200_v24  ;;  %v113_v24 = vld [vmem:[%s4757_s2 + $0x1a8] sm:$0xff]  ;;  %v225_v28 = vpack.c.bf16 %v136_v21, %v128_v20  ;;  %v1021_v21 = vld [vmem:[%s4760_s5 + $0x5e0] sm:$0xff] }
  0x78   :  { %v1022_v13 = vld [vmem:[%s4760_s5 + $0x5e8] sm:$0xff] }
  0x79   :  { %624 = vmatpush1.bf16.msra.mxu0 %v197_v30  ;;  %v218_v30 = vpack.c.bf16 %v121_v25, %v113_v24  ;;  %v1446_v20 = vpack.c.bf16 %v1022_v13, %v1018_v12  ;;  %v1014_v24 = vld [vmem:[%s4760_s5 + $0x5a8] sm:$0xff]  ;;  %v849_v13 = vld [vmem:[%s4760_s5 + $0x80] sm:$0xff] }
  0x7a   :  { %665 = vmatpush1.bf16.msra.mxu1 %v199_v31  ;;  %625 = vmatprep.subr.bf16.mxu0 %v190_v32  ;;  %v112_v31 = vld [vmem:[%s4757_s2 + $0x1a0] sm:$0xff] }
  0x7b   :  { %666 = vmatprep.subr.bf16.mxu1 %v192_v36  ;;  %v120_v32 = vld [vmem:[%s4757_s2 + $0x1e0] sm:$0xff]  ;;  %v97_v36 = vld [vmem:[%s4757_s2 + $0x128] sm:$0xff] }
  0x7c   :  { %v217_v39 = vpack.c.bf16 %v120_v32, %v112_v31  ;;  %v1442_v31 = vpack.c.bf16 %v1014_v24, %v1010_v23  ;;  %v1013_v32 = vld [vmem:[%s4760_s5 + $0x5a0] sm:$0xff] }
  0x7d   :  { %626 = vmatpush1.bf16.msra.mxu0 %v189_v41  ;;  %v210_v41 = vpack.c.bf16 %v105_v37, %v97_v36  ;;  %v1006_v36 = vld [vmem:[%s4760_s5 + $0x568] sm:$0xff]  ;;  %v841_v24 = vld [vmem:[%s4760_s5 + $0x40] sm:$0xff] }
  0x7e   :  { %667 = vmatpush1.bf16.msra.mxu1 %v191_v43  ;;  %693 = vmatprep.subr.bf16.mxu0 %v250_v44  ;;  %v104_v43 = vld [vmem:[%s4757_s2 + $0x160] sm:$0xff]  ;;  %v98_v44 = vld [vmem:[%s4757_s2 + $0x130] sm:$0xff] }
  0x7f   :  { %734 = vmatprep.subr.bf16.mxu1 %v252_v49  ;;  %v89_v49 = vld [vmem:[%s4757_s2 + $0xe8] sm:$0xff]  ;;  %v209_v52 = vpack.c.bf16 %v104_v43, %v96_v42  ;;  %v211_v54 = vpack.c.bf16 %v106_v46, %v98_v44  ;;  %v1005_v42 = vld [vmem:[%s4760_s5 + $0x560] sm:$0xff] }
  0x80   :  { %644 = vmatmul.mubr.bf16.vlgmr.msra.gmra.mxu0 %v2936_v53  ;;  %v202_v55 = vpack.c.bf16 %v89_v49, %v81_v48  ;;  %v866_v43 = vld [vmem:[%s4760_s5 + $0x108] sm:$0xff] }
  0x81   :  { %685 = vmatmul.mubr.bf16.vlgmr.msra.gmra.mxu1 %v2936_v53  ;;  %694 = vmatpush1.bf16.msra.mxu0 %v249_v56  ;;  %v80_v56 = vld [vmem:[%s4757_s2 + $0xa0] sm:$0xff]  ;;  %v870_v44 = vld [vmem:[%s4760_s5 + $0x128] sm:$0xff] }
  0x82   :  { %735 = vmatpush1.bf16.msra.mxu1 %v251_v57  ;;  %695 = vmatprep.subr.bf16.mxu0 %v242_v58  ;;  %v88_v57 = vld [vmem:[%s4757_s2 + $0xe0] sm:$0xff]  ;;  %v82_v58 = vld [vmem:[%s4757_s2 + $0xb0] sm:$0xff]  ;;  %v998_v46 = vld [vmem:[%s4760_s5 + $0x528] sm:$0xff]  ;;  %v1370_v50 = vpack.c.bf16 %v870_v44, %v866_v43 }
  0x83   :  { %736 = vmatprep.subr.bf16.mxu1 %v244_v62  ;;  %725 = vmatprep.mubr.bf16.mxu0 %v2255_v0  ;;  %v73_v62 = vld [vmem:[%s4757_s2 + $0x68] sm:$0xff]  ;;  %v201_v2 = vpack.c.bf16 %v88_v57, %v80_v56  ;;  %v203_v3 = vpack.c.bf16 %v90_v60, %v82_v58  ;;  %v997_v56 = vld [vmem:[%s4760_s5 + $0x520] sm:$0xff] }
  0x84   :  { %766 = vmatprep.mubr.bf16.mxu1 %v2255_v0  ;;  %v228_v0 = vpack.c.bf16 %v139_v16, %v131_v15  ;;  %v194_v4 = vpack.c.bf16 %v73_v62, %v65_v61  ;;  %v858_v57 = vld [vmem:[%s4760_s5 + $0xc8] sm:$0xff] }
  0x85   :  { %696 = vmatpush1.bf16.msra.mxu0 %v241_v5  ;;  %v64_v5 = vld [vmem:[%s4757_s2 + $0x20] sm:$0xff]  ;;  %v862_v58 = vld [vmem:[%s4760_s5 + $0xe8] sm:$0xff] }
  0x86   :  { %737 = vmatpush1.bf16.msra.mxu1 %v243_v6  ;;  %697 = vmatprep.subr.bf16.mxu0 %v234_v7  ;;  %v72_v6 = vld [vmem:[%s4757_s2 + $0x60] sm:$0xff]  ;;  %v66_v7 = vld [vmem:[%s4757_s2 + $0x30] sm:$0xff]  ;;  %v990_v60 = vld [vmem:[%s4760_s5 + $0x4e8] sm:$0xff]  ;;  %v1366_v63 = vpack.c.bf16 %v862_v58, %v858_v57 }
  0x87   :  { %738 = vmatprep.subr.bf16.mxu1 %v236_v11  ;;  %v894_v11 = vld [vmem:[%s4760_s5 + $0x1e8] sm:$0xff]  ;;  %v193_v14 = vpack.c.bf16 %v72_v6, %v64_v5  ;;  %v195_v15 = vpack.c.bf16 %v74_v9, %v66_v7  ;;  %v989_v5 = vld [vmem:[%s4760_s5 + $0x4e0] sm:$0xff] }
  0x88   :  { %v1382_v16 = vpack.c.bf16 %v894_v11, %v890_v10  ;;  %v850_v6 = vld [vmem:[%s4760_s5 + $0x88] sm:$0xff] }
  0x89   :  { %698 = vmatpush1.bf16.msra.mxu0 %v233_v17  ;;  %v889_v17 = vld [vmem:[%s4760_s5 + $0x1c0] sm:$0xff]  ;;  %v854_v7 = vld [vmem:[%s4760_s5 + $0xa8] sm:$0xff] }
  0x8a   :  { %739 = vmatpush1.bf16.msra.mxu1 %v235_v18  ;;  %699 = vmatprep.subr.bf16.mxu0 %v226_v19  ;;  %v893_v18 = vld [vmem:[%s4760_s5 + $0x1e0] sm:$0xff]  ;;  %v982_v9 = vld [vmem:[%s4760_s5 + $0x4a8] sm:$0xff]  ;;  %v1362_v12 = vpack.c.bf16 %v854_v7, %v850_v6 }
  0x8b   :  { %740 = vmatprep.subr.bf16.mxu1 %v228_v0  ;;  %v1017_v19 = vld [vmem:[%s4760_s5 + $0x5c0] sm:$0xff]  ;;  %v886_v0 = vld [vmem:[%s4760_s5 + $0x1a8] sm:$0xff]  ;;  %v1381_v25 = vpack.c.bf16 %v893_v18, %v889_v17 }
  0x8c   :  { %v1445_v26 = vpack.c.bf16 %v1021_v21, %v1017_v19  ;;  %v1378_v27 = vpack.c.bf16 %v886_v0, %v882_v22  ;;  %v981_v17 = vld [vmem:[%s4760_s5 + $0x4a0] sm:$0xff]  ;;  %v842_v18 = vld [vmem:[%s4760_s5 + $0x48] sm:$0xff] }
  0x8d   :  { %700 = vmatpush1.bf16.msra.mxu0 %v225_v28  ;;  %v881_v28 = vld [vmem:[%s4760_s5 + $0x180] sm:$0xff]  ;;  %v846_v19 = vld [vmem:[%s4760_s5 + $0x68] sm:$0xff] }
  0x8e   :  { %741 = vmatpush1.bf16.msra.mxu1 %v227_v29  ;;  %701 = vmatprep.subr.bf16.mxu0 %v218_v30  ;;  %v885_v29 = vld [vmem:[%s4760_s5 + $0x1a0] sm:$0xff]  ;;  %v974_v21 = vld [vmem:[%s4760_s5 + $0x468] sm:$0xff]  ;;  %v1358_v23 = vpack.c.bf16 %v846_v19, %v842_v18 }
  0x8f   :  { %742 = vmatprep.subr.bf16.mxu1 %v220_v34  ;;  %v1009_v30 = vld [vmem:[%s4760_s5 + $0x580] sm:$0xff]  ;;  %v878_v34 = vld [vmem:[%s4760_s5 + $0x168] sm:$0xff]  ;;  %v1377_v37 = vpack.c.bf16 %v885_v29, %v881_v28 }
  0x90   :  { %v1441_v38 = vpack.c.bf16 %v1013_v32, %v1009_v30  ;;  %v1374_v47 = vpack.c.bf16 %v878_v34, %v874_v33  ;;  %v973_v28 = vld [vmem:[%s4760_s5 + $0x460] sm:$0xff]  ;;  %v834_v29 = vld [vmem:[%s4760_s5 + $0x8] sm:$0xff] }
  0x91   :  { %702 = vmatpush1.bf16.msra.mxu0 %v217_v39  ;;  %v873_v39 = vld [vmem:[%s4760_s5 + $0x140] sm:$0xff]  ;;  %v838_v30 = vld [vmem:[%s4760_s5 + $0x28] sm:$0xff] }
  0x92   :  { %743 = vmatpush1.bf16.msra.mxu1 %v219_v40  ;;  %703 = vmatprep.subr.bf16.mxu0 %v210_v41  ;;  %v877_v40 = vld [vmem:[%s4760_s5 + $0x160] sm:$0xff]  ;;  %v966_v32 = vld [vmem:[%s4760_s5 + $0x428] sm:$0xff] }
  0x93   :  { %744 = vmatprep.subr.bf16.mxu1 %v212_v45  ;;  %v1001_v41 = vld [vmem:[%s4760_s5 + $0x540] sm:$0xff]  ;;  %v994_v45 = vld [vmem:[%s4760_s5 + $0x508] sm:$0xff]  ;;  %v1373_v48 = vpack.c.bf16 %v877_v40, %v873_v39 }
  0x94   :  { %v1437_v49 = vpack.c.bf16 %v1005_v42, %v1001_v41  ;;  %v965_v39 = vld [vmem:[%s4760_s5 + $0x420] sm:$0xff]  ;;  %v954_v40 = vld [vmem:[%s4760_s5 + $0x3c8] sm:$0xff] }
  0x95   :  { %704 = vmatpush1.bf16.msra.mxu0 %v209_v52  ;;  %v869_v52 = vld [vmem:[%s4760_s5 + $0x120] sm:$0xff]  ;;  %v958_v41 = vld [vmem:[%s4760_s5 + $0x3e8] sm:$0xff] }
  0x96   :  { %745 = vmatpush1.bf16.msra.mxu1 %v211_v54  ;;  %705 = vmatprep.subr.bf16.mxu0 %v202_v55  ;;  %v993_v54 = vld [vmem:[%s4760_s5 + $0x500] sm:$0xff]  ;;  %v1434_v55 = vpack.c.bf16 %v998_v46, %v994_v45  ;;  %v1369_v61 = vpack.c.bf16 %v869_v52, %v865_v51  ;;  %v1086_v42 = vld [vmem:[%s4760_s5 + $0x7e8] sm:$0xff]  ;;  %v1414_v45 = vpack.c.bf16 %v958_v41, %v954_v40 }
  0x97   :  { %746 = vmatprep.subr.bf16.mxu1 %v204_v59  ;;  %v986_v59 = vld [vmem:[%s4760_s5 + $0x4c8] sm:$0xff]  ;;  %v1433_v62 = vpack.c.bf16 %v997_v56, %v993_v54  ;;  %v953_v46 = vld [vmem:[%s4760_s5 + $0x3c0] sm:$0xff] }
  0x98   :  { %v1085_v51 = vld [vmem:[%s4760_s5 + $0x7e0] sm:$0xff]  ;;  %v946_v52 = vld [vmem:[%s4760_s5 + $0x388] sm:$0xff] }
  0x99   :  { %706 = vmatpush1.bf16.msra.mxu0 %v201_v2  ;;  %v861_v2 = vld [vmem:[%s4760_s5 + $0xe0] sm:$0xff]  ;;  %v950_v54 = vld [vmem:[%s4760_s5 + $0x3a8] sm:$0xff] }
  0x9a   :  { %747 = vmatpush1.bf16.msra.mxu1 %v203_v3  ;;  %707 = vmatprep.subr.bf16.mxu0 %v194_v4  ;;  %v985_v3 = vld [vmem:[%s4760_s5 + $0x4c0] sm:$0xff]  ;;  %v1430_v4 = vpack.c.bf16 %v990_v60, %v986_v59  ;;  %v1365_v10 = vpack.c.bf16 %v861_v2, %v857_v1  ;;  %v1078_v56 = vld [vmem:[%s4760_s5 + $0x7a8] sm:$0xff]  ;;  %v1410_v59 = vpack.c.bf16 %v950_v54, %v946_v52 }
  0x9b   :  { %748 = vmatprep.subr.bf16.mxu1 %v196_v8  ;;  %v978_v8 = vld [vmem:[%s4760_s5 + $0x488] sm:$0xff]  ;;  %v1429_v11 = vpack.c.bf16 %v989_v5, %v985_v3  ;;  %v945_v60 = vld [vmem:[%s4760_s5 + $0x380] sm:$0xff] }
  0x9c   :  { %v1077_v1 = vld [vmem:[%s4760_s5 + $0x7a0] sm:$0xff]  ;;  %v938_v2 = vld [vmem:[%s4760_s5 + $0x348] sm:$0xff] }
  0x9d   :  { %708 = vmatpush1.bf16.msra.mxu0 %v193_v14  ;;  %v853_v14 = vld [vmem:[%s4760_s5 + $0xa0] sm:$0xff]  ;;  %v942_v3 = vld [vmem:[%s4760_s5 + $0x368] sm:$0xff] }
  0x9e   :  { %749 = vmatpush1.bf16.msra.mxu1 %v195_v15  ;;  %1631 = vmatprep.subr.bf16.mxu0 %v1382_v16  ;;  %v977_v15 = vld [vmem:[%s4760_s5 + $0x480] sm:$0xff]  ;;  %v1426_v16 = vpack.c.bf16 %v982_v9, %v978_v8  ;;  %v1361_v22 = vpack.c.bf16 %v853_v14, %v849_v13  ;;  %v1070_v5 = vld [vmem:[%s4760_s5 + $0x768] sm:$0xff]  ;;  %v1406_v8 = vpack.c.bf16 %v942_v3, %v938_v2 }
  0x9f   :  { %1672 = vmatprep.subr.bf16.mxu1 %v1446_v20  ;;  %v970_v20 = vld [vmem:[%s4760_s5 + $0x448] sm:$0xff]  ;;  %v1425_v0 = vpack.c.bf16 %v981_v17, %v977_v15  ;;  %v937_v9 = vld [vmem:[%s4760_s5 + $0x340] sm:$0xff] }
  0xa0   :  { %726 = vmatmul.mubr.bf16.vlgmr.msra.gmra.mxu0 %v2936_v53  ;;  %v1069_v13 = vld [vmem:[%s4760_s5 + $0x760] sm:$0xff]  ;;  %v930_v14 = vld [vmem:[%s4760_s5 + $0x308] sm:$0xff] }
  0xa1   :  { %767 = vmatmul.mubr.bf16.vlgmr.msra.gmra.mxu1 %v2936_v53  ;;  %1632 = vmatpush1.bf16.msra.mxu0 %v1381_v25  ;;  %v1438_v53 = vpack.c.bf16 %v1006_v36, %v1002_v35  ;;  %v845_v25 = vld [vmem:[%s4760_s5 + $0x60] sm:$0xff]  ;;  %v1354_v35 = vpack.c.bf16 %v838_v30, %v834_v29  ;;  %v934_v15 = vld [vmem:[%s4760_s5 + $0x328] sm:$0xff] }
  0xa2   :  { %1673 = vmatpush1.bf16.msra.mxu1 %v1445_v26  ;;  %1633 = vmatprep.subr.bf16.mxu0 %v1378_v27  ;;  %v969_v26 = vld [vmem:[%s4760_s5 + $0x440] sm:$0xff]  ;;  %v1422_v27 = vpack.c.bf16 %v974_v21, %v970_v20  ;;  %v1357_v33 = vpack.c.bf16 %v845_v25, %v841_v24  ;;  %v1062_v17 = vld [vmem:[%s4760_s5 + $0x728] sm:$0xff]  ;;  %v1402_v20 = vpack.c.bf16 %v934_v15, %v930_v14 }
  0xa3   :  { %1674 = vmatprep.subr.bf16.mxu1 %v1442_v31  ;;  %v962_v31 = vld [vmem:[%s4760_s5 + $0x408] sm:$0xff]  ;;  %v1421_v34 = vpack.c.bf16 %v973_v28, %v969_v26  ;;  %v833_v36 = vld [vmem:[%s4760_s5] sm:$0xff] }
  0xa4   :  { %v929_v21 = vld [vmem:[%s4760_s5 + $0x300] sm:$0xff]  ;;  %v922_v25 = vld [vmem:[%s4760_s5 + $0x2c8] sm:$0xff] }
  0xa5   :  { %1634 = vmatpush1.bf16.msra.mxu0 %v1377_v37  ;;  %v837_v37 = vld [vmem:[%s4760_s5 + $0x20] sm:$0xff]  ;;  %v926_v26 = vld [vmem:[%s4760_s5 + $0x2e8] sm:$0xff] }
  0xa6   :  { %1675 = vmatpush1.bf16.msra.mxu1 %v1441_v38  ;;  %1635 = vmatprep.subr.bf16.mxu0 %v1374_v47  ;;  %v961_v38 = vld [vmem:[%s4760_s5 + $0x400] sm:$0xff]  ;;  %v1418_v47 = vpack.c.bf16 %v966_v32, %v962_v31  ;;  %v1353_v43 = vpack.c.bf16 %v837_v37, %v833_v36  ;;  %v1054_v28 = vld [vmem:[%s4760_s5 + $0x6e8] sm:$0xff]  ;;  %v1398_v31 = vpack.c.bf16 %v926_v26, %v922_v25 }
  0xa7   :  { %1676 = vmatprep.subr.bf16.mxu1 %v1438_v53  ;;  %v1082_v53 = vld [vmem:[%s4760_s5 + $0x7c8] sm:$0xff]  ;;  %v1417_v44 = vpack.c.bf16 %v965_v39, %v961_v38  ;;  %v1061_v24 = vld [vmem:[%s4760_s5 + $0x720] sm:$0xff] }
  0xa8   :  { %v921_v32 = vld [vmem:[%s4760_s5 + $0x2c0] sm:$0xff]  ;;  %v914_v37 = vld [vmem:[%s4760_s5 + $0x288] sm:$0xff] }
  0xa9   :  { %1636 = vmatpush1.bf16.msra.mxu0 %v1373_v48  ;;  %v957_v48 = vld [vmem:[%s4760_s5 + $0x3e0] sm:$0xff]  ;;  %v918_v38 = vld [vmem:[%s4760_s5 + $0x2a8] sm:$0xff] }
  0xaa   :  { %1677 = vmatpush1.bf16.msra.mxu1 %v1437_v49  ;;  %1637 = vmatprep.subr.bf16.mxu0 %v1370_v50  ;;  %v1081_v49 = vld [vmem:[%s4760_s5 + $0x7c0] sm:$0xff]  ;;  %v1478_v50 = vpack.c.bf16 %v1086_v42, %v1082_v53  ;;  %v1413_v57 = vpack.c.bf16 %v957_v48, %v953_v46  ;;  %v1046_v39 = vld [vmem:[%s4760_s5 + $0x6a8] sm:$0xff]  ;;  %v1394_v53 = vpack.c.bf16 %v918_v38, %v914_v37 }
  0xab   :  { %1678 = vmatprep.subr.bf16.mxu1 %v1434_v55  ;;  %v1074_v55 = vld [vmem:[%s4760_s5 + $0x788] sm:$0xff]  ;;  %v1477_v58 = vpack.c.bf16 %v1085_v51, %v1081_v49  ;;  %v1053_v36 = vld [vmem:[%s4760_s5 + $0x6e0] sm:$0xff] }
  0xac   :  { %v913_v42 = vld [vmem:[%s4760_s5 + $0x280] sm:$0xff]  ;;  %v906_v48 = vld [vmem:[%s4760_s5 + $0x248] sm:$0xff] }
  0xad   :  { %1638 = vmatpush1.bf16.msra.mxu0 %v1369_v61  ;;  %v949_v61 = vld [vmem:[%s4760_s5 + $0x3a0] sm:$0xff]  ;;  %v910_v49 = vld [vmem:[%s4760_s5 + $0x268] sm:$0xff] }
  0xae   :  { %1679 = vmatpush1.bf16.msra.mxu1 %v1433_v62  ;;  %1639 = vmatprep.subr.bf16.mxu0 %v1366_v63  ;;  %v1073_v62 = vld [vmem:[%s4760_s5 + $0x780] sm:$0xff]  ;;  %v1474_v63 = vpack.c.bf16 %v1078_v56, %v1074_v55  ;;  %v1409_v6 = vpack.c.bf16 %v949_v61, %v945_v60  ;;  %v1038_v51 = vld [vmem:[%s4760_s5 + $0x668] sm:$0xff]  ;;  %v1390_v55 = vpack.c.bf16 %v910_v49, %v906_v48 }
  0xaf   :  { %1680 = vmatprep.subr.bf16.mxu1 %v1430_v4  ;;  %v1066_v4 = vld [vmem:[%s4760_s5 + $0x748] sm:$0xff]  ;;  %v1473_v7 = vpack.c.bf16 %v1077_v1, %v1073_v62  ;;  %v1045_v46 = vld [vmem:[%s4760_s5 + $0x6a0] sm:$0xff] }
  0xb0   :  { %v905_v56 = vld [vmem:[%s4760_s5 + $0x240] sm:$0xff]  ;;  %v898_v61 = vld [vmem:[%s4760_s5 + $0x208] sm:$0xff] }
  0xb1   :  { %1640 = vmatpush1.bf16.msra.mxu0 %v1365_v10  ;;  %v941_v10 = vld [vmem:[%s4760_s5 + $0x360] sm:$0xff]  ;;  %v902_v62 = vld [vmem:[%s4760_s5 + $0x228] sm:$0xff] }
  0xb2   :  { %1681 = vmatpush1.bf16.msra.mxu1 %v1429_v11  ;;  %1641 = vmatprep.subr.bf16.mxu0 %v1362_v12  ;;  %v1065_v11 = vld [vmem:[%s4760_s5 + $0x740] sm:$0xff]  ;;  %v1470_v12 = vpack.c.bf16 %v1070_v5, %v1066_v4  ;;  %v1405_v18 = vpack.c.bf16 %v941_v10, %v937_v9  ;;  %v1030_v1 = vld [vmem:[%s4760_s5 + $0x628] sm:$0xff]  ;;  %v1386_v4 = vpack.c.bf16 %v902_v62, %v898_v61 }
  0xb3   :  { %1682 = vmatprep.subr.bf16.mxu1 %v1426_v16  ;;  %v1058_v16 = vld [vmem:[%s4760_s5 + $0x708] sm:$0xff]  ;;  %v1469_v19 = vpack.c.bf16 %v1069_v13, %v1065_v11  ;;  %v1037_v60 = vld [vmem:[%s4760_s5 + $0x660] sm:$0xff] }
  0xb4   :  { %v897_v5 = vld [vmem:[%s4760_s5 + $0x200] sm:$0xff]  ;;  %v1146_v10 = vld [vmem:[%s4760_s5 + $0x9c8] sm:$0xff] }
  0xb5   :  { %1642 = vmatpush1.bf16.msra.mxu0 %v1361_v22  ;;  %v933_v22 = vld [vmem:[%s4760_s5 + $0x320] sm:$0xff]  ;;  %v1150_v11 = vld [vmem:[%s4760_s5 + $0x9e8] sm:$0xff] }
  0xb6   :  { %1683 = vmatpush1.bf16.msra.mxu1 %v1425_v0  ;;  %1643 = vmatprep.subr.bf16.mxu0 %v1358_v23  ;;  %v1057_v0 = vld [vmem:[%s4760_s5 + $0x700] sm:$0xff]  ;;  %v1466_v23 = vpack.c.bf16 %v1062_v17, %v1058_v16  ;;  %v1401_v29 = vpack.c.bf16 %v933_v22, %v929_v21  ;;  %v1278_v13 = vld [vmem:[%s4760_s5 + $0xde8] sm:$0xff]  ;;  %v1510_v16 = vpack.c.bf16 %v1150_v11, %v1146_v10  ;;  %v777_v17 = vlaneseq }
  0xb7   :  { %1684 = vmatprep.subr.bf16.mxu1 %v1422_v27  ;;  %v1050_v27 = vld [vmem:[%s4760_s5 + $0x6c8] sm:$0xff]  ;;  %v1465_v30 = vpack.c.bf16 %v1061_v24, %v1057_v0  ;;  %v1029_v9 = vld [vmem:[%s4760_s5 + $0x620] sm:$0xff] }
  0xb8   :  { %v3509_v22 = vld [vmem:[%s4759_s4] sm:$0xff]  ;;  %v1266_v11 = vld [vmem:[%s4760_s5 + $0xd88] sm:$0xff] }
  0xb9   :  { %1644 = vmatpush1.bf16.msra.mxu0 %v1357_v33  ;;  %v925_v33 = vld [vmem:[%s4760_s5 + $0x2e0] sm:$0xff] }
  0xba   :  { %1685 = vmatpush1.bf16.msra.mxu1 %v1421_v34  ;;  %1645 = vmatprep.subr.bf16.mxu0 %v1354_v35  ;;  %v1049_v34 = vld [vmem:[%s4760_s5 + $0x6c0] sm:$0xff]  ;;  %v1462_v35 = vpack.c.bf16 %v1054_v28, %v1050_v27  ;;  %v1397_v40 = vpack.c.bf16 %v925_v33, %v921_v32 }
  0xbb   :  { %1686 = vmatprep.subr.bf16.mxu1 %v1418_v47  ;;  %v1042_v47 = vld [vmem:[%s4760_s5 + $0x688] sm:$0xff]  ;;  %v1461_v41 = vpack.c.bf16 %v1053_v36, %v1049_v34 }
  0xbd   :  { %1646 = vmatpush1.bf16.msra.mxu0 %v1353_v43  ;;  %v917_v43 = vld [vmem:[%s4760_s5 + $0x2a0] sm:$0xff] }
  0xbe   :  { %1687 = vmatpush1.bf16.msra.mxu1 %v1417_v44  ;;  %1647 = vmatprep.subr.bf16.mxu0 %v1414_v45  ;;  %v1041_v44 = vld [vmem:[%s4760_s5 + $0x680] sm:$0xff]  ;;  %v1458_v45 = vpack.c.bf16 %v1046_v39, %v1042_v47  ;;  %v1393_v52 = vpack.c.bf16 %v917_v43, %v913_v42 }
  0xbf   :  { %1688 = vmatprep.subr.bf16.mxu1 %v1478_v50  ;;  %v1034_v50 = vld [vmem:[%s4760_s5 + $0x648] sm:$0xff]  ;;  %v1457_v54 = vpack.c.bf16 %v1045_v46, %v1041_v44 }
  0xc1   :  { %1648 = vmatpush2.bf16.msra.mxu0 %v1413_v57  ;;  %v909_v57 = vld [vmem:[%s4760_s5 + $0x260] sm:$0xff] }
  0xc2   :  { %1689 = vmatpush2.bf16.msra.mxu1 %v1477_v58  ;;  %1649 = vmatprep.subr.bf16.mxu0 %v1410_v59  ;;  %v1033_v58 = vld [vmem:[%s4760_s5 + $0x640] sm:$0xff]  ;;  %v1454_v59 = vpack.c.bf16 %v1038_v51, %v1034_v50  ;;  %v1389_v2 = vpack.c.bf16 %v909_v57, %v905_v56 }
  0xc3   :  { %1690 = vmatprep.subr.bf16.mxu1 %v1474_v63  ;;  %v1026_v63 = vld [vmem:[%s4760_s5 + $0x608] sm:$0xff]  ;;  %v1453_v3 = vpack.c.bf16 %v1037_v60, %v1033_v58 }
  0xc5   :  { %1650 = vmatpush2.bf16.msra.mxu0 %v1409_v6  ;;  %v901_v6 = vld [vmem:[%s4760_s5 + $0x220] sm:$0xff] }
  0xc6   :  { %1691 = vmatpush2.bf16.msra.mxu1 %v1473_v7  ;;  %1651 = vmatprep.subr.bf16.mxu0 %v1406_v8  ;;  %v1025_v7 = vld [vmem:[%s4760_s5 + $0x600] sm:$0xff]  ;;  %v1450_v8 = vpack.c.bf16 %v1030_v1, %v1026_v63  ;;  %v1385_v14 = vpack.c.bf16 %v901_v6, %v897_v5 }
  0xc7   :  { %1692 = vmatprep.subr.bf16.mxu1 %v1470_v12  ;;  %v1274_v12 = vld [vmem:[%s4760_s5 + $0xdc8] sm:$0xff]  ;;  %v1449_v15 = vpack.c.bf16 %v1029_v9, %v1025_v7  ;;  %v1145_v1 = vld [vmem:[%s4760_s5 + $0x9c0] sm:$0xff] }
  0xc8   :  { %v1277_v7 = vld [vmem:[%s4760_s5 + $0xde0] sm:$0xff]  ;;  %v1142_v9 = vld [vmem:[%s4760_s5 + $0x9a8] sm:$0xff] }
  0xc9   :  { %1652 = vmatpush2.bf16.msra.mxu0 %v1405_v18  ;;  %v1574_v18 = vpack.c.bf16 %v1278_v13, %v1274_v12  ;;  %v1270_v12 = vld [vmem:[%s4760_s5 + $0xda8] sm:$0xff] }
  0xca   :  { %1693 = vmatpush2.bf16.msra.mxu1 %v1469_v19  ;;  %1653 = vmatprep.subr.bf16.mxu0 %v1402_v20  ;;  %v3502_v19 = vshrl.u32 %v777_v17, 7 }
  0xcb   :  { %1694 = vmatprep.subr.bf16.mxu1 %v1466_v23 }
  0xcc   :  { %v795_v20 = vsub.s32 4, %v3502_v19  ;;  %v803_v21 = vsub.s32 6, %v3502_v19  ;;  %v779_v39 = vsub.s32 0, %v3502_v19 }
  0xcd   :  { %1654 = vmatpush2.bf16.msra.mxu0 %v1401_v29 }
  0xce   :  { %1695 = vmatpush2.bf16.msra.mxu1 %v1465_v30  ;;  %1655 = vmatprep.subr.bf16.mxu0 %v1398_v31  ;;  %v3512_v0 = vrot.slane %v3509_v22, %v795_v20  ;;  %v3515_v23 = vrot.slane %v3509_v22, %v803_v21  ;;  %v780_v42 = vrot.slane %v3509_v22, %v779_v39  ;;  %v1137_v20 = vld [vmem:[%s4760_s5 + $0x980] sm:$0xff] }
  0xcf   :  { %1696 = vmatprep.subr.bf16.mxu1 %v1462_v35  ;;  %v1141_v21 = vld [vmem:[%s4760_s5 + $0x9a0] sm:$0xff] }
  0xd1   :  { %1656 = vmatpush2.bf16.msra.mxu0 %v1397_v40  ;;  %v787_v40 = vsub.s32 2, %v3502_v19 }
  0xd2   :  { %1697 = vmatpush2.bf16.msra.mxu1 %v1461_v41  ;;  %1657 = vmatprep.subr.bf16.mxu0 %v1394_v53  ;;  %v783_v41 = vsub.s32 1, %v3502_v19  ;;  %v791_v53 = vsub.s32 3, %v3502_v19 }
  0xd3   :  { %1698 = vmatprep.subr.bf16.mxu1 %v1458_v45  ;;  %v788_v44 = vrot.slane %v3509_v22, %v787_v40 }
  0xd4   :  { %v784_v48 = vrot.slane %v3509_v22, %v783_v41  ;;  %v792_v51 = vrot.slane %v3509_v22, %v791_v53 }
  0xd5   :  { %1658 = vmatpush2.bf16.msra.mxu0 %v1393_v52 }
  0xd6   :  { %1699 = vmatpush2.bf16.msra.mxu1 %v1457_v54  ;;  %1659 = vmatprep.subr.bf16.mxu0 %v1390_v55 }
  0xd7   :  { %1700 = vmatprep.subr.bf16.mxu1 %v1454_v59 }
  0xd9   :  { %1660 = vmatpush2.bf16.msra.mxu0 %v1389_v2  ;;  %v1149_v2 = vld [vmem:[%s4760_s5 + $0x9e0] sm:$0xff] }
  0xda   :  { %1701 = vmatpush2.bf16.msra.mxu1 %v1453_v3  ;;  %1661 = vmatprep.subr.bf16.mxu0 %v1386_v4  ;;  %v1273_v3 = vld [vmem:[%s4760_s5 + $0xdc0] sm:$0xff] }
  0xdb   :  { %1702 = vmatprep.subr.bf16.mxu1 %v1450_v8  ;;  %v1138_v8 = vld [vmem:[%s4760_s5 + $0x988] sm:$0xff]  ;;  %v1573_v17 = vpack.c.bf16 %v1277_v7, %v1273_v3 }
  0xdd   :  { %1662 = vmatpush2.bf16.msra.mxu0 %v1385_v14  ;;  %v1509_v14 = vpack.c.bf16 %v1149_v2, %v1145_v1 }
  0xde   :  { %1703 = vmatpush2.bf16.msra.mxu1 %v1449_v15  ;;  %1713 = vmatprep.subr.bf16.mxu0 %v1510_v16 }
  0xdf   :  { %1754 = vmatprep.subr.bf16.mxu1 %v1574_v18  ;;  %v1506_v18 = vpack.c.bf16 %v1142_v9, %v1138_v8  ;;  %v1245_v8 = vld [vmem:[%s4760_s5 + $0xce0] sm:$0xff]  ;;  %v1106_v9 = vld [vmem:[%s4760_s5 + $0x888] sm:$0xff] }
 0x100   :  { %v481_v24 = vpop.f32.mrf.mxu0 }
 0x101   :  { %v522_v25 = vpop.f32.mrf.mxu1 }
 0x102   :  { %v483_v26 = vpop.f32.mrf.mxu0 }
 0x103   :  { %v524_v27 = vpop.f32.mrf.mxu1 }
 0x104   :  { %v485_v28 = vpop.f32.mrf.mxu0 }
 0x105   :  { %v526_v29 = vpop.f32.mrf.mxu1  ;;  %v1130_v28 = vld [vmem:[%s4760_s5 + $0x948] sm:$0xff] }
 0x106   :  { %v486_v30 = vpop.f32.mrf.mxu0  ;;  %v1134_v29 = vld [vmem:[%s4760_s5 + $0x968] sm:$0xff] }
 0x107   :  { %v527_v31 = vpop.f32.mrf.mxu1  ;;  %v1258_v30 = vld [vmem:[%s4760_s5 + $0xd48] sm:$0xff] }
 0x108   :  { %v1262_v31 = vld [vmem:[%s4760_s5 + $0xd68] sm:$0xff] }
 0x120   :  { %v3517_v32 = vpop.f32.mrf.mxu0 }
 0x121   :  { %v3519_v33 = vpop.f32.mrf.mxu1 }
 0x122   :  { %v3521_v34 = vpop.f32.mrf.mxu0 }
 0x123   :  { %v3523_v35 = vpop.f32.mrf.mxu1 }
 0x124   :  { %v567_v36 = vpop.f32.mrf.mxu0 }
 0x125   :  { %v608_v37 = vpop.f32.mrf.mxu1  ;;  %v1505_v36 = vpack.c.bf16 %v1141_v21, %v1137_v20  ;;  %v1105_v20 = vld [vmem:[%s4760_s5 + $0x880] sm:$0xff] }
 0x126   :  { %v568_v38 = vpop.f32.mrf.mxu0  ;;  %v1109_v21 = vld [vmem:[%s4760_s5 + $0x8a0] sm:$0xff] }
 0x127   :  { %v609_v47 = vpop.f32.mrf.mxu1  ;;  %v1502_v38 = vpack.c.bf16 %v1134_v29, %v1130_v28  ;;  %v1098_v28 = vld [vmem:[%s4760_s5 + $0x848] sm:$0xff] }
 0x128   :  { %v1129_v47 = vld [vmem:[%s4760_s5 + $0x940] sm:$0xff]  ;;  %v1102_v29 = vld [vmem:[%s4760_s5 + $0x868] sm:$0xff] }
 0x140   :  { %v645_v43 = vpop.f32.mrf.mxu0 }
 0x141   :  { %v646_v45 = vadd.f32 %v645_v43, %v481_v24  ;;  %v686_v46 = vpop.f32.mrf.mxu1  ;;  %v1265_v24 = vld [vmem:[%s4760_s5 + $0xd80] sm:$0xff] }
 0x142   :  { %v687_v49 = vadd.f32 %v686_v46, %v522_v25  ;;  %v647_v50 = vpop.f32.mrf.mxu0  ;;  %v1257_v43 = vld [vmem:[%s4760_s5 + $0xd40] sm:$0xff]  ;;  %v1122_v46 = vld [vmem:[%s4760_s5 + $0x908] sm:$0xff] }
 0x143   :  { %v817_v52 = vadd.f32 %v780_v42, %v646_v45  ;;  %v648_v54 = vadd.f32 %v647_v50, %v483_v26  ;;  %v688_v55 = vpop.f32.mrf.mxu1  ;;  %v1570_v26 = vpack.c.bf16 %v1270_v12, %v1266_v11  ;;  %v1133_v42 = vld [vmem:[%s4760_s5 + $0x960] sm:$0xff]  ;;  %v1254_v50 = vld [vmem:[%s4760_s5 + $0xd28] sm:$0xff] }
 0x144   :  { %v819_v56 = vadd.f32 %v788_v44, %v687_v49  ;;  %v689_v57 = vadd.f32 %v688_v55, %v524_v27  ;;  %v649_v58 = vpop.f32.mrf.mxu0  ;;  %v1269_v27 = vld [vmem:[%s4760_s5 + $0xda0] sm:$0xff]  ;;  %v1566_v44 = vpack.c.bf16 %v1262_v31, %v1258_v30  ;;  %v1250_v49 = vld [vmem:[%s4760_s5 + $0xd08] sm:$0xff] }
 0x145   :  { %v818_v59 = vadd.f32 %v784_v48, %v648_v54  ;;  %v690_v60 = vpop.f32.mrf.mxu1  ;;  %v825_v61 = vmax.f32 %v817_v52, 0.0  ;;  %v1569_v37 = vpack.c.bf16 %v1269_v27, %v1265_v24  ;;  %v1261_v45 = vld [vmem:[%s4760_s5 + $0xd60] sm:$0xff]  ;;  %v1126_v48 = vld [vmem:[%s4760_s5 + $0x928] sm:$0xff]  ;;  %v1562_v58 = vpack.c.bf16 %v1254_v50, %v1250_v49 }
 0x146   :  { %v820_v62 = vadd.f32 %v792_v51, %v689_v57  ;;  %v650_v63 = vpop.f32.mrf.mxu0  ;;  %v827_v4 = vmax.f32 %v819_v56, 0.0  ;;  %v1501_v51 = vpack.c.bf16 %v1133_v42, %v1129_v47  ;;  %v1565_v52 = vpack.c.bf16 %v1261_v45, %v1257_v43  ;;  %v1121_v55 = vld [vmem:[%s4760_s5 + $0x900] sm:$0xff]  ;;  %v1114_v60 = vld [vmem:[%s4760_s5 + $0x8c8] sm:$0xff] }
 0x147   :  { %v826_v5 = vmax.f32 %v818_v59, 0.0  ;;  %v691_v6 = vpop.f32.mrf.mxu1  ;;  %v3567_v15 = vpack.c.bf16 %v825_v61, %v825_v61  ;;  %v1498_v54 = vpack.c.bf16 %v1126_v48, %v1122_v46  ;;  %v1125_v56 = vld [vmem:[%s4760_s5 + $0x920] sm:$0xff]  ;;  %v1118_v61 = vld [vmem:[%s4760_s5 + $0x8e8] sm:$0xff]  ;;  %v1486_v42 = vpack.c.bf16 %v1102_v29, %v1098_v28 }
 0x148   :  { %v828_v10 = vmax.f32 %v820_v62, 0.0  ;;  %v3580_v25 = vpack.c.bf16 %v827_v4, %v827_v4  ;;  %v1249_v57 = vld [vmem:[%s4760_s5 + $0xd00] sm:$0xff]  ;;  %v1242_v62 = vld [vmem:[%s4760_s5 + $0xcc8] sm:$0xff]  ;;  %v1497_v1 = vpack.c.bf16 %v1125_v56, %v1121_v55  ;;  %v1494_v3 = vpack.c.bf16 %v1118_v61, %v1114_v60 }
 0x149   :  { %v3565_v13 = vpack.c.bf16 %v826_v5, %v826_v5  ;;  %v1253_v59 = vld [vmem:[%s4760_s5 + $0xd20] sm:$0xff]  ;;  %v1246_v63 = vld [vmem:[%s4760_s5 + $0xce8] sm:$0xff] }
 0x14a   :  { %v3569_v16 = vpack.c.bf16 %v828_v10, %v828_v10  ;;  %v1561_v2 = vpack.c.bf16 %v1253_v59, %v1249_v57  ;;  %v1113_v4 = vld [vmem:[%s4760_s5 + $0x8c0] sm:$0xff]  ;;  %v1558_v7 = vpack.c.bf16 %v1246_v63, %v1242_v62  ;;  %v1110_v10 = vld [vmem:[%s4760_s5 + $0x8a8] sm:$0xff] }
 0x14b   :  { %1663 = vmatprep.mubr.bf16.mxu0 %v3565_v13  ;;  %v1117_v5 = vld [vmem:[%s4760_s5 + $0x8e0] sm:$0xff]  ;;  %v1234_v11 = vld [vmem:[%s4760_s5 + $0xc88] sm:$0xff] }
 0x14c   :  { %1704 = vmatprep.mubr.bf16.mxu1 %v3569_v16  ;;  %1664 = vmatmul.mubr.bf16.vlgmr.msra.gmra.mxu0 %v3567_v15  ;;  %v1241_v6 = vld [vmem:[%s4760_s5 + $0xcc0] sm:$0xff]  ;;  %v1238_v12 = vld [vmem:[%s4760_s5 + $0xca8] sm:$0xff] }
 0x14d   :  { %1705 = vmatmul.mubr.bf16.vlgmr.msra.gmra.mxu1 %v3580_v25  ;;  %1714 = vmatpush1.bf16.msra.mxu0 %v1509_v14  ;;  %v1493_v14 = vpack.c.bf16 %v1117_v5, %v1113_v4  ;;  %v1233_v24 = vld [vmem:[%s4760_s5 + $0xc80] sm:$0xff]  ;;  %v1226_v30 = vld [vmem:[%s4760_s5 + $0xc48] sm:$0xff] }
 0x14e   :  { %1755 = vmatpush1.bf16.msra.mxu1 %v1573_v17  ;;  %1715 = vmatprep.subr.bf16.mxu0 %v1506_v18  ;;  %v1557_v17 = vpack.c.bf16 %v1245_v8, %v1241_v6  ;;  %v1490_v18 = vpack.c.bf16 %v1110_v10, %v1106_v9  ;;  %v1237_v27 = vld [vmem:[%s4760_s5 + $0xca0] sm:$0xff]  ;;  %v1230_v31 = vld [vmem:[%s4760_s5 + $0xc68] sm:$0xff] }
 0x14f   :  { %1756 = vmatprep.subr.bf16.mxu1 %v1570_v26  ;;  %v1554_v26 = vpack.c.bf16 %v1238_v12, %v1234_v11  ;;  %v1553_v47 = vpack.c.bf16 %v1237_v27, %v1233_v24  ;;  %v1097_v43 = vld [vmem:[%s4760_s5 + $0x840] sm:$0xff]  ;;  %v1550_v46 = vpack.c.bf16 %v1230_v31, %v1226_v30  ;;  %v1090_v49 = vld [vmem:[%s4760_s5 + $0x808] sm:$0xff] }
 0x150   :  { %v1225_v45 = vld [vmem:[%s4760_s5 + $0xc40] sm:$0xff]  ;;  %v1094_v50 = vld [vmem:[%s4760_s5 + $0x828] sm:$0xff] }
 0x151   :  { %1716 = vmatpush1.bf16.msra.mxu0 %v1505_v36  ;;  %v1489_v36 = vpack.c.bf16 %v1109_v21, %v1105_v20  ;;  %v1229_v48 = vld [vmem:[%s4760_s5 + $0xc60] sm:$0xff]  ;;  %v1482_v63 = vpack.c.bf16 %v1094_v50, %v1090_v49  ;;  %v1210_v6 = vld [vmem:[%s4760_s5 + $0xbc8] sm:$0xff] }
 0x152   :  { %1757 = vmatpush1.bf16.msra.mxu1 %v1569_v37  ;;  %1717 = vmatprep.subr.bf16.mxu0 %v1502_v38  ;;  %v799_v37 = vsub.s32 5, %v3502_v19  ;;  %v807_v38 = vsub.s32 7, %v3502_v19  ;;  %v1549_v62 = vpack.c.bf16 %v1229_v48, %v1225_v45  ;;  %v1221_v5 = vld [vmem:[%s4760_s5 + $0xc20] sm:$0xff]  ;;  %v1338_v8 = vld [vmem:[%s4760_s5 + $0xfc8] sm:$0xff] }
 0x153   :  { %1758 = vmatprep.subr.bf16.mxu1 %v1566_v44  ;;  %v1101_v44 = vld [vmem:[%s4760_s5 + $0x860] sm:$0xff]  ;;  %v1342_v9 = vld [vmem:[%s4760_s5 + $0xfe8] sm:$0xff] }
 0x154   :  { %v800_v57 = vrot.slane %v3509_v22, %v799_v37  ;;  %v1485_v59 = vpack.c.bf16 %v1101_v44, %v1097_v43  ;;  %v1213_v20 = vld [vmem:[%s4760_s5 + $0xbe0] sm:$0xff]  ;;  %v1606_v27 = vpack.c.bf16 %v1342_v9, %v1338_v8  ;;  %v1202_v29 = vld [vmem:[%s4760_s5 + $0xb88] sm:$0xff] }
 0x155   :  { %1718 = vmatpush1.bf16.msra.mxu0 %v1501_v51  ;;  %v1337_v21 = vld [vmem:[%s4760_s5 + $0xfc0] sm:$0xff]  ;;  %v1206_v30 = vld [vmem:[%s4760_s5 + $0xba8] sm:$0xff] }
 0x156   :  { %1759 = vmatpush1.bf16.msra.mxu1 %v1565_v52  ;;  %1719 = vmatprep.subr.bf16.mxu0 %v1498_v54  ;;  %v1218_v52 = vld [vmem:[%s4760_s5 + $0xc08] sm:$0xff]  ;;  %v1341_v28 = vld [vmem:[%s4760_s5 + $0xfe0] sm:$0xff]  ;;  %v1538_v45 = vpack.c.bf16 %v1206_v30, %v1202_v29 }
 0x157   :  { %1760 = vmatprep.subr.bf16.mxu1 %v1562_v58  ;;  %v1222_v54 = vld [vmem:[%s4760_s5 + $0xc28] sm:$0xff]  ;;  %v808_v58 = vrot.slane %v3509_v22, %v807_v38  ;;  %v1217_v22 = vld [vmem:[%s4760_s5 + $0xc00] sm:$0xff]  ;;  %v1605_v44 = vpack.c.bf16 %v1341_v28, %v1337_v21 }
 0x158   :  { %v1546_v4 = vpack.c.bf16 %v1222_v54, %v1218_v52  ;;  %v1330_v37 = vld [vmem:[%s4760_s5 + $0xf88] sm:$0xff]  ;;  %v1205_v48 = vld [vmem:[%s4760_s5 + $0xba0] sm:$0xff] }
 0x159   :  { %1720 = vmatpush1.bf16.msra.mxu0 %v1497_v1  ;;  %v1089_v1 = vld [vmem:[%s4760_s5 + $0x800] sm:$0xff]  ;;  %v1334_v38 = vld [vmem:[%s4760_s5 + $0xfa8] sm:$0xff] }
 0x15a   :  { %1761 = vmatpush1.bf16.msra.mxu1 %v1561_v2  ;;  %1721 = vmatprep.subr.bf16.mxu0 %v1494_v3  ;;  %v1329_v49 = vld [vmem:[%s4760_s5 + $0xf80] sm:$0xff]  ;;  %v1602_v50 = vpack.c.bf16 %v1334_v38, %v1330_v37  ;;  %v1194_v52 = vld [vmem:[%s4760_s5 + $0xb48] sm:$0xff] }
 0x15b   :  { %1762 = vmatprep.subr.bf16.mxu1 %v1558_v7  ;;  %v1214_v7 = vld [vmem:[%s4760_s5 + $0xbe8] sm:$0xff]  ;;  %v1313_v8 = vld [vmem:[%s4760_s5 + $0xf00] sm:$0xff] }
 0x15c   :  { %v1198_v54 = vld [vmem:[%s4760_s5 + $0xb68] sm:$0xff]  ;;  %v1181_v21 = vld [vmem:[%s4760_s5 + $0xae0] sm:$0xff] }
 0x15d   :  { %1722 = vmatpush1.bf16.msra.mxu0 %v1493_v14  ;;  %v1170_v28 = vld [vmem:[%s4760_s5 + $0xa88] sm:$0xff] }
 0x15e   :  { %1763 = vmatpush1.bf16.msra.mxu1 %v1557_v17  ;;  %1723 = vmatprep.subr.bf16.mxu0 %v1490_v18  ;;  %v1542_v18 = vpack.c.bf16 %v1214_v7, %v1210_v6  ;;  %v1185_v7 = vld [vmem:[%s4760_s5 + $0xb00] sm:$0xff]  ;;  %v1174_v29 = vld [vmem:[%s4760_s5 + $0xaa8] sm:$0xff] }
 0x15f   :  { %1764 = vmatprep.subr.bf16.mxu1 %v1554_v26  ;;  %v1298_v30 = vld [vmem:[%s4760_s5 + $0xe88] sm:$0xff]  ;;  %v1522_v38 = vpack.c.bf16 %v1174_v29, %v1170_v28  ;;  %v1012_v28 = vld [vmem:[%s4760_s5 + $0x598] sm:$0xff] }
 0x160   :  { %v727_v51 = vpop.f32.mrf.mxu0  ;;  %v1016_v29 = vld [vmem:[%s4760_s5 + $0x5b8] sm:$0xff] }
 0x161   :  { %v728_v55 = vadd.f32 %v727_v51, %v3517_v32  ;;  %v768_v56 = vpop.f32.mrf.mxu1  ;;  %1724 = vmatpush1.bf16.msra.mxu0 %v1489_v36  ;;  %v1093_v32 = vld [vmem:[%s4760_s5 + $0x820] sm:$0xff] }
 0x162   :  { %v769_v60 = vadd.f32 %v768_v56, %v3519_v33  ;;  %1765 = vmatpush1.bf16.msra.mxu1 %v1553_v47  ;;  %v729_v61 = vpop.f32.mrf.mxu0  ;;  %1725 = vmatprep.subr.bf16.mxu0 %v1486_v42  ;;  %v1481_v12 = vpack.c.bf16 %v1093_v32, %v1089_v1  ;;  %v1333_v51 = vld [vmem:[%s4760_s5 + $0xfa0] sm:$0xff]  ;;  %v1326_v56 = vld [vmem:[%s4760_s5 + $0xf68] sm:$0xff] }
 0x163   :  { %v3737_v2 = vadd.f32 %v3512_v0, %v728_v55  ;;  %v730_v33 = vadd.f32 %v729_v61, %v3521_v34  ;;  %v770_v3 = vpop.f32.mrf.mxu1  ;;  %1766 = vmatprep.subr.bf16.mxu1 %v1550_v46  ;;  %v1201_v46 = vld [vmem:[%s4760_s5 + $0xb80] sm:$0xff]  ;;  %v1322_v55 = vld [vmem:[%s4760_s5 + $0xf48] sm:$0xff] }
 0x164   :  { %v3750_v0 = vadd.f32 %v3515_v23, %v769_v60  ;;  %v771_v34 = vadd.f32 %v770_v3, %v3523_v35  ;;  %v731_v10 = vpop.f32.mrf.mxu0  ;;  %v1545_v23 = vpack.c.bf16 %v1221_v5, %v1217_v22  ;;  %v1209_v35 = vld [vmem:[%s4760_s5 + $0xbc0] sm:$0xff]  ;;  %v1186_v32 = vld [vmem:[%s4760_s5 + $0xb08] sm:$0xff] }
 0x165   :  { %v822_v11 = vadd.f32 %v800_v57, %v730_v33  ;;  %1726 = vmatpush1.bf16.msra.mxu0 %v1485_v59  ;;  %v772_v14 = vpop.f32.mrf.mxu1  ;;  %v1541_v42 = vpack.c.bf16 %v1213_v20, %v1209_v35  ;;  %v1537_v57 = vpack.c.bf16 %v1205_v48, %v1201_v46  ;;  %v1534_v59 = vpack.c.bf16 %v1198_v54, %v1194_v52  ;;  %v1193_v60 = vld [vmem:[%s4760_s5 + $0xb40] sm:$0xff]  ;;  %v1190_v22 = vld [vmem:[%s4760_s5 + $0xb28] sm:$0xff] }
 0x166   :  { %v824_v17 = vadd.f32 %v808_v58, %v771_v34  ;;  %1767 = vmatpush1.bf16.msra.mxu1 %v1549_v62  ;;  %1727 = vmatprep.subr.bf16.mxu0 %v1482_v63  ;;  %v732_v24 = vpop.f32.mrf.mxu0  ;;  %v1601_v58 = vpack.c.bf16 %v1333_v51, %v1329_v49  ;;  %v1197_v61 = vld [vmem:[%s4760_s5 + $0xb60] sm:$0xff]  ;;  %v1598_v63 = vpack.c.bf16 %v1326_v56, %v1322_v55  ;;  %v1314_v33 = vld [vmem:[%s4760_s5 + $0xf08] sm:$0xff] }
 0x167   :  { %v830_v26 = vmax.f32 %v822_v11, 0.0  ;;  %1768 = vmatprep.subr.bf16.mxu1 %v1546_v4  ;;  %v773_v31 = vpop.f32.mrf.mxu1  ;;  %v1321_v62 = vld [vmem:[%s4760_s5 + $0xf40] sm:$0xff]  ;;  %v1318_v3 = vld [vmem:[%s4760_s5 + $0xf28] sm:$0xff]  ;;  %v1533_v4 = vpack.c.bf16 %v1197_v61, %v1193_v60  ;;  %v1530_v6 = vpack.c.bf16 %v1190_v22, %v1186_v32 }
 0x168   :  { %v832_v36 = vmax.f32 %v824_v17, 0.0  ;;  %v1325_v1 = vld [vmem:[%s4760_s5 + $0xf60] sm:$0xff]  ;;  %v1594_v9 = vpack.c.bf16 %v1318_v3, %v1314_v33  ;;  %v1178_v11 = vld [vmem:[%s4760_s5 + $0xac8] sm:$0xff] }
 0x169   :  { %v3783_v47 = vpack.c.bf16 %v830_v26, %v830_v26  ;;  %1728 = vmatpush1.bf16.msra.mxu0 %v1481_v12  ;;  %v1597_v5 = vpack.c.bf16 %v1325_v1, %v1321_v62  ;;  %v1189_v34 = vld [vmem:[%s4760_s5 + $0xb20] sm:$0xff]  ;;  %v1182_v12 = vld [vmem:[%s4760_s5 + $0xae8] sm:$0xff] }
 0x16a   :  { %v3785_v43 = vpack.c.bf16 %v832_v36, %v832_v36  ;;  %1769 = vmatpush1.bf16.msra.mxu1 %v1545_v23  ;;  %1729 = vmatprep.subr.bf16.mxu0 %v1542_v18  ;;  %v1317_v10 = vld [vmem:[%s4760_s5 + $0xf20] sm:$0xff]  ;;  %v1306_v14 = vld [vmem:[%s4760_s5 + $0xec8] sm:$0xff]  ;;  %v1529_v23 = vpack.c.bf16 %v1189_v34, %v1185_v7  ;;  %v1526_v35 = vpack.c.bf16 %v1182_v12, %v1178_v11  ;;  %v1024_v11 = vld [vmem:[%s4760_s5 + $0x5f8] sm:$0xff] }
 0x16b   :  { %1745 = vmatprep.mubr.bf16.mxu0 %v3783_v47  ;;  %1770 = vmatprep.subr.bf16.mxu1 %v1606_v27  ;;  %v1310_v17 = vld [vmem:[%s4760_s5 + $0xee8] sm:$0xff]  ;;  %v1593_v18 = vpack.c.bf16 %v1317_v10, %v1313_v8  ;;  %v1177_v20 = vld [vmem:[%s4760_s5 + $0xac0] sm:$0xff]  ;;  %v892_v8 = vld [vmem:[%s4760_s5 + $0x1d8] sm:$0xff] }
 0x16c   :  { %1786 = vmatprep.mubr.bf16.mxu1 %v3785_v43  ;;  %v1305_v24 = vld [vmem:[%s4760_s5 + $0xec0] sm:$0xff]  ;;  %v1590_v26 = vpack.c.bf16 %v1310_v17, %v1306_v14  ;;  %v1302_v31 = vld [vmem:[%s4760_s5 + $0xea8] sm:$0xff]  ;;  %v1525_v36 = vpack.c.bf16 %v1181_v21, %v1177_v20  ;;  %v1020_v10 = vld [vmem:[%s4760_s5 + $0x5d8] sm:$0xff]  ;;  %v829_v14 = vmax.f32 %v3737_v2, 0.0  ;;  %v831_v20 = vmax.f32 %v3750_v0, 0.0 }
 0x16d   :  { %1730 = vmatpush2.bf16.msra.mxu0 %v1541_v42  ;;  %v1309_v27 = vld [vmem:[%s4760_s5 + $0xee0] sm:$0xff]  ;;  %v1586_v46 = vpack.c.bf16 %v1302_v31, %v1298_v30  ;;  %v1162_v49 = vld [vmem:[%s4760_s5 + $0xa48] sm:$0xff]  ;;  %v1448_v21 = vpack.c.bf16 %v1024_v11, %v1020_v10  ;;  %v1019_v2 = vld [vmem:[%s4760_s5 + $0x5d0] sm:$0xff] }
 0x16e   :  { %1771 = vmatpush2.bf16.msra.mxu1 %v1605_v44  ;;  %1731 = vmatprep.subr.bf16.mxu0 %v1538_v45  ;;  %v1589_v37 = vpack.c.bf16 %v1309_v27, %v1305_v24  ;;  %v1169_v42 = vld [vmem:[%s4760_s5 + $0xa80] sm:$0xff]  ;;  %v1290_v51 = vld [vmem:[%s4760_s5 + $0xe48] sm:$0xff]  ;;  %v1023_v24 = vld [vmem:[%s4760_s5 + $0x5f0] sm:$0xff]  ;;  %v3983_v30 = vpack.c.bf16 %v829_v14, %v829_v14 }
 0x16f   :  { %1772 = vmatprep.subr.bf16.mxu1 %v1602_v50  ;;  %v1173_v44 = vld [vmem:[%s4760_s5 + $0xaa0] sm:$0xff]  ;;  %v1166_v50 = vld [vmem:[%s4760_s5 + $0xa68] sm:$0xff]  ;;  %v888_v27 = vld [vmem:[%s4760_s5 + $0x1b8] sm:$0xff]  ;;  %v1447_v31 = vpack.c.bf16 %v1023_v24, %v1019_v2 }
 0x170   :  { %v1297_v45 = vld [vmem:[%s4760_s5 + $0xe80] sm:$0xff]  ;;  %v1294_v52 = vld [vmem:[%s4760_s5 + $0xe68] sm:$0xff]  ;;  %v1521_v54 = vpack.c.bf16 %v1173_v44, %v1169_v42  ;;  %v1518_v56 = vpack.c.bf16 %v1166_v50, %v1162_v49  ;;  %v3994_v42 = vpack.c.bf16 %v831_v20, %v831_v20  ;;  %v1444_v49 = vpack.c.bf16 %v1016_v29, %v1012_v28  ;;  %v1004_v50 = vld [vmem:[%s4760_s5 + $0x558] sm:$0xff] }
 0x171   :  { %1732 = vmatpush2.bf16.msra.mxu0 %v1537_v57  ;;  %v1301_v48 = vld [vmem:[%s4760_s5 + $0xea0] sm:$0xff]  ;;  %v1582_v60 = vpack.c.bf16 %v1294_v52, %v1290_v51  ;;  %v1154_v62 = vld [vmem:[%s4760_s5 + $0xa08] sm:$0xff]  ;;  %v1008_v51 = vld [vmem:[%s4760_s5 + $0x578] sm:$0xff] }
 0x172   :  { %1773 = vmatpush2.bf16.msra.mxu1 %v1601_v58  ;;  %1733 = vmatprep.subr.bf16.mxu0 %v1534_v59  ;;  %v1585_v55 = vpack.c.bf16 %v1301_v48, %v1297_v45  ;;  %v1161_v57 = vld [vmem:[%s4760_s5 + $0xa40] sm:$0xff]  ;;  %v1282_v1 = vld [vmem:[%s4760_s5 + $0xe08] sm:$0xff]  ;;  %v1015_v45 = vld [vmem:[%s4760_s5 + $0x5b0] sm:$0xff] }
 0x173   :  { %1774 = vmatprep.subr.bf16.mxu1 %v1598_v63  ;;  %v1165_v58 = vld [vmem:[%s4760_s5 + $0xa60] sm:$0xff]  ;;  %v1158_v63 = vld [vmem:[%s4760_s5 + $0xa28] sm:$0xff]  ;;  %v880_v48 = vld [vmem:[%s4760_s5 + $0x178] sm:$0xff] }
 0x174   :  { %v1289_v59 = vld [vmem:[%s4760_s5 + $0xe40] sm:$0xff]  ;;  %v1286_v32 = vld [vmem:[%s4760_s5 + $0xe28] sm:$0xff]  ;;  %v1517_v22 = vpack.c.bf16 %v1165_v58, %v1161_v57  ;;  %v1514_v3 = vpack.c.bf16 %v1158_v63, %v1154_v62  ;;  %v879_v57 = vld [vmem:[%s4760_s5 + $0x170] sm:$0xff] }
 0x175   :  { %1734 = vmatpush2.bf16.msra.mxu0 %v1533_v4  ;;  %v1293_v61 = vld [vmem:[%s4760_s5 + $0xe60] sm:$0xff]  ;;  %v1578_v7 = vpack.c.bf16 %v1286_v32, %v1282_v1  ;;  %v1003_v58 = vld [vmem:[%s4760_s5 + $0x550] sm:$0xff]  ;;  %v996_v62 = vld [vmem:[%s4760_s5 + $0x518] sm:$0xff] }
 0x176   :  { %1775 = vmatpush2.bf16.msra.mxu1 %v1597_v5  ;;  %1735 = vmatprep.subr.bf16.mxu0 %v1530_v6  ;;  %v1581_v33 = vpack.c.bf16 %v1293_v61, %v1289_v59  ;;  %v1153_v4 = vld [vmem:[%s4760_s5 + $0xa00] sm:$0xff]  ;;  %v1440_v59 = vpack.c.bf16 %v1008_v51, %v1004_v50  ;;  %v872_v61 = vld [vmem:[%s4760_s5 + $0x138] sm:$0xff]  ;;  %v863_v14 = vld [vmem:[%s4760_s5 + $0xf0] sm:$0xff] }
 0x177   :  { %1776 = vmatprep.subr.bf16.mxu1 %v1594_v9  ;;  %v1157_v5 = vld [vmem:[%s4760_s5 + $0xa20] sm:$0xff]  ;;  %v896_v9 = vld [vmem:[%s4760_s5 + $0x1f8] sm:$0xff]  ;;  %v855_v28 = vld [vmem:[%s4760_s5 + $0xb0] sm:$0xff] }
 0x178   :  { %v1281_v6 = vld [vmem:[%s4760_s5 + $0xe00] sm:$0xff]  ;;  %v1513_v12 = vpack.c.bf16 %v1157_v5, %v1153_v4  ;;  %v999_v5 = vld [vmem:[%s4760_s5 + $0x530] sm:$0xff]  ;;  %v856_v20 = vld [vmem:[%s4760_s5 + $0xb8] sm:$0xff] }
 0x179   :  { %1736 = vmatpush2.bf16.msra.mxu0 %v1529_v23  ;;  %v1285_v34 = vld [vmem:[%s4760_s5 + $0xe20] sm:$0xff]  ;;  %v1384_v23 = vpack.c.bf16 %v896_v9, %v892_v8  ;;  %v992_v8 = vld [vmem:[%s4760_s5 + $0x4f8] sm:$0xff]  ;;  %v979_v29 = vld [vmem:[%s4760_s5 + $0x490] sm:$0xff] }
 0x17a   :  { %1777 = vmatpush2.bf16.msra.mxu1 %v1593_v18  ;;  %1737 = vmatprep.subr.bf16.mxu0 %v1526_v35  ;;  %v1577_v17 = vpack.c.bf16 %v1285_v34, %v1281_v6  ;;  %v891_v18 = vld [vmem:[%s4760_s5 + $0x1d0] sm:$0xff]  ;;  %v860_v6 = vld [vmem:[%s4760_s5 + $0xd8] sm:$0xff] }
 0x17b   :  { %1778 = vmatprep.subr.bf16.mxu1 %v1590_v26  ;;  %v895_v35 = vld [vmem:[%s4760_s5 + $0x1f0] sm:$0xff]  ;;  %v884_v26 = vld [vmem:[%s4760_s5 + $0x198] sm:$0xff] }
 0x17c   :  { %v1383_v0 = vpack.c.bf16 %v895_v35, %v891_v18  ;;  %v1380_v44 = vpack.c.bf16 %v888_v27, %v884_v26  ;;  %v988_v34 = vld [vmem:[%s4760_s5 + $0x4d8] sm:$0xff]  ;;  %v991_v18 = vld [vmem:[%s4760_s5 + $0x4f0] sm:$0xff] }
 0x17d   :  { %1738 = vmatpush2.bf16.msra.mxu0 %v1525_v36  ;;  %v883_v36 = vld [vmem:[%s4760_s5 + $0x190] sm:$0xff]  ;;  %v852_v35 = vld [vmem:[%s4760_s5 + $0x98] sm:$0xff] }
 0x17e   :  { %1779 = vmatpush2.bf16.msra.mxu1 %v1589_v37  ;;  %1739 = vmatprep.subr.bf16.mxu0 %v1522_v38  ;;  %v887_v37 = vld [vmem:[%s4760_s5 + $0x1b0] sm:$0xff]  ;;  %v984_v2 = vld [vmem:[%s4760_s5 + $0x4b8] sm:$0xff]  ;;  %v1364_v27 = vpack.c.bf16 %v856_v20, %v852_v35 }
 0x17f   :  { %1780 = vmatprep.subr.bf16.mxu1 %v1586_v46  ;;  %v1011_v38 = vld [vmem:[%s4760_s5 + $0x590] sm:$0xff]  ;;  %v876_v46 = vld [vmem:[%s4760_s5 + $0x158] sm:$0xff]  ;;  %v1379_v52 = vpack.c.bf16 %v887_v37, %v883_v36 }
 0x180   :  { %v983_v36 = vld [vmem:[%s4760_s5 + $0x4b0] sm:$0xff]  ;;  %v844_v37 = vld [vmem:[%s4760_s5 + $0x58] sm:$0xff] }
 0x181   :  { %1740 = vmatpush2.bf16.msra.mxu0 %v1521_v54  ;;  %v1443_v54 = vpack.c.bf16 %v1015_v45, %v1011_v38  ;;  %v848_v38 = vld [vmem:[%s4760_s5 + $0x78] sm:$0xff]  ;;  %v843_v50 = vld [vmem:[%s4760_s5 + $0x50] sm:$0xff] }
 0x182   :  { %1781 = vmatpush2.bf16.msra.mxu1 %v1585_v55  ;;  %1741 = vmatprep.subr.bf16.mxu0 %v1518_v56  ;;  %v1376_v55 = vpack.c.bf16 %v880_v48, %v876_v46  ;;  %v875_v56 = vld [vmem:[%s4760_s5 + $0x150] sm:$0xff]  ;;  %v976_v45 = vld [vmem:[%s4760_s5 + $0x478] sm:$0xff]  ;;  %v1427_v48 = vpack.c.bf16 %v983_v36, %v979_v29 }
 0x183   :  { %1782 = vmatprep.subr.bf16.mxu1 %v1582_v60  ;;  %v868_v60 = vld [vmem:[%s4760_s5 + $0x118] sm:$0xff]  ;;  %v1375_v63 = vpack.c.bf16 %v879_v57, %v875_v56  ;;  %v847_v51 = vld [vmem:[%s4760_s5 + $0x70] sm:$0xff] }
 0x184   :  { %v1372_v32 = vpack.c.bf16 %v872_v61, %v868_v60  ;;  %v836_v56 = vld [vmem:[%s4760_s5 + $0x18] sm:$0xff] }
 0x185   :  { %1742 = vmatpush2.bf16.msra.mxu0 %v1517_v22  ;;  %v867_v22 = vld [vmem:[%s4760_s5 + $0x110] sm:$0xff]  ;;  %v840_v57 = vld [vmem:[%s4760_s5 + $0x38] sm:$0xff] }
 0x186   :  { %1783 = vmatpush2.bf16.msra.mxu1 %v1581_v33  ;;  %1743 = vmatprep.subr.bf16.mxu0 %v1514_v3  ;;  %v871_v33 = vld [vmem:[%s4760_s5 + $0x130] sm:$0xff]  ;;  %v1356_v61 = vpack.c.bf16 %v840_v57, %v836_v56  ;;  %v1068_v29 = vld [vmem:[%s4760_s5 + $0x758] sm:$0xff] }
 0x187   :  { %1784 = vmatprep.subr.bf16.mxu1 %v1578_v7  ;;  %v995_v3 = vld [vmem:[%s4760_s5 + $0x510] sm:$0xff]  ;;  %v864_v7 = vld [vmem:[%s4760_s5 + $0xf8] sm:$0xff]  ;;  %v1371_v9 = vpack.c.bf16 %v871_v33, %v867_v22 }
 0x188   :  { %v1435_v10 = vpack.c.bf16 %v999_v5, %v995_v3  ;;  %v1368_v11 = vpack.c.bf16 %v864_v7, %v860_v6  ;;  %v956_v22 = vld [vmem:[%s4760_s5 + $0x3d8] sm:$0xff] }
 0x189   :  { %1744 = vmatpush2.bf16.msra.mxu0 %v1513_v12  ;;  %v859_v12 = vld [vmem:[%s4760_s5 + $0xd0] sm:$0xff]  ;;  %v960_v33 = vld [vmem:[%s4760_s5 + $0x3f8] sm:$0xff] }
 0x18a   :  { %1785 = vmatpush2.bf16.msra.mxu1 %v1577_v17  ;;  %1795 = vmatprep.subr.bf16.mxu0 %v1384_v23  ;;  %v987_v17 = vld [vmem:[%s4760_s5 + $0x4d0] sm:$0xff]  ;;  %v1432_v23 = vpack.c.bf16 %v992_v8, %v988_v34  ;;  %v1367_v24 = vpack.c.bf16 %v863_v14, %v859_v12  ;;  %v1084_v3 = vld [vmem:[%s4760_s5 + $0x7d8] sm:$0xff]  ;;  %v1416_v7 = vpack.c.bf16 %v960_v33, %v956_v22 }
 0x18b   :  { %1836 = vmatprep.subr.bf16.mxu1 %v1448_v21  ;;  %v980_v21 = vld [vmem:[%s4760_s5 + $0x498] sm:$0xff]  ;;  %v1431_v26 = vpack.c.bf16 %v991_v18, %v987_v17  ;;  %v955_v34 = vld [vmem:[%s4760_s5 + $0x3d0] sm:$0xff] }
 0x18c   :  { %1746 = vmatmul.mubr.bf16.vlgmr.msra.gmra.mxu0 %v3983_v30  ;;  %v959_v8 = vld [vmem:[%s4760_s5 + $0x3f0] sm:$0xff]  ;;  %v948_v12 = vld [vmem:[%s4760_s5 + $0x398] sm:$0xff] }
 0x18d   :  { %1787 = vmatmul.mubr.bf16.vlgmr.msra.gmra.mxu1 %v3994_v42  ;;  %1796 = vmatpush1.bf16.msra.mxu0 %v1383_v0  ;;  %v851_v0 = vld [vmem:[%s4760_s5 + $0x90] sm:$0xff]  ;;  %v952_v14 = vld [vmem:[%s4760_s5 + $0x3b8] sm:$0xff]  ;;  %v1415_v18 = vpack.c.bf16 %v959_v8, %v955_v34 }
 0x18e   :  { %1827 = vmatprep.mubr.bf16.mxu0 %v3565_v13  ;;  %1837 = vmatpush1.bf16.msra.mxu1 %v1447_v31  ;;  %v1007_v13 = vld [vmem:[%s4760_s5 + $0x570] sm:$0xff]  ;;  %v1428_v31 = vpack.c.bf16 %v984_v2, %v980_v21  ;;  %v1363_v46 = vpack.c.bf16 %v855_v28, %v851_v0  ;;  %v1076_v17 = vld [vmem:[%s4760_s5 + $0x798] sm:$0xff]  ;;  %v1412_v20 = vpack.c.bf16 %v952_v14, %v948_v12 }
 0x18f   :  { %1868 = vmatprep.mubr.bf16.mxu1 %v3569_v16  ;;  %1797 = vmatprep.subr.bf16.mxu0 %v1380_v44  ;;  %v1000_v16 = vld [vmem:[%s4760_s5 + $0x538] sm:$0xff]  ;;  %v1439_v1 = vpack.c.bf16 %v1007_v13, %v1003_v58  ;;  %v1359_v13 = vpack.c.bf16 %v847_v51, %v843_v50  ;;  %v947_v21 = vld [vmem:[%s4760_s5 + $0x390] sm:$0xff] }
 0x190   :  { %1838 = vmatprep.subr.bf16.mxu1 %v1444_v49  ;;  %v1436_v4 = vpack.c.bf16 %v1000_v16, %v996_v62  ;;  %v972_v44 = vld [vmem:[%s4760_s5 + $0x458] sm:$0xff]  ;;  %v1360_v49 = vpack.c.bf16 %v848_v38, %v844_v37  ;;  %v835_v62 = vld [vmem:[%s4760_s5 + $0x10] sm:$0xff] }
 0x191   :  { %1798 = vmatpush1.bf16.msra.mxu0 %v1379_v52  ;;  %v971_v52 = vld [vmem:[%s4760_s5 + $0x450] sm:$0xff]  ;;  %v964_v58 = vld [vmem:[%s4760_s5 + $0x418] sm:$0xff] }
 0x192   :  { %1839 = vmatpush1.bf16.msra.mxu1 %v1443_v54  ;;  %1799 = vmatprep.subr.bf16.mxu0 %v1376_v55  ;;  %v1424_v54 = vpack.c.bf16 %v976_v45, %v972_v44  ;;  %v975_v55 = vld [vmem:[%s4760_s5 + $0x470] sm:$0xff]  ;;  %v940_v0 = vld [vmem:[%s4760_s5 + $0x358] sm:$0xff] }
 0x193   :  { %1840 = vmatprep.subr.bf16.mxu1 %v1440_v59  ;;  %v968_v59 = vld [vmem:[%s4760_s5 + $0x438] sm:$0xff]  ;;  %v1423_v60 = vpack.c.bf16 %v975_v55, %v971_v52  ;;  %v839_v16 = vld [vmem:[%s4760_s5 + $0x30] sm:$0xff] }
 0x194   :  { %v1355_v5 = vpack.c.bf16 %v839_v16, %v835_v62  ;;  %v951_v2 = vld [vmem:[%s4760_s5 + $0x3b0] sm:$0xff]  ;;  %v944_v28 = vld [vmem:[%s4760_s5 + $0x378] sm:$0xff] }
 0x195   :  { %1800 = vmatpush1.bf16.msra.mxu0 %v1375_v63  ;;  %v963_v63 = vld [vmem:[%s4760_s5 + $0x410] sm:$0xff]  ;;  %v1411_v36 = vpack.c.bf16 %v951_v2, %v947_v21  ;;  %v1408_v38 = vpack.c.bf16 %v944_v28, %v940_v0  ;;  %v932_v50 = vld [vmem:[%s4760_s5 + $0x318] sm:$0xff] }
 0x196   :  { %1841 = vmatpush1.bf16.msra.mxu1 %v1439_v1  ;;  %1801 = vmatprep.subr.bf16.mxu0 %v1372_v32  ;;  %v1420_v1 = vpack.c.bf16 %v968_v59, %v964_v58  ;;  %v967_v32 = vld [vmem:[%s4760_s5 + $0x430] sm:$0xff]  ;;  %v936_v51 = vld [vmem:[%s4760_s5 + $0x338] sm:$0xff] }
 0x197   :  { %1842 = vmatprep.subr.bf16.mxu1 %v1436_v4  ;;  %v1088_v4 = vld [vmem:[%s4760_s5 + $0x7f8] sm:$0xff]  ;;  %v1419_v6 = vpack.c.bf16 %v967_v32, %v963_v63  ;;  %v939_v44 = vld [vmem:[%s4760_s5 + $0x350] sm:$0xff]  ;;  %v1404_v57 = vpack.c.bf16 %v936_v51, %v932_v50 }
 0x198   :  { %v943_v45 = vld [vmem:[%s4760_s5 + $0x370] sm:$0xff]  ;;  %v1060_v52 = vld [vmem:[%s4760_s5 + $0x718] sm:$0xff] }
 0x199   :  { %1802 = vmatpush1.bf16.msra.mxu0 %v1371_v9  ;;  %v1083_v9 = vld [vmem:[%s4760_s5 + $0x7d0] sm:$0xff]  ;;  %v1407_v55 = vpack.c.bf16 %v943_v45, %v939_v44  ;;  %v924_v62 = vld [vmem:[%s4760_s5 + $0x2d8] sm:$0xff] }
 0x19a   :  { %1843 = vmatpush1.bf16.msra.mxu1 %v1435_v10  ;;  %1803 = vmatprep.subr.bf16.mxu0 %v1368_v11  ;;  %v1480_v10 = vpack.c.bf16 %v1088_v4, %v1084_v3  ;;  %v1087_v11 = vld [vmem:[%s4760_s5 + $0x7f0] sm:$0xff]  ;;  %v928_v16 = vld [vmem:[%s4760_s5 + $0x2f8] sm:$0xff] }
 0x19b   :  { %1844 = vmatprep.subr.bf16.mxu1 %v1432_v23  ;;  %v1080_v23 = vld [vmem:[%s4760_s5 + $0x7b8] sm:$0xff]  ;;  %v1479_v35 = vpack.c.bf16 %v1087_v11, %v1083_v9  ;;  %v931_v58 = vld [vmem:[%s4760_s5 + $0x310] sm:$0xff]  ;;  %v1400_v33 = vpack.c.bf16 %v928_v16, %v924_v62 }
 0x19c   :  { %v935_v59 = vld [vmem:[%s4760_s5 + $0x330] sm:$0xff]  ;;  %v1052_v63 = vld [vmem:[%s4760_s5 + $0x6d8] sm:$0xff] }
 0x19d   :  { %1804 = vmatpush1.bf16.msra.mxu0 %v1367_v24  ;;  %v1075_v24 = vld [vmem:[%s4760_s5 + $0x790] sm:$0xff]  ;;  %v1403_v32 = vpack.c.bf16 %v935_v59, %v931_v58  ;;  %v916_v34 = vld [vmem:[%s4760_s5 + $0x298] sm:$0xff] }
 0x19e   :  { %1845 = vmatpush1.bf16.msra.mxu1 %v1431_v26  ;;  %1805 = vmatprep.subr.bf16.mxu0 %v1364_v27  ;;  %v1476_v26 = vpack.c.bf16 %v1080_v23, %v1076_v17  ;;  %v1079_v27 = vld [vmem:[%s4760_s5 + $0x7b0] sm:$0xff]  ;;  %v920_v8 = vld [vmem:[%s4760_s5 + $0x2b8] sm:$0xff] }
 0x19f   :  { %1846 = vmatprep.subr.bf16.mxu1 %v1428_v31  ;;  %v1072_v31 = vld [vmem:[%s4760_s5 + $0x778] sm:$0xff]  ;;  %v1475_v37 = vpack.c.bf16 %v1079_v27, %v1075_v24  ;;  %v923_v3 = vld [vmem:[%s4760_s5 + $0x2d0] sm:$0xff]  ;;  %v1396_v14 = vpack.c.bf16 %v920_v8, %v916_v34 }
 0x1a0   :  { %v927_v4 = vld [vmem:[%s4760_s5 + $0x2f0] sm:$0xff]  ;;  %v1044_v9 = vld [vmem:[%s4760_s5 + $0x698] sm:$0xff] }
 0x1a1   :  { %1806 = vmatpush1.bf16.msra.mxu0 %v1363_v46  ;;  %v1067_v46 = vld [vmem:[%s4760_s5 + $0x750] sm:$0xff]  ;;  %v1399_v11 = vpack.c.bf16 %v927_v4, %v923_v3  ;;  %v908_v21 = vld [vmem:[%s4760_s5 + $0x258] sm:$0xff] }
 0x1a2   :  { %1847 = vmatpush1.bf16.msra.mxu1 %v1427_v48  ;;  %1807 = vmatprep.subr.bf16.mxu0 %v1360_v49  ;;  %v1472_v48 = vpack.c.bf16 %v1072_v31, %v1068_v29  ;;  %v1071_v49 = vld [vmem:[%s4760_s5 + $0x770] sm:$0xff]  ;;  %v912_v2 = vld [vmem:[%s4760_s5 + $0x278] sm:$0xff] }
 0x1a3   :  { %1848 = vmatprep.subr.bf16.mxu1 %v1424_v54  ;;  %v1064_v54 = vld [vmem:[%s4760_s5 + $0x738] sm:$0xff]  ;;  %v1471_v56 = vpack.c.bf16 %v1071_v49, %v1067_v46  ;;  %v915_v17 = vld [vmem:[%s4760_s5 + $0x290] sm:$0xff]  ;;  %v1392_v28 = vpack.c.bf16 %v912_v2, %v908_v21 }
 0x1a4   :  { %v919_v23 = vld [vmem:[%s4760_s5 + $0x2b0] sm:$0xff]  ;;  %v1036_v24 = vld [vmem:[%s4760_s5 + $0x658] sm:$0xff] }
 0x1a5   :  { %1808 = vmatpush1.bf16.msra.mxu0 %v1359_v13  ;;  %v1059_v13 = vld [vmem:[%s4760_s5 + $0x710] sm:$0xff]  ;;  %v1395_v27 = vpack.c.bf16 %v919_v23, %v915_v17  ;;  %v900_v44 = vld [vmem:[%s4760_s5 + $0x218] sm:$0xff] }
 0x1a6   :  { %1849 = vmatpush1.bf16.msra.mxu1 %v1423_v60  ;;  %1809 = vmatprep.subr.bf16.mxu0 %v1356_v61  ;;  %v1468_v60 = vpack.c.bf16 %v1064_v54, %v1060_v52  ;;  %v1063_v61 = vld [vmem:[%s4760_s5 + $0x730] sm:$0xff]  ;;  %v904_v45 = vld [vmem:[%s4760_s5 + $0x238] sm:$0xff] }
 0x1a7   :  { %1850 = vmatprep.subr.bf16.mxu1 %v1420_v1  ;;  %v1056_v1 = vld [vmem:[%s4760_s5 + $0x6f8] sm:$0xff]  ;;  %v1467_v22 = vpack.c.bf16 %v1063_v61, %v1059_v13  ;;  %v907_v29 = vld [vmem:[%s4760_s5 + $0x250] sm:$0xff]  ;;  %v1388_v51 = vpack.c.bf16 %v904_v45, %v900_v44 }
 0x1a8   :  { %v911_v31 = vld [vmem:[%s4760_s5 + $0x270] sm:$0xff]  ;;  %v1028_v46 = vld [vmem:[%s4760_s5 + $0x618] sm:$0xff] }
 0x1a9   :  { %1810 = vmatpush1.bf16.msra.mxu0 %v1355_v5  ;;  %v1051_v5 = vld [vmem:[%s4760_s5 + $0x6d0] sm:$0xff]  ;;  %v1391_v49 = vpack.c.bf16 %v911_v31, %v907_v29  ;;  %v1148_v58 = vld [vmem:[%s4760_s5 + $0x9d8] sm:$0xff] }
 0x1aa   :  { %1851 = vmatpush1.bf16.msra.mxu1 %v1419_v6  ;;  %1811 = vmatprep.subr.bf16.mxu0 %v1416_v7  ;;  %v1464_v6 = vpack.c.bf16 %v1056_v1, %v1052_v63  ;;  %v1055_v7 = vld [vmem:[%s4760_s5 + $0x6f0] sm:$0xff]  ;;  %v1152_v59 = vld [vmem:[%s4760_s5 + $0x9f8] sm:$0xff] }
 0x1ab   :  { %1852 = vmatprep.subr.bf16.mxu1 %v1480_v10  ;;  %v1048_v10 = vld [vmem:[%s4760_s5 + $0x6b8] sm:$0xff]  ;;  %v1463_v12 = vpack.c.bf16 %v1055_v7, %v1051_v5  ;;  %v899_v52 = vld [vmem:[%s4760_s5 + $0x210] sm:$0xff]  ;;  %v1512_v16 = vpack.c.bf16 %v1152_v59, %v1148_v58 }
 0x1ac   :  { %v903_v54 = vld [vmem:[%s4760_s5 + $0x230] sm:$0xff]  ;;  %v1276_v13 = vld [vmem:[%s4760_s5 + $0xdd8] sm:$0xff] }
 0x1ad   :  { %1812 = vmatpush2.bf16.msra.mxu0 %v1415_v18  ;;  %v1043_v18 = vld [vmem:[%s4760_s5 + $0x690] sm:$0xff]  ;;  %v1387_v61 = vpack.c.bf16 %v903_v54, %v899_v52  ;;  %v1140_v3 = vld [vmem:[%s4760_s5 + $0x998] sm:$0xff] }
 0x1ae   :  { %1853 = vmatpush2.bf16.msra.mxu1 %v1479_v35  ;;  %1813 = vmatprep.subr.bf16.mxu0 %v1412_v20  ;;  %v1460_v35 = vpack.c.bf16 %v1048_v10, %v1044_v9  ;;  %v1047_v20 = vld [vmem:[%s4760_s5 + $0x6b0] sm:$0xff]  ;;  %v1144_v4 = vld [vmem:[%s4760_s5 + $0x9b8] sm:$0xff] }
 0x1af   :  { %1854 = vmatprep.subr.bf16.mxu1 %v1476_v26  ;;  %v1040_v26 = vld [vmem:[%s4760_s5 + $0x678] sm:$0xff]  ;;  %v1459_v0 = vpack.c.bf16 %v1047_v20, %v1043_v18  ;;  %v1147_v63 = vld [vmem:[%s4760_s5 + $0x9d0] sm:$0xff] }
 0x1b0   :  { %v1151_v1 = vld [vmem:[%s4760_s5 + $0x9f0] sm:$0xff]  ;;  %v1272_v7 = vld [vmem:[%s4760_s5 + $0xdb8] sm:$0xff] }
 0x1b1   :  { %1814 = vmatpush2.bf16.msra.mxu0 %v1411_v36  ;;  %v1035_v36 = vld [vmem:[%s4760_s5 + $0x650] sm:$0xff]  ;;  %v1511_v5 = vpack.c.bf16 %v1151_v1, %v1147_v63  ;;  %v1136_v17 = vld [vmem:[%s4760_s5 + $0x978] sm:$0xff] }
 0x1b2   :  { %1855 = vmatpush2.bf16.msra.mxu1 %v1475_v37  ;;  %1815 = vmatprep.subr.bf16.mxu0 %v1408_v38  ;;  %v1456_v37 = vpack.c.bf16 %v1040_v26, %v1036_v24  ;;  %v1039_v38 = vld [vmem:[%s4760_s5 + $0x670] sm:$0xff]  ;;  %v1260_v18 = vld [vmem:[%s4760_s5 + $0xd58] sm:$0xff] }
 0x1b3   :  { %1856 = vmatprep.subr.bf16.mxu1 %v1472_v48  ;;  %v1032_v48 = vld [vmem:[%s4760_s5 + $0x638] sm:$0xff]  ;;  %v1455_v50 = vpack.c.bf16 %v1039_v38, %v1035_v36  ;;  %v1139_v8 = vld [vmem:[%s4760_s5 + $0x990] sm:$0xff] }
 0x1b4   :  { %v1143_v9 = vld [vmem:[%s4760_s5 + $0x9b0] sm:$0xff] }
 0x1b5   :  { %1816 = vmatpush2.bf16.msra.mxu0 %v1407_v55  ;;  %v1027_v55 = vld [vmem:[%s4760_s5 + $0x610] sm:$0xff]  ;;  %v1507_v20 = vpack.c.bf16 %v1143_v9, %v1139_v8  ;;  %v1232_v8 = vld [vmem:[%s4760_s5 + $0xc78] sm:$0xff] }
 0x1b6   :  { %1857 = vmatpush2.bf16.msra.mxu1 %v1471_v56  ;;  %1817 = vmatprep.subr.bf16.mxu0 %v1404_v57  ;;  %v1452_v56 = vpack.c.bf16 %v1032_v48, %v1028_v46  ;;  %v1031_v57 = vld [vmem:[%s4760_s5 + $0x630] sm:$0xff]  ;;  %v1116_v48 = vld [vmem:[%s4760_s5 + $0x8d8] sm:$0xff] }
 0x1b7   :  { %1858 = vmatprep.subr.bf16.mxu1 %v1468_v60  ;;  %v1280_v60 = vld [vmem:[%s4760_s5 + $0xdf8] sm:$0xff]  ;;  %v1451_v62 = vpack.c.bf16 %v1031_v57, %v1027_v55  ;;  %v1267_v10 = vld [vmem:[%s4760_s5 + $0xd90] sm:$0xff] }
 0x1b8   :  { %v1135_v24 = vld [vmem:[%s4760_s5 + $0x970] sm:$0xff] }
 0x1b9   :  { %1818 = vmatpush2.bf16.msra.mxu0 %v1403_v32  ;;  %v1576_v32 = vpack.c.bf16 %v1280_v60, %v1276_v13  ;;  %v1259_v26 = vld [vmem:[%s4760_s5 + $0xd50] sm:$0xff]  ;;  %v1108_v60 = vld [vmem:[%s4760_s5 + $0x898] sm:$0xff] }
 0x1ba   :  { %1859 = vmatpush2.bf16.msra.mxu1 %v1467_v22  ;;  %1819 = vmatprep.subr.bf16.mxu0 %v1400_v33  ;;  %v1275_v22 = vld [vmem:[%s4760_s5 + $0xdd0] sm:$0xff] }
 0x1bb   :  { %1860 = vmatprep.subr.bf16.mxu1 %v1464_v6  ;;  %v1279_v33 = vld [vmem:[%s4760_s5 + $0xdf0] sm:$0xff]  ;;  %v1268_v6 = vld [vmem:[%s4760_s5 + $0xd98] sm:$0xff] }
 0x1bc   :  { %v1575_v34 = vpack.c.bf16 %v1279_v33, %v1275_v22  ;;  %v1572_v23 = vpack.c.bf16 %v1272_v7, %v1268_v6  ;;  %v1127_v38 = vld [vmem:[%s4760_s5 + $0x930] sm:$0xff]  ;;  %v1100_v6 = vld [vmem:[%s4760_s5 + $0x858] sm:$0xff] }
 0x1bd   :  { %1820 = vmatpush2.bf16.msra.mxu0 %v1399_v11  ;;  %v1508_v11 = vpack.c.bf16 %v1144_v4, %v1140_v3  ;;  %v1251_v44 = vld [vmem:[%s4760_s5 + $0xd10] sm:$0xff]  ;;  %v1104_v7 = vld [vmem:[%s4760_s5 + $0x878] sm:$0xff] }
 0x1be   :  { %1861 = vmatpush2.bf16.msra.mxu1 %v1463_v12  ;;  %1821 = vmatprep.subr.bf16.mxu0 %v1396_v14  ;;  %v1271_v12 = vld [vmem:[%s4760_s5 + $0xdb0] sm:$0xff]  ;;  %v1132_v14 = vld [vmem:[%s4760_s5 + $0x958] sm:$0xff] }
 0x1bf   :  { %1862 = vmatprep.subr.bf16.mxu1 %v1460_v35  ;;  %v1264_v35 = vld [vmem:[%s4760_s5 + $0xd78] sm:$0xff]  ;;  %v1571_v21 = vpack.c.bf16 %v1271_v12, %v1267_v10  ;;  %v1504_v2 = vpack.c.bf16 %v1136_v17, %v1132_v14  ;;  %v1255_v46 = vld [vmem:[%s4760_s5 + $0xd30] sm:$0xff] }
 0x1c0   :  { %v1563_v54 = vpack.c.bf16 %v1255_v46, %v1251_v44  ;;  %v1119_v57 = vld [vmem:[%s4760_s5 + $0x8f0] sm:$0xff] }
 0x1c1   :  { %1822 = vmatpush2.bf16.msra.mxu0 %v1395_v27  ;;  %v1124_v27 = vld [vmem:[%s4760_s5 + $0x918] sm:$0xff]  ;;  %v1243_v58 = vld [vmem:[%s4760_s5 + $0xcd0] sm:$0xff] }
 0x1c2   :  { %1863 = vmatpush2.bf16.msra.mxu1 %v1459_v0  ;;  %1823 = vmatprep.subr.bf16.mxu0 %v1392_v28  ;;  %v1128_v0 = vld [vmem:[%s4760_s5 + $0x938] sm:$0xff]  ;;  %v1247_v13 = vld [vmem:[%s4760_s5 + $0xcf0] sm:$0xff] }
 0x1c3   :  { %1864 = vmatprep.subr.bf16.mxu1 %v1456_v37  ;;  %v1252_v28 = vld [vmem:[%s4760_s5 + $0xd18] sm:$0xff]  ;;  %v1500_v36 = vpack.c.bf16 %v1128_v0, %v1124_v27  ;;  %v1123_v37 = vld [vmem:[%s4760_s5 + $0x910] sm:$0xff]  ;;  %v1559_v1 = vpack.c.bf16 %v1247_v13, %v1243_v58 }
 0x1c4   :  { %v1499_v52 = vpack.c.bf16 %v1127_v38, %v1123_v37  ;;  %v1107_v22 = vld [vmem:[%s4760_s5 + $0x890] sm:$0xff] }
 0x1c5   :  { %1824 = vmatpush2.bf16.msra.mxu0 %v1391_v49  ;;  %v1120_v49 = vld [vmem:[%s4760_s5 + $0x8f8] sm:$0xff]  ;;  %v1111_v33 = vld [vmem:[%s4760_s5 + $0x8b0] sm:$0xff] }
 0x1c6   :  { %1865 = vmatpush2.bf16.msra.mxu1 %v1455_v50  ;;  %1825 = vmatprep.subr.bf16.mxu0 %v1388_v51  ;;  %v1244_v50 = vld [vmem:[%s4760_s5 + $0xcd8] sm:$0xff]  ;;  %v1496_v55 = vpack.c.bf16 %v1120_v49, %v1116_v48  ;;  %v1235_v3 = vld [vmem:[%s4760_s5 + $0xc90] sm:$0xff]  ;;  %v1491_v9 = vpack.c.bf16 %v1111_v33, %v1107_v22 }
 0x1c7   :  { %1866 = vmatprep.subr.bf16.mxu1 %v1452_v56  ;;  %v1248_v51 = vld [vmem:[%s4760_s5 + $0xcf8] sm:$0xff]  ;;  %v1115_v56 = vld [vmem:[%s4760_s5 + $0x8d0] sm:$0xff] }
 0x1c8   :  { %v1560_v59 = vpack.c.bf16 %v1248_v51, %v1244_v50  ;;  %v1495_v63 = vpack.c.bf16 %v1119_v57, %v1115_v56  ;;  %v1099_v12 = vld [vmem:[%s4760_s5 + $0x850] sm:$0xff]  ;;  %v1204_v51 = vld [vmem:[%s4760_s5 + $0xb98] sm:$0xff] }
 0x1c9   :  { %1826 = vmatpush2.bf16.msra.mxu0 %v1387_v61  ;;  %v1112_v61 = vld [vmem:[%s4760_s5 + $0x8b8] sm:$0xff]  ;;  %v1103_v14 = vld [vmem:[%s4760_s5 + $0x870] sm:$0xff] }
 0x1ca   :  { %1867 = vmatpush2.bf16.msra.mxu1 %v1451_v62  ;;  %1877 = vmatprep.subr.bf16.mxu0 %v1512_v16  ;;  %v1236_v62 = vld [vmem:[%s4760_s5 + $0xc98] sm:$0xff]  ;;  %v1227_v17 = vld [vmem:[%s4760_s5 + $0xc50] sm:$0xff] }
 0x1cb   :  { %1918 = vmatprep.subr.bf16.mxu1 %v1576_v32  ;;  %v1240_v16 = vld [vmem:[%s4760_s5 + $0xcb8] sm:$0xff]  ;;  %v1492_v32 = vpack.c.bf16 %v1112_v61, %v1108_v60  ;;  %v1219_v27 = vld [vmem:[%s4760_s5 + $0xc10] sm:$0xff] }
 0x1cc   :  { %1828 = vmatmul.mubr.bf16.vlgmr.msra.gmra.mxu0 %v3567_v15  ;;  %v1131_v15 = vld [vmem:[%s4760_s5 + $0x950] sm:$0xff]  ;;  %v1556_v4 = vpack.c.bf16 %v1240_v16, %v1236_v62  ;;  %v1196_v16 = vld [vmem:[%s4760_s5 + $0xb58] sm:$0xff] }
 0x1cd   :  { %1869 = vmatmul.mubr.bf16.vlgmr.msra.gmra.mxu1 %v3580_v25  ;;  %1878 = vmatpush1.bf16.msra.mxu0 %v1511_v5  ;;  %v1568_v25 = vpack.c.bf16 %v1264_v35, %v1260_v18  ;;  %v1503_v29 = vpack.c.bf16 %v1135_v24, %v1131_v15  ;;  %v1239_v5 = vld [vmem:[%s4760_s5 + $0xcb0] sm:$0xff]  ;;  %v1092_v35 = vld [vmem:[%s4760_s5 + $0x818] sm:$0xff]  ;;  %v1487_v15 = vpack.c.bf16 %v1103_v14, %v1099_v12 }
 0x1ce   :  { %1909 = vmatprep.mubr.bf16.mxu0 %v3783_v47  ;;  %1919 = vmatpush1.bf16.msra.mxu1 %v1575_v34  ;;  %v1263_v47 = vld [vmem:[%s4760_s5 + $0xd70] sm:$0xff]  ;;  %v1228_v34 = vld [vmem:[%s4760_s5 + $0xc58] sm:$0xff]  ;;  %v1555_v10 = vpack.c.bf16 %v1239_v5, %v1235_v3 }
 0x1cf   :  { %1950 = vmatprep.mubr.bf16.mxu1 %v3785_v43  ;;  %1879 = vmatprep.subr.bf16.mxu0 %v1508_v11  ;;  %v1256_v43 = vld [vmem:[%s4760_s5 + $0xd38] sm:$0xff]  ;;  %v1567_v31 = vpack.c.bf16 %v1263_v47, %v1259_v26  ;;  %v1488_v11 = vpack.c.bf16 %v1104_v7, %v1100_v6  ;;  %v1231_v18 = vld [vmem:[%s4760_s5 + $0xc70] sm:$0xff] }
 0x1d0   :  { %1920 = vmatprep.subr.bf16.mxu1 %v1572_v23  ;;  %v1564_v45 = vpack.c.bf16 %v1256_v43, %v1252_v28  ;;  %v1552_v23 = vpack.c.bf16 %v1232_v8, %v1228_v34  ;;  %v1551_v24 = vpack.c.bf16 %v1231_v18, %v1227_v17  ;;  %v1095_v47 = vld [vmem:[%s4760_s5 + $0x830] sm:$0xff]  ;;  %v1212_v43 = vld [vmem:[%s4760_s5 + $0xbd8] sm:$0xff] }
 0x1d1   :  { %1880 = vmatpush1.bf16.msra.mxu0 %v1507_v20  ;;  %v1096_v20 = vld [vmem:[%s4760_s5 + $0x838] sm:$0xff]  ;;  %v1223_v28 = vld [vmem:[%s4760_s5 + $0xc30] sm:$0xff] }
 0x1d2   :  { %1921 = vmatpush1.bf16.msra.mxu1 %v1571_v21  ;;  %1881 = vmatprep.subr.bf16.mxu0 %v1504_v2  ;;  %v1220_v21 = vld [vmem:[%s4760_s5 + $0xc18] sm:$0xff]  ;;  %v1484_v26 = vpack.c.bf16 %v1096_v20, %v1092_v35  ;;  %v1547_v38 = vpack.c.bf16 %v1223_v28, %v1219_v27  ;;  %v1215_v46 = vld [vmem:[%s4760_s5 + $0xbf0] sm:$0xff] }
 0x1d3   :  { %1922 = vmatprep.subr.bf16.mxu1 %v1568_v25  ;;  %v1224_v2 = vld [vmem:[%s4760_s5 + $0xc38] sm:$0xff]  ;;  %v1091_v25 = vld [vmem:[%s4760_s5 + $0x810] sm:$0xff] }
 0x1d4   :  { %v1548_v0 = vpack.c.bf16 %v1224_v2, %v1220_v21  ;;  %v1483_v37 = vpack.c.bf16 %v1095_v47, %v1091_v25  ;;  %v1339_v48 = vld [vmem:[%s4760_s5 + $0xfd0] sm:$0xff]  ;;  %v1188_v8 = vld [vmem:[%s4760_s5 + $0xb18] sm:$0xff] }
 0x1d5   :  { %1882 = vmatpush1.bf16.msra.mxu0 %v1503_v29  ;;  %v1216_v29 = vld [vmem:[%s4760_s5 + $0xbf8] sm:$0xff]  ;;  %v1343_v50 = vld [vmem:[%s4760_s5 + $0xff0] sm:$0xff] }
 0x1d6   :  { %1923 = vmatpush1.bf16.msra.mxu1 %v1567_v31  ;;  %1883 = vmatprep.subr.bf16.mxu0 %v1500_v36  ;;  %v1340_v31 = vld [vmem:[%s4760_s5 + $0xfd8] sm:$0xff]  ;;  %v1544_v44 = vpack.c.bf16 %v1216_v29, %v1212_v43  ;;  %v1607_v57 = vpack.c.bf16 %v1343_v50, %v1339_v48  ;;  %v1207_v13 = vld [vmem:[%s4760_s5 + $0xbb0] sm:$0xff] }
 0x1d7   :  { %1924 = vmatprep.subr.bf16.mxu1 %v1564_v45  ;;  %v1344_v36 = vld [vmem:[%s4760_s5 + $0xff8] sm:$0xff]  ;;  %v1211_v45 = vld [vmem:[%s4760_s5 + $0xbd0] sm:$0xff] }
 0x1d8   :  { %v1608_v49 = vpack.c.bf16 %v1344_v36, %v1340_v31  ;;  %v1543_v56 = vpack.c.bf16 %v1215_v46, %v1211_v45  ;;  %v1331_v60 = vld [vmem:[%s4760_s5 + $0xf90] sm:$0xff]  ;;  %v1180_v2 = vld [vmem:[%s4760_s5 + $0xad8] sm:$0xff] }
 0x1d9   :  { %1884 = vmatpush1.bf16.msra.mxu0 %v1499_v52  ;;  %v1208_v52 = vld [vmem:[%s4760_s5 + $0xbb8] sm:$0xff]  ;;  %v1335_v62 = vld [vmem:[%s4760_s5 + $0xfb0] sm:$0xff] }
 0x1da   :  { %1925 = vmatpush1.bf16.msra.mxu1 %v1563_v54  ;;  %1885 = vmatprep.subr.bf16.mxu0 %v1496_v55  ;;  %v1332_v54 = vld [vmem:[%s4760_s5 + $0xf98] sm:$0xff]  ;;  %v1540_v58 = vpack.c.bf16 %v1208_v52, %v1204_v51  ;;  %v1603_v33 = vpack.c.bf16 %v1335_v62, %v1331_v60  ;;  %v1199_v5 = vld [vmem:[%s4760_s5 + $0xb70] sm:$0xff] }
 0x1db   :  { %1926 = vmatprep.subr.bf16.mxu1 %v1560_v59  ;;  %v1336_v55 = vld [vmem:[%s4760_s5 + $0xfb8] sm:$0xff]  ;;  %v1203_v59 = vld [vmem:[%s4760_s5 + $0xb90] sm:$0xff] }
 0x1dc   :  { %v1604_v61 = vpack.c.bf16 %v1336_v55, %v1332_v54  ;;  %v1539_v22 = vpack.c.bf16 %v1207_v13, %v1203_v59  ;;  %v1323_v6 = vld [vmem:[%s4760_s5 + $0xf50] sm:$0xff]  ;;  %v1172_v36 = vld [vmem:[%s4760_s5 + $0xa98] sm:$0xff] }
 0x1dd   :  { %1886 = vmatpush1.bf16.msra.mxu0 %v1495_v63  ;;  %v1200_v63 = vld [vmem:[%s4760_s5 + $0xb78] sm:$0xff]  ;;  %v1327_v34 = vld [vmem:[%s4760_s5 + $0xf70] sm:$0xff] }
 0x1de   :  { %1927 = vmatpush1.bf16.msra.mxu1 %v1559_v1  ;;  %1887 = vmatprep.subr.bf16.mxu0 %v1492_v32  ;;  %v1324_v1 = vld [vmem:[%s4760_s5 + $0xf58] sm:$0xff]  ;;  %v1536_v3 = vpack.c.bf16 %v1200_v63, %v1196_v16  ;;  %v1599_v14 = vpack.c.bf16 %v1327_v34, %v1323_v6  ;;  %v1191_v18 = vld [vmem:[%s4760_s5 + $0xb30] sm:$0xff] }
 0x1df   :  { %1928 = vmatprep.subr.bf16.mxu1 %v1556_v4  ;;  %v1328_v32 = vld [vmem:[%s4760_s5 + $0xf78] sm:$0xff]  ;;  %v1195_v4 = vld [vmem:[%s4760_s5 + $0xb50] sm:$0xff] }
 0x1e0   :  { %v1600_v7 = vpack.c.bf16 %v1328_v32, %v1324_v1  ;;  %v1535_v12 = vpack.c.bf16 %v1199_v5, %v1195_v4  ;;  %v1315_v35 = vld [vmem:[%s4760_s5 + $0xf10] sm:$0xff]  ;;  %v1164_v55 = vld [vmem:[%s4760_s5 + $0xa58] sm:$0xff] }
 0x1e1   :  { %1888 = vmatpush1.bf16.msra.mxu0 %v1491_v9  ;;  %v1192_v9 = vld [vmem:[%s4760_s5 + $0xb38] sm:$0xff]  ;;  %v1319_v21 = vld [vmem:[%s4760_s5 + $0xf30] sm:$0xff] }
 0x1e2   :  { %1929 = vmatpush1.bf16.msra.mxu1 %v1555_v10  ;;  %1889 = vmatprep.subr.bf16.mxu0 %v1488_v11  ;;  %v1316_v10 = vld [vmem:[%s4760_s5 + $0xf18] sm:$0xff]  ;;  %v1532_v17 = vpack.c.bf16 %v1192_v9, %v1188_v8  ;;  %v1595_v47 = vpack.c.bf16 %v1319_v21, %v1315_v35  ;;  %v1183_v28 = vld [vmem:[%s4760_s5 + $0xaf0] sm:$0xff]  ;;  %v1992_v21 = vld [vmem:[#allocation2 + $0xe8] sm:$0xff] }
 0x1e3   :  { %1930 = vmatprep.subr.bf16.mxu1 %v1552_v23  ;;  %v1320_v11 = vld [vmem:[%s4760_s5 + $0xf38] sm:$0xff]  ;;  %v1187_v23 = vld [vmem:[%s4760_s5 + $0xb10] sm:$0xff] }
 0x1e4   :  { %v1596_v20 = vpack.c.bf16 %v1320_v11, %v1316_v10  ;;  %v1531_v25 = vpack.c.bf16 %v1191_v18, %v1187_v23  ;;  %v1307_v43 = vld [vmem:[%s4760_s5 + $0xed0] sm:$0xff]  ;;  %v1156_v32 = vld [vmem:[%s4760_s5 + $0xa18] sm:$0xff] }
 0x1e5   :  { %1890 = vmatpush1.bf16.msra.mxu0 %v1487_v15  ;;  %v1184_v15 = vld [vmem:[%s4760_s5 + $0xaf8] sm:$0xff]  ;;  %v1311_v31 = vld [vmem:[%s4760_s5 + $0xef0] sm:$0xff] }
 0x1e6   :  { %1931 = vmatpush1.bf16.msra.mxu1 %v1551_v24  ;;  %1891 = vmatprep.subr.bf16.mxu0 %v1484_v26  ;;  %v1308_v24 = vld [vmem:[%s4760_s5 + $0xed8] sm:$0xff]  ;;  %v1528_v27 = vpack.c.bf16 %v1184_v15, %v1180_v2  ;;  %v1591_v46 = vpack.c.bf16 %v1311_v31, %v1307_v43  ;;  %v1175_v50 = vld [vmem:[%s4760_s5 + $0xab0] sm:$0xff] }
 0x1e7   :  { %1932 = vmatprep.subr.bf16.mxu1 %v1548_v0  ;;  %v1312_v26 = vld [vmem:[%s4760_s5 + $0xef8] sm:$0xff]  ;;  %v1179_v0 = vld [vmem:[%s4760_s5 + $0xad0] sm:$0xff] }
 0x1e8   :  { %v1592_v29 = vpack.c.bf16 %v1312_v26, %v1308_v24  ;;  %v1527_v45 = vpack.c.bf16 %v1183_v28, %v1179_v0  ;;  %v1299_v51 = vld [vmem:[%s4760_s5 + $0xe90] sm:$0xff]  ;;  %v1978_v35 = vld [vmem:[#allocation2 + $0x78] sm:$0xff]  ;;  %v1975_v24 = vld [vmem:[#allocation2 + $0x60] sm:$0xff] }
 0x1e9   :  { %1892 = vmatpush1.bf16.msra.mxu0 %v1483_v37  ;;  %v1176_v37 = vld [vmem:[%s4760_s5 + $0xab8] sm:$0xff]  ;;  %v1303_v54 = vld [vmem:[%s4760_s5 + $0xeb0] sm:$0xff]  ;;  %v1976_v26 = vld [vmem:[#allocation2 + $0x68] sm:$0xff] }
 0x1ea   :  { %1933 = vmatpush1.bf16.msra.mxu1 %v1547_v38  ;;  %1893 = vmatprep.subr.bf16.mxu0 %v1544_v44  ;;  %v1300_v38 = vld [vmem:[%s4760_s5 + $0xe98] sm:$0xff]  ;;  %v1524_v48 = vpack.c.bf16 %v1176_v37, %v1172_v36  ;;  %v1587_v13 = vpack.c.bf16 %v1303_v54, %v1299_v51  ;;  %v1167_v62 = vld [vmem:[%s4760_s5 + $0xa70] sm:$0xff]  ;;  %v2037_v28 = vpack.c.bf16 %v1976_v26, %v1975_v24 }
 0x1eb   :  { %1934 = vmatprep.subr.bf16.mxu1 %v1608_v49  ;;  %v1304_v44 = vld [vmem:[%s4760_s5 + $0xeb8] sm:$0xff]  ;;  %v1171_v49 = vld [vmem:[%s4760_s5 + $0xa90] sm:$0xff] }
 0x1ec   :  { %v1588_v52 = vpack.c.bf16 %v1304_v44, %v1300_v38  ;;  %v1523_v59 = vpack.c.bf16 %v1175_v50, %v1171_v49  ;;  %v1291_v16 = vld [vmem:[%s4760_s5 + $0xe50] sm:$0xff]  ;;  %v1974_v36 = vld [vmem:[#allocation2 + $0x58] sm:$0xff]  ;;  %v1987_v38 = vld [vmem:[#allocation2 + $0xc0] sm:$0xff] }
 0x1ed   :  { %1894 = vmatpush2.bf16.msra.mxu0 %v1543_v56  ;;  %v1168_v56 = vld [vmem:[%s4760_s5 + $0xa78] sm:$0xff]  ;;  %v1295_v1 = vld [vmem:[%s4760_s5 + $0xe70] sm:$0xff]  ;;  %v1988_v44 = vld [vmem:[#allocation2 + $0xc8] sm:$0xff] }
 0x1ee   :  { %1935 = vmatpush2.bf16.msra.mxu1 %v1607_v57  ;;  %1895 = vmatprep.subr.bf16.mxu0 %v1540_v58  ;;  %v1292_v57 = vld [vmem:[%s4760_s5 + $0xe58] sm:$0xff]  ;;  %v1520_v60 = vpack.c.bf16 %v1168_v56, %v1164_v55  ;;  %v1583_v5 = vpack.c.bf16 %v1295_v1, %v1291_v16  ;;  %v1159_v34 = vld [vmem:[%s4760_s5 + $0xa30] sm:$0xff]  ;;  %v2043_v49 = vpack.c.bf16 %v1988_v44, %v1987_v38  ;;  %v1972_v50 = vld [vmem:[#allocation2 + $0x48] sm:$0xff] }
 0x1ef   :  { %1936 = vmatprep.subr.bf16.mxu1 %v1604_v61  ;;  %v1296_v58 = vld [vmem:[%s4760_s5 + $0xe78] sm:$0xff]  ;;  %v1163_v61 = vld [vmem:[%s4760_s5 + $0xa50] sm:$0xff]  ;;  %v2008_v1 = vld [vmem:[#allocation2 + $0x168] sm:$0xff] }
 0x1f0   :  { %v1584_v63 = vpack.c.bf16 %v1296_v58, %v1292_v57  ;;  %v1519_v4 = vpack.c.bf16 %v1167_v62, %v1163_v61  ;;  %v1283_v8 = vld [vmem:[%s4760_s5 + $0xe10] sm:$0xff]  ;;  %v2026_v56 = vld [vmem:[#allocation2 + $0x1f8] sm:$0xff] }
 0x1f1   :  { %1896 = vmatpush2.bf16.msra.mxu0 %v1539_v22  ;;  %v1160_v22 = vld [vmem:[%s4760_s5 + $0xa38] sm:$0xff]  ;;  %v1287_v10 = vld [vmem:[%s4760_s5 + $0xe30] sm:$0xff] }
 0x1f2   :  { %1937 = vmatpush2.bf16.msra.mxu1 %v1603_v33  ;;  %1897 = vmatprep.subr.bf16.mxu0 %v1536_v3  ;;  %v1284_v33 = vld [vmem:[%s4760_s5 + $0xe18] sm:$0xff]  ;;  %v1516_v6 = vpack.c.bf16 %v1160_v22, %v1156_v32  ;;  %v1993_v11 = vld [vmem:[#allocation2 + $0xf0] sm:$0xff] }
 0x1f3   :  { %1938 = vmatprep.subr.bf16.mxu1 %v1600_v7  ;;  %v1288_v3 = vld [vmem:[%s4760_s5 + $0xe38] sm:$0xff]  ;;  %v1155_v7 = vld [vmem:[%s4760_s5 + $0xa10] sm:$0xff] }
 0x1f4   :  { %v1580_v9 = vpack.c.bf16 %v1288_v3, %v1284_v33  ;;  %v1977_v18 = vld [vmem:[#allocation2 + $0x70] sm:$0xff]  ;;  %v1970_v3 = vld [vmem:[#allocation2 + $0x38] sm:$0xff] }
 0x1f5   :  { %1898 = vmatpush2.bf16.msra.mxu0 %v1535_v12  ;;  %v1994_v12 = vld [vmem:[#allocation2 + $0xf8] sm:$0xff]  ;;  %v2038_v2 = vpack.c.bf16 %v1978_v35, %v1977_v18  ;;  %v1973_v31 = vld [vmem:[#allocation2 + $0x50] sm:$0xff] }
 0x1f6   :  { %1939 = vmatpush2.bf16.msra.mxu1 %v1599_v14  ;;  %1899 = vmatprep.subr.bf16.mxu0 %v1532_v17  ;;  %v1515_v14 = vpack.c.bf16 %v1159_v34, %v1155_v7  ;;  %v1579_v17 = vpack.c.bf16 %v1287_v10, %v1283_v8  ;;  %v2046_v23 = vpack.c.bf16 %v1994_v12, %v1993_v11  ;;  %v1985_v51 = vld [vmem:[#allocation2 + $0xb0] sm:$0xff]  ;;  %v2019_v11 = vld [vmem:[#allocation2 + $0x1c0] sm:$0xff]  ;;  %v2020_v12 = vld [vmem:[#allocation2 + $0x1c8] sm:$0xff] }
 0x1f7   :  { %1940 = vmatprep.subr.bf16.mxu1 %v1596_v20  ;;  %v1991_v20 = vld [vmem:[#allocation2 + $0xe0] sm:$0xff]  ;;  %v2025_v55 = vld [vmem:[#allocation2 + $0x1f0] sm:$0xff]  ;;  %v1982_v35 = vld [vmem:[#allocation2 + $0x98] sm:$0xff] }
 0x1f8   :  { %v2045_v15 = vpack.c.bf16 %v1992_v21, %v1991_v20  ;;  %v2009_v57 = vld [vmem:[#allocation2 + $0x170] sm:$0xff]  ;;  %v2062_v58 = vpack.c.bf16 %v2026_v56, %v2025_v55  ;;  %v2059_v21 = vpack.c.bf16 %v2020_v12, %v2019_v11  ;;  %v2011_v12 = vld [vmem:[#allocation2 + $0x180] sm:$0xff] }
 0x1f9   :  { %1900 = vmatpush2.bf16.msra.mxu0 %v1531_v25  ;;  %v1989_v25 = vld [vmem:[#allocation2 + $0xd0] sm:$0xff] }
 0x1fa   :  { %1941 = vmatpush2.bf16.msra.mxu1 %v1595_v47  ;;  %1901 = vmatprep.subr.bf16.mxu0 %v1528_v27  ;;  %v1990_v47 = vld [vmem:[#allocation2 + $0xd8] sm:$0xff]  ;;  %v2021_v32 = vld [vmem:[#allocation2 + $0x1d0] sm:$0xff] }
 0x1fb   :  { %1942 = vmatprep.subr.bf16.mxu1 %v1592_v29  ;;  %v2044_v29 = vpack.c.bf16 %v1990_v47, %v1989_v25  ;;  %v1969_v33 = vld [vmem:[#allocation2 + $0x30] sm:$0xff]  ;;  %v2018_v25 = vld [vmem:[#allocation2 + $0x1b8] sm:$0xff] }
 0x1fc   :  { %v2005_v8 = vld [vmem:[#allocation2 + $0x150] sm:$0xff]  ;;  %v2034_v10 = vpack.c.bf16 %v1970_v3, %v1969_v33  ;;  %v2014_v3 = vld [vmem:[#allocation2 + $0x198] sm:$0xff] }
 0x1fd   :  { %1902 = vmatpush2.bf16.msra.mxu0 %v1527_v45  ;;  %v1981_v18 = vld [vmem:[#allocation2 + $0x90] sm:$0xff] }
 0x1fe   :  { %1943 = vmatpush2.bf16.msra.mxu1 %v1591_v46  ;;  %1903 = vmatprep.subr.bf16.mxu0 %v1524_v48  ;;  %v2036_v46 = vpack.c.bf16 %v1974_v36, %v1973_v31  ;;  %v1971_v48 = vld [vmem:[#allocation2 + $0x40] sm:$0xff]  ;;  %v2017_v26 = vld [vmem:[#allocation2 + $0x1b0] sm:$0xff]  ;;  %v2040_v47 = vpack.c.bf16 %v1982_v35, %v1981_v18  ;;  %v1980_v36 = vld [vmem:[#allocation2 + $0x88] sm:$0xff] }
 0x1ff   :  { %1944 = vmatprep.subr.bf16.mxu1 %v1588_v52  ;;  %v1986_v52 = vld [vmem:[#allocation2 + $0xb8] sm:$0xff]  ;;  %v2035_v61 = vpack.c.bf16 %v1972_v50, %v1971_v48  ;;  %v1979_v31 = vld [vmem:[#allocation2 + $0x80] sm:$0xff]  ;;  %v2058_v44 = vpack.c.bf16 %v2018_v25, %v2017_v26  ;;  %v1996_v18 = vld [vmem:[#allocation2 + $0x108] sm:$0xff] }
 0x200   :  { %v2042_v22 = vpack.c.bf16 %v1986_v52, %v1985_v51  ;;  %v2039_v48 = vpack.c.bf16 %v1980_v36, %v1979_v31  ;;  %v1609_v52 = vld [vmem:[%s4761_s6] sm:$0xf] }
 0x201   :  { %1904 = vmatpush2.bf16.msra.mxu0 %v1523_v59  ;;  %v2010_v59 = vld [vmem:[#allocation2 + $0x178] sm:$0xff]  ;;  %v1618_v55 = vrot.slane %v1609_v52, %v783_v41  ;;  %v1622_v31 = vrot.slane %v1609_v52, %v787_v40  ;;  %v1626_v36 = vrot.slane %v1609_v52, %v791_v53 }
 0x202   :  { %1945 = vmatpush2.bf16.msra.mxu1 %v1587_v13  ;;  %1905 = vmatprep.subr.bf16.mxu0 %v1520_v60  ;;  %v2023_v13 = vld [vmem:[#allocation2 + $0x1e0] sm:$0xff]  ;;  %v2024_v60 = vld [vmem:[#allocation2 + $0x1e8] sm:$0xff]  ;;  %v2054_v62 = vpack.c.bf16 %v2010_v59, %v2009_v57 }
 0x203   :  { %1946 = vmatprep.subr.bf16.mxu1 %v1584_v63  ;;  %v2061_v16 = vpack.c.bf16 %v2024_v60, %v2023_v13  ;;  %v2007_v63 = vld [vmem:[#allocation2 + $0x160] sm:$0xff]  ;;  %v2016_v13 = vld [vmem:[#allocation2 + $0x1a8] sm:$0xff] }
 0x204   :  { %v2053_v7 = vpack.c.bf16 %v2008_v1, %v2007_v63  ;;  %v2015_v59 = vld [vmem:[#allocation2 + $0x1a0] sm:$0xff] }
 0x205   :  { %1906 = vmatpush2.bf16.msra.mxu0 %v1519_v4  ;;  %v2022_v4 = vld [vmem:[#allocation2 + $0x1d8] sm:$0xff] }
 0x206   :  { %1947 = vmatpush2.bf16.msra.mxu1 %v1583_v5  ;;  %1907 = vmatprep.subr.bf16.mxu0 %v1516_v6  ;;  %v1983_v5 = vld [vmem:[#allocation2 + $0xa0] sm:$0xff]  ;;  %v1984_v6 = vld [vmem:[#allocation2 + $0xa8] sm:$0xff]  ;;  %v2060_v34 = vpack.c.bf16 %v2022_v4, %v2021_v32 }
 0x207   :  { %1948 = vmatprep.subr.bf16.mxu1 %v1580_v9  ;;  %v2006_v9 = vld [vmem:[#allocation2 + $0x158] sm:$0xff] }
 0x208   :  { %v2052_v20 = vpack.c.bf16 %v2006_v9, %v2005_v8 }
 0x209   :  { %1908 = vmatpush2.bf16.msra.mxu0 %v1515_v14  ;;  %v2041_v14 = vpack.c.bf16 %v1984_v6, %v1983_v5  ;;  %v1997_v5 = vld [vmem:[#allocation2 + $0x110] sm:$0xff]  ;;  %v1998_v6 = vld [vmem:[#allocation2 + $0x118] sm:$0xff] }
 0x20a   :  { %1949 = vmatpush2.bf16.msra.mxu1 %v1579_v17  ;;  %2158 = vmatprep.subr.bf16.mxu0 %v2046_v23  ;;  %v1967_v17 = vld [vmem:[#allocation2 + $0x20] sm:$0xff]  ;;  %v1968_v23 = vld [vmem:[#allocation2 + $0x28] sm:$0xff]  ;;  %v2048_v8 = vpack.c.bf16 %v1998_v6, %v1997_v5 }
 0x20b   :  { %2180 = vmatprep.subr.bf16.mxu1 %v2062_v58  ;;  %v2033_v24 = vpack.c.bf16 %v1968_v23, %v1967_v17  ;;  %v1995_v23 = vld [vmem:[#allocation2 + $0x100] sm:$0xff] }
 0x20c   :  { %1910 = vmatmul.mubr.bf16.vlgmr.msra.gmra.mxu0 %v3983_v30  ;;  %v4728_v27 = vpop.f32.mrf.mxu0 }
 0x20d   :  { %1951 = vmatmul.mubr.bf16.vlgmr.msra.gmra.mxu1 %v3994_v42  ;;  %v4731_v0 = vpop.f32.mrf.mxu1  ;;  %2159 = vmatpush3.bf16.msra.mxu0 %v2038_v2  ;;  %v2003_v2 = vld [vmem:[#allocation2 + $0x140] sm:$0xff] }
 0x20e   :  { %v4733_v43 = vpop.f32.mrf.mxu0  ;;  %2160 = vmatprep.subr.bf16.mxu0 %v2045_v15  ;;  %2181 = vmatpush3.bf16.msra.mxu1 %v2054_v62  ;;  %v2004_v15 = vld [vmem:[#allocation2 + $0x148] sm:$0xff]  ;;  %v1999_v62 = vld [vmem:[#allocation2 + $0x120] sm:$0xff] }
 0x20f   :  { %v4735_v37 = vpop.f32.mrf.mxu1  ;;  %2182 = vmatprep.subr.bf16.mxu1 %v2061_v16  ;;  %v2051_v38 = vpack.c.bf16 %v2004_v15, %v2003_v2  ;;  %v1668_v57 = vadd.f32 %v4733_v43, %v1618_v55  ;;  %v2000_v16 = vld [vmem:[#allocation2 + $0x128] sm:$0xff]  ;;  %v2013_v43 = vld [vmem:[#allocation2 + $0x190] sm:$0xff] }
 0x210   :  { %v1669_v45 = vpop.f32.mrf.mxu0  ;;  %v2056_v4 = vpack.c.bf16 %v2014_v3, %v2013_v43 }
 0x211   :  { %v1710_v30 = vpop.f32.mrf.mxu1  ;;  %2161 = vmatpush3.bf16.msra.mxu0 %v2037_v28  ;;  %v1965_v28 = vld [vmem:[#allocation2 + $0x10] sm:$0xff]  ;;  %v1709_v63 = vadd.f32 %v4735_v37, %v1668_v57 }
 0x212   :  { %v1670_v42 = vpop.f32.mrf.mxu0  ;;  %2162 = vmatprep.subr.bf16.mxu0 %v2044_v29  ;;  %2183 = vmatpush3.bf16.msra.mxu1 %v2053_v7  ;;  %v1966_v29 = vld [vmem:[#allocation2 + $0x18] sm:$0xff]  ;;  %v2001_v45 = vld [vmem:[#allocation2 + $0x130] sm:$0xff] }
 0x213   :  { %v1711_v54 = vpop.f32.mrf.mxu1  ;;  %2184 = vmatprep.subr.bf16.mxu1 %v2060_v34  ;;  %v2002_v30 = vld [vmem:[#allocation2 + $0x138] sm:$0xff]  ;;  %v1963_v42 = vld [vmem:[#allocation2] sm:$0xff] }
 0x214   :  { %v2050_v50 = vpack.c.bf16 %v2002_v30, %v2001_v45  ;;  %v1614_v54 = vrot.slane %v1609_v52, %v779_v39  ;;  %v2049_v39 = vpack.c.bf16 %v2000_v16, %v1999_v62 }
 0x215   :  { %2163 = vmatpush3.bf16.msra.mxu0 %v2036_v46  ;;  %v2032_v46 = vpack.c.bf16 %v1966_v29, %v1965_v28 }
 0x216   :  { %2164 = vmatprep.subr.bf16.mxu0 %v2043_v49  ;;  %2185 = vmatpush3.bf16.msra.mxu1 %v2052_v20  ;;  %v1964_v49 = vld [vmem:[#allocation2 + $0x8] sm:$0xff]  ;;  %v1666_v56 = vadd.f32 %v4728_v27, %v1614_v54  ;;  %v2047_v20 = vpack.c.bf16 %v1996_v18, %v1995_v23 }
 0x217   :  { %2186 = vmatprep.subr.bf16.mxu1 %v2059_v21  ;;  %v2031_v51 = vpack.c.bf16 %v1964_v49, %v1963_v42 }
 0x218   :  { %v1707_v58 = vadd.f32 %v4731_v0, %v1666_v56 }
 0x219   :  { %2165 = vmatpush3.bf16.msra.mxu0 %v2035_v61  ;;  %v2057_v61 = vpack.c.bf16 %v2016_v13, %v2015_v59 }
 0x21a   :  { %2166 = vmatprep.subr.bf16.mxu0 %v2042_v22  ;;  %2187 = vmatpush3.bf16.msra.mxu1 %v2051_v38 }
 0x21b   :  { %2188 = vmatprep.subr.bf16.mxu1 %v2058_v44 }
 0x21d   :  { %2167 = vmatpush3.bf16.msra.mxu0 %v2034_v10 }
 0x21e   :  { %2168 = vmatprep.subr.bf16.mxu0 %v2041_v14  ;;  %2189 = vmatpush3.bf16.msra.mxu1 %v2050_v50  ;;  %v2012_v14 = vld [vmem:[#allocation2 + $0x188] sm:$0xff] }
 0x21f   :  { %2190 = vmatprep.subr.bf16.mxu1 %v2057_v61  ;;  %v2055_v17 = vpack.c.bf16 %v2012_v14, %v2011_v12 }
 0x221   :  { %2169 = vmatpush3.bf16.msra.mxu0 %v2033_v24 }
 0x222   :  { %2170 = vmatprep.subr.bf16.mxu0 %v2040_v47  ;;  %2191 = vmatpush3.bf16.msra.mxu1 %v2049_v39 }
 0x223   :  { %2192 = vmatprep.subr.bf16.mxu1 %v2056_v4 }
 0x225   :  { %2171 = vmatpush3.bf16.msra.mxu0 %v2032_v46 }
 0x226   :  { %2172 = vmatprep.subr.bf16.mxu0 %v2039_v48  ;;  %2193 = vmatpush3.bf16.msra.mxu1 %v2048_v8 }
 0x227   :  { %2194 = vmatprep.subr.bf16.mxu1 %v2055_v17 }
 0x229   :  { %2173 = vmatpush3.bf16.msra.mxu0 %v2031_v51 }
 0x22a   :  { %2195 = vmatpush3.bf16.msra.mxu1 %v2047_v20 }
 0x24c   :  { %v1747_v60 = vpop.f32.mrf.mxu0 }
 0x24d   :  { %v1748_v1 = vadd.f32 %v1747_v60, %v1707_v58  ;;  %v1788_v32 = vpop.f32.mrf.mxu1 }
 0x24e   :  { %v1749_v22 = vpop.f32.mrf.mxu0 }
 0x24f   :  { %v1789_v41 = vadd.f32 %v1788_v32, %v1748_v1  ;;  %v1750_v33 = vadd.f32 %v1749_v22, %v1709_v63  ;;  %v1790_v27 = vpop.f32.mrf.mxu1  ;;  %v2157_v63 = vld [vmem:[#allocation4] ss:$0 sm:$0xff] }
 0x250   :  { %v1751_v0 = vpop.f32.mrf.mxu0 }
 0x251   :  { %v1791_v7 = vadd.f32 %v1790_v27, %v1750_v33  ;;  %v1792_v34 = vpop.f32.mrf.mxu1  ;;  %v1959_v9 = vmax.f32 %v1789_v41, 0.0 }
 0x252   :  { %v1752_v37 = vpop.f32.mrf.mxu0 }
 0x253   :  { %v1960_v10 = vmax.f32 %v1791_v7, 0.0  ;;  %v1793_v11 = vpop.f32.mrf.mxu1  ;;  %v2027_v21 = vpack.c.bf16 %v1959_v9, %v1959_v9 }
 0x255   :  { %v2028_v35 = vpack.c.bf16 %v1960_v10, %v1960_v10 }
 0x257   :  { %2102 = vmatprep.mubr.bf16.mxu0 %v2028_v35 }
 0x258   :  { %2103 = vmatmul.mubr.bf16.vlgmr.msra.gmra.mxu0 %v2027_v21 }
 0x28c   :  { %v1829_v2 = vpop.f32.mrf.mxu0 }
 0x28d   :  { %v1870_v15 = vpop.f32.mrf.mxu1  ;;  %v1830_v38 = vadd.f32 %v1829_v2, %v1622_v31 }
 0x28e   :  { %v1831_v24 = vpop.f32.mrf.mxu0 }
 0x28f   :  { %v1872_v26 = vpop.f32.mrf.mxu1  ;;  %v1832_v44 = vadd.f32 %v1831_v24, %v1626_v36  ;;  %v1871_v45 = vadd.f32 %v1870_v15, %v1830_v38 }
 0x290   :  { %v1833_v25 = vpop.f32.mrf.mxu0 }
 0x291   :  { %v1874_v47 = vpop.f32.mrf.mxu1  ;;  %v1873_v46 = vadd.f32 %v1872_v26, %v1832_v44 }
 0x292   :  { %v1834_v28 = vpop.f32.mrf.mxu0 }
 0x293   :  { %v1875_v29 = vpop.f32.mrf.mxu1 }
 0x2cc   :  { %v1911_v30 = vpop.f32.mrf.mxu0 }
 0x2cd   :  { %v1912_v48 = vadd.f32 %v1911_v30, %v1871_v45  ;;  %v1952_v42 = vpop.f32.mrf.mxu1 }
 0x2ce   :  { %v1913_v49 = vpop.f32.mrf.mxu0 }
 0x2cf   :  { %v1953_v50 = vadd.f32 %v1952_v42, %v1912_v48  ;;  %v1914_v51 = vadd.f32 %v1913_v49, %v1873_v46  ;;  %v1954_v54 = vpop.f32.mrf.mxu1 }
 0x2d0   :  { %v1915_v55 = vpop.f32.mrf.mxu0 }
 0x2d1   :  { %v1955_v56 = vadd.f32 %v1954_v54, %v1914_v51  ;;  %v1956_v57 = vpop.f32.mrf.mxu1  ;;  %v1961_v58 = vmax.f32 %v1953_v50, 0.0 }
 0x2d2   :  { %v1916_v59 = vpop.f32.mrf.mxu0 }
 0x2d3   :  { %v1962_v40 = vmax.f32 %v1955_v56, 0.0  ;;  %v1957_v13 = vpop.f32.mrf.mxu1  ;;  %v2029_v53 = vpack.c.bf16 %v1961_v58, %v1961_v58 }
 0x2d5   :  { %v2030_v19 = vpack.c.bf16 %v1962_v40, %v1962_v40 }
 0x2d7   :  { %2142 = vmatprep.mubr.bf16.mxu1 %v2030_v19 }
 0x2d8   :  { %2143 = vmatmul.mubr.bf16.vlgmr.msra.gmra.mxu1 %v2029_v53 }
 0x318   :  { %v2174_v52 = vpop.f32.mrf.mxu0 }
 0x31a   :  { %v2175_v60 = vpop.f32.mrf.mxu0 }
 0x31b   :  { %v2176_v61 = vadd.f32 %v2175_v60, %v2174_v52 }
 0x31c   :  { %v2177_v62 = vpop.f32.mrf.mxu0 }
 0x31d   :  { %v2105_v39 = vadd.f32 %v2176_v61, %v2157_v63 }
 0x31e   :  { %v2178_v16 = vpop.f32.mrf.mxu0 }
 0x398   :  { %v2196_v1 = vpop.f32.mrf.mxu1 }
 0x39a   :  { %v2197_v32 = vpop.f32.mrf.mxu1 }
 0x39b   :  { %v2198_v22 = vadd.f32 %v2197_v32, %v2196_v1 }
 0x39c   :  { %v2199_v41 = vpop.f32.mrf.mxu1 }
 0x39d   :  { %v2145_v33 = vadd.f32 %v2198_v22, %v2105_v39 }
 0x39e   :  { %v2200_v27 = vpop.f32.mrf.mxu1 }
 0x39f   :  { %2150 = vst [vmem:[%s4764_s9] sm:$0x3] %v2145_v33 }
 0x3a0   :  { %2155 = vsyncpa [#allocation3], 1 }
 0x3a1   :  { %2156 = vsyncpa [#allocation5], 1 }

</bundles_post_ra>
